<compile_context>
chip_gen: v5e
topology: v5e:2x2
jax: 0.10.0
libtpu: 0.0.40
codegen_flags: <defaults>
</compile_context>

<pallas_src>
import functools

import jax
import jax.numpy as jnp
from jax.experimental import pallas as pl
from jax.experimental.pallas import tpu as pltpu

_PADL = 8  # sublane-aligned offset of the data region inside the padded scratch


def _conv_block_kernel(x_ref, w1_ref, b1_ref, w2_ref, b2_ref, o_ref,
                       xpad_ref, hpad_ref, *, H, W, use_pn, slope, eps):
    """Fused: conv3x3+b -> leaky -> (PN) -> conv3x3+b -> leaky -> (PN).

    x_ref  : (1, H, W, Cin)        unpadded input tile (one batch element)
    w*_ref : (3, 3, C, Cout)       conv weights (HWIO), equalized-LR scale folded in
    b*_ref : (1, Cout)             bias
    o_ref  : (1, H, W, Cout)       output tile
    xpad_ref / hpad_ref : VMEM scratch (H+2, W+16, C) holding the zero-padded
                          input / intermediate activation; data lives at
                          rows [1:H+1], cols [_PADL:_PADL+W].
    """
    # Zero the scratch halos (full zero each step: cheap and correct even when
    # the batch grid axis is megacore-partitioned).
    xpad_ref[...] = jnp.zeros(xpad_ref.shape, xpad_ref.dtype)
    hpad_ref[...] = jnp.zeros(hpad_ref.shape, hpad_ref.dtype)

    # Stage the unpadded input into the zero-padded scratch (aligned store).
    xpad_ref[pl.ds(1, H), pl.ds(_PADL, W), :] = x_ref[0].astype(xpad_ref.dtype)

    def conv3x3(src_ref, w_ref, b_ref):
        """3x3 'same' conv as 9 shifted (H,W,C)x(C,Cout) MXU contractions."""
        src = src_ref[...]                                  # (H+2, W+16, C)
        cout = w_ref.shape[-1]
        acc = jnp.zeros((H, W, cout), jnp.float32)
        for kh in range(3):
            for kw in range(3):
                patch = src[kh:kh + H, _PADL - 1 + kw:_PADL - 1 + kw + W, :]
                acc = acc + jax.lax.dot_general(
                    patch, w_ref[kh, kw],
                    dimension_numbers=(((2,), (0,)), ((), ())),
                    preferred_element_type=jnp.float32)
        return acc + b_ref[0].astype(jnp.float32)

    def leaky_pn(a):
        a = jnp.where(a >= 0, a, slope * a)                 # LeakyReLU(0.2)
        if use_pn:                                          # PixelNorm over channels (lane axis)
            a = a * jax.lax.rsqrt(jnp.mean(a * a, axis=-1, keepdims=True) + eps)
        return a

    # Layer 1 (epilogue in f32); intermediate never leaves VMEM.
    h = leaky_pn(conv3x3(xpad_ref, w1_ref, b1_ref))
    hpad_ref[pl.ds(1, H), pl.ds(_PADL, W), :] = h.astype(hpad_ref.dtype)

    # Layer 2.
    y = leaky_pn(conv3x3(hpad_ref, w2_ref, b2_ref))
    o_ref[0] = y.astype(o_ref.dtype)


def conv_block_forward(x_nchw, params, use_pixelnorm=True):
    """ConvBlock forward.  Input/output in NCHW (PyTorch convention)."""
    N, Cin, H, W = x_nchw.shape

    # Fold the equalized-LR scale into the weights (exact: conv is linear).
    w1 = (params["w1"] * params["scale1"]).astype(x_nchw.dtype)   # (3,3,Cin,Cout)
    w2 = (params["w2"] * params["scale2"]).astype(x_nchw.dtype)   # (3,3,Cout,Cout)
    b1 = params["b1"].reshape(1, -1).astype(jnp.float32)
    b2 = params["b2"].reshape(1, -1).astype(jnp.float32)
    Cout = w1.shape[-1]

    # NCHW -> NHWC (channels on the lane axis).  Keep the model NHWC to skip these.
    x = jnp.transpose(x_nchw, (0, 2, 3, 1))

    kernel = functools.partial(
        _conv_block_kernel, H=H, W=W,
        use_pn=bool(use_pixelnorm), slope=0.2, eps=1e-8)

    out = pl.pallas_call(
        kernel,
        out_shape=jax.ShapeDtypeStruct((N, H, W, Cout), x.dtype),
        grid_spec=pltpu.PrefetchScalarGridSpec(
            num_scalar_prefetch=0,
            grid=(N,),
            in_specs=[
                pl.BlockSpec((1, H, W, Cin), lambda n: (n, 0, 0, 0)),
                pl.BlockSpec((3, 3, Cin, Cout), lambda n: (0, 0, 0, 0)),
                pl.BlockSpec((1, Cout), lambda n: (0, 0)),
                pl.BlockSpec((3, 3, Cout, Cout), lambda n: (0, 0, 0, 0)),
                pl.BlockSpec((1, Cout), lambda n: (0, 0)),
            ],
            out_specs=pl.BlockSpec((1, H, W, Cout), lambda n: (n, 0, 0, 0)),
            scratch_shapes=[
                pltpu.VMEM((H + 2, W + 16, Cin), x.dtype),    # padded input
                pltpu.VMEM((H + 2, W + 16, Cout), x.dtype),   # padded intermediate
            ],
        ),
        compiler_params=pltpu.CompilerParams(
            dimension_semantics=("parallel",)),
    )(x, w1, b1, w2, b2)

    return jnp.transpose(out, (0, 3, 1, 2))


def init_conv_block_params(key, in_channels, out_channels, gain=2):
    """Deterministic init matching WSConv2d.__init__:
       weight ~ N(0,1), bias = 0, scale = sqrt(gain / (Cin * 3*3))."""
    k1, k2 = jax.random.split(key)
    # PyTorch weight layout is OIHW; generate there then transpose to HWIO.
    w1_oihw = jax.random.normal(k1, (out_channels, in_channels, 3, 3), jnp.float32)
    w2_oihw = jax.random.normal(k2, (out_channels, out_channels, 3, 3), jnp.float32)
    return {
        "w1": jnp.transpose(w1_oihw, (2, 3, 1, 0)),   # (3,3,Cin,Cout)
        "b1": jnp.zeros((out_channels,), jnp.float32),
        "scale1": (gain / (in_channels * 9)) ** 0.5,
        "w2": jnp.transpose(w2_oihw, (2, 3, 1, 0)),
        "b2": jnp.zeros((out_channels,), jnp.float32),
        "scale2": (gain / (out_channels * 9)) ** 0.5,
    }


def _reference_forward(x_nchw, params, use_pixelnorm=True):
    """Plain-JAX reference (lax.conv), mirroring the PyTorch module exactly."""
    def layer(x, w_hwio, b, scale, use_pn):
        y = jax.lax.conv_general_dilated(
            x * scale, w_hwio, window_strides=(1, 1), padding=((1, 1), (1, 1)),
            dimension_numbers=("NCHW", "HWIO", "NCHW"))
        y = y + b.reshape(1, -1, 1, 1)
        y = jnp.where(y >= 0, y, 0.2 * y)
        if use_pn:
            y = y / jnp.sqrt(jnp.mean(y * y, axis=1, keepdims=True) + 1e-8)
        return y
    x = layer(x_nchw, params["w1"], params["b1"], params["scale1"], use_pixelnorm)
    x = layer(x, params["w2"], params["b2"], params["scale2"], use_pixelnorm)
    return x


if __name__ == "__main__":
    key = jax.random.PRNGKey(0)
    kx, kp = jax.random.split(key)

    N, Cin, Cout, HW = 2, 4, 8, 16
    x = jax.random.normal(kx, (N, Cin, HW, HW), jnp.float32)   # NCHW like PyTorch
    params = init_conv_block_params(kp, Cin, Cout)

    out = conv_block_forward(x, params, use_pixelnorm=True)
    out = jax.block_until_ready(out)

    ref = _reference_forward(x, params, use_pixelnorm=True)
    assert out.shape == (N, Cout, HW, HW)
    assert jnp.allclose(out, ref, atol=1e-3, rtol=1e-3)

    print("KERNEL_OK")
</pallas_src>

<mosaic_0001>
module attributes {stable_mosaic.version = 11 : i64} {
  func.func @_conv_block_kernel(%arg0: i32, %arg1: memref<1x16x16x4xf32, #tpu.memory_space<vmem>>, %arg2: memref<3x3x4x8xf32, #tpu.memory_space<vmem>>, %arg3: memref<1x8xf32, #tpu.memory_space<vmem>>, %arg4: memref<3x3x8x8xf32, #tpu.memory_space<vmem>>, %arg5: memref<1x8xf32, #tpu.memory_space<vmem>>, %arg6: memref<1x16x16x8xf32, #tpu.memory_space<vmem>>, %arg7: memref<18x32x4xf32, #tpu.memory_space<vmem>>, %arg8: memref<18x32x8xf32, #tpu.memory_space<vmem>>) attributes {dimension_semantics = [#tpu.dimension_semantics<parallel>], iteration_bounds = array<i64: 2>, scalar_prefetch = 0 : i64, scratch_operands = 2 : i64, tpu.core_type = #tpu.core_type<tc>, window_params = [{transform_indices = @transform_0, window_bounds = array<i64: 1, 16, 16, 4>}, {pipeline_mode = #tpu.pipeline_mode<synchronous>, transform_indices = @transform_1, window_bounds = array<i64: 3, 3, 4, 8>}, {pipeline_mode = #tpu.pipeline_mode<synchronous>, transform_indices = @transform_2, window_bounds = array<i64: 1, 8>}, {pipeline_mode = #tpu.pipeline_mode<synchronous>, transform_indices = @transform_3, window_bounds = array<i64: 3, 3, 8, 8>}, {pipeline_mode = #tpu.pipeline_mode<synchronous>, transform_indices = @transform_4, window_bounds = array<i64: 1, 8>}, {transform_indices = @transform_5, window_bounds = array<i64: 1, 16, 16, 8>}]} {
    %cst = arith.constant 0.000000e+00 : f32
    %0 = vector.broadcast %cst : f32 to vector<18x32x4xf32>
    %c0 = arith.constant 0 : index
    %c0_0 = arith.constant 0 : index
    %c0_1 = arith.constant 0 : index
    %1 = vector.load %arg7[%c0, %c0_0, %c0_1] : memref<18x32x4xf32, #tpu.memory_space<vmem>>, vector<18x32x4xf32>
    tpu.vector_store %arg7[%c0, %c0_0, %c0_1], %0 {strides = array<i32>} : memref<18x32x4xf32, #tpu.memory_space<vmem>>, vector<18x32x4xf32>,
    %cst_2 = arith.constant 0.000000e+00 : f32
    %2 = vector.broadcast %cst_2 : f32 to vector<18x32x8xf32>
    %c0_3 = arith.constant 0 : index
    %c0_4 = arith.constant 0 : index
    %c0_5 = arith.constant 0 : index
    %3 = vector.load %arg8[%c0_3, %c0_4, %c0_5] : memref<18x32x8xf32, #tpu.memory_space<vmem>>, vector<18x32x8xf32>
    tpu.vector_store %arg8[%c0_3, %c0_4, %c0_5], %2 {strides = array<i32>} : memref<18x32x8xf32, #tpu.memory_space<vmem>>, vector<18x32x8xf32>,
    %c0_6 = arith.constant 0 : index
    %c0_7 = arith.constant 0 : index
    %c0_8 = arith.constant 0 : index
    %c0_9 = arith.constant 0 : index
    %4 = vector.load %arg1[%c0_6, %c0_7, %c0_8, %c0_9] : memref<1x16x16x4xf32, #tpu.memory_space<vmem>>, vector<1x16x16x4xf32>
    %5 = vector.shape_cast %4 : vector<1x16x16x4xf32> to vector<16x16x4xf32>
    %c1 = arith.constant 1 : index
    %c8 = arith.constant 8 : index
    %c0_10 = arith.constant 0 : index
    %6 = vector.load %arg7[%c1, %c8, %c0_10] : memref<18x32x4xf32, #tpu.memory_space<vmem>>, vector<16x16x4xf32>
    tpu.vector_store %arg7[%c1, %c8, %c0_10], %5 {strides = array<i32>} : memref<18x32x4xf32, #tpu.memory_space<vmem>>, vector<16x16x4xf32>,
    %c0_11 = arith.constant 0 : index
    %c0_12 = arith.constant 0 : index
    %c0_13 = arith.constant 0 : index
    %7 = vector.load %arg7[%c0_11, %c0_12, %c0_13] : memref<18x32x4xf32, #tpu.memory_space<vmem>>, vector<18x32x4xf32>
    %cst_14 = arith.constant 0.000000e+00 : f32
    %8 = vector.broadcast %cst_14 : f32 to vector<16x16x8xf32>
    %9 = vector.extract_strided_slice %7 {offsets = [0, 7, 0], sizes = [16, 16, 4], strides = [1, 1, 1]} : vector<18x32x4xf32> to vector<16x16x4xf32>
    %c0_15 = arith.constant 0 : index
    %c0_16 = arith.constant 0 : index
    %c0_17 = arith.constant 0 : index
    %c0_18 = arith.constant 0 : index
    %10 = vector.load %arg2[%c0_15, %c0_16, %c0_17, %c0_18] : memref<3x3x4x8xf32, #tpu.memory_space<vmem>>, vector<1x1x4x8xf32>
    %11 = vector.shape_cast %10 : vector<1x1x4x8xf32> to vector<4x8xf32>
    %cst_19 = arith.constant dense<0.000000e+00> : vector<16x16x8xf32>
    %12 = tpu.matmul %9, %11, %cst_19 {dimension_numbers = #tpu.dot_dimension_numbers<[2], [0], [0, 1], [1], [0, 0, 0, 1, 1, 1], [], []>} : vector<16x16x4xf32>, vector<4x8xf32>, vector<16x16x8xf32> -> vector<16x16x8xf32>
    %13 = arith.addf %8, %12 : vector<16x16x8xf32>
    %14 = vector.extract_strided_slice %7 {offsets = [0, 8, 0], sizes = [16, 16, 4], strides = [1, 1, 1]} : vector<18x32x4xf32> to vector<16x16x4xf32>
    %c0_20 = arith.constant 0 : index
    %c1_21 = arith.constant 1 : index
    %c0_22 = arith.constant 0 : index
    %c0_23 = arith.constant 0 : index
    %15 = vector.load %arg2[%c0_20, %c1_21, %c0_22, %c0_23] : memref<3x3x4x8xf32, #tpu.memory_space<vmem>>, vector<1x1x4x8xf32>
    %16 = vector.shape_cast %15 : vector<1x1x4x8xf32> to vector<4x8xf32>
    %cst_24 = arith.constant dense<0.000000e+00> : vector<16x16x8xf32>
    %17 = tpu.matmul %14, %16, %cst_24 {dimension_numbers = #tpu.dot_dimension_numbers<[2], [0], [0, 1], [1], [0, 0, 0, 1, 1, 1], [], []>} : vector<16x16x4xf32>, vector<4x8xf32>, vector<16x16x8xf32> -> vector<16x16x8xf32>
    %18 = arith.addf %13, %17 : vector<16x16x8xf32>
    %19 = vector.extract_strided_slice %7 {offsets = [0, 9, 0], sizes = [16, 16, 4], strides = [1, 1, 1]} : vector<18x32x4xf32> to vector<16x16x4xf32>
    %c0_25 = arith.constant 0 : index
    %c2 = arith.constant 2 : index
    %c0_26 = arith.constant 0 : index
    %c0_27 = arith.constant 0 : index
    %20 = vector.load %arg2[%c0_25, %c2, %c0_26, %c0_27] : memref<3x3x4x8xf32, #tpu.memory_space<vmem>>, vector<1x1x4x8xf32>
    %21 = vector.shape_cast %20 : vector<1x1x4x8xf32> to vector<4x8xf32>
    %cst_28 = arith.constant dense<0.000000e+00> : vector<16x16x8xf32>
    %22 = tpu.matmul %19, %21, %cst_28 {dimension_numbers = #tpu.dot_dimension_numbers<[2], [0], [0, 1], [1], [0, 0, 0, 1, 1, 1], [], []>} : vector<16x16x4xf32>, vector<4x8xf32>, vector<16x16x8xf32> -> vector<16x16x8xf32>
    %23 = arith.addf %18, %22 : vector<16x16x8xf32>
    %24 = vector.extract_strided_slice %7 {offsets = [1, 7, 0], sizes = [16, 16, 4], strides = [1, 1, 1]} : vector<18x32x4xf32> to vector<16x16x4xf32>
    %c1_29 = arith.constant 1 : index
    %c0_30 = arith.constant 0 : index
    %c0_31 = arith.constant 0 : index
    %c0_32 = arith.constant 0 : index
    %25 = vector.load %arg2[%c1_29, %c0_30, %c0_31, %c0_32] : memref<3x3x4x8xf32, #tpu.memory_space<vmem>>, vector<1x1x4x8xf32>
    %26 = vector.shape_cast %25 : vector<1x1x4x8xf32> to vector<4x8xf32>
    %cst_33 = arith.constant dense<0.000000e+00> : vector<16x16x8xf32>
    %27 = tpu.matmul %24, %26, %cst_33 {dimension_numbers = #tpu.dot_dimension_numbers<[2], [0], [0, 1], [1], [0, 0, 0, 1, 1, 1], [], []>} : vector<16x16x4xf32>, vector<4x8xf32>, vector<16x16x8xf32> -> vector<16x16x8xf32>
    %28 = arith.addf %23, %27 : vector<16x16x8xf32>
    %29 = vector.extract_strided_slice %7 {offsets = [1, 8, 0], sizes = [16, 16, 4], strides = [1, 1, 1]} : vector<18x32x4xf32> to vector<16x16x4xf32>
    %c1_34 = arith.constant 1 : index
    %c1_35 = arith.constant 1 : index
    %c0_36 = arith.constant 0 : index
    %c0_37 = arith.constant 0 : index
    %30 = vector.load %arg2[%c1_34, %c1_35, %c0_36, %c0_37] : memref<3x3x4x8xf32, #tpu.memory_space<vmem>>, vector<1x1x4x8xf32>
    %31 = vector.shape_cast %30 : vector<1x1x4x8xf32> to vector<4x8xf32>
    %cst_38 = arith.constant dense<0.000000e+00> : vector<16x16x8xf32>
    %32 = tpu.matmul %29, %31, %cst_38 {dimension_numbers = #tpu.dot_dimension_numbers<[2], [0], [0, 1], [1], [0, 0, 0, 1, 1, 1], [], []>} : vector<16x16x4xf32>, vector<4x8xf32>, vector<16x16x8xf32> -> vector<16x16x8xf32>
    %33 = arith.addf %28, %32 : vector<16x16x8xf32>
    %34 = vector.extract_strided_slice %7 {offsets = [1, 9, 0], sizes = [16, 16, 4], strides = [1, 1, 1]} : vector<18x32x4xf32> to vector<16x16x4xf32>
    %c1_39 = arith.constant 1 : index
    %c2_40 = arith.constant 2 : index
    %c0_41 = arith.constant 0 : index
    %c0_42 = arith.constant 0 : index
    %35 = vector.load %arg2[%c1_39, %c2_40, %c0_41, %c0_42] : memref<3x3x4x8xf32, #tpu.memory_space<vmem>>, vector<1x1x4x8xf32>
    %36 = vector.shape_cast %35 : vector<1x1x4x8xf32> to vector<4x8xf32>
    %cst_43 = arith.constant dense<0.000000e+00> : vector<16x16x8xf32>
    %37 = tpu.matmul %34, %36, %cst_43 {dimension_numbers = #tpu.dot_dimension_numbers<[2], [0], [0, 1], [1], [0, 0, 0, 1, 1, 1], [], []>} : vector<16x16x4xf32>, vector<4x8xf32>, vector<16x16x8xf32> -> vector<16x16x8xf32>
    %38 = arith.addf %33, %37 : vector<16x16x8xf32>
    %39 = vector.extract_strided_slice %7 {offsets = [2, 7, 0], sizes = [16, 16, 4], strides = [1, 1, 1]} : vector<18x32x4xf32> to vector<16x16x4xf32>
    %c2_44 = arith.constant 2 : index
    %c0_45 = arith.constant 0 : index
    %c0_46 = arith.constant 0 : index
    %c0_47 = arith.constant 0 : index
    %40 = vector.load %arg2[%c2_44, %c0_45, %c0_46, %c0_47] : memref<3x3x4x8xf32, #tpu.memory_space<vmem>>, vector<1x1x4x8xf32>
    %41 = vector.shape_cast %40 : vector<1x1x4x8xf32> to vector<4x8xf32>
    %cst_48 = arith.constant dense<0.000000e+00> : vector<16x16x8xf32>
    %42 = tpu.matmul %39, %41, %cst_48 {dimension_numbers = #tpu.dot_dimension_numbers<[2], [0], [0, 1], [1], [0, 0, 0, 1, 1, 1], [], []>} : vector<16x16x4xf32>, vector<4x8xf32>, vector<16x16x8xf32> -> vector<16x16x8xf32>
    %43 = arith.addf %38, %42 : vector<16x16x8xf32>
    %44 = vector.extract_strided_slice %7 {offsets = [2, 8, 0], sizes = [16, 16, 4], strides = [1, 1, 1]} : vector<18x32x4xf32> to vector<16x16x4xf32>
    %c2_49 = arith.constant 2 : index
    %c1_50 = arith.constant 1 : index
    %c0_51 = arith.constant 0 : index
    %c0_52 = arith.constant 0 : index
    %45 = vector.load %arg2[%c2_49, %c1_50, %c0_51, %c0_52] : memref<3x3x4x8xf32, #tpu.memory_space<vmem>>, vector<1x1x4x8xf32>
    %46 = vector.shape_cast %45 : vector<1x1x4x8xf32> to vector<4x8xf32>
    %cst_53 = arith.constant dense<0.000000e+00> : vector<16x16x8xf32>
    %47 = tpu.matmul %44, %46, %cst_53 {dimension_numbers = #tpu.dot_dimension_numbers<[2], [0], [0, 1], [1], [0, 0, 0, 1, 1, 1], [], []>} : vector<16x16x4xf32>, vector<4x8xf32>, vector<16x16x8xf32> -> vector<16x16x8xf32>
    %48 = arith.addf %43, %47 : vector<16x16x8xf32>
    %49 = vector.extract_strided_slice %7 {offsets = [2, 9, 0], sizes = [16, 16, 4], strides = [1, 1, 1]} : vector<18x32x4xf32> to vector<16x16x4xf32>
    %c2_54 = arith.constant 2 : index
    %c2_55 = arith.constant 2 : index
    %c0_56 = arith.constant 0 : index
    %c0_57 = arith.constant 0 : index
    %50 = vector.load %arg2[%c2_54, %c2_55, %c0_56, %c0_57] : memref<3x3x4x8xf32, #tpu.memory_space<vmem>>, vector<1x1x4x8xf32>
    %51 = vector.shape_cast %50 : vector<1x1x4x8xf32> to vector<4x8xf32>
    %cst_58 = arith.constant dense<0.000000e+00> : vector<16x16x8xf32>
    %52 = tpu.matmul %49, %51, %cst_58 {dimension_numbers = #tpu.dot_dimension_numbers<[2], [0], [0, 1], [1], [0, 0, 0, 1, 1, 1], [], []>} : vector<16x16x4xf32>, vector<4x8xf32>, vector<16x16x8xf32> -> vector<16x16x8xf32>
    %53 = arith.addf %48, %52 : vector<16x16x8xf32>
    %c0_59 = arith.constant 0 : index
    %c0_60 = arith.constant 0 : index
    %54 = vector.load %arg3[%c0_59, %c0_60] : memref<1x8xf32, #tpu.memory_space<vmem>>, vector<1x8xf32>
    %55 = vector.shape_cast %54 : vector<1x8xf32> to vector<8xf32>
    %56 = vector.shape_cast %55 : vector<8xf32> to vector<1x1x8xf32>
    %57 = vector.broadcast %56 : vector<1x1x8xf32> to vector<16x16x8xf32>
    %58 = arith.addf %53, %57 : vector<16x16x8xf32>
    %cst_61 = arith.constant 0.000000e+00 : f32
    %59 = vector.broadcast %cst_61 : f32 to vector<16x16x8xf32>
    %60 = arith.cmpf oge, %58, %59 : vector<16x16x8xf32>
    %cst_62 = arith.constant 2.000000e-01 : f32
    %61 = vector.broadcast %cst_62 : f32 to vector<16x16x8xf32>
    %62 = arith.mulf %61, %58 : vector<16x16x8xf32>
    %63 = arith.select %60, %58, %62 : vector<16x16x8xi1>, vector<16x16x8xf32>
    %64 = arith.mulf %63, %63 : vector<16x16x8xf32>
    %cst_63 = arith.constant dense<0.000000e+00> : vector<16x16xf32>
    %65 = vector.multi_reduction <add>, %64, %cst_63 [2] : vector<16x16x8xf32> to vector<16x16xf32>
    %66 = vector.shape_cast %65 : vector<16x16xf32> to vector<16x16x1xf32>
    %cst_64 = arith.constant 8.000000e+00 : f32
    %67 = vector.broadcast %cst_64 : f32 to vector<16x16x1xf32>
    %68 = arith.divf %66, %67 : vector<16x16x1xf32>
    %cst_65 = arith.constant 9.99999993E-9 : f32
    %69 = vector.broadcast %cst_65 : f32 to vector<16x16x1xf32>
    %70 = arith.addf %68, %69 : vector<16x16x1xf32>
    %71 = math.rsqrt %70 : vector<16x16x1xf32>
    %72 = vector.broadcast %71 : vector<16x16x1xf32> to vector<16x16x8xf32>
    %73 = arith.mulf %63, %72 : vector<16x16x8xf32>
    %c1_66 = arith.constant 1 : index
    %c8_67 = arith.constant 8 : index
    %c0_68 = arith.constant 0 : index
    %74 = vector.load %arg8[%c1_66, %c8_67, %c0_68] : memref<18x32x8xf32, #tpu.memory_space<vmem>>, vector<16x16x8xf32>
    tpu.vector_store %arg8[%c1_66, %c8_67, %c0_68], %73 {strides = array<i32>} : memref<18x32x8xf32, #tpu.memory_space<vmem>>, vector<16x16x8xf32>,
    %c0_69 = arith.constant 0 : index
    %c0_70 = arith.constant 0 : index
    %c0_71 = arith.constant 0 : index
    %75 = vector.load %arg8[%c0_69, %c0_70, %c0_71] : memref<18x32x8xf32, #tpu.memory_space<vmem>>, vector<18x32x8xf32>
    %cst_72 = arith.constant 0.000000e+00 : f32
    %76 = vector.broadcast %cst_72 : f32 to vector<16x16x8xf32>
    %77 = vector.extract_strided_slice %75 {offsets = [0, 7, 0], sizes = [16, 16, 8], strides = [1, 1, 1]} : vector<18x32x8xf32> to vector<16x16x8xf32>
    %c0_73 = arith.constant 0 : index
    %c0_74 = arith.constant 0 : index
    %c0_75 = arith.constant 0 : index
    %c0_76 = arith.constant 0 : index
    %78 = vector.load %arg4[%c0_73, %c0_74, %c0_75, %c0_76] : memref<3x3x8x8xf32, #tpu.memory_space<vmem>>, vector<1x1x8x8xf32>
    %79 = vector.shape_cast %78 : vector<1x1x8x8xf32> to vector<8x8xf32>
    %cst_77 = arith.constant dense<0.000000e+00> : vector<16x16x8xf32>
    %80 = tpu.matmul %77, %79, %cst_77 {dimension_numbers = #tpu.dot_dimension_numbers<[2], [0], [0, 1], [1], [0, 0, 0, 1, 1, 1], [], []>} : vector<16x16x8xf32>, vector<8x8xf32>, vector<16x16x8xf32> -> vector<16x16x8xf32>
    %81 = arith.addf %76, %80 : vector<16x16x8xf32>
    %82 = vector.extract_strided_slice %75 {offsets = [0, 8, 0], sizes = [16, 16, 8], strides = [1, 1, 1]} : vector<18x32x8xf32> to vector<16x16x8xf32>
    %c0_78 = arith.constant 0 : index
    %c1_79 = arith.constant 1 : index
    %c0_80 = arith.constant 0 : index
    %c0_81 = arith.constant 0 : index
    %83 = vector.load %arg4[%c0_78, %c1_79, %c0_80, %c0_81] : memref<3x3x8x8xf32, #tpu.memory_space<vmem>>, vector<1x1x8x8xf32>
    %84 = vector.shape_cast %83 : vector<1x1x8x8xf32> to vector<8x8xf32>
    %cst_82 = arith.constant dense<0.000000e+00> : vector<16x16x8xf32>
    %85 = tpu.matmul %82, %84, %cst_82 {dimension_numbers = #tpu.dot_dimension_numbers<[2], [0], [0, 1], [1], [0, 0, 0, 1, 1, 1], [], []>} : vector<16x16x8xf32>, vector<8x8xf32>, vector<16x16x8xf32> -> vector<16x16x8xf32>
    %86 = arith.addf %81, %85 : vector<16x16x8xf32>
    %87 = vector.extract_strided_slice %75 {offsets = [0, 9, 0], sizes = [16, 16, 8], strides = [1, 1, 1]} : vector<18x32x8xf32> to vector<16x16x8xf32>
    %c0_83 = arith.constant 0 : index
    %c2_84 = arith.constant 2 : index
    %c0_85 = arith.constant 0 : index
    %c0_86 = arith.constant 0 : index
    %88 = vector.load %arg4[%c0_83, %c2_84, %c0_85, %c0_86] : memref<3x3x8x8xf32, #tpu.memory_space<vmem>>, vector<1x1x8x8xf32>
    %89 = vector.shape_cast %88 : vector<1x1x8x8xf32> to vector<8x8xf32>
    %cst_87 = arith.constant dense<0.000000e+00> : vector<16x16x8xf32>
    %90 = tpu.matmul %87, %89, %cst_87 {dimension_numbers = #tpu.dot_dimension_numbers<[2], [0], [0, 1], [1], [0, 0, 0, 1, 1, 1], [], []>} : vector<16x16x8xf32>, vector<8x8xf32>, vector<16x16x8xf32> -> vector<16x16x8xf32>
    %91 = arith.addf %86, %90 : vector<16x16x8xf32>
    %92 = vector.extract_strided_slice %75 {offsets = [1, 7, 0], sizes = [16, 16, 8], strides = [1, 1, 1]} : vector<18x32x8xf32> to vector<16x16x8xf32>
    %c1_88 = arith.constant 1 : index
    %c0_89 = arith.constant 0 : index
    %c0_90 = arith.constant 0 : index
    %c0_91 = arith.constant 0 : index
    %93 = vector.load %arg4[%c1_88, %c0_89, %c0_90, %c0_91] : memref<3x3x8x8xf32, #tpu.memory_space<vmem>>, vector<1x1x8x8xf32>
    %94 = vector.shape_cast %93 : vector<1x1x8x8xf32> to vector<8x8xf32>
    %cst_92 = arith.constant dense<0.000000e+00> : vector<16x16x8xf32>
    %95 = tpu.matmul %92, %94, %cst_92 {dimension_numbers = #tpu.dot_dimension_numbers<[2], [0], [0, 1], [1], [0, 0, 0, 1, 1, 1], [], []>} : vector<16x16x8xf32>, vector<8x8xf32>, vector<16x16x8xf32> -> vector<16x16x8xf32>
    %96 = arith.addf %91, %95 : vector<16x16x8xf32>
    %97 = vector.extract_strided_slice %75 {offsets = [1, 8, 0], sizes = [16, 16, 8], strides = [1, 1, 1]} : vector<18x32x8xf32> to vector<16x16x8xf32>
    %c1_93 = arith.constant 1 : index
    %c1_94 = arith.constant 1 : index
    %c0_95 = arith.constant 0 : index
    %c0_96 = arith.constant 0 : index
    %98 = vector.load %arg4[%c1_93, %c1_94, %c0_95, %c0_96] : memref<3x3x8x8xf32, #tpu.memory_space<vmem>>, vector<1x1x8x8xf32>
    %99 = vector.shape_cast %98 : vector<1x1x8x8xf32> to vector<8x8xf32>
    %cst_97 = arith.constant dense<0.000000e+00> : vector<16x16x8xf32>
    %100 = tpu.matmul %97, %99, %cst_97 {dimension_numbers = #tpu.dot_dimension_numbers<[2], [0], [0, 1], [1], [0, 0, 0, 1, 1, 1], [], []>} : vector<16x16x8xf32>, vector<8x8xf32>, vector<16x16x8xf32> -> vector<16x16x8xf32>
    %101 = arith.addf %96, %100 : vector<16x16x8xf32>
    %102 = vector.extract_strided_slice %75 {offsets = [1, 9, 0], sizes = [16, 16, 8], strides = [1, 1, 1]} : vector<18x32x8xf32> to vector<16x16x8xf32>
    %c1_98 = arith.constant 1 : index
    %c2_99 = arith.constant 2 : index
    %c0_100 = arith.constant 0 : index
    %c0_101 = arith.constant 0 : index
    %103 = vector.load %arg4[%c1_98, %c2_99, %c0_100, %c0_101] : memref<3x3x8x8xf32, #tpu.memory_space<vmem>>, vector<1x1x8x8xf32>
    %104 = vector.shape_cast %103 : vector<1x1x8x8xf32> to vector<8x8xf32>
    %cst_102 = arith.constant dense<0.000000e+00> : vector<16x16x8xf32>
    %105 = tpu.matmul %102, %104, %cst_102 {dimension_numbers = #tpu.dot_dimension_numbers<[2], [0], [0, 1], [1], [0, 0, 0, 1, 1, 1], [], []>} : vector<16x16x8xf32>, vector<8x8xf32>, vector<16x16x8xf32> -> vector<16x16x8xf32>
    %106 = arith.addf %101, %105 : vector<16x16x8xf32>
    %107 = vector.extract_strided_slice %75 {offsets = [2, 7, 0], sizes = [16, 16, 8], strides = [1, 1, 1]} : vector<18x32x8xf32> to vector<16x16x8xf32>
    %c2_103 = arith.constant 2 : index
    %c0_104 = arith.constant 0 : index
    %c0_105 = arith.constant 0 : index
    %c0_106 = arith.constant 0 : index
    %108 = vector.load %arg4[%c2_103, %c0_104, %c0_105, %c0_106] : memref<3x3x8x8xf32, #tpu.memory_space<vmem>>, vector<1x1x8x8xf32>
    %109 = vector.shape_cast %108 : vector<1x1x8x8xf32> to vector<8x8xf32>
    %cst_107 = arith.constant dense<0.000000e+00> : vector<16x16x8xf32>
    %110 = tpu.matmul %107, %109, %cst_107 {dimension_numbers = #tpu.dot_dimension_numbers<[2], [0], [0, 1], [1], [0, 0, 0, 1, 1, 1], [], []>} : vector<16x16x8xf32>, vector<8x8xf32>, vector<16x16x8xf32> -> vector<16x16x8xf32>
    %111 = arith.addf %106, %110 : vector<16x16x8xf32>
    %112 = vector.extract_strided_slice %75 {offsets = [2, 8, 0], sizes = [16, 16, 8], strides = [1, 1, 1]} : vector<18x32x8xf32> to vector<16x16x8xf32>
    %c2_108 = arith.constant 2 : index
    %c1_109 = arith.constant 1 : index
    %c0_110 = arith.constant 0 : index
    %c0_111 = arith.constant 0 : index
    %113 = vector.load %arg4[%c2_108, %c1_109, %c0_110, %c0_111] : memref<3x3x8x8xf32, #tpu.memory_space<vmem>>, vector<1x1x8x8xf32>
    %114 = vector.shape_cast %113 : vector<1x1x8x8xf32> to vector<8x8xf32>
    %cst_112 = arith.constant dense<0.000000e+00> : vector<16x16x8xf32>
    %115 = tpu.matmul %112, %114, %cst_112 {dimension_numbers = #tpu.dot_dimension_numbers<[2], [0], [0, 1], [1], [0, 0, 0, 1, 1, 1], [], []>} : vector<16x16x8xf32>, vector<8x8xf32>, vector<16x16x8xf32> -> vector<16x16x8xf32>
    %116 = arith.addf %111, %115 : vector<16x16x8xf32>
    %117 = vector.extract_strided_slice %75 {offsets = [2, 9, 0], sizes = [16, 16, 8], strides = [1, 1, 1]} : vector<18x32x8xf32> to vector<16x16x8xf32>
    %c2_113 = arith.constant 2 : index
    %c2_114 = arith.constant 2 : index
    %c0_115 = arith.constant 0 : index
    %c0_116 = arith.constant 0 : index
    %118 = vector.load %arg4[%c2_113, %c2_114, %c0_115, %c0_116] : memref<3x3x8x8xf32, #tpu.memory_space<vmem>>, vector<1x1x8x8xf32>
    %119 = vector.shape_cast %118 : vector<1x1x8x8xf32> to vector<8x8xf32>
    %cst_117 = arith.constant dense<0.000000e+00> : vector<16x16x8xf32>
    %120 = tpu.matmul %117, %119, %cst_117 {dimension_numbers = #tpu.dot_dimension_numbers<[2], [0], [0, 1], [1], [0, 0, 0, 1, 1, 1], [], []>} : vector<16x16x8xf32>, vector<8x8xf32>, vector<16x16x8xf32> -> vector<16x16x8xf32>
    %121 = arith.addf %116, %120 : vector<16x16x8xf32>
    %c0_118 = arith.constant 0 : index
    %c0_119 = arith.constant 0 : index
    %122 = vector.load %arg5[%c0_118, %c0_119] : memref<1x8xf32, #tpu.memory_space<vmem>>, vector<1x8xf32>
    %123 = vector.shape_cast %122 : vector<1x8xf32> to vector<8xf32>
    %124 = vector.shape_cast %123 : vector<8xf32> to vector<1x1x8xf32>
    %125 = vector.broadcast %124 : vector<1x1x8xf32> to vector<16x16x8xf32>
    %126 = arith.addf %121, %125 : vector<16x16x8xf32>
    %cst_120 = arith.constant 0.000000e+00 : f32
    %127 = vector.broadcast %cst_120 : f32 to vector<16x16x8xf32>
    %128 = arith.cmpf oge, %126, %127 : vector<16x16x8xf32>
    %cst_121 = arith.constant 2.000000e-01 : f32
    %129 = vector.broadcast %cst_121 : f32 to vector<16x16x8xf32>
    %130 = arith.mulf %129, %126 : vector<16x16x8xf32>
    %131 = arith.select %128, %126, %130 : vector<16x16x8xi1>, vector<16x16x8xf32>
    %132 = arith.mulf %131, %131 : vector<16x16x8xf32>
    %cst_122 = arith.constant dense<0.000000e+00> : vector<16x16xf32>
    %133 = vector.multi_reduction <add>, %132, %cst_122 [2] : vector<16x16x8xf32> to vector<16x16xf32>
    %134 = vector.shape_cast %133 : vector<16x16xf32> to vector<16x16x1xf32>
    %cst_123 = arith.constant 8.000000e+00 : f32
    %135 = vector.broadcast %cst_123 : f32 to vector<16x16x1xf32>
    %136 = arith.divf %134, %135 : vector<16x16x1xf32>
    %cst_124 = arith.constant 9.99999993E-9 : f32
    %137 = vector.broadcast %cst_124 : f32 to vector<16x16x1xf32>
    %138 = arith.addf %136, %137 : vector<16x16x1xf32>
    %139 = math.rsqrt %138 : vector<16x16x1xf32>
    %140 = vector.broadcast %139 : vector<16x16x1xf32> to vector<16x16x8xf32>
    %141 = arith.mulf %131, %140 : vector<16x16x8xf32>
    %c0_125 = arith.constant 0 : index
    %c0_126 = arith.constant 0 : index
    %c0_127 = arith.constant 0 : index
    %c0_128 = arith.constant 0 : index
    %142 = vector.load %arg6[%c0_125, %c0_126, %c0_127, %c0_128] : memref<1x16x16x8xf32, #tpu.memory_space<vmem>>, vector<1x16x16x8xf32>
    %143 = vector.shape_cast %142 : vector<1x16x16x8xf32> to vector<16x16x8xf32>
    %144 = vector.shape_cast %141 : vector<16x16x8xf32> to vector<1x16x16x8xf32>
    tpu.vector_store %arg6[%c0_125, %c0_126, %c0_127, %c0_128], %144 {strides = array<i32>} : memref<1x16x16x8xf32, #tpu.memory_space<vmem>>, vector<1x16x16x8xf32>,
    return
  }
  func.func @transform_0(%arg0: i32) -> (i32, i32, i32, i32) {
    %c0_i32 = arith.constant 0 : i32
    %c0_i32_0 = arith.constant 0 : i32
    %c0_i32_1 = arith.constant 0 : i32
    %c0_i32_2 = arith.constant 0 : i32
    return %arg0, %c0_i32, %c0_i32_0, %c0_i32_1 : i32, i32, i32, i32
  }
  func.func @transform_1(%arg0: i32) -> (i32, i32, i32, i32) {
    %c0_i32 = arith.constant 0 : i32
    %c0_i32_0 = arith.constant 0 : i32
    %c0_i32_1 = arith.constant 0 : i32
    %c0_i32_2 = arith.constant 0 : i32
    %c0_i32_3 = arith.constant 0 : i32
    return %c0_i32, %c0_i32_0, %c0_i32_1, %c0_i32_2 : i32, i32, i32, i32
  }
  func.func @transform_2(%arg0: i32) -> (i32, i32) {
    %c0_i32 = arith.constant 0 : i32
    %c0_i32_0 = arith.constant 0 : i32
    %c0_i32_1 = arith.constant 0 : i32
    return %c0_i32, %c0_i32_0 : i32, i32
  }
  func.func @transform_3(%arg0: i32) -> (i32, i32, i32, i32) {
    %c0_i32 = arith.constant 0 : i32
    %c0_i32_0 = arith.constant 0 : i32
    %c0_i32_1 = arith.constant 0 : i32
    %c0_i32_2 = arith.constant 0 : i32
    %c0_i32_3 = arith.constant 0 : i32
    return %c0_i32, %c0_i32_0, %c0_i32_1, %c0_i32_2 : i32, i32, i32, i32
  }
  func.func @transform_4(%arg0: i32) -> (i32, i32) {
    %c0_i32 = arith.constant 0 : i32
    %c0_i32_0 = arith.constant 0 : i32
    %c0_i32_1 = arith.constant 0 : i32
    return %c0_i32, %c0_i32_0 : i32, i32
  }
  func.func @transform_5(%arg0: i32) -> (i32, i32, i32, i32) {
    %c0_i32 = arith.constant 0 : i32
    %c0_i32_0 = arith.constant 0 : i32
    %c0_i32_1 = arith.constant 0 : i32
    %c0_i32_2 = arith.constant 0 : i32
    return %arg0, %c0_i32, %c0_i32_0, %c0_i32_1 : i32, i32, i32, i32
  }
}

</mosaic_0001>

<bundles_post_ra>
// kernel: tpu_custom_call.1
= control target key start
LH: loop header
LB: loop body
LE: loop exit
PB: predicated region body
PF: predicated region fallthrough
CT: control target
= control target key end

     0   :  { %s6391_s18 = smov 0   ;;  %s10217_s0 = inlined_call_operand.vmem [shape: f32[2,16,16,4], index: 0, kind: input, shape index: {}]   ;;  %s10218_s1 = inlined_call_operand.vmem [shape: f32[3,3,4,8], index: 1, kind: input, shape index: {}]   ;;  %s10219_s2 = inlined_call_operand.vmem [shape: f32[1,8], index: 2, kind: input, shape index: {}]   ;;  %s10220_s3 = inlined_call_operand.vmem [shape: f32[3,3,8,8], index: 3, kind: input, shape index: {}]   ;;  %s10221_s4 = inlined_call_operand.vmem [shape: f32[1,8], index: 4, kind: input, shape index: {}]   ;;  %s10222_s5 = inlined_call_operand.vmem [shape: f32[2,16,16,8], index: 5, kind: output, shape index: {}]  }
   0x1 LB: > { %s5541_s19 = sadd.s32 4294967295, %s6357_s18   ;;  %p5545_p0 = scmp.ge.s32.totalorder %s6357_s18, 1  ;;  %s6357_s18 = sphi %s6391_s18, %s15_s18  }
   0x2   : > { %p187_p1 = scmp.lt.s32.totalorder %s6357_s18, 3 }
   0x4   : > { %p188_p2 = pnand %p5545_p0, %p187_p1 }
   0x6   : > { %191 = sbr.rel (%p188_p2) target bundleno = 1789 (0x6fd), region = 40 }
   0xb   : > { %v5550_v0 = vld [vmem:[%s10218_s1 + $0x4] sm:$0xf]  ;;  %vm607_vm0 = vcmask 1043456   ;;  %p215_p3 = scmp.lt.s32.totalorder %s5541_s19, 1  ;;  %vm225_vm1 = vcmask 31744   ;;  %v10223_v1 = vmov 0.0  }
   0xc   : > { %6155 = vmatpush.msk.msra.mxu2 %vm607_vm0, %v5550_v0  ;;  %259 = vst.msk [vmem:[#allocation2 + $0x108] sm:$0xff] %vm225_vm1, %v10223_v1  ;;  %5551 = vmatpush.msk.msra.mxu0 %vm607_vm0, %v5550_v0  ;;  %v508_v3 = vld [vmem:[%s10218_s1] sm:$0xf]  ;;  %v5617_v5 = vld [vmem:[%s10218_s1 + $0x8] sm:$0xf]  ;;  %vm740_vm2 = vcmask 1040384  }
   0xd   : > { %s10647_s19 = smov (!%p215_p3, %s5541_s19), 1  ;;  %226 = vst.msk [vmem:[#allocation2] sm:$0xff] %vm225_vm1, %v10223_v1  ;;  %6156 = vmatpush.msk.msra.mxu3 %vm607_vm0, %v508_v3  ;;  %5584 = vmatpush.msk.msra.mxu1 %vm607_vm0, %v508_v3  ;;  %v5651_v7 = vld [vmem:[%s10218_s1 + $0xc] sm:$0xf]  ;;  %v5685_v16 = vld [vmem:[%s10218_s1 + $0x10] sm:$0xf] }
   0xe   : > { %227 = vst.msk [vmem:[#allocation2 + $0x8] sm:$0xff] %vm225_vm1, %v10223_v1  ;;  %s6153_s22 = sshll.u32 %s10647_s19, 8  ;;  %5618 = vmatpush.msk.msrb.mxu2 %vm607_vm0, %v5617_v5  ;;  %5686 = vmatpush.msk.msrb.mxu0 %vm607_vm0, %v5685_v16  ;;  %vm1019_vm3 = vcmask 1046528   ;;  %vm298_vm4 = vcmask 64512  }
   0xf   : > { %228 = vst.msk [vmem:[#allocation2 + $0x10] sm:$0xff] %vm225_vm1, %v10223_v1  ;;  %s6420_s25 = scalar_lea.vmem %s10217_s0, %s6153_s22  ;;  %5652 = vmatpush.msk.msrb.mxu3 %vm607_vm0, %v5651_v7  ;;  %s9873_s24 = scalar_lea.vmem %s10222_s5, %s6153_s22 }
  0x10   : > { %229 = vst.msk [vmem:[#allocation2 + $0x18] sm:$0xff] %vm225_vm1, %v10223_v1  ;;  %v385_v2 = vld [vmem:[%s6420_s25 + $0x70] sm:$0xff]  ;;  %v386_v20 = vld [vmem:[%s6420_s25 + $0x78] sm:$0xff]  ;;  %v387_v21 = vld [vmem:[%s6420_s25 + $0x80] sm:$0xff] }
  0x11   : > { %230 = vst.msk [vmem:[#allocation2 + $0x20] sm:$0xff] %vm225_vm1, %v10223_v1  ;;  %v388_v22 = vld [vmem:[%s6420_s25 + $0x88] sm:$0xff]  ;;  %v371_v23 = vld [vmem:[%s6420_s25] sm:$0xff]  ;;  %v389_v24 = vld [vmem:[%s6420_s25 + $0x90] sm:$0xff] }
  0x12   : > { %418 = vst.msk [vmem:[#allocation2 + $0x108] sm:$0xff] %vm225_vm1, %v385_v2  ;;  %v372_v25 = vld [vmem:[%s6420_s25 + $0x8] sm:$0xff]  ;;  %v390_v26 = vld [vmem:[%s6420_s25 + $0x98] sm:$0xff]  ;;  %v373_v27 = vld [vmem:[%s6420_s25 + $0x10] sm:$0xff] }
  0x13   : > { %231 = vst.msk [vmem:[#allocation2 + $0x28] sm:$0xff] %vm225_vm1, %v10223_v1  ;;  %v391_v30 = vld [vmem:[%s6420_s25 + $0xa0] sm:$0xff]  ;;  %v374_v32 = vld [vmem:[%s6420_s25 + $0x18] sm:$0xff]  ;;  %v392_v44 = vld [vmem:[%s6420_s25 + $0xa8] sm:$0xff] }
  0x14   : > { %232 = vst.msk [vmem:[#allocation2 + $0x30] sm:$0xff] %vm225_vm1, %v10223_v1  ;;  %v436_v12 = vld [vmem:[#allocation2] sm:$0xff]  ;;  %v393_v54 = vld [vmem:[%s6420_s25 + $0xb0] sm:$0xff]  ;;  %v376_v56 = vld [vmem:[%s6420_s25 + $0x28] sm:$0xff] }
  0x15   : > { %233 = vst.msk [vmem:[#allocation2 + $0x38] sm:$0xff] %vm225_vm1, %v10223_v1  ;;  %v6537_v11 = vld [vmem:[#allocation2 + $0x8] sm:$0xff]  ;;  %v741_v14 = vrot.slane %v436_v12, 7  ;;  %v375_v46 = vld [vmem:[%s6420_s25 + $0x20] sm:$0xff]  ;;  %v394_v0 = vld [vmem:[%s6420_s25 + $0xb8] sm:$0xff] }
  0x16   : > { %234 = vst.msk [vmem:[#allocation2 + $0x40] sm:$0xff] %vm225_vm1, %v10223_v1  ;;  %5552 = vmatmul.msk.f32.vlgmr.msra.gmra.mxu0 %vm225_vm1, %v6537_v11  ;;  %v742_v13 = vrot.slane %v6537_v11, 7  ;;  %v6564_v17 = vld [vmem:[#allocation2 + $0x10] sm:$0xff]  ;;  %v378_v16 = vld [vmem:[%s6420_s25 + $0x38] sm:$0xff] }
  0x17   : > { %235 = vst.msk [vmem:[#allocation2 + $0x48] sm:$0xff] %vm225_vm1, %v10223_v1  ;;  %v744_v18 = vrot.slane %v6564_v17, 7  ;;  %v377_v3 = vld [vmem:[%s6420_s25 + $0x30] sm:$0xff] }
  0x18   : > { %236 = vst.msk [vmem:[#allocation2 + $0x50] sm:$0xff] %vm225_vm1, %v10223_v1  ;;  %v743_v15 = vsel %vm740_vm2, %v741_v14, %v742_v13  ;;  %v440_v28 = vld [vmem:[#allocation2 + $0x20] sm:$0xff] }
  0x19   : > { %v6445_v4 = vld [vmem:[#allocation2 + $0x108] sm:$0xff]  ;;  %237 = vst.msk [vmem:[#allocation2 + $0x58] sm:$0xff] %vm225_vm1, %v10223_v1  ;;  %5585 = vmatmul.msk.f32.vlgmr.msra.gmra.mxu1 %vm225_vm1, %v743_v15  ;;  %v745_v19 = vsel %vm740_vm2, %v742_v13, %v744_v18  ;;  %v746_v35 = vrot.slane %v440_v28, 7  ;;  %v395_v14 = vld [vmem:[%s6420_s25 + $0xc0] sm:$0xff] }
  0x1a   : > { %5568 = vmatmul.msk.f32.vlgmr.msra.gmra.mxu2 %vm225_vm1, %v6445_v4  ;;  %238 = vst.msk [vmem:[#allocation2 + $0x60] sm:$0xff] %vm225_vm1, %v10223_v1  ;;  %v782_v6 = vrot.slane %v6445_v4, 7 }
  0x1b   : > { %239 = vst.msk [vmem:[#allocation2 + $0x68] sm:$0xff] %vm225_vm1, %v10223_v1 }
  0x1c   : > { %240 = vst.msk [vmem:[#allocation2 + $0x70] sm:$0xff] %vm225_vm1, %v10223_v1 }
  0x1d   : > { %241 = vst.msk [vmem:[#allocation2 + $0x78] sm:$0xff] %vm225_vm1, %v10223_v1  ;;  %v444_v51 = vld [vmem:[#allocation2 + $0x40] sm:$0xff] }
  0x1e   : > { %242 = vst.msk [vmem:[#allocation2 + $0x80] sm:$0xff] %vm225_vm1, %v10223_v1  ;;  %5553 = vmatmul.msk.f32.gmra.mxu0 %vm225_vm1, %v6564_v17  ;;  %v751_v52 = vrot.slane %v444_v51, 7 }
  0x1f   : > { %243 = vst.msk [vmem:[#allocation2 + $0x88] sm:$0xff] %vm225_vm1, %v10223_v1 }
  0x20   : > { %244 = vst.msk [vmem:[#allocation2 + $0x90] sm:$0xff] %vm225_vm1, %v10223_v1 }
  0x21   : > { %245 = vst.msk [vmem:[#allocation2 + $0x98] sm:$0xff] %vm225_vm1, %v10223_v1  ;;  %5586 = vmatmul.msk.f32.gmra.mxu1 %vm225_vm1, %v745_v19 }
  0x22   : > { %246 = vst.msk [vmem:[#allocation2 + $0xa0] sm:$0xff] %vm225_vm1, %v10223_v1 }
  0x23   : > { %247 = vst.msk [vmem:[#allocation2 + $0xa8] sm:$0xff] %vm225_vm1, %v10223_v1 }
  0x24   : > { %248 = vst.msk [vmem:[#allocation2 + $0xb0] sm:$0xff] %vm225_vm1, %v10223_v1 }
  0x25   : > { %249 = vst.msk [vmem:[#allocation2 + $0xb8] sm:$0xff] %vm225_vm1, %v10223_v1 }
  0x26   : > { %250 = vst.msk [vmem:[#allocation2 + $0xc0] sm:$0xff] %vm225_vm1, %v10223_v1 }
  0x27   : > { %251 = vst.msk [vmem:[#allocation2 + $0xc8] sm:$0xff] %vm225_vm1, %v10223_v1 }
  0x28   : > { %252 = vst.msk [vmem:[#allocation2 + $0xd0] sm:$0xff] %vm225_vm1, %v10223_v1 }
  0x29   : > { %253 = vst.msk [vmem:[#allocation2 + $0xd8] sm:$0xff] %vm225_vm1, %v10223_v1 }
  0x2a   : > { %254 = vst.msk [vmem:[#allocation2 + $0xe0] sm:$0xff] %vm225_vm1, %v10223_v1 }
  0x2b   : > { %255 = vst.msk [vmem:[#allocation2 + $0xe8] sm:$0xff] %vm225_vm1, %v10223_v1 }
  0x2c   : > { %256 = vst.msk [vmem:[#allocation2 + $0xf0] sm:$0xff] %vm225_vm1, %v10223_v1 }
  0x2d   : > { %257 = vst.msk [vmem:[#allocation2 + $0xf8] sm:$0xff] %vm225_vm1, %v10223_v1 }
  0x2e   : > { %258 = vst.msk [vmem:[#allocation2 + $0x100] sm:$0xff] %vm225_vm1, %v10223_v1 }
  0x2f   : > { %260 = vst.msk [vmem:[#allocation2 + $0x110] sm:$0xff] %vm225_vm1, %v10223_v1 }
  0x30   : > { %261 = vst.msk [vmem:[#allocation2 + $0x118] sm:$0xff] %vm225_vm1, %v10223_v1 }
  0x31   : > { %262 = vst.msk [vmem:[#allocation2 + $0x120] sm:$0xff] %vm225_vm1, %v10223_v1 }
  0x32   : > { %263 = vst.msk [vmem:[#allocation2 + $0x128] sm:$0xff] %vm225_vm1, %v10223_v1 }
  0x33   : > { %264 = vst.msk [vmem:[#allocation2 + $0x130] sm:$0xff] %vm225_vm1, %v10223_v1 }
  0x34   : > { %265 = vst.msk [vmem:[#allocation2 + $0x138] sm:$0xff] %vm225_vm1, %v10223_v1 }
  0x35   : > { %266 = vst.msk [vmem:[#allocation2 + $0x140] sm:$0xff] %vm225_vm1, %v10223_v1  ;;  %v468_v8 = vld [vmem:[#allocation2 + $0x100] sm:$0xff] }
  0x36   : > { %267 = vst.msk [vmem:[#allocation2 + $0x148] sm:$0xff] %vm225_vm1, %v10223_v1  ;;  %v781_v9 = vrot.slane %v468_v8, 7 }
  0x37   : > { %268 = vst.msk [vmem:[#allocation2 + $0x150] sm:$0xff] %vm225_vm1, %v10223_v1 }
  0x38   : > { %269 = vst.msk [vmem:[#allocation2 + $0x158] sm:$0xff] %vm225_vm1, %v10223_v1  ;;  %v6525_v10 = vsel %vm740_vm2, %v781_v9, %v782_v6  ;;  %v472_v34 = vld [vmem:[#allocation2 + $0x120] sm:$0xff] }
  0x39   : > { %10314 = vst [vmem:[#allocation4_spill] sm:$0xff] %v6525_v10  ;;  %5601 = vmatmul.msk.f32.vlgmr.msra.gmra.mxu3 %vm225_vm1, %v6525_v10  ;;  %v786_v39 = vrot.slane %v472_v34, 7  ;;  %v448_v9 = vld [vmem:[#allocation2 + $0x60] sm:$0xff] }
  0x3a   : > { %270 = vst.msk [vmem:[#allocation2 + $0x160] sm:$0xff] %vm225_vm1, %v10223_v1  ;;  %v756_v12 = vrot.slane %v448_v9, 7  ;;  %v452_v34 = vld [vmem:[#allocation2 + $0x80] sm:$0xff] }
  0x3b   : > { %271 = vst.msk [vmem:[#allocation2 + $0x168] sm:$0xff] %vm225_vm1, %v10223_v1 }
  0x3c   : > { %272 = vst.msk [vmem:[#allocation2 + $0x170] sm:$0xff] %vm225_vm1, %v10223_v1  ;;  %v476_v58 = vld [vmem:[#allocation2 + $0x140] sm:$0xff] }
  0x3d   : > { %273 = vst.msk [vmem:[#allocation2 + $0x178] sm:$0xff] %vm225_vm1, %v10223_v1  ;;  %v791_v60 = vrot.slane %v476_v58, 7 }
  0x3e   : > { %274 = vst.msk [vmem:[#allocation2 + $0x180] sm:$0xff] %vm225_vm1, %v10223_v1 }
  0x3f   : > { %275 = vst.msk [vmem:[#allocation2 + $0x188] sm:$0xff] %vm225_vm1, %v10223_v1 }
  0x40   : > { %276 = vst.msk [vmem:[#allocation2 + $0x190] sm:$0xff] %vm225_vm1, %v10223_v1 }
  0x41   : > { %277 = vst.msk [vmem:[#allocation2 + $0x198] sm:$0xff] %vm225_vm1, %v10223_v1  ;;  %v480_v19 = vld [vmem:[#allocation2 + $0x160] sm:$0xff] }
  0x42   : > { %278 = vst.msk [vmem:[#allocation2 + $0x1a0] sm:$0xff] %vm225_vm1, %v10223_v1 }
  0x43   : > { %279 = vst.msk [vmem:[#allocation2 + $0x1a8] sm:$0xff] %vm225_vm1, %v10223_v1 }
  0x44   : > { %280 = vst.msk [vmem:[#allocation2 + $0x1b0] sm:$0xff] %vm225_vm1, %v10223_v1 }
  0x45   : > { %281 = vst.msk [vmem:[#allocation2 + $0x1b8] sm:$0xff] %vm225_vm1, %v10223_v1 }
  0x46   : > { %282 = vst.msk [vmem:[#allocation2 + $0x1c0] sm:$0xff] %vm225_vm1, %v10223_v1 }
  0x47   : > { %283 = vst.msk [vmem:[#allocation2 + $0x1c8] sm:$0xff] %vm225_vm1, %v10223_v1 }
  0x48   : > { %284 = vst.msk [vmem:[#allocation2 + $0x1d0] sm:$0xff] %vm225_vm1, %v10223_v1 }
  0x49   : > { %285 = vst.msk [vmem:[#allocation2 + $0x1d8] sm:$0xff] %vm225_vm1, %v10223_v1 }
  0x4a   : > { %286 = vst.msk [vmem:[#allocation2 + $0x1e0] sm:$0xff] %vm225_vm1, %v10223_v1 }
  0x4b   : > { %287 = vst.msk [vmem:[#allocation2 + $0x1e8] sm:$0xff] %vm225_vm1, %v10223_v1 }
  0x4c   : > { %288 = vst.msk [vmem:[#allocation2 + $0x1f0] sm:$0xff] %vm225_vm1, %v10223_v1 }
  0x4d   : > { %289 = vst.msk [vmem:[#allocation2 + $0x1f8] sm:$0xff] %vm225_vm1, %v10223_v1 }
  0x4e   : > { %290 = vst.msk [vmem:[#allocation2 + $0x200] sm:$0xff] %vm225_vm1, %v10223_v1 }
  0x4f   : > { %291 = vst.msk [vmem:[#allocation2 + $0x208] sm:$0xff] %vm225_vm1, %v10223_v1 }
  0x50   : > { %292 = vst.msk [vmem:[#allocation2 + $0x210] sm:$0xff] %vm225_vm1, %v10223_v1 }
  0x51   : > { %293 = vst.msk [vmem:[#allocation2 + $0x218] sm:$0xff] %vm225_vm1, %v10223_v1 }
  0x52   : > { %294 = vst.msk [vmem:[#allocation2 + $0x220] sm:$0xff] %vm225_vm1, %v10223_v1 }
  0x53   : > { %295 = vst.msk [vmem:[#allocation2 + $0x228] sm:$0xff] %vm225_vm1, %v10223_v1 }
  0x54   : > { %296 = vst.msk [vmem:[#allocation2 + $0x230] sm:$0xff] %vm225_vm1, %v10223_v1 }
  0x55   : > { %297 = vst.msk [vmem:[#allocation2 + $0x238] sm:$0xff] %vm225_vm1, %v10223_v1  ;;  %v496_v1 = vld [vmem:[#allocation2 + $0x1e0] sm:$0xff] }
  0x56   : > { %419 = vst.msk [vmem:[#allocation2 + $0x110] sm:$0xff] %vm225_vm1, %v386_v20 }
  0x57   : > { %420 = vst.msk [vmem:[#allocation2 + $0x128] sm:$0xff] %vm225_vm1, %v387_v21  ;;  %v796_v21 = vrot.slane %v480_v19, 7 }
  0x58   : > { %421 = vst.msk [vmem:[#allocation2 + $0x130] sm:$0xff] %vm225_vm1, %v388_v22 }
  0x59   : > { %404 = vst.msk [vmem:[#allocation2 + $0x28] sm:$0xff] %vm225_vm1, %v371_v23 }
  0x5a   : > { %422 = vst.msk [vmem:[#allocation2 + $0x148] sm:$0xff] %vm225_vm1, %v389_v24 }
  0x5b   : > { %405 = vst.msk [vmem:[#allocation2 + $0x30] sm:$0xff] %vm225_vm1, %v372_v25  ;;  %v396_v25 = vld [vmem:[%s6420_s25 + $0xc8] sm:$0xff] }
  0x5c   : > { %423 = vst.msk [vmem:[#allocation2 + $0x150] sm:$0xff] %vm225_vm1, %v390_v26 }
  0x5d   : > { %v6618_v29 = vld [vmem:[#allocation2 + $0x110] sm:$0xff]  ;;  %406 = vst.msk [vmem:[#allocation2 + $0x48] sm:$0xff] %vm225_vm1, %v373_v27  ;;  %v379_v27 = vld [vmem:[%s6420_s25 + $0x40] sm:$0xff] }
  0x5e   : > { %5569 = vmatmul.msk.f32.gmra.mxu2 %vm225_vm1, %v6618_v29  ;;  %v784_v31 = vrot.slane %v6618_v29, 7  ;;  %424 = vst.msk [vmem:[#allocation2 + $0x168] sm:$0xff] %vm225_vm1, %v391_v30  ;;  %v6627_v33 = vld [vmem:[#allocation2 + $0x128] sm:$0xff] }
  0x5f   : > { %407 = vst.msk [vmem:[#allocation2 + $0x50] sm:$0xff] %vm225_vm1, %v374_v32  ;;  %v787_v40 = vrot.slane %v6627_v33, 7  ;;  %v6659_v47 = vld [vmem:[#allocation2 + $0x130] sm:$0xff] }
  0x60   : > { %v6633_v36 = vsel %vm740_vm2, %v782_v6, %v784_v31  ;;  %v6635_v37 = vld [vmem:[#allocation2 + $0x28] sm:$0xff]  ;;  %425 = vst.msk [vmem:[#allocation2 + $0x170] sm:$0xff] %vm225_vm1, %v392_v44  ;;  %v789_v49 = vrot.slane %v6659_v47, 7 }
  0x61   : > { %10315 = vst [vmem:[#allocation5_spill] sm:$0xff] %v6633_v36  ;;  %5602 = vmatmul.msk.f32.gmra.mxu3 %vm225_vm1, %v6633_v36  ;;  %5554 = vmatmul.msk.f32.gmra.mxu0 %vm225_vm1, %v6635_v37  ;;  %v747_v38 = vrot.slane %v6635_v37, 7  ;;  %v6655_v45 = vsel %vm740_vm2, %v786_v39, %v787_v40  ;;  %v6683_v57 = vld [vmem:[#allocation2 + $0x148] sm:$0xff]  ;;  %v397_v39 = vld [vmem:[%s6420_s25 + $0xd0] sm:$0xff] }
  0x62   : > { %v6643_v41 = vld [vmem:[#allocation2 + $0x30] sm:$0xff]  ;;  %10316 = vst [vmem:[#allocation6_spill] sm:$0xff] %v6655_v45  ;;  %v6679_v55 = vsel %vm740_vm2, %v787_v40, %v789_v49  ;;  %v792_v61 = vrot.slane %v6683_v57, 7 }
  0x63   : > { %v6646_v42 = vsel %vm740_vm2, %v746_v35, %v747_v38  ;;  %v749_v43 = vrot.slane %v6643_v41, 7  ;;  %408 = vst.msk [vmem:[#allocation2 + $0x68] sm:$0xff] %vm225_vm1, %v375_v46  ;;  %v6707_v5 = vld [vmem:[#allocation2 + $0x150] sm:$0xff]  ;;  %v761_v35 = vrot.slane %v452_v34, 7  ;;  %v484_v46 = vld [vmem:[#allocation2 + $0x180] sm:$0xff]  ;;  %v400_v34 = vld [vmem:[%s6420_s25 + $0xe8] sm:$0xff] }
  0x64   : > { %5587 = vmatmul.msk.f32.gmra.mxu1 %vm225_vm1, %v6646_v42  ;;  %v6670_v50 = vld [vmem:[#allocation2 + $0x48] sm:$0xff]  ;;  %426 = vst.msk [vmem:[#allocation2 + $0x188] sm:$0xff] %vm225_vm1, %v393_v54  ;;  %v6703_v2 = vsel %vm740_vm2, %v791_v60, %v792_v61  ;;  %v794_v7 = vrot.slane %v6707_v5, 7  ;;  %v801_v51 = vrot.slane %v484_v46, 7  ;;  %v381_v60 = vld [vmem:[%s6420_s25 + $0x50] sm:$0xff] }
  0x65   : > { %v6667_v48 = vsel %vm740_vm2, %v747_v38, %v749_v43  ;;  %v752_v53 = vrot.slane %v6670_v50, 7  ;;  %409 = vst.msk [vmem:[#allocation2 + $0x70] sm:$0xff] %vm225_vm1, %v376_v56  ;;  %v6731_v18 = vld [vmem:[#allocation2 + $0x168] sm:$0xff]  ;;  %v398_v56 = vld [vmem:[%s6420_s25 + $0xd8] sm:$0xff] }
  0x66   : > { %5570 = vmatmul.msk.f32.gmra.mxu2 %vm225_vm1, %v6627_v33  ;;  %v6694_v62 = vld [vmem:[#allocation2 + $0x50] sm:$0xff]  ;;  %427 = vst.msk [vmem:[#allocation2 + $0x190] sm:$0xff] %vm225_vm1, %v394_v0  ;;  %v6727_v15 = vsel %vm740_vm2, %v792_v61, %v794_v7  ;;  %v797_v22 = vrot.slane %v6731_v18, 7  ;;  %v380_v43 = vld [vmem:[%s6420_s25 + $0x48] sm:$0xff]  ;;  %v456_v7 = vld [vmem:[#allocation2 + $0xa0] sm:$0xff] }
  0x67   : > { %v6691_v59 = vsel %vm740_vm2, %v751_v52, %v752_v53  ;;  %v754_v63 = vrot.slane %v6694_v62, 7  ;;  %410 = vst.msk [vmem:[#allocation2 + $0x88] sm:$0xff] %vm225_vm1, %v377_v3  ;;  %v6755_v28 = vld [vmem:[#allocation2 + $0x170] sm:$0xff]  ;;  %v766_v9 = vrot.slane %v456_v7, 7  ;;  %v10225_v7 = vrot.slane %v6564_v17, 1 }
  0x68   : > { %10317 = vst [vmem:[#allocation7_spill] sm:$0xff] %v6691_v59  ;;  %v6751_v26 = vsel %vm740_vm2, %v796_v21, %v797_v22  ;;  %v799_v31 = vrot.slane %v6755_v28, 7  ;;  %v488_v21 = vld [vmem:[#allocation2 + $0x1a0] sm:$0xff] }
  0x69   : > { %5603 = vmatmul.msk.f32.gmra.mxu3 %vm225_vm1, %v6655_v45  ;;  %5555 = vmatmul.msk.f32.gmra.mxu0 %vm225_vm1, %v6643_v41  ;;  %v6715_v6 = vsel %vm740_vm2, %v752_v53, %v754_v63  ;;  %428 = vst.msk [vmem:[#allocation2 + $0x1a8] sm:$0xff] %vm225_vm1, %v395_v14 }
  0x6a   : > { %10318 = vst [vmem:[#allocation8_spill] sm:$0xff] %v6715_v6  ;;  %v6718_v8 = vld [vmem:[#allocation2 + $0x68] sm:$0xff]  ;;  %v6775_v40 = vsel %vm740_vm2, %v797_v22, %v799_v31 }
  0x6b   : > { %v757_v13 = vrot.slane %v6718_v8, 7  ;;  %411 = vst.msk [vmem:[#allocation2 + $0x90] sm:$0xff] %vm225_vm1, %v378_v16  ;;  %v6779_v44 = vld [vmem:[#allocation2 + $0x188] sm:$0xff]  ;;  %v382_v16 = vld [vmem:[%s6420_s25 + $0x58] sm:$0xff] }
  0x6c   : > { %5588 = vmatmul.msk.f32.gmra.mxu1 %vm225_vm1, %v6667_v48  ;;  %v6742_v23 = vld [vmem:[#allocation2 + $0x70] sm:$0xff]  ;;  %429 = vst.msk [vmem:[#allocation2 + $0x1b0] sm:$0xff] %vm225_vm1, %v396_v25  ;;  %v802_v52 = vrot.slane %v6779_v44, 7 }
  0x6d   : > { %v6739_v20 = vsel %vm740_vm2, %v756_v12, %v757_v13  ;;  %v759_v24 = vrot.slane %v6742_v23, 7  ;;  %412 = vst.msk [vmem:[#allocation2 + $0xa8] sm:$0xff] %vm225_vm1, %v379_v27  ;;  %v6803_v61 = vld [vmem:[#allocation2 + $0x190] sm:$0xff] }
  0x6e   : > { %5571 = vmatmul.msk.f32.gmra.mxu2 %vm225_vm1, %v6659_v47  ;;  %10319 = vst [vmem:[#allocation9_spill] sm:$0xff] %v6739_v20  ;;  %v6766_v32 = vld [vmem:[#allocation2 + $0x88] sm:$0xff]  ;;  %v6799_v58 = vsel %vm740_vm2, %v801_v51, %v802_v52  ;;  %v804_v0 = vrot.slane %v6803_v61, 7 }
  0x6f   : > { %v6763_v30 = vsel %vm740_vm2, %v757_v13, %v759_v24  ;;  %v762_v38 = vrot.slane %v6766_v32, 7  ;;  %430 = vst.msk [vmem:[#allocation2 + $0x1c8] sm:$0xff] %vm225_vm1, %v397_v39  ;;  %v399_v13 = vld [vmem:[%s6420_s25 + $0xe0] sm:$0xff]  ;;  %v806_v24 = vrot.slane %v488_v21, 7 }
  0x70   : > { %10320 = vst [vmem:[#allocation10_spill] sm:$0xff] %v6763_v30  ;;  %v6823_v14 = vsel %vm740_vm2, %v802_v52, %v804_v0  ;;  %v6827_v19 = vld [vmem:[#allocation2 + $0x1a8] sm:$0xff]  ;;  %v460_v52 = vld [vmem:[#allocation2 + $0xc0] sm:$0xff]  ;;  %v1020_v0 = vrot.slane %v6537_v11, 1 }
  0x71   : > { %5604 = vmatmul.msk.f32.gmra.mxu3 %vm225_vm1, %v6679_v55  ;;  %5556 = vmatmul.msk.f32.gmra.mxu0 %vm225_vm1, %v6670_v50  ;;  %413 = vst.msk [vmem:[#allocation2 + $0xb0] sm:$0xff] %vm225_vm1, %v380_v43  ;;  %v6787_v49 = vsel %vm740_vm2, %v761_v35, %v762_v38  ;;  %v807_v25 = vrot.slane %v6827_v19, 7 }
  0x72   : > { %10321 = vst [vmem:[#allocation11_spill] sm:$0xff] %v6787_v49  ;;  %v6790_v53 = vld [vmem:[#allocation2 + $0x90] sm:$0xff] }
  0x73   : > { %v764_v54 = vrot.slane %v6790_v53, 7  ;;  %431 = vst.msk [vmem:[#allocation2 + $0x1d0] sm:$0xff] %vm225_vm1, %v398_v56  ;;  %v6847_v35 = vsel %vm740_vm2, %v806_v24, %v807_v25  ;;  %v6851_v39 = vld [vmem:[#allocation2 + $0x1b0] sm:$0xff] }
  0x74   : > { %5589 = vmatmul.msk.f32.gmra.mxu1 %vm225_vm1, %v6691_v59  ;;  %414 = vst.msk [vmem:[#allocation2 + $0xc8] sm:$0xff] %vm225_vm1, %v381_v60  ;;  %v6814_v3 = vld [vmem:[#allocation2 + $0xa8] sm:$0xff]  ;;  %v809_v46 = vrot.slane %v6851_v39, 7 }
  0x75   : > { %v6811_v63 = vsel %vm740_vm2, %v762_v38, %v764_v54  ;;  %v767_v12 = vrot.slane %v6814_v3, 7  ;;  %10323 = vst [vmem:[#allocation13_spill] sm:$0xff] %v6823_v14  ;;  %v383_v38 = vld [vmem:[%s6420_s25 + $0x60] sm:$0xff]  ;;  %v771_v54 = vrot.slane %v460_v52, 7  ;;  %v384_v60 = vld [vmem:[%s6420_s25 + $0x68] sm:$0xff] }
  0x76   : > { %5572 = vmatmul.msk.f32.gmra.mxu2 %vm225_vm1, %v6683_v57  ;;  %10322 = vst [vmem:[#allocation12_spill] sm:$0xff] %v6811_v63 }
  0x77   : > { %432 = vst.msk [vmem:[#allocation2 + $0x1e8] sm:$0xff] %vm225_vm1, %v399_v13  ;;  %v6835_v22 = vsel %vm740_vm2, %v766_v9, %v767_v12  ;;  %v6873_v9 = vsel %vm740_vm2, %v807_v25, %v809_v46  ;;  %v492_v13 = vld [vmem:[#allocation2 + $0x1c0] sm:$0xff]  ;;  %v1022_v25 = vsel %vm1019_vm3, %v1020_v0, %v10225_v7 }
  0x78   : > { %415 = vst.msk [vmem:[#allocation2 + $0xd0] sm:$0xff] %vm225_vm1, %v382_v16  ;;  %v6838_v27 = vld [vmem:[#allocation2 + $0xb0] sm:$0xff]  ;;  %v811_v16 = vrot.slane %v492_v13, 7  ;;  %v464_v13 = vld [vmem:[#allocation2 + $0xe0] sm:$0xff] }
  0x79   : > { %5605 = vmatmul.msk.f32.gmra.mxu3 %vm225_vm1, %v6703_v2  ;;  %5557 = vmatmul.msk.f32.gmra.mxu0 %vm225_vm1, %v6694_v62  ;;  %10324 = vst [vmem:[#allocation14_spill] sm:$0xff] %v6835_v22  ;;  %v769_v31 = vrot.slane %v6838_v27, 7 }
  0x7a   : > { %10325 = vst [vmem:[#allocation15_spill] sm:$0xff] %v6847_v35  ;;  %v6902_v46 = vld [vmem:[#allocation2 + $0x1d0] sm:$0xff] }
  0x7b   : > { %433 = vst.msk [vmem:[#allocation2 + $0x1f0] sm:$0xff] %vm225_vm1, %v400_v34  ;;  %v6859_v43 = vsel %vm740_vm2, %v767_v12, %v769_v31  ;;  %v6862_v51 = vld [vmem:[#allocation2 + $0xc8] sm:$0xff] }
  0x7c   : > { %5590 = vmatmul.msk.f32.gmra.mxu1 %vm225_vm1, %v6715_v6  ;;  %416 = vst.msk [vmem:[#allocation2 + $0xe8] sm:$0xff] %vm225_vm1, %v383_v38  ;;  %v772_v56 = vrot.slane %v6862_v51, 7  ;;  %v6876_v12 = vld [vmem:[#allocation2 + $0x1c8] sm:$0xff]  ;;  %v5753_v38 = vld [vmem:[%s10218_s1 + $0x18] sm:$0xf] }
  0x7d   : > { %10326 = vst [vmem:[#allocation16_spill] sm:$0xff] %v6859_v43  ;;  %v812_v21 = vrot.slane %v6876_v12, 7  ;;  %5754 = vmatpush.msk.msra.mxu2 %vm607_vm0, %v5753_v38 }
  0x7e   : > { %5573 = vmatmul.msk.f32.gmra.mxu2 %vm225_vm1, %v6707_v5  ;;  %10327 = vst [vmem:[#allocation17_spill] sm:$0xff] %v6873_v9  ;;  %v6883_v11 = vsel %vm740_vm2, %v771_v54, %v772_v56  ;;  %v5787_v54 = vld [vmem:[%s10218_s1 + $0x1c] sm:$0xf] }
  0x7f   : > { %417 = vst.msk [vmem:[#allocation2 + $0xf0] sm:$0xff] %vm225_vm1, %v384_v60  ;;  %v6886_v24 = vld [vmem:[#allocation2 + $0xd0] sm:$0xff]  ;;  %v6897_v34 = vsel %vm740_vm2, %v811_v16, %v812_v21  ;;  %v814_v60 = vrot.slane %v6902_v46, 7  ;;  %5788 = vmatpush.msk.msra.mxu3 %vm607_vm0, %v5787_v54  ;;  %v776_v16 = vrot.slane %v464_v13, 7  ;;  %v5821_v13 = vld [vmem:[%s10218_s1 + $0x20] sm:$0xf] }
  0x80   : > { %10328 = vst [vmem:[#allocation18_spill] sm:$0xff] %v6876_v12  ;;  %v774_v31 = vrot.slane %v6886_v24, 7  ;;  %5822 = vmatpush.msk.msra.mxu0 %vm607_vm0, %v5821_v13 }
  0x81   : > { %5606 = vmatmul.msk.f32.gmra.mxu3 %vm225_vm1, %v6727_v15  ;;  %5558 = vmatmul.msk.f32.gmra.mxu0 %vm225_vm1, %v6718_v8  ;;  %10329 = vst [vmem:[#allocation19_spill] sm:$0xff] %v6883_v11 }
  0x82   : > { %10330 = vst [vmem:[#allocation20_spill] sm:$0xff] %v6897_v34  ;;  %v6910_v52 = vsel %vm740_vm2, %v772_v56, %v774_v31  ;;  %v6925_v56 = vsel %vm740_vm2, %v812_v21, %v814_v60  ;;  %v6927_v31 = vld [vmem:[#allocation2 + $0x1e8] sm:$0xff]  ;;  %v5719_v21 = vld [vmem:[%s10218_s1 + $0x14] sm:$0xf]  ;;  %v816_v60 = vrot.slane %v496_v1, 7 }
  0x83   : > { %10331 = vst [vmem:[#allocation21_spill] sm:$0xff] %v6902_v46  ;;  %v6916_v0 = vld [vmem:[#allocation2 + $0xe8] sm:$0xff]  ;;  %v817_v7 = vrot.slane %v6927_v31, 7  ;;  %5720 = vmatpush.msk.msrb.mxu1 %vm607_vm0, %v5719_v21  ;;  %v6955_v1 = vld [vmem:[#allocation2 + $0x1f0] sm:$0xff] }
  0x84   : > { %5591 = vmatmul.msk.f32.gmra.mxu1 %vm225_vm1, %v6739_v20  ;;  %10332 = vst [vmem:[#allocation22_spill] sm:$0xff] %v6910_v52  ;;  %v777_v38 = vrot.slane %v6916_v0, 7  ;;  %v819_v21 = vrot.slane %v6955_v1, 7 }
  0x85   : > { %10333 = vst [vmem:[#allocation23_spill] sm:$0xff] %v6925_v56 }
  0x86   : > { %5574 = vmatmul.msk.f32.gmra.mxu2 %vm225_vm1, %v6731_v18  ;;  %10334 = vst [vmem:[#allocation24_spill] sm:$0xff] %v6927_v31  ;;  %v6934_v54 = vsel %vm740_vm2, %v776_v16, %v777_v38 }
  0x87   : > { %10335 = vst [vmem:[#allocation25_spill] sm:$0xff] %v6934_v54 }
  0x88   : > { %10337 = vst [vmem:[#allocation27_spill] sm:$0xff] %v6955_v1 }
  0x89   : > { %5607 = vmatmul.msk.f32.gmra.mxu3 %vm225_vm1, %v6751_v26  ;;  %5559 = vmatmul.msk.f32.gmra.mxu0 %vm225_vm1, %v6742_v23 }
  0x8c   : > { %5592 = vmatmul.msk.f32.gmra.mxu1 %vm225_vm1, %v6763_v30 }
  0x8e   : > { %5575 = vmatmul.msk.f32.gmra.mxu2 %vm225_vm1, %v6755_v28 }
  0x91   : > { %5608 = vmatmul.msk.f32.gmra.mxu3 %vm225_vm1, %v6775_v40  ;;  %5560 = vmatmul.msk.f32.gmra.mxu0 %vm225_vm1, %v6766_v32 }
  0x94   : > { %5593 = vmatmul.msk.f32.gmra.mxu1 %vm225_vm1, %v6787_v49 }
  0x96   : > { %5576 = vmatmul.msk.f32.gmra.mxu2 %vm225_vm1, %v6779_v44 }
  0x99   : > { %5609 = vmatmul.msk.f32.gmra.mxu3 %vm225_vm1, %v6799_v58  ;;  %5561 = vmatmul.msk.f32.gmra.mxu0 %vm225_vm1, %v6790_v53 }
  0x9c   : > { %5594 = vmatmul.msk.f32.gmra.mxu1 %vm225_vm1, %v6811_v63 }
  0x9e   : > { %5577 = vmatmul.msk.f32.gmra.mxu2 %vm225_vm1, %v6803_v61 }
  0xa1   : > { %5610 = vmatmul.msk.f32.gmra.mxu3 %vm225_vm1, %v6823_v14  ;;  %5562 = vmatmul.msk.f32.gmra.mxu0 %vm225_vm1, %v6814_v3 }
  0xa4   : > { %5595 = vmatmul.msk.f32.gmra.mxu1 %vm225_vm1, %v6835_v22 }
  0xa6   : > { %5578 = vmatmul.msk.f32.gmra.mxu2 %vm225_vm1, %v6827_v19 }
  0xa9   : > { %5611 = vmatmul.msk.f32.gmra.mxu3 %vm225_vm1, %v6847_v35  ;;  %5563 = vmatmul.msk.f32.gmra.mxu0 %vm225_vm1, %v6838_v27 }
  0xac   : > { %5596 = vmatmul.msk.f32.gmra.mxu1 %vm225_vm1, %v6859_v43 }
  0xae   : > { %5579 = vmatmul.msk.f32.gmra.mxu2 %vm225_vm1, %v6851_v39 }
  0xb1   : > { %5612 = vmatmul.msk.f32.gmra.mxu3 %vm225_vm1, %v6873_v9  ;;  %5564 = vmatmul.msk.f32.gmra.mxu0 %vm225_vm1, %v6862_v51  ;;  %v6965_v9 = vpop.f32.mrf.mxu0 }
  0xb4   : > { %5597 = vmatmul.msk.f32.gmra.mxu1 %vm225_vm1, %v6883_v11 }
  0xb6   : > { %5580 = vmatmul.msk.f32.gmra.mxu2 %vm225_vm1, %v6876_v12  ;;  %v439_v12 = vld [vmem:[#allocation2 + $0x18] sm:$0xff] }
  0xb9   : > { %5613 = vmatmul.msk.f32.gmra.mxu3 %vm225_vm1, %v6897_v34  ;;  %5565 = vmatmul.msk.f32.gmra.mxu0 %vm225_vm1, %v6886_v24  ;;  %v6943_v34 = vld [vmem:[#allocation2 + $0xf0] sm:$0xff]  ;;  %v6984_v35 = vpop.f32.mrf.mxu0 }
  0xba   : > { %v779_v16 = vrot.slane %v6943_v34, 7 }
  0xbc   : > { %5598 = vmatmul.msk.f32.gmra.mxu1 %vm225_vm1, %v6910_v52  ;;  %v6962_v13 = vsel %vm740_vm2, %v777_v38, %v779_v16  ;;  %v443_v16 = vld [vmem:[#allocation2 + $0x38] sm:$0xff] }
  0xbd   : > { %10338 = vst [vmem:[#allocation28_spill] sm:$0xff] %v6962_v13  ;;  %v1028_v14 = vrot.slane %v443_v16, 1 }
  0xbe   : > { %5581 = vmatmul.msk.f32.gmra.mxu2 %vm225_vm1, %v6902_v46  ;;  %v6971_v46 = vpop.f32.mrf.mxu1 }
  0xc1   : > { %5614 = vmatmul.msk.f32.gmra.mxu3 %vm225_vm1, %v6925_v56  ;;  %5566 = vmatmul.msk.f32.gmra.mxu0 %vm225_vm1, %v6916_v0  ;;  %v6953_v56 = vsel %vm740_vm2, %v816_v60, %v817_v7  ;;  %v1025_v60 = vrot.slane %v6635_v37, 1 }
  0xc2   : > { %10336 = vst [vmem:[#allocation26_spill] sm:$0xff] %v6953_v56 }
  0xc4   : > { %5599 = vmatmul.msk.f32.gmra.mxu1 %vm225_vm1, %v6934_v54 }
  0xc6   : > { %5582 = vmatmul.msk.f32.gmra.mxu2 %vm225_vm1, %v6927_v31  ;;  %v1026_v31 = vrot.slane %v6643_v41, 1 }
  0xc8   : > { %v1027_v38 = vsel %vm1019_vm3, %v1025_v60, %v1026_v31  ;;  %v6996_v60 = vpop.f32.mrf.mxu3 }
  0xc9   : > { %5615 = vmatmul.msk.f32.gmra.mxu3 %vm225_vm1, %v6953_v56  ;;  %5567 = vmatmul.msk.f32.gmra.mxu0 %vm225_vm1, %v6943_v34  ;;  %v6976_v56 = vsel %vm740_vm2, %v817_v7, %v819_v21  ;;  %v1023_v7 = vrot.slane %v439_v12, 1  ;;  %v6989_v21 = vpop.f32.mrf.mxu1  ;;  %10341 = vst [vmem:[#allocation31_spill] sm:$0xff] %v6996_v60  ;;  %v1030_v12 = vrot.slane %v6670_v50, 1 }
  0xca   : > { %10339 = vst [vmem:[#allocation29_spill] sm:$0xff] %v6976_v56 }
  0xcc   : > { %5600 = vmatmul.msk.f32.gmra.mxu1 %vm225_vm1, %v6962_v13 }
  0xce   : > { %5583 = vmatmul.msk.f32.gmra.mxu2 %vm225_vm1, %v6955_v1  ;;  %v6987_v1 = vpop.f32.mrf.mxu2 }
  0xcf   : > { %10340 = vst [vmem:[#allocation30_spill] sm:$0xff] %v6987_v1 }
  0xd1   : > { %5616 = vmatmul.msk.f32.gmra.mxu3 %vm225_vm1, %v6976_v56  ;;  %5687 = vmatmul.msk.f32.vlgmr.msrb.gmra.mxu0 %vm225_vm1, %v6635_v37  ;;  %v1029_v37 = vsel %vm1019_vm3, %v1026_v31, %v1028_v14  ;;  %v10342_v56 = vrot.slane %v6564_v17, 1  ;;  %v447_v14 = vld [vmem:[#allocation2 + $0x58] sm:$0xff] }
  0xd3   : > { %v1024_v16 = vsel %vm1019_vm3, %v10342_v56, %v1023_v7  ;;  %v1033_v7 = vrot.slane %v447_v14, 1  ;;  %v1036_v14 = vrot.slane %v6742_v23, 1 }
  0xd4   : > { %5721 = vmatmul.msk.f32.vlgmr.msrb.gmra.mxu1 %vm225_vm1, %v1027_v38 }
  0xd6   : > { %5619 = vmatmul.msk.f32.vlgmr.msrb.gmra.mxu2 %vm225_vm1, %v1022_v25  ;;  %v1031_v25 = vrot.slane %v6694_v62, 1 }
  0xd8   : > { %v7014_v17 = vsel %vm1019_vm3, %v1030_v12, %v1031_v25  ;;  %v7030_v12 = vsel %vm1019_vm3, %v1031_v25, %v1033_v7  ;;  %v451_v25 = vld [vmem:[#allocation2 + $0x78] sm:$0xff] }
  0xd9   : > { %5653 = vmatmul.msk.f32.vlgmr.msrb.gmra.mxu3 %vm225_vm1, %v6646_v42  ;;  %5688 = vmatmul.msk.f32.gmra.mxu0 %vm225_vm1, %v6643_v41  ;;  %10343 = vst [vmem:[#allocation32_spill] sm:$0xff] %v7014_v17 }
  0xda   : > { %10345 = vst [vmem:[#allocation34_spill] sm:$0xff] %v7030_v12 }
  0xdc   : > { %5722 = vmatmul.msk.f32.gmra.mxu1 %vm225_vm1, %v1029_v37 }
  0xde   : > { %5620 = vmatmul.msk.f32.gmra.mxu2 %vm225_vm1, %v1024_v16  ;;  %v7005_v42 = vpop.f32.mrf.mxu0 }
  0xe1   : > { %v679_v1 = vpop.f32.mrf.mxu2  ;;  %5654 = vmatmul.msk.f32.gmra.mxu3 %vm225_vm1, %v6667_v48  ;;  %v7009_v41 = vpop.f32.mrf.mxu1  ;;  %5689 = vmatmul.msk.f32.gmra.mxu0 %vm225_vm1, %v6670_v50 }
  0xe4   : > { %v956_v56 = vpop.f32.mrf.mxu3  ;;  %5723 = vmatmul.msk.f32.gmra.mxu1 %vm225_vm1, %v7014_v17 }
  0xe5   : > { %v7018_v31 = vadd.f32 %v956_v56, %v679_v1 }
  0xe6   : > { %5621 = vmatmul.msk.f32.gmra.mxu2 %vm225_vm1, %v1027_v38  ;;  %v7021_v16 = vpop.f32.mrf.mxu0  ;;  %v1035_v38 = vrot.slane %v6718_v8, 1 }
  0xe7   : > { %10344 = vst [vmem:[#allocation33_spill] sm:$0xff] %v7018_v31 }
  0xe9   : > { %v682_v48 = vpop.f32.mrf.mxu2  ;;  %5655 = vmatmul.msk.f32.gmra.mxu3 %vm225_vm1, %v6691_v59  ;;  %v7025_v50 = vpop.f32.mrf.mxu1  ;;  %5690 = vmatmul.msk.f32.gmra.mxu0 %vm225_vm1, %v6694_v62 }
  0xec   : > { %v959_v60 = vpop.f32.mrf.mxu3  ;;  %5724 = vmatmul.msk.f32.gmra.mxu1 %vm225_vm1, %v7030_v12 }
  0xed   : > { %v7034_v1 = vadd.f32 %v959_v60, %v682_v48  ;;  %v7048_v60 = vsel %vm1019_vm3, %v1035_v38, %v1036_v14  ;;  %v1038_v48 = vrot.slane %v451_v25, 1 }
  0xee   : > { %5622 = vmatmul.msk.f32.gmra.mxu2 %vm225_vm1, %v1029_v37  ;;  %v7039_v56 = vpop.f32.mrf.mxu0  ;;  %10347 = vst [vmem:[#allocation36_spill] sm:$0xff] %v7048_v60 }
  0xef   : > { %10346 = vst [vmem:[#allocation35_spill] sm:$0xff] %v7034_v1  ;;  %v7065_v38 = vsel %vm1019_vm3, %v1036_v14, %v1038_v48  ;;  %v455_v14 = vld [vmem:[#allocation2 + $0x98] sm:$0xff] }
  0xf0   : > { %10349 = vst [vmem:[#allocation38_spill] sm:$0xff] %v7065_v38 }
  0xf1   : > { %v685_v31 = vpop.f32.mrf.mxu2  ;;  %5656 = vmatmul.msk.f32.gmra.mxu3 %vm225_vm1, %v6715_v6  ;;  %v7043_v62 = vpop.f32.mrf.mxu1  ;;  %5691 = vmatmul.msk.f32.gmra.mxu0 %vm225_vm1, %v6718_v8 }
  0xf4   : > { %v962_v7 = vpop.f32.mrf.mxu3  ;;  %5725 = vmatmul.msk.f32.gmra.mxu1 %vm225_vm1, %v7048_v60 }
  0xf5   : > { %v7052_v37 = vadd.f32 %v962_v7, %v685_v31  ;;  %v1040_v7 = vrot.slane %v6766_v32, 1 }
  0xf6   : > { %5623 = vmatmul.msk.f32.gmra.mxu2 %vm225_vm1, %v7014_v17  ;;  %v7056_v1 = vpop.f32.mrf.mxu0 }
  0xf7   : > { %10348 = vst [vmem:[#allocation37_spill] sm:$0xff] %v7052_v37  ;;  %v1041_v37 = vrot.slane %v6790_v53, 1 }
  0xf9   : > { %v688_v6 = vpop.f32.mrf.mxu2  ;;  %5657 = vmatmul.msk.f32.gmra.mxu3 %vm225_vm1, %v6739_v20  ;;  %v7060_v8 = vpop.f32.mrf.mxu1  ;;  %5692 = vmatmul.msk.f32.gmra.mxu0 %vm225_vm1, %v6742_v23 }
  0xfc   : > { %v965_v31 = vpop.f32.mrf.mxu3  ;;  %5726 = vmatmul.msk.f32.gmra.mxu1 %vm225_vm1, %v7065_v38 }
  0xfd   : > { %v7069_v25 = vadd.f32 %v965_v31, %v688_v6  ;;  %v7084_v6 = vsel %vm1019_vm3, %v1040_v7, %v1041_v37 }
  0xfe   : > { %5624 = vmatmul.msk.f32.gmra.mxu2 %vm225_vm1, %v7030_v12  ;;  %v7075_v20 = vpop.f32.mrf.mxu0  ;;  %10351 = vst [vmem:[#allocation40_spill] sm:$0xff] %v7084_v6 }
  0xff   : > { %10350 = vst [vmem:[#allocation39_spill] sm:$0xff] %v7069_v25  ;;  %v1043_v25 = vrot.slane %v455_v14, 1 }
 0x101   : > { %v691_v59 = vpop.f32.mrf.mxu2  ;;  %5658 = vmatmul.msk.f32.gmra.mxu3 %vm225_vm1, %v6763_v30  ;;  %v7079_v23 = vpop.f32.mrf.mxu1  ;;  %5693 = vmatmul.msk.f32.gmra.mxu0 %vm225_vm1, %v6766_v32  ;;  %v7101_v7 = vsel %vm1019_vm3, %v1041_v37, %v1043_v25  ;;  %v459_v37 = vld [vmem:[#allocation2 + $0xb8] sm:$0xff] }
 0x102   : > { %10353 = vst [vmem:[#allocation42_spill] sm:$0xff] %v7101_v7 }
 0x104   : > { %v968_v48 = vpop.f32.mrf.mxu3  ;;  %5727 = vmatmul.msk.f32.gmra.mxu1 %vm225_vm1, %v7084_v6 }
 0x105   : > { %v7088_v31 = vadd.f32 %v968_v48, %v691_v59  ;;  %v1045_v48 = vrot.slane %v6814_v3, 1 }
 0x106   : > { %5625 = vmatmul.msk.f32.gmra.mxu2 %vm225_vm1, %v7048_v60  ;;  %v7092_v30 = vpop.f32.mrf.mxu0 }
 0x107   : > { %10352 = vst [vmem:[#allocation41_spill] sm:$0xff] %v7088_v31  ;;  %v1046_v31 = vrot.slane %v6838_v27, 1 }
 0x109   : > { %v694_v12 = vpop.f32.mrf.mxu2  ;;  %5659 = vmatmul.msk.f32.gmra.mxu3 %vm225_vm1, %v6787_v49  ;;  %v7096_v32 = vpop.f32.mrf.mxu1  ;;  %5694 = vmatmul.msk.f32.gmra.mxu0 %vm225_vm1, %v6790_v53 }
 0x10c   : > { %v971_v59 = vpop.f32.mrf.mxu3  ;;  %5728 = vmatmul.msk.f32.gmra.mxu1 %vm225_vm1, %v7101_v7 }
 0x10d   : > { %v7105_v14 = vadd.f32 %v971_v59, %v694_v12  ;;  %v7120_v12 = vsel %vm1019_vm3, %v1045_v48, %v1046_v31 }
 0x10e   : > { %5626 = vmatmul.msk.f32.gmra.mxu2 %vm225_vm1, %v7065_v38  ;;  %v7111_v49 = vpop.f32.mrf.mxu0  ;;  %10355 = vst [vmem:[#allocation44_spill] sm:$0xff] %v7120_v12 }
 0x10f   : > { %10354 = vst [vmem:[#allocation43_spill] sm:$0xff] %v7105_v14  ;;  %v1048_v14 = vrot.slane %v459_v37, 1 }
 0x111   : > { %v697_v60 = vpop.f32.mrf.mxu2  ;;  %5660 = vmatmul.msk.f32.gmra.mxu3 %vm225_vm1, %v6811_v63  ;;  %v7115_v53 = vpop.f32.mrf.mxu1  ;;  %5695 = vmatmul.msk.f32.gmra.mxu0 %vm225_vm1, %v6814_v3  ;;  %v7137_v48 = vsel %vm1019_vm3, %v1046_v31, %v1048_v14  ;;  %v463_v31 = vld [vmem:[#allocation2 + $0xd8] sm:$0xff] }
 0x112   : > { %10357 = vst [vmem:[#allocation46_spill] sm:$0xff] %v7137_v48 }
 0x114   : > { %v974_v25 = vpop.f32.mrf.mxu3  ;;  %5729 = vmatmul.msk.f32.gmra.mxu1 %vm225_vm1, %v7120_v12 }
 0x115   : > { %v7124_v59 = vadd.f32 %v974_v25, %v697_v60  ;;  %v1050_v25 = vrot.slane %v6862_v51, 1 }
 0x116   : > { %5627 = vmatmul.msk.f32.gmra.mxu2 %vm225_vm1, %v7084_v6  ;;  %v7128_v63 = vpop.f32.mrf.mxu0 }
 0x117   : > { %10356 = vst [vmem:[#allocation45_spill] sm:$0xff] %v7124_v59  ;;  %v1051_v59 = vrot.slane %v6886_v24, 1 }
 0x119   : > { %v700_v38 = vpop.f32.mrf.mxu2  ;;  %5661 = vmatmul.msk.f32.gmra.mxu3 %vm225_vm1, %v6835_v22  ;;  %v7132_v3 = vpop.f32.mrf.mxu1  ;;  %5696 = vmatmul.msk.f32.gmra.mxu0 %vm225_vm1, %v6838_v27 }
 0x11c   : > { %v977_v60 = vpop.f32.mrf.mxu3  ;;  %5730 = vmatmul.msk.f32.gmra.mxu1 %vm225_vm1, %v7137_v48 }
 0x11d   : > { %v7141_v37 = vadd.f32 %v977_v60, %v700_v38  ;;  %v7156_v38 = vsel %vm1019_vm3, %v1050_v25, %v1051_v59 }
 0x11e   : > { %5628 = vmatmul.msk.f32.gmra.mxu2 %vm225_vm1, %v7101_v7  ;;  %v7147_v22 = vpop.f32.mrf.mxu0  ;;  %10359 = vst [vmem:[#allocation48_spill] sm:$0xff] %v7156_v38 }
 0x11f   : > { %10358 = vst [vmem:[#allocation47_spill] sm:$0xff] %v7141_v37  ;;  %v1053_v37 = vrot.slane %v463_v31, 1 }
 0x121   : > { %v703_v6 = vpop.f32.mrf.mxu2  ;;  %5662 = vmatmul.msk.f32.gmra.mxu3 %vm225_vm1, %v6859_v43  ;;  %v7151_v27 = vpop.f32.mrf.mxu1  ;;  %5697 = vmatmul.msk.f32.gmra.mxu0 %vm225_vm1, %v6862_v51  ;;  %v7173_v25 = vsel %vm1019_vm3, %v1051_v59, %v1053_v37  ;;  %v467_v59 = vld [vmem:[#allocation2 + $0xf8] sm:$0xff] }
 0x122   : > { %10361 = vst [vmem:[#allocation50_spill] sm:$0xff] %v7173_v25 }
 0x124   : > { %v980_v14 = vpop.f32.mrf.mxu3  ;;  %5731 = vmatmul.msk.f32.gmra.mxu1 %vm225_vm1, %v7156_v38 }
 0x125   : > { %v7160_v60 = vadd.f32 %v980_v14, %v703_v6  ;;  %v1055_v14 = vrot.slane %v6916_v0, 1 }
 0x126   : > { %5629 = vmatmul.msk.f32.gmra.mxu2 %vm225_vm1, %v7120_v12  ;;  %v7164_v43 = vpop.f32.mrf.mxu0 }
 0x127   : > { %10360 = vst [vmem:[#allocation49_spill] sm:$0xff] %v7160_v60  ;;  %v1056_v60 = vrot.slane %v6943_v34, 1 }
 0x129   : > { %v706_v7 = vpop.f32.mrf.mxu2  ;;  %5663 = vmatmul.msk.f32.gmra.mxu3 %vm225_vm1, %v6883_v11  ;;  %v7168_v51 = vpop.f32.mrf.mxu1  ;;  %5698 = vmatmul.msk.f32.gmra.mxu0 %vm225_vm1, %v6886_v24 }
 0x12c   : > { %v983_v6 = vpop.f32.mrf.mxu3  ;;  %5732 = vmatmul.msk.f32.gmra.mxu1 %vm225_vm1, %v7173_v25 }
 0x12d   : > { %v7177_v31 = vadd.f32 %v983_v6, %v706_v7  ;;  %v7192_v7 = vsel %vm1019_vm3, %v1055_v14, %v1056_v60 }
 0x12e   : > { %5630 = vmatmul.msk.f32.gmra.mxu2 %vm225_vm1, %v7137_v48  ;;  %v7183_v11 = vpop.f32.mrf.mxu0  ;;  %10363 = vst [vmem:[#allocation52_spill] sm:$0xff] %v7192_v7 }
 0x12f   : > { %10362 = vst [vmem:[#allocation51_spill] sm:$0xff] %v7177_v31  ;;  %v1058_v31 = vrot.slane %v467_v59, 1 }
 0x131   : > { %v709_v12 = vpop.f32.mrf.mxu2  ;;  %5664 = vmatmul.msk.f32.gmra.mxu3 %vm225_vm1, %v6910_v52  ;;  %v7187_v24 = vpop.f32.mrf.mxu1  ;;  %5699 = vmatmul.msk.f32.gmra.mxu0 %vm225_vm1, %v6916_v0  ;;  %v7209_v14 = vsel %vm1019_vm3, %v1056_v60, %v1058_v31  ;;  %v471_v60 = vld [vmem:[#allocation2 + $0x118] sm:$0xff] }
 0x132   : > { %10365 = vst [vmem:[#allocation54_spill] sm:$0xff] %v7209_v14 }
 0x134   : > { %v986_v37 = vpop.f32.mrf.mxu3  ;;  %5733 = vmatmul.msk.f32.gmra.mxu1 %vm225_vm1, %v7192_v7 }
 0x135   : > { %v7196_v6 = vadd.f32 %v986_v37, %v709_v12  ;;  %v1060_v37 = vrot.slane %v6445_v4, 1 }
 0x136   : > { %5631 = vmatmul.msk.f32.gmra.mxu2 %vm225_vm1, %v7156_v38  ;;  %v7200_v52 = vpop.f32.mrf.mxu0 }
 0x137   : > { %10364 = vst [vmem:[#allocation53_spill] sm:$0xff] %v7196_v6  ;;  %v1061_v6 = vrot.slane %v6618_v29, 1 }
 0x139   : > { %v712_v48 = vpop.f32.mrf.mxu2  ;;  %5665 = vmatmul.msk.f32.gmra.mxu3 %vm225_vm1, %v6934_v54  ;;  %v7204_v0 = vpop.f32.mrf.mxu1  ;;  %5700 = vmatmul.msk.f32.gmra.mxu0 %vm225_vm1, %v6943_v34 }
 0x13c   : > { %v989_v12 = vpop.f32.mrf.mxu3  ;;  %5734 = vmatmul.msk.f32.gmra.mxu1 %vm225_vm1, %v7209_v14 }
 0x13d   : > { %v7213_v59 = vadd.f32 %v989_v12, %v712_v48  ;;  %v7228_v48 = vsel %vm1019_vm3, %v1060_v37, %v1061_v6 }
 0x13e   : > { %5632 = vmatmul.msk.f32.gmra.mxu2 %vm225_vm1, %v7173_v25  ;;  %v7219_v54 = vpop.f32.mrf.mxu0 }
 0x13f   : > { %10366 = vst [vmem:[#allocation55_spill] sm:$0xff] %v7213_v59  ;;  %v1063_v59 = vrot.slane %v471_v60, 1 }
 0x141   : > { %v715_v38 = vpop.f32.mrf.mxu2  ;;  %5666 = vmatmul.msk.f32.gmra.mxu3 %vm225_vm1, %v6962_v13  ;;  %v7223_v34 = vpop.f32.mrf.mxu1  ;;  %5701 = vmatmul.msk.f32.gmra.mxu0 %vm225_vm1, %v6445_v4  ;;  %v7245_v37 = vsel %vm1019_vm3, %v1061_v6, %v1063_v59 }
 0x142   : > { %10368 = vst [vmem:[#allocation57_spill] sm:$0xff] %v7245_v37 }
 0x144   : > { %v992_v31 = vpop.f32.mrf.mxu3  ;;  %5735 = vmatmul.msk.f32.gmra.mxu1 %vm225_vm1, %v7228_v48 }
 0x145   : > { %v7232_v12 = vadd.f32 %v992_v31, %v715_v38  ;;  %v1065_v31 = vrot.slane %v6627_v33, 1 }
 0x146   : > { %5633 = vmatmul.msk.f32.gmra.mxu2 %vm225_vm1, %v7192_v7  ;;  %v7236_v13 = vpop.f32.mrf.mxu0 }
 0x147   : > { %10367 = vst [vmem:[#allocation56_spill] sm:$0xff] %v7232_v12  ;;  %v1066_v12 = vrot.slane %v6659_v47, 1 }
 0x149   : > { %v718_v25 = vpop.f32.mrf.mxu2  ;;  %5667 = vmatmul.msk.f32.gmra.mxu3 %vm225_vm1, %v6525_v10  ;;  %v7240_v4 = vpop.f32.mrf.mxu1  ;;  %5702 = vmatmul.msk.f32.gmra.mxu0 %vm225_vm1, %v6618_v29  ;;  %v7260_v6 = vsel %vm1019_vm3, %v1065_v31, %v1066_v12 }
 0x14c   : > { %v995_v38 = vpop.f32.mrf.mxu3  ;;  %5736 = vmatmul.msk.f32.gmra.mxu1 %vm225_vm1, %v7245_v37 }
 0x14d   : > { %v7249_v60 = vadd.f32 %v995_v38, %v718_v25  ;;  %v475_v25 = vld [vmem:[#allocation2 + $0x138] sm:$0xff] }
 0x14e   : > { %5634 = vmatmul.msk.f32.gmra.mxu2 %vm225_vm1, %v7209_v14  ;;  %v1500_v10 = vpop.f32.mrf.mxu0 }
 0x14f   : > { %10369 = vst [vmem:[#allocation58_spill] sm:$0xff] %v7249_v60  ;;  %v1068_v60 = vrot.slane %v475_v25, 1 }
 0x151   : > { %v721_v7 = vpop.f32.mrf.mxu2  ;;  %5668 = vmatmul.msk.f32.gmra.mxu3 %vm225_vm1, %v6633_v36  ;;  %v1660_v29 = vpop.f32.mrf.mxu1  ;;  %5703 = vmatmul.msk.f32.gmra.mxu0 %vm225_vm1, %v6627_v33  ;;  %v906_v36 = vadd.f32 %v6971_v46, %v6965_v9  ;;  %v7275_v33 = vsel %vm1019_vm3, %v1066_v12, %v1068_v60  ;;  %v1071_v9 = vrot.slane %v6707_v5, 1 }
 0x154   : > { %v998_v59 = vpop.f32.mrf.mxu3  ;;  %5737 = vmatmul.msk.f32.gmra.mxu1 %vm225_vm1, %v7260_v6 }
 0x155   : > { %v7264_v38 = vadd.f32 %v998_v59, %v721_v7 }
 0x156   : > { %5635 = vmatmul.msk.f32.gmra.mxu2 %vm225_vm1, %v7228_v48  ;;  %v1503_v14 = vpop.f32.mrf.mxu0 }
 0x157   : > { %10370 = vst [vmem:[#allocation59_spill] sm:$0xff] %v7264_v38  ;;  %v1070_v38 = vrot.slane %v6683_v57, 1 }
 0x159   : > { %v1184_v17 = vpop.f32.mrf.mxu2  ;;  %5669 = vmatmul.msk.f32.gmra.mxu3 %vm225_vm1, %v6655_v45  ;;  %5704 = vmatmul.msk.f32.gmra.mxu0 %vm225_vm1, %v6659_v47  ;;  %v1663_v31 = vpop.f32.mrf.mxu1  ;;  %v909_v47 = vadd.f32 %v6989_v21, %v6984_v35 }
 0x15a   : > { %v1280_v7 = vadd.f32 %v1184_v17, %v906_v36  ;;  %v7292_v17 = vsel %vm1019_vm3, %v1070_v38, %v1071_v9 }
 0x15c   : > { %v1346_v25 = vpop.f32.mrf.mxu3  ;;  %5738 = vmatmul.msk.f32.gmra.mxu1 %vm225_vm1, %v7275_v33 }
 0x15d   : > { %v1442_v59 = vadd.f32 %v1346_v25, %v1280_v7  ;;  %v479_v7 = vld [vmem:[#allocation2 + $0x158] sm:$0xff] }
 0x15e   : > { %5636 = vmatmul.msk.f32.gmra.mxu2 %vm225_vm1, %v7245_v37  ;;  %v1506_v46 = vpop.f32.mrf.mxu0 }
 0x15f   : > { %v1596_v45 = vadd.f32 %v1500_v10, %v1442_v59 }
 0x161   : > { %v7285_v12 = vadd.f32 %v1660_v29, %v1596_v45  ;;  %v1187_v36 = vpop.f32.mrf.mxu2  ;;  %5670 = vmatmul.msk.f32.gmra.mxu3 %vm225_vm1, %v6679_v55  ;;  %5705 = vmatmul.msk.f32.gmra.mxu0 %vm225_vm1, %v6683_v57  ;;  %v1666_v37 = vpop.f32.mrf.mxu1  ;;  %v1073_v45 = vrot.slane %v479_v7, 1  ;;  %v912_v57 = vadd.f32 %v7009_v41, %v7005_v42  ;;  %v1075_v42 = vrot.slane %v6731_v18, 1 }
 0x162   : > { %v1281_v60 = vadd.f32 %v1187_v36, %v909_v47  ;;  %v1076_v41 = vrot.slane %v6755_v28, 1 }
 0x163   : > { %v7307_v59 = vsel %vm1019_vm3, %v1071_v9, %v1073_v45 }
 0x164   : > { %v1349_v25 = vpop.f32.mrf.mxu3  ;;  %5739 = vmatmul.msk.f32.gmra.mxu1 %vm225_vm1, %v7292_v17 }
 0x165   : > { %v1443_v10 = vadd.f32 %v1349_v25, %v1281_v60 }
 0x166   : > { %5637 = vmatmul.msk.f32.gmra.mxu2 %vm225_vm1, %v7260_v6  ;;  %v1509_v35 = vpop.f32.mrf.mxu0 }
 0x167   : > { %v1597_v21 = vadd.f32 %v1503_v14, %v1443_v10  ;;  %v7324_v10 = vsel %vm1019_vm3, %v1075_v42, %v1076_v41 }
 0x169   : > { %v7300_v29 = vadd.f32 %v1663_v31, %v1597_v21  ;;  %v1190_v38 = vpop.f32.mrf.mxu2  ;;  %5671 = vmatmul.msk.f32.gmra.mxu3 %vm225_vm1, %v6703_v2  ;;  %5706 = vmatmul.msk.f32.gmra.mxu0 %vm225_vm1, %v6707_v5  ;;  %v1669_v31 = vpop.f32.mrf.mxu1  ;;  %v915_v5 = vadd.f32 %v7025_v50, %v7021_v16  ;;  %v483_v21 = vld [vmem:[#allocation2 + $0x178] sm:$0xff] }
 0x16a   : > { %v1282_v47 = vadd.f32 %v1190_v38, %v912_v57  ;;  %v1078_v16 = vrot.slane %v483_v21, 1  ;;  %v918_v38 = vadd.f32 %v7043_v62, %v7039_v56  ;;  %v1080_v56 = vrot.slane %v6779_v44, 1 }
 0x16b   : > { %v1081_v62 = vrot.slane %v6803_v61, 1 }
 0x16c   : > { %v1352_v36 = vpop.f32.mrf.mxu3  ;;  %5740 = vmatmul.msk.f32.gmra.mxu1 %vm225_vm1, %v7307_v59 }
 0x16d   : > { %v1444_v14 = vadd.f32 %v1352_v36, %v1282_v47 }
 0x16e   : > { %5638 = vmatmul.msk.f32.gmra.mxu2 %vm225_vm1, %v7275_v33  ;;  %v1512_v60 = vpop.f32.mrf.mxu0 }
 0x16f   : > { %v1598_v7 = vadd.f32 %v1506_v46, %v1444_v14  ;;  %v7339_v14 = vsel %vm1019_vm3, %v1076_v41, %v1078_v16 }
 0x171   : > { %v7317_v9 = vadd.f32 %v1666_v37, %v1598_v7  ;;  %v1193_v25 = vpop.f32.mrf.mxu2  ;;  %5672 = vmatmul.msk.f32.gmra.mxu3 %vm225_vm1, %v6727_v15  ;;  %5707 = vmatmul.msk.f32.gmra.mxu0 %vm225_vm1, %v6731_v18  ;;  %v1672_v18 = vpop.f32.mrf.mxu1 }
 0x172   : > { %v1283_v45 = vadd.f32 %v1193_v25, %v915_v5 }
 0x174   : > { %v1355_v57 = vpop.f32.mrf.mxu3  ;;  %5741 = vmatmul.msk.f32.gmra.mxu1 %vm225_vm1, %v7324_v10 }
 0x175   : > { %v1445_v46 = vadd.f32 %v1355_v57, %v1283_v45  ;;  %v7356_v45 = vsel %vm1019_vm3, %v1080_v56, %v1081_v62 }
 0x176   : > { %5639 = vmatmul.msk.f32.gmra.mxu2 %vm225_vm1, %v7292_v17  ;;  %v1515_v50 = vpop.f32.mrf.mxu0 }
 0x177   : > { %v1599_v37 = vadd.f32 %v1509_v35, %v1445_v46  ;;  %v487_v46 = vld [vmem:[#allocation2 + $0x198] sm:$0xff] }
 0x179   : > { %v7332_v47 = vadd.f32 %v1669_v31, %v1599_v37  ;;  %v1196_v36 = vpop.f32.mrf.mxu2  ;;  %5673 = vmatmul.msk.f32.gmra.mxu3 %vm225_vm1, %v6751_v26  ;;  %5708 = vmatmul.msk.f32.gmra.mxu0 %vm225_vm1, %v6755_v28  ;;  %v921_v28 = vadd.f32 %v7060_v8, %v7056_v1  ;;  %v1675_v57 = vpop.f32.mrf.mxu1  ;;  %v1083_v8 = vrot.slane %v487_v46, 1  ;;  %v491_v46 = vld [vmem:[#allocation2 + $0x1b8] sm:$0xff] }
 0x17a   : > { %v1284_v42 = vadd.f32 %v1196_v36, %v918_v38 }
 0x17b   : > { %v7371_v36 = vsel %vm1019_vm3, %v1081_v62, %v1083_v8 }
 0x17c   : > { %v1358_v7 = vpop.f32.mrf.mxu3  ;;  %5742 = vmatmul.msk.f32.gmra.mxu1 %vm225_vm1, %v7339_v14 }
 0x17d   : > { %v1446_v35 = vadd.f32 %v1358_v7, %v1284_v42 }
 0x17e   : > { %5640 = vmatmul.msk.f32.gmra.mxu2 %vm225_vm1, %v7307_v59  ;;  %v1518_v31 = vpop.f32.mrf.mxu0 }
 0x17f   : > { %v1600_v5 = vadd.f32 %v1512_v60, %v1446_v35 }
 0x181   : > { %v7349_v41 = vadd.f32 %v1672_v18, %v1600_v5  ;;  %v1199_v25 = vpop.f32.mrf.mxu2  ;;  %5674 = vmatmul.msk.f32.gmra.mxu3 %vm225_vm1, %v6775_v40  ;;  %5709 = vmatmul.msk.f32.gmra.mxu0 %vm225_vm1, %v6779_v44  ;;  %v924_v44 = vadd.f32 %v7079_v23, %v7075_v20  ;;  %v1678_v35 = vpop.f32.mrf.mxu1  ;;  %v1085_v20 = vrot.slane %v6827_v19, 1  ;;  %v1086_v23 = vrot.slane %v6851_v39, 1 }
 0x182   : > { %v1285_v21 = vadd.f32 %v1199_v25, %v921_v28  ;;  %v10371_v25 = vld [vmem:[#allocation13_spill] sm:$0xff] }
 0x184   : > { %v1361_v16 = vpop.f32.mrf.mxu3  ;;  %5743 = vmatmul.msk.f32.gmra.mxu1 %vm225_vm1, %v7356_v45 }
 0x185   : > { %v1447_v1 = vadd.f32 %v1361_v16, %v1285_v21  ;;  %v7388_v21 = vsel %vm1019_vm3, %v1085_v20, %v1086_v23 }
 0x186   : > { %5641 = vmatmul.msk.f32.gmra.mxu2 %vm225_vm1, %v7324_v10  ;;  %v1521_v60 = vpop.f32.mrf.mxu0 }
 0x187   : > { %v1601_v37 = vadd.f32 %v1515_v50, %v1447_v1 }
 0x189   : > { %v7364_v38 = vadd.f32 %v1675_v57, %v1601_v37  ;;  %v1202_v18 = vpop.f32.mrf.mxu2  ;;  %5675 = vmatmul.msk.f32.gmra.mxu3 %vm225_vm1, %v6799_v58  ;;  %5710 = vmatmul.msk.f32.gmra.mxu0 %vm225_vm1, %v6803_v61  ;;  %v927_v61 = vadd.f32 %v7096_v32, %v7092_v30  ;;  %v1088_v30 = vrot.slane %v491_v46, 1  ;;  %v1681_v32 = vpop.f32.mrf.mxu1 }
 0x18a   : > { %v1286_v42 = vadd.f32 %v1202_v18, %v924_v44  ;;  %v10372_v18 = vld [vmem:[#allocation15_spill] sm:$0xff] }
 0x18c   : > { %v1364_v7 = vpop.f32.mrf.mxu3  ;;  %5744 = vmatmul.msk.f32.gmra.mxu1 %vm225_vm1, %v7371_v36 }
 0x18d   : > { %v1448_v50 = vadd.f32 %v1364_v7, %v1286_v42  ;;  %v7403_v42 = vsel %vm1019_vm3, %v1086_v23, %v1088_v30  ;;  %v933_v23 = vadd.f32 %v7132_v3, %v7128_v63 }
 0x18e   : > { %5642 = vmatmul.msk.f32.gmra.mxu2 %vm225_vm1, %v7339_v14  ;;  %v1524_v56 = vpop.f32.mrf.mxu0 }
 0x18f   : > { %v1602_v5 = vadd.f32 %v1518_v31, %v1448_v50  ;;  %v10373_v50 = vld [vmem:[#allocation18_spill] sm:$0xff] }
 0x191   : > { %v7381_v62 = vadd.f32 %v1678_v35, %v1602_v5  ;;  %v1205_v28 = vpop.f32.mrf.mxu2  ;;  %5676 = vmatmul.msk.f32.gmra.mxu3 %vm225_vm1, %v10371_v25  ;;  %5711 = vmatmul.msk.f32.gmra.mxu0 %vm225_vm1, %v6827_v19  ;;  %v930_v19 = vadd.f32 %v7115_v53, %v7111_v49  ;;  %v1090_v49 = vrot.slane %v10373_v50, 1  ;;  %v10374_v53 = vld [vmem:[#allocation21_spill] sm:$0xff]  ;;  %v401_v5 = vld [vmem:[%s6420_s25 + $0xf0] sm:$0xff] }
 0x192   : > { %v1287_v57 = vadd.f32 %v1205_v28, %v927_v61  ;;  %v1091_v20 = vrot.slane %v10374_v53, 1  ;;  %434 = vst.msk [vmem:[#allocation2 + $0x208] sm:$0xff] %vm225_vm1, %v401_v5 }
 0x194   : > { %v1367_v16 = vpop.f32.mrf.mxu3  ;;  %5745 = vmatmul.msk.f32.gmra.mxu1 %vm225_vm1, %v7388_v21  ;;  %v7422_v46 = vsel %vm1019_vm3, %v1090_v49, %v1091_v20  ;;  %v10377_v49 = vld [vmem:[#allocation24_spill] sm:$0xff] }
 0x195   : > { %v1449_v31 = vadd.f32 %v1367_v16, %v1287_v57  ;;  %v10375_v57 = vld [vmem:[#allocation17_spill] sm:$0xff]  ;;  %v1095_v5 = vrot.slane %v10377_v49, 1 }
 0x196   : > { %5643 = vmatmul.msk.f32.gmra.mxu2 %vm225_vm1, %v7356_v45  ;;  %v1527_v1 = vpop.f32.mrf.mxu0 }
 0x197   : > { %v1603_v8 = vadd.f32 %v1521_v60, %v1449_v31  ;;  %v495_v31 = vld [vmem:[#allocation2 + $0x1d8] sm:$0xff] }
 0x199   : > { %v7396_v37 = vadd.f32 %v1681_v32, %v1603_v8  ;;  %v1208_v44 = vpop.f32.mrf.mxu2  ;;  %5677 = vmatmul.msk.f32.gmra.mxu3 %vm225_vm1, %v10372_v18  ;;  %5712 = vmatmul.msk.f32.gmra.mxu0 %vm225_vm1, %v6851_v39  ;;  %v1093_v32 = vrot.slane %v495_v31, 1  ;;  %v402_v8 = vld [vmem:[%s6420_s25 + $0xf8] sm:$0xff] }
 0x19a   : > { %v1288_v7 = vadd.f32 %v1208_v44, %v930_v19  ;;  %435 = vst.msk [vmem:[#allocation2 + $0x210] sm:$0xff] %vm225_vm1, %v402_v8  ;;  %v936_v19 = vadd.f32 %v7151_v27, %v7147_v22 }
 0x19c   : > { %v1370_v35 = vpop.f32.mrf.mxu3  ;;  %5746 = vmatmul.msk.f32.gmra.mxu1 %vm225_vm1, %v7403_v42 }
 0x19d   : > { %v1450_v60 = vadd.f32 %v1370_v35, %v1288_v7  ;;  %v10376_v7 = vld [vmem:[#allocation20_spill] sm:$0xff]  ;;  %v7439_v35 = vsel %vm1019_vm3, %v1091_v20, %v1093_v32 }
 0x19e   : > { %5644 = vmatmul.msk.f32.gmra.mxu2 %vm225_vm1, %v7371_v36  ;;  %v1530_v61 = vpop.f32.mrf.mxu0 }
 0x19f   : > { %v7413_v39 = vadd.f32 %v1524_v56, %v1450_v60 }
 0x1a1   : > { %v1211_v28 = vpop.f32.mrf.mxu2  ;;  %5678 = vmatmul.msk.f32.gmra.mxu3 %vm225_vm1, %v10375_v57  ;;  %5713 = vmatmul.msk.f32.gmra.mxu0 %vm225_vm1, %v10373_v50 }
 0x1a2   : > { %v1289_v16 = vadd.f32 %v1211_v28, %v933_v23  ;;  %v10378_v23 = vld [vmem:[#allocation27_spill] sm:$0xff] }
 0x1a3   : > { %v1096_v22 = vrot.slane %v10378_v23, 1 }
 0x1a4   : > { %v1373_v30 = vpop.f32.mrf.mxu3  ;;  %5747 = vmatmul.msk.f32.gmra.mxu1 %vm225_vm1, %v7422_v46 }
 0x1a5   : > { %v1451_v56 = vadd.f32 %v1373_v30, %v1289_v16  ;;  %v10379_v16 = vld [vmem:[#allocation23_spill] sm:$0xff]  ;;  %v7456_v31 = vsel %vm1019_vm3, %v1095_v5, %v1096_v22  ;;  %v7473_v5 = vld [vmem:[#allocation2 + $0x208] sm:$0xff] }
 0x1a6   : > { %5645 = vmatmul.msk.f32.gmra.mxu2 %vm225_vm1, %v7388_v21  ;;  %v1533_v63 = vpop.f32.mrf.mxu0 }
 0x1a7   : > { %v7430_v3 = vadd.f32 %v1527_v1, %v1451_v56  ;;  %v499_v56 = vld [vmem:[#allocation2 + $0x1f8] sm:$0xff] }
 0x1a8   : > { %v1098_v8 = vrot.slane %v499_v56, 1 }
 0x1a9   : > { %v1214_v44 = vpop.f32.mrf.mxu2  ;;  %5679 = vmatmul.msk.f32.gmra.mxu3 %vm225_vm1, %v10376_v7  ;;  %5714 = vmatmul.msk.f32.gmra.mxu0 %vm225_vm1, %v10374_v53  ;;  %v939_v53 = vadd.f32 %v7168_v51, %v7164_v43 }
 0x1aa   : > { %v1290_v60 = vadd.f32 %v1214_v44, %v936_v19  ;;  %v942_v19 = vadd.f32 %v7187_v24, %v7183_v11  ;;  %v1631_v24 = vrot.slane %v7473_v5, 1 }
 0x1ac   : > { %v1376_v50 = vpop.f32.mrf.mxu3  ;;  %5748 = vmatmul.msk.f32.gmra.mxu1 %vm225_vm1, %v7439_v35 }
 0x1ad   : > { %v1452_v1 = vadd.f32 %v1376_v50, %v1290_v60  ;;  %v10380_v60 = vld [vmem:[#allocation26_spill] sm:$0xff]  ;;  %v7471_v50 = vsel %vm1019_vm3, %v1096_v22, %v1098_v8 }
 0x1ae   : > { %5646 = vmatmul.msk.f32.gmra.mxu2 %vm225_vm1, %v7403_v42  ;;  %v1536_v27 = vpop.f32.mrf.mxu0 }
 0x1af   : > { %v7447_v28 = vadd.f32 %v1530_v61, %v1452_v1 }
 0x1b1   : > { %v1217_v20 = vpop.f32.mrf.mxu2  ;;  %5680 = vmatmul.msk.f32.gmra.mxu3 %vm225_vm1, %v10379_v16  ;;  %5715 = vmatmul.msk.f32.gmra.mxu0 %vm225_vm1, %v10377_v49 }
 0x1b2   : > { %v1291_v30 = vadd.f32 %v1217_v20, %v939_v53  ;;  %v500_v20 = vld [vmem:[#allocation2 + $0x200] sm:$0xff] }
 0x1b4   : > { %v1379_v32 = vpop.f32.mrf.mxu3  ;;  %5749 = vmatmul.msk.f32.gmra.mxu1 %vm225_vm1, %v7456_v31 }
 0x1b5   : > { %v1453_v61 = vadd.f32 %v1379_v32, %v1291_v30  ;;  %v945_v30 = vadd.f32 %v7204_v0, %v7200_v52  ;;  %v10382_v32 = vld [vmem:[#allocation29_spill] sm:$0xff] }
 0x1b6   : > { %5647 = vmatmul.msk.f32.gmra.mxu2 %vm225_vm1, %v7422_v46  ;;  %v1539_v43 = vpop.f32.mrf.mxu0 }
 0x1b7   : > { %v7462_v51 = vadd.f32 %v1533_v63, %v1453_v61  ;;  %v7477_v63 = vld [vmem:[#allocation2 + $0x210] sm:$0xff] }
 0x1b8   : > { %10381 = vst [vmem:[#allocation13_spill] sm:$0xff] %v7477_v63  ;;  %v1632_v53 = vrot.slane %v7477_v63, 1 }
 0x1b9   : > { %v1220_v44 = vpop.f32.mrf.mxu2  ;;  %5681 = vmatmul.msk.f32.gmra.mxu3 %vm225_vm1, %v10380_v60  ;;  %5716 = vmatmul.msk.f32.gmra.mxu0 %vm225_vm1, %v10378_v23 }
 0x1ba   : > { %v1292_v1 = vadd.f32 %v1220_v44, %v942_v19  ;;  %v7492_v61 = vsel %vm1019_vm3, %v1631_v24, %v1632_v53  ;;  %v1317_v19 = vrot.slane %v500_v20, 7  ;;  %v1318_v44 = vrot.slane %v7473_v5, 7 }
 0x1bb   : > { %v948_v20 = vadd.f32 %v7223_v34, %v7219_v54  ;;  %v5855_v54 = vld [vmem:[%s10220_s3 + $0x8] sm:$0xff] }
 0x1bc   : > { %v1382_v49 = vpop.f32.mrf.mxu3  ;;  %5750 = vmatmul.msk.f32.gmra.mxu1 %vm225_vm1, %v7471_v50 }
 0x1bd   : > { %v1454_v11 = vadd.f32 %v1382_v49, %v1292_v1  ;;  %v7500_v49 = vsel %vm740_vm2, %v1317_v19, %v1318_v44  ;;  %v1320_v19 = vrot.slane %v7477_v63, 7  ;;  %3166 = vmatpush.msra.mxu1 %v5855_v54 }
 0x1be   : > { %5648 = vmatmul.msk.f32.gmra.mxu2 %vm225_vm1, %v7439_v35  ;;  %v1542_v23 = vpop.f32.mrf.mxu0 }
 0x1bf   : > { %v7483_v22 = vadd.f32 %v1536_v27, %v1454_v11  ;;  %v503_v27 = vld [vmem:[#allocation2 + $0x218] sm:$0xff]  ;;  %v7522_v34 = vsel %vm740_vm2, %v1318_v44, %v1320_v19 }
 0x1c0   : > { %v1634_v0 = vrot.slane %v503_v27, 1 }
 0x1c1   : > { %v1223_v56 = vpop.f32.mrf.mxu2  ;;  %5682 = vmatmul.msk.f32.gmra.mxu3 %vm225_vm1, %v10382_v32  ;;  %5717 = vmatmul.msk.f32.gmra.mxu0 %vm225_vm1, %v7473_v5 }
 0x1c2   : > { %v1293_v8 = vadd.f32 %v1223_v56, %v945_v30  ;;  %v7511_v56 = vsel %vm1019_vm3, %v1632_v53, %v1634_v0 }
 0x1c4   : > { %v1385_v1 = vpop.f32.mrf.mxu3  ;;  %5751 = vmatmul.msk.f32.gmra.mxu1 %vm225_vm1, %v7492_v61 }
 0x1c5   : > { %v1455_v52 = vadd.f32 %v1385_v1, %v1293_v8 }
 0x1c6   : > { %5649 = vmatmul.msk.f32.gmra.mxu2 %vm225_vm1, %v7456_v31  ;;  %v1545_v11 = vpop.f32.mrf.mxu0 }
 0x1c7   : > { %v7502_v24 = vadd.f32 %v1539_v43, %v1455_v52  ;;  %v951_v52 = vadd.f32 %v7240_v4, %v7236_v13  ;;  %v6299_v4 = vld [vmem:[#allocation2 + $0x48] sm:$0xff] }
 0x1c9   : > { %v1226_v30 = vpop.f32.mrf.mxu2  ;;  %5683 = vmatmul.msk.f32.gmra.mxu3 %vm225_vm1, %v7500_v49  ;;  %5718 = vmatmul.msk.f32.gmra.mxu0 %vm225_vm1, %v7477_v63  ;;  %v10385_v63 = vld [vmem:[#allocation7_spill] sm:$0xff] }
 0x1ca   : > { %v1294_v8 = vadd.f32 %v1226_v30, %v948_v20  ;;  %v10384_v20 = vld [vmem:[#allocation32_spill] sm:$0xff] }
 0x1cc   : > { %v1388_v27 = vpop.f32.mrf.mxu3  ;;  %5752 = vmatmul.msk.f32.gmra.mxu1 %vm225_vm1, %v7511_v56 }
 0x1cd   : > { %v1456_v43 = vadd.f32 %v1388_v27, %v1294_v8 }
 0x1ce   : > { %5650 = vmatmul.msk.f32.gmra.mxu2 %vm225_vm1, %v7471_v50  ;;  %v1548_v53 = vpop.f32.mrf.mxu0 }
 0x1cf   : > { %v7524_v1 = vadd.f32 %v1542_v23, %v1456_v43  ;;  %v10387_v23 = vld [vmem:[#allocation30_spill] sm:$0xff]  ;;  %v10388_v43 = vld [vmem:[#allocation31_spill] sm:$0xff] }
 0x1d0   : > { %v954_v54 = vadd.f32 %v10388_v43, %v10387_v23  ;;  %v10392_v23 = vld [vmem:[#allocation36_spill] sm:$0xff]  ;;  %v10393_v43 = vld [vmem:[#allocation33_spill] sm:$0xff] }
 0x1d1   : > { %10383 = vst [vmem:[#allocation15_spill] sm:$0xff] %v7524_v1  ;;  %v1229_v0 = vpop.f32.mrf.mxu2  ;;  %5684 = vmatmul.msk.f32.gmra.mxu3 %vm225_vm1, %v7522_v34  ;;  %5823 = vmatmul.msk.f32.vlgmr.msra.gmra.mxu0 %vm225_vm1, %v10384_v20  ;;  %v10389_v1 = vld [vmem:[#allocation34_spill] sm:$0xff] }
 0x1d2   : > { %v1295_v30 = vadd.f32 %v1229_v0, %v951_v52 }
 0x1d4   : > { %v1391_v8 = vpop.f32.mrf.mxu3 }
 0x1d5   : > { %v1457_v27 = vadd.f32 %v1391_v8, %v1295_v30  ;;  %v10390_v30 = vld [vmem:[#allocation8_spill] sm:$0xff] }
 0x1d6   : > { %5755 = vmatmul.msk.f32.vlgmr.msra.gmra.mxu2 %vm225_vm1, %v10385_v63  ;;  %v1551_v44 = vpop.f32.mrf.mxu0 }
 0x1d7   : > { %v7534_v19 = vadd.f32 %v1545_v11, %v1457_v27  ;;  %v6300_v27 = vld [vmem:[#allocation2 + $0x50] sm:$0xff] }
 0x1d9   : > { %10386 = vst [vmem:[#allocation18_spill] sm:$0xff] %v7534_v19  ;;  %v1232_v13 = vpop.f32.mrf.mxu2  ;;  %5789 = vmatmul.msk.f32.vlgmr.msra.gmra.mxu3 %vm225_vm1, %v6299_v4  ;;  %5824 = vmatmul.msk.f32.gmra.mxu0 %vm225_vm1, %v10389_v1 }
 0x1da   : > { %v1296_v20 = vadd.f32 %v1232_v13, %v954_v54  ;;  %v10394_v54 = vld [vmem:[#allocation9_spill] sm:$0xff] }
 0x1dc   : > { %v1394_v52 = vpop.f32.mrf.mxu3 }
 0x1dd   : > { %v1458_v0 = vadd.f32 %v1394_v52, %v1296_v20 }
 0x1de   : > { %5756 = vmatmul.msk.f32.gmra.mxu2 %vm225_vm1, %v10390_v30  ;;  %v1554_v63 = vpop.f32.mrf.mxu0  ;;  %v10397_v30 = vld [vmem:[#allocation35_spill] sm:$0xff] }
 0x1df   : > { %v7543_v8 = vadd.f32 %v1548_v53, %v1458_v0  ;;  %v6301_v53 = vld [vmem:[#allocation2 + $0x68] sm:$0xff]  ;;  %v10396_v0 = vld [vmem:[#allocation38_spill] sm:$0xff] }
 0x1e1   : > { %10391 = vst [vmem:[#allocation21_spill] sm:$0xff] %v7543_v8  ;;  %v1235_v11 = vpop.f32.mrf.mxu2  ;;  %5790 = vmatmul.msk.f32.gmra.mxu3 %vm225_vm1, %v6300_v27  ;;  %5825 = vmatmul.msk.f32.gmra.mxu0 %vm225_vm1, %v10392_v23 }
 0x1e2   : > { %v1297_v4 = vadd.f32 %v1235_v11, %v10393_v43  ;;  %v10398_v11 = vld [vmem:[#allocation10_spill] sm:$0xff] }
 0x1e4   : > { %v1397_v19 = vpop.f32.mrf.mxu3 }
 0x1e5   : > { %v1459_v1 = vadd.f32 %v1397_v19, %v1297_v4 }
 0x1e6   : > { %5757 = vmatmul.msk.f32.gmra.mxu2 %vm225_vm1, %v10394_v54  ;;  %v1557_v13 = vpop.f32.mrf.mxu0  ;;  %v10401_v54 = vld [vmem:[#allocation37_spill] sm:$0xff] }
 0x1e7   : > { %v7551_v20 = vadd.f32 %v1551_v44, %v1459_v1  ;;  %v6302_v44 = vld [vmem:[#allocation2 + $0x70] sm:$0xff]  ;;  %v10400_v1 = vld [vmem:[#allocation40_spill] sm:$0xff] }
 0x1e9   : > { %10395 = vst [vmem:[#allocation17_spill] sm:$0xff] %v7551_v20  ;;  %v1238_v52 = vpop.f32.mrf.mxu2  ;;  %5791 = vmatmul.msk.f32.gmra.mxu3 %vm225_vm1, %v6301_v53  ;;  %5826 = vmatmul.msk.f32.gmra.mxu0 %vm225_vm1, %v10396_v0 }
 0x1ea   : > { %v1298_v27 = vadd.f32 %v1238_v52, %v10397_v30  ;;  %v10402_v52 = vld [vmem:[#allocation11_spill] sm:$0xff] }
 0x1ec   : > { %v1400_v23 = vpop.f32.mrf.mxu3 }
 0x1ed   : > { %v1460_v8 = vadd.f32 %v1400_v23, %v1298_v27 }
 0x1ee   : > { %5758 = vmatmul.msk.f32.gmra.mxu2 %vm225_vm1, %v10398_v11  ;;  %v1560_v19 = vpop.f32.mrf.mxu0  ;;  %v10405_v11 = vld [vmem:[#allocation39_spill] sm:$0xff] }
 0x1ef   : > { %v7559_v43 = vadd.f32 %v1554_v63, %v1460_v8  ;;  %v6303_v63 = vld [vmem:[#allocation2 + $0x88] sm:$0xff]  ;;  %v10404_v8 = vld [vmem:[#allocation42_spill] sm:$0xff] }
 0x1f1   : > { %10399 = vst [vmem:[#allocation20_spill] sm:$0xff] %v7559_v43  ;;  %v1241_v4 = vpop.f32.mrf.mxu2  ;;  %5792 = vmatmul.msk.f32.gmra.mxu3 %vm225_vm1, %v6302_v44  ;;  %5827 = vmatmul.msk.f32.gmra.mxu0 %vm225_vm1, %v10400_v1 }
 0x1f2   : > { %v1299_v53 = vadd.f32 %v1241_v4, %v10401_v54  ;;  %v10406_v4 = vld [vmem:[#allocation12_spill] sm:$0xff] }
 0x1f4   : > { %v1403_v0 = vpop.f32.mrf.mxu3 }
 0x1f5   : > { %v1461_v20 = vadd.f32 %v1403_v0, %v1299_v53 }
 0x1f6   : > { %5759 = vmatmul.msk.f32.gmra.mxu2 %vm225_vm1, %v10402_v52  ;;  %v1563_v30 = vpop.f32.mrf.mxu0  ;;  %v10409_v52 = vld [vmem:[#allocation41_spill] sm:$0xff] }
 0x1f7   : > { %v7567_v27 = vadd.f32 %v1557_v13, %v1461_v20  ;;  %v6304_v13 = vld [vmem:[#allocation2 + $0x90] sm:$0xff]  ;;  %v10408_v20 = vld [vmem:[#allocation44_spill] sm:$0xff] }
 0x1f9   : > { %10403 = vst [vmem:[#allocation24_spill] sm:$0xff] %v7567_v27  ;;  %v1244_v23 = vpop.f32.mrf.mxu2  ;;  %5793 = vmatmul.msk.f32.gmra.mxu3 %vm225_vm1, %v6303_v63  ;;  %5828 = vmatmul.msk.f32.gmra.mxu0 %vm225_vm1, %v10404_v8 }
 0x1fa   : > { %v1300_v44 = vadd.f32 %v1244_v23, %v10405_v11  ;;  %v10410_v23 = vld [vmem:[#allocation14_spill] sm:$0xff] }
 0x1fc   : > { %v1406_v1 = vpop.f32.mrf.mxu3 }
 0x1fd   : > { %v1462_v43 = vadd.f32 %v1406_v1, %v1300_v44 }
 0x1fe   : > { %5760 = vmatmul.msk.f32.gmra.mxu2 %vm225_vm1, %v10406_v4  ;;  %v1566_v54 = vpop.f32.mrf.mxu0  ;;  %v10413_v4 = vld [vmem:[#allocation43_spill] sm:$0xff] }
 0x1ff   : > { %v7575_v53 = vadd.f32 %v1560_v19, %v1462_v43  ;;  %v6305_v19 = vld [vmem:[#allocation2 + $0xa8] sm:$0xff]  ;;  %v10412_v43 = vld [vmem:[#allocation46_spill] sm:$0xff] }
 0x201   : > { %10407 = vst [vmem:[#allocation27_spill] sm:$0xff] %v7575_v53  ;;  %v1247_v0 = vpop.f32.mrf.mxu2  ;;  %5794 = vmatmul.msk.f32.gmra.mxu3 %vm225_vm1, %v6304_v13  ;;  %5829 = vmatmul.msk.f32.gmra.mxu0 %vm225_vm1, %v10408_v20 }
 0x202   : > { %v1301_v63 = vadd.f32 %v1247_v0, %v10409_v52  ;;  %v10414_v0 = vld [vmem:[#allocation16_spill] sm:$0xff] }
 0x204   : > { %v1409_v8 = vpop.f32.mrf.mxu3 }
 0x205   : > { %v1463_v27 = vadd.f32 %v1409_v8, %v1301_v63 }
 0x206   : > { %5761 = vmatmul.msk.f32.gmra.mxu2 %vm225_vm1, %v10410_v23  ;;  %v1569_v11 = vpop.f32.mrf.mxu0  ;;  %v10417_v23 = vld [vmem:[#allocation45_spill] sm:$0xff] }
 0x207   : > { %v7583_v44 = vadd.f32 %v1563_v30, %v1463_v27  ;;  %v6306_v30 = vld [vmem:[#allocation2 + $0xb0] sm:$0xff]  ;;  %v10416_v27 = vld [vmem:[#allocation48_spill] sm:$0xff] }
 0x209   : > { %10411 = vst [vmem:[#allocation23_spill] sm:$0xff] %v7583_v44  ;;  %v1250_v1 = vpop.f32.mrf.mxu2  ;;  %5795 = vmatmul.msk.f32.gmra.mxu3 %vm225_vm1, %v6305_v19  ;;  %5830 = vmatmul.msk.f32.gmra.mxu0 %vm225_vm1, %v10412_v43 }
 0x20a   : > { %v1302_v13 = vadd.f32 %v1250_v1, %v10413_v4  ;;  %v10418_v1 = vld [vmem:[#allocation19_spill] sm:$0xff] }
 0x20c   : > { %v1412_v20 = vpop.f32.mrf.mxu3 }
 0x20d   : > { %v1464_v53 = vadd.f32 %v1412_v20, %v1302_v13 }
 0x20e   : > { %5762 = vmatmul.msk.f32.gmra.mxu2 %vm225_vm1, %v10414_v0  ;;  %v1572_v52 = vpop.f32.mrf.mxu0  ;;  %v10421_v0 = vld [vmem:[#allocation47_spill] sm:$0xff] }
 0x20f   : > { %v7591_v63 = vadd.f32 %v1566_v54, %v1464_v53  ;;  %v6307_v54 = vld [vmem:[#allocation2 + $0xc8] sm:$0xff]  ;;  %v10420_v53 = vld [vmem:[#allocation50_spill] sm:$0xff] }
 0x211   : > { %10415 = vst [vmem:[#allocation26_spill] sm:$0xff] %v7591_v63  ;;  %v1253_v8 = vpop.f32.mrf.mxu2  ;;  %5796 = vmatmul.msk.f32.gmra.mxu3 %vm225_vm1, %v6306_v30  ;;  %5831 = vmatmul.msk.f32.gmra.mxu0 %vm225_vm1, %v10416_v27 }
 0x212   : > { %v1303_v19 = vadd.f32 %v1253_v8, %v10417_v23  ;;  %v10422_v8 = vld [vmem:[#allocation22_spill] sm:$0xff] }
 0x214   : > { %v1415_v43 = vpop.f32.mrf.mxu3 }
 0x215   : > { %v1465_v44 = vadd.f32 %v1415_v43, %v1303_v19 }
 0x216   : > { %5763 = vmatmul.msk.f32.gmra.mxu2 %vm225_vm1, %v10418_v1  ;;  %v1575_v4 = vpop.f32.mrf.mxu0  ;;  %v10425_v1 = vld [vmem:[#allocation49_spill] sm:$0xff] }
 0x217   : > { %v7599_v13 = vadd.f32 %v1569_v11, %v1465_v44  ;;  %v6308_v11 = vld [vmem:[#allocation2 + $0xd0] sm:$0xff]  ;;  %v10424_v44 = vld [vmem:[#allocation52_spill] sm:$0xff] }
 0x219   : > { %10419 = vst [vmem:[#allocation29_spill] sm:$0xff] %v7599_v13  ;;  %v1256_v20 = vpop.f32.mrf.mxu2  ;;  %5797 = vmatmul.msk.f32.gmra.mxu3 %vm225_vm1, %v6307_v54  ;;  %5832 = vmatmul.msk.f32.gmra.mxu0 %vm225_vm1, %v10420_v53 }
 0x21a   : > { %v1304_v30 = vadd.f32 %v1256_v20, %v10421_v0  ;;  %v10426_v20 = vld [vmem:[#allocation25_spill] sm:$0xff] }
 0x21c   : > { %v1418_v27 = vpop.f32.mrf.mxu3 }
 0x21d   : > { %v1466_v63 = vadd.f32 %v1418_v27, %v1304_v30 }
 0x21e   : > { %5764 = vmatmul.msk.f32.gmra.mxu2 %vm225_vm1, %v10422_v8  ;;  %v1578_v23 = vpop.f32.mrf.mxu0  ;;  %v10428_v8 = vld [vmem:[#allocation51_spill] sm:$0xff] }
 0x21f   : > { %v7607_v19 = vadd.f32 %v1572_v52, %v1466_v63  ;;  %v6309_v52 = vld [vmem:[#allocation2 + $0xe8] sm:$0xff]  ;;  %v10427_v63 = vld [vmem:[#allocation54_spill] sm:$0xff] }
 0x221   : > { %10423 = vst [vmem:[#allocation32_spill] sm:$0xff] %v7607_v19  ;;  %v1259_v43 = vpop.f32.mrf.mxu2  ;;  %5798 = vmatmul.msk.f32.gmra.mxu3 %vm225_vm1, %v6308_v11  ;;  %5833 = vmatmul.msk.f32.gmra.mxu0 %vm225_vm1, %v10424_v44 }
 0x222   : > { %v1305_v54 = vadd.f32 %v1259_v43, %v10425_v1  ;;  %v10429_v43 = vld [vmem:[#allocation28_spill] sm:$0xff] }
 0x224   : > { %v1421_v53 = vpop.f32.mrf.mxu3 }
 0x225   : > { %v1467_v13 = vadd.f32 %v1421_v53, %v1305_v54 }
 0x226   : > { %5765 = vmatmul.msk.f32.gmra.mxu2 %vm225_vm1, %v10426_v20  ;;  %v1581_v0 = vpop.f32.mrf.mxu0 }
 0x227   : > { %v7615_v30 = vadd.f32 %v1575_v4, %v1467_v13  ;;  %v6310_v4 = vld [vmem:[#allocation2 + $0xf0] sm:$0xff]  ;;  %v10431_v13 = vld [vmem:[#allocation53_spill] sm:$0xff] }
 0x229   : > { %v1262_v27 = vpop.f32.mrf.mxu2  ;;  %5799 = vmatmul.msk.f32.gmra.mxu3 %vm225_vm1, %v6309_v52  ;;  %5834 = vmatmul.msk.f32.gmra.mxu0 %vm225_vm1, %v10427_v63 }
 0x22a   : > { %v1306_v11 = vadd.f32 %v1262_v27, %v10428_v8  ;;  %v10432_v27 = vld [vmem:[#allocation4_spill] sm:$0xff] }
 0x22c   : > { %v1424_v44 = vpop.f32.mrf.mxu3 }
 0x22d   : > { %v1468_v19 = vadd.f32 %v1424_v44, %v1306_v11 }
 0x22e   : > { %5766 = vmatmul.msk.f32.gmra.mxu2 %vm225_vm1, %v10429_v43  ;;  %v1584_v1 = vpop.f32.mrf.mxu0  ;;  %v10434_v43 = vld [vmem:[#allocation55_spill] sm:$0xff] }
 0x22f   : > { %v7623_v54 = vadd.f32 %v1578_v23, %v1468_v19  ;;  %v6311_v23 = vld [vmem:[#allocation2 + $0x108] sm:$0xff] }
 0x230   : > { %v10433_v19 = vld [vmem:[#allocation57_spill] sm:$0xff] }
 0x231   : > { %10430 = vst [vmem:[#allocation7_spill] sm:$0xff] %v7623_v54  ;;  %v1265_v53 = vpop.f32.mrf.mxu2  ;;  %5800 = vmatmul.msk.f32.gmra.mxu3 %vm225_vm1, %v6310_v4  ;;  %5835 = vmatmul.msk.f32.gmra.mxu0 %vm225_vm1, %v7228_v48 }
 0x232   : > { %v1307_v20 = vadd.f32 %v1265_v53, %v10431_v13  ;;  %v10435_v53 = vld [vmem:[#allocation5_spill] sm:$0xff] }
 0x234   : > { %v1427_v52 = vpop.f32.mrf.mxu3 }
 0x235   : > { %v1469_v63 = vadd.f32 %v1427_v52, %v1307_v20 }
 0x236   : > { %5767 = vmatmul.msk.f32.gmra.mxu2 %vm225_vm1, %v10432_v27  ;;  %v1587_v8 = vpop.f32.mrf.mxu0 }
 0x237   : > { %v7631_v11 = vadd.f32 %v1581_v0, %v1469_v63  ;;  %v6312_v0 = vld [vmem:[#allocation2 + $0x110] sm:$0xff]  ;;  %v10436_v63 = vld [vmem:[#allocation56_spill] sm:$0xff] }
 0x239   : > { %v1268_v44 = vpop.f32.mrf.mxu2  ;;  %5801 = vmatmul.msk.f32.gmra.mxu3 %vm225_vm1, %v6311_v23  ;;  %5836 = vmatmul.msk.f32.gmra.mxu0 %vm225_vm1, %v10433_v19 }
 0x23a   : > { %v1308_v4 = vadd.f32 %v1268_v44, %v10434_v43  ;;  %v10437_v44 = vld [vmem:[#allocation6_spill] sm:$0xff] }
 0x23c   : > { %v1430_v48 = vpop.f32.mrf.mxu3 }
 0x23d   : > { %v1470_v54 = vadd.f32 %v1430_v48, %v1308_v4  ;;  %v6313_v48 = vld [vmem:[#allocation2 + $0x128] sm:$0xff] }
 0x23e   : > { %5768 = vmatmul.msk.f32.gmra.mxu2 %vm225_vm1, %v10435_v53  ;;  %v1590_v13 = vpop.f32.mrf.mxu0 }
 0x23f   : > { %v7639_v20 = vadd.f32 %v1584_v1, %v1470_v54  ;;  %v10438_v1 = vmov 0.0  }
 0x240   : > { %299 = vst.msk [vmem:[#allocation3] sm:$0xff] %vm298_vm4, %v10438_v1 }
 0x241   : > { %v1271_v52 = vpop.f32.mrf.mxu2  ;;  %5802 = vmatmul.msk.f32.gmra.mxu3 %vm225_vm1, %v6312_v0  ;;  %5837 = vmatmul.msk.f32.gmra.mxu0 %vm225_vm1, %v7260_v6  ;;  %300 = vst.msk [vmem:[#allocation3 + $0x8] sm:$0xff] %vm298_vm4, %v10438_v1  ;;  %v10439_v6 = vld [vmem:[#allocation58_spill] sm:$0xff] }
 0x242   : > { %v1309_v27 = vadd.f32 %v1271_v52, %v10436_v63  ;;  %301 = vst.msk [vmem:[#allocation3 + $0x10] sm:$0xff] %vm298_vm4, %v10438_v1 }
 0x243   : > { %302 = vst.msk [vmem:[#allocation3 + $0x18] sm:$0xff] %vm298_vm4, %v10438_v1 }
 0x244   : > { %v1433_v23 = vpop.f32.mrf.mxu3  ;;  %303 = vst.msk [vmem:[#allocation3 + $0x20] sm:$0xff] %vm298_vm4, %v10438_v1 }
 0x245   : > { %v1471_v19 = vadd.f32 %v1433_v23, %v1309_v27  ;;  %304 = vst.msk [vmem:[#allocation3 + $0x28] sm:$0xff] %vm298_vm4, %v10438_v1  ;;  %v6314_v27 = vld [vmem:[#allocation2 + $0x130] sm:$0xff] }
 0x246   : > { %5769 = vmatmul.msk.f32.gmra.mxu2 %vm225_vm1, %v10437_v44  ;;  %v1593_v43 = vpop.f32.mrf.mxu0  ;;  %305 = vst.msk [vmem:[#allocation3 + $0x30] sm:$0xff] %vm298_vm4, %v10438_v1 }
 0x247   : > { %v7647_v4 = vadd.f32 %v1587_v8, %v1471_v19  ;;  %306 = vst.msk [vmem:[#allocation3 + $0x38] sm:$0xff] %vm298_vm4, %v10438_v1 }
 0x248   : > { %307 = vst.msk [vmem:[#allocation3 + $0x40] sm:$0xff] %vm298_vm4, %v10438_v1 }
 0x249   : > { %v1274_v54 = vpop.f32.mrf.mxu2  ;;  %5803 = vmatmul.msk.f32.gmra.mxu3 %vm225_vm1, %v6313_v48  ;;  %5838 = vmatmul.msk.f32.gmra.mxu0 %vm225_vm1, %v7275_v33  ;;  %308 = vst.msk [vmem:[#allocation3 + $0x48] sm:$0xff] %vm298_vm4, %v10438_v1  ;;  %v6315_v48 = vld [vmem:[#allocation2 + $0x148] sm:$0xff] }
 0x24a   : > { %v1310_v53 = vadd.f32 %v1274_v54, %v10439_v6  ;;  %309 = vst.msk [vmem:[#allocation3 + $0x50] sm:$0xff] %vm298_vm4, %v10438_v1 }
 0x24b   : > { %310 = vst.msk [vmem:[#allocation3 + $0x58] sm:$0xff] %vm298_vm4, %v10438_v1 }
 0x24c   : > { %v1436_v8 = vpop.f32.mrf.mxu3  ;;  %311 = vst.msk [vmem:[#allocation3 + $0x60] sm:$0xff] %vm298_vm4, %v10438_v1 }
 0x24d   : > { %v1472_v52 = vadd.f32 %v1436_v8, %v1310_v53  ;;  %312 = vst.msk [vmem:[#allocation3 + $0x68] sm:$0xff] %vm298_vm4, %v10438_v1 }
 0x24e   : > { %5770 = vmatmul.msk.f32.gmra.mxu2 %vm225_vm1, %v6679_v55  ;;  %v2136_v33 = vpop.f32.mrf.mxu0  ;;  %v10440_v55 = vld [vmem:[#allocation59_spill] sm:$0xff]  ;;  %313 = vst.msk [vmem:[#allocation3 + $0x70] sm:$0xff] %vm298_vm4, %v10438_v1 }
 0x24f   : > { %v7669_v0 = vadd.f32 %v1590_v13, %v1472_v52  ;;  %314 = vst.msk [vmem:[#allocation3 + $0x78] sm:$0xff] %vm298_vm4, %v10438_v1 }
 0x250   : > { %315 = vst.msk [vmem:[#allocation3 + $0x80] sm:$0xff] %vm298_vm4, %v10438_v1 }
 0x251   : > { %v1277_v63 = vpop.f32.mrf.mxu2  ;;  %5804 = vmatmul.msk.f32.gmra.mxu3 %vm225_vm1, %v6314_v27  ;;  %5839 = vmatmul.msk.f32.gmra.mxu0 %vm225_vm1, %v7292_v17  ;;  %316 = vst.msk [vmem:[#allocation3 + $0x88] sm:$0xff] %vm298_vm4, %v10438_v1 }
 0x252   : > { %v1311_v23 = vadd.f32 %v1277_v63, %v10440_v55  ;;  %317 = vst.msk [vmem:[#allocation3 + $0x90] sm:$0xff] %vm298_vm4, %v10438_v1  ;;  %v6316_v63 = vld [vmem:[#allocation2 + $0x150] sm:$0xff]  ;;  %v7739_v55 = vpop.f32.mrf.mxu1 }
 0x253   : > { %318 = vst.msk [vmem:[#allocation3 + $0x98] sm:$0xff] %vm298_vm4, %v10438_v1 }
 0x254   : > { %v1439_v13 = vpop.f32.mrf.mxu3  ;;  %319 = vst.msk [vmem:[#allocation3 + $0xa0] sm:$0xff] %vm298_vm4, %v10438_v1 }
 0x255   : > { %v1473_v19 = vadd.f32 %v1439_v13, %v1311_v23  ;;  %320 = vst.msk [vmem:[#allocation3 + $0xa8] sm:$0xff] %vm298_vm4, %v10438_v1 }
 0x256   : > { %5771 = vmatmul.msk.f32.gmra.mxu2 %vm225_vm1, %v6703_v2  ;;  %v2139_v17 = vpop.f32.mrf.mxu0  ;;  %321 = vst.msk [vmem:[#allocation3 + $0xb0] sm:$0xff] %vm298_vm4, %v10438_v1 }
 0x257   : > { %v7693_v44 = vadd.f32 %v1593_v43, %v1473_v19  ;;  %322 = vst.msk [vmem:[#allocation3 + $0xb8] sm:$0xff] %vm298_vm4, %v10438_v1 }
 0x258   : > { %323 = vst.msk [vmem:[#allocation3 + $0xc0] sm:$0xff] %vm298_vm4, %v10438_v1 }
 0x259   : > { %v1822_v54 = vpop.f32.mrf.mxu2  ;;  %5805 = vmatmul.msk.f32.gmra.mxu3 %vm225_vm1, %v6315_v48  ;;  %5840 = vmatmul.msk.f32.gmra.mxu0 %vm225_vm1, %v7307_v59  ;;  %v7714_v59 = vld [vmem:[%s10219_s2] ss:$0 sm:$0xff]  ;;  %324 = vst.msk [vmem:[#allocation3 + $0xc8] sm:$0xff] %vm298_vm4, %v10438_v1 }
 0x25a   : > { %v1918_v2 = vadd.f32 %v1822_v54, %v7285_v12  ;;  %325 = vst.msk [vmem:[#allocation3 + $0xd0] sm:$0xff] %vm298_vm4, %v10438_v1 }
 0x25b   : > { %326 = vst.msk [vmem:[#allocation3 + $0xd8] sm:$0xff] %vm298_vm4, %v10438_v1 }
 0x25c   : > { %v1976_v43 = vpop.f32.mrf.mxu3  ;;  %327 = vst.msk [vmem:[#allocation3 + $0xe0] sm:$0xff] %vm298_vm4, %v10438_v1 }
 0x25d   : > { %v2072_v6 = vadd.f32 %v1976_v43, %v1918_v2  ;;  %328 = vst.msk [vmem:[#allocation3 + $0xe8] sm:$0xff] %vm298_vm4, %v10438_v1 }
 0x25e   : > { %5772 = vmatmul.msk.f32.gmra.mxu2 %vm225_vm1, %v6727_v15  ;;  %v2142_v12 = vpop.f32.mrf.mxu0  ;;  %329 = vst.msk [vmem:[#allocation3 + $0xf0] sm:$0xff] %vm298_vm4, %v10438_v1 }
 0x25f   : > { %v2232_v53 = vadd.f32 %v2136_v33, %v2072_v6  ;;  %330 = vst.msk [vmem:[#allocation3 + $0xf8] sm:$0xff] %vm298_vm4, %v10438_v1 }
 0x260   : > { %331 = vst.msk [vmem:[#allocation3 + $0x100] sm:$0xff] %vm298_vm4, %v10438_v1 }
 0x261   : > { %v2268_v8 = vadd.f32 %v7714_v59, %v2232_v53  ;;  %v1825_v52 = vpop.f32.mrf.mxu2  ;;  %5806 = vmatmul.msk.f32.gmra.mxu3 %vm225_vm1, %v6316_v63  ;;  %5841 = vmatmul.msk.f32.gmra.mxu0 %vm225_vm1, %v7324_v10  ;;  %332 = vst.msk [vmem:[#allocation3 + $0x108] sm:$0xff] %vm298_vm4, %v10438_v1 }
 0x262   : > { %v1919_v15 = vadd.f32 %v1825_v52, %v7300_v29  ;;  %333 = vst.msk [vmem:[#allocation3 + $0x110] sm:$0xff] %vm298_vm4, %v10438_v1  ;;  %v7779_v52 = vpop.f32.mrf.mxu1 }
 0x263   : > { %vm2300_vm5 = vcmp.ge.f32.partialorder %v2268_v8, 0.0  ;;  %v2332_v33 = vmul.f32 0.2, %v2268_v8  ;;  %334 = vst.msk [vmem:[#allocation3 + $0x118] sm:$0xff] %vm298_vm4, %v10438_v1 }
 0x264   : > { %v1979_v27 = vpop.f32.mrf.mxu3  ;;  %335 = vst.msk [vmem:[#allocation3 + $0x120] sm:$0xff] %vm298_vm4, %v10438_v1 }
 0x265   : > { %v2073_v23 = vadd.f32 %v1979_v27, %v1919_v15  ;;  %v7741_v13 = vsel %vm2300_vm5, %v2268_v8, %v2332_v33  ;;  %336 = vst.msk [vmem:[#allocation3 + $0x128] sm:$0xff] %vm298_vm4, %v10438_v1  ;;  %v6318_v27 = vld [vmem:[#allocation2 + $0x170] sm:$0xff] }
 0x266   : > { %5773 = vmatmul.msk.f32.gmra.mxu2 %vm225_vm1, %v6751_v26  ;;  %v2396_v29 = vmul.f32 %v7741_v13, %v7741_v13  ;;  %v2145_v10 = vpop.f32.mrf.mxu0  ;;  %v6317_v26 = vld [vmem:[#allocation2 + $0x168] sm:$0xff]  ;;  %337 = vst.msk [vmem:[#allocation3 + $0x130] sm:$0xff] %vm298_vm4, %v10438_v1 }
 0x267   : > { %v2233_v19 = vadd.f32 %v2139_v17, %v2073_v23  ;;  %338 = vst.msk [vmem:[#allocation3 + $0x138] sm:$0xff] %vm298_vm4, %v10438_v1 }
 0x268   : > { %v2428_v54 = vsel %vm298_vm4, %v2396_v29, 0.0  ;;  %339 = vst.msk [vmem:[#allocation3 + $0x140] sm:$0xff] %vm298_vm4, %v10438_v1 }
 0x269   : > { %v2269_v48 = vadd.f32 %v7714_v59, %v2233_v19  ;;  %v1828_v2 = vpop.f32.mrf.mxu2  ;;  %5807 = vmatmul.msk.f32.gmra.mxu3 %vm225_vm1, %v6317_v26  ;;  %2429 = vadd.xlane.f32.xlu0 %v2428_v54  ;;  %340 = vst.msk [vmem:[#allocation3 + $0x148] sm:$0xff] %vm298_vm4, %v10438_v1 }
 0x26a   : > { %v1920_v17 = vadd.f32 %v1828_v2, %v7317_v9  ;;  %5842 = vmatmul.msk.f32.gmra.mxu0 %vm225_vm1, %v7339_v14  ;;  %341 = vst.msk [vmem:[#allocation3 + $0x150] sm:$0xff] %vm298_vm4, %v10438_v1  ;;  %v7814_v26 = vpop.f32.mrf.mxu1 }
 0x26b   : > { %vm2301_vm6 = vcmp.ge.f32.partialorder %v2269_v48, 0.0  ;;  %v2333_v43 = vmul.f32 0.2, %v2269_v48  ;;  %342 = vst.msk [vmem:[#allocation3 + $0x158] sm:$0xff] %vm298_vm4, %v10438_v1 }
 0x26c   : > { %v1982_v6 = vpop.f32.mrf.mxu3  ;;  %343 = vst.msk [vmem:[#allocation3 + $0x160] sm:$0xff] %vm298_vm4, %v10438_v1 }
 0x26d   : > { %v2074_v53 = vadd.f32 %v1982_v6, %v1920_v17  ;;  %v7771_v9 = vsel %vm2301_vm6, %v2269_v48, %v2333_v43  ;;  %344 = vst.msk [vmem:[#allocation3 + $0x168] sm:$0xff] %vm298_vm4, %v10438_v1  ;;  %v6319_v43 = vld [vmem:[#allocation2 + $0x188] sm:$0xff] }
 0x26e   : > { %5774 = vmatmul.msk.f32.gmra.mxu2 %vm225_vm1, %v6775_v40  ;;  %v2397_v14 = vmul.f32 %v7771_v9, %v7771_v9  ;;  %v2148_v8 = vpop.f32.mrf.mxu0  ;;  %345 = vst.msk [vmem:[#allocation3 + $0x170] sm:$0xff] %vm298_vm4, %v10438_v1 }
 0x26f   : > { %v2234_v63 = vadd.f32 %v2142_v12, %v2074_v53  ;;  %346 = vst.msk [vmem:[#allocation3 + $0x178] sm:$0xff] %vm298_vm4, %v10438_v1 }
 0x270   : > { %v2431_v15 = vsel %vm298_vm4, %v2397_v14, 0.0  ;;  %347 = vst.msk [vmem:[#allocation3 + $0x180] sm:$0xff] %vm298_vm4, %v10438_v1 }
 0x271   : > { %v2270_v40 = vadd.f32 %v7714_v59, %v2234_v63  ;;  %v1831_v33 = vpop.f32.mrf.mxu2  ;;  %5808 = vmatmul.msk.f32.gmra.mxu3 %vm225_vm1, %v6318_v27  ;;  %2432 = vadd.xlane.f32.xlu0 %v2431_v15  ;;  %348 = vst.msk [vmem:[#allocation3 + $0x188] sm:$0xff] %vm298_vm4, %v10438_v1 }
 0x272   : > { %v1921_v12 = vadd.f32 %v1831_v33, %v7332_v47  ;;  %5843 = vmatmul.msk.f32.gmra.mxu0 %vm225_vm1, %v7356_v45  ;;  %349 = vst.msk [vmem:[#allocation3 + $0x190] sm:$0xff] %vm298_vm4, %v10438_v1 }
 0x273   : > { %vm2302_vm7 = vcmp.ge.f32.partialorder %v2270_v40, 0.0  ;;  %v2334_v23 = vmul.f32 0.2, %v2270_v40  ;;  %350 = vst.msk [vmem:[#allocation3 + $0x198] sm:$0xff] %vm298_vm4, %v10438_v1 }
 0x274   : > { %v1985_v29 = vpop.f32.mrf.mxu3  ;;  %351 = vst.msk [vmem:[#allocation3 + $0x1a0] sm:$0xff] %vm298_vm4, %v10438_v1 }
 0x275   : > { %v2075_v19 = vadd.f32 %v1985_v29, %v1921_v12  ;;  %v7801_v54 = vsel %vm2302_vm7, %v2270_v40, %v2334_v23  ;;  %352 = vst.msk [vmem:[#allocation3 + $0x1a8] sm:$0xff] %vm298_vm4, %v10438_v1  ;;  %v7853_v12 = vpop.f32.mrf.mxu1 }
 0x276   : > { %5775 = vmatmul.msk.f32.gmra.mxu2 %vm225_vm1, %v6799_v58  ;;  %v2398_v47 = vmul.f32 %v7801_v54, %v7801_v54  ;;  %v2151_v45 = vpop.f32.mrf.mxu0  ;;  %353 = vst.msk [vmem:[#allocation3 + $0x1b0] sm:$0xff] %vm298_vm4, %v10438_v1 }
 0x277   : > { %v2235_v48 = vadd.f32 %v2145_v10, %v2075_v19  ;;  %354 = vst.msk [vmem:[#allocation3 + $0x1b8] sm:$0xff] %vm298_vm4, %v10438_v1 }
 0x278   : > { %v2434_v2 = vsel %vm298_vm4, %v2398_v47, 0.0  ;;  %355 = vst.msk [vmem:[#allocation3 + $0x1c0] sm:$0xff] %vm298_vm4, %v10438_v1 }
 0x279   : > { %v2271_v58 = vadd.f32 %v7714_v59, %v2235_v48  ;;  %v1834_v17 = vpop.f32.mrf.mxu2  ;;  %5809 = vmatmul.msk.f32.gmra.mxu3 %vm225_vm1, %v6319_v43  ;;  %2435 = vadd.xlane.f32.xlu1 %v2434_v2  ;;  %356 = vst.msk [vmem:[#allocation3 + $0x1c8] sm:$0xff] %vm298_vm4, %v10438_v1 }
 0x27a   : > { %v1922_v10 = vadd.f32 %v1834_v17, %v7349_v41  ;;  %5844 = vmatmul.msk.f32.gmra.mxu0 %vm225_vm1, %v7371_v36  ;;  %357 = vst.msk [vmem:[#allocation3 + $0x1d0] sm:$0xff] %vm298_vm4, %v10438_v1 }
 0x27b   : > { %vm2303_vm8 = vcmp.ge.f32.partialorder %v2271_v58, 0.0  ;;  %v2335_v6 = vmul.f32 0.2, %v2271_v58  ;;  %358 = vst.msk [vmem:[#allocation3 + $0x1d8] sm:$0xff] %vm298_vm4, %v10438_v1 }
 0x27c   : > { %v1988_v53 = vpop.f32.mrf.mxu3  ;;  %359 = vst.msk [vmem:[#allocation3 + $0x1e0] sm:$0xff] %vm298_vm4, %v10438_v1 }
 0x27d   : > { %v2076_v14 = vadd.f32 %v1988_v53, %v1922_v10  ;;  %v7831_v63 = vsel %vm2303_vm8, %v2271_v58, %v2335_v6  ;;  %360 = vst.msk [vmem:[#allocation3 + $0x1e8] sm:$0xff] %vm298_vm4, %v10438_v1  ;;  %v7887_v6 = vpop.f32.mrf.mxu1 }
 0x27e   : > { %5776 = vmatmul.msk.f32.gmra.mxu2 %vm225_vm1, %v10371_v25  ;;  %v2399_v41 = vmul.f32 %v7831_v63, %v7831_v63  ;;  %v2154_v36 = vpop.f32.mrf.mxu0  ;;  %v6320_v25 = vld [vmem:[#allocation2 + $0x190] sm:$0xff]  ;;  %361 = vst.msk [vmem:[#allocation3 + $0x1f0] sm:$0xff] %vm298_vm4, %v10438_v1 }
 0x27f   : > { %v2236_v15 = vadd.f32 %v2148_v8, %v2076_v14  ;;  %362 = vst.msk [vmem:[#allocation3 + $0x1f8] sm:$0xff] %vm298_vm4, %v10438_v1 }
 0x280   : > { %v2437_v40 = vsel %vm298_vm4, %v2399_v41, 0.0  ;;  %363 = vst.msk [vmem:[#allocation3 + $0x200] sm:$0xff] %vm298_vm4, %v10438_v1 }
 0x281   : > { %v2272_v33 = vadd.f32 %v7714_v59, %v2236_v15  ;;  %v1837_v27 = vpop.f32.mrf.mxu2  ;;  %5810 = vmatmul.msk.f32.gmra.mxu3 %vm225_vm1, %v6320_v25  ;;  %2438 = vadd.xlane.f32.xlu1 %v2437_v40  ;;  %364 = vst.msk [vmem:[#allocation3 + $0x208] sm:$0xff] %vm298_vm4, %v10438_v1 }
 0x282   : > { %v1923_v8 = vadd.f32 %v1837_v27, %v7364_v38  ;;  %5845 = vmatmul.msk.f32.gmra.mxu0 %vm225_vm1, %v7388_v21  ;;  %365 = vst.msk [vmem:[#allocation3 + $0x210] sm:$0xff] %vm298_vm4, %v10438_v1  ;;  %v6322_v27 = vld [vmem:[#allocation2 + $0x1b0] sm:$0xff] }
 0x283   : > { %vm2304_vm9 = vcmp.ge.f32.partialorder %v2272_v33, 0.0  ;;  %v2336_v23 = vmul.f32 0.2, %v2272_v33  ;;  %366 = vst.msk [vmem:[#allocation3 + $0x218] sm:$0xff] %vm298_vm4, %v10438_v1 }
 0x284   : > { %v1991_v29 = vpop.f32.mrf.mxu3  ;;  %367 = vst.msk [vmem:[#allocation3 + $0x220] sm:$0xff] %vm298_vm4, %v10438_v1 }
 0x285   : > { %v2077_v19 = vadd.f32 %v1991_v29, %v1923_v8  ;;  %v7861_v47 = vsel %vm2304_vm9, %v2272_v33, %v2336_v23  ;;  %368 = vst.msk [vmem:[#allocation3 + $0x228] sm:$0xff] %vm298_vm4, %v10438_v1 }
 0x286   : > { %5777 = vmatmul.msk.f32.gmra.mxu2 %vm225_vm1, %v10372_v18  ;;  %v2400_v38 = vmul.f32 %v7861_v47, %v7861_v47  ;;  %v2157_v21 = vpop.f32.mrf.mxu0  ;;  %v6321_v18 = vld [vmem:[#allocation2 + $0x1a8] sm:$0xff]  ;;  %369 = vst.msk [vmem:[#allocation3 + $0x230] sm:$0xff] %vm298_vm4, %v10438_v1 }
 0x287   : > { %v2237_v48 = vadd.f32 %v2151_v45, %v2077_v19  ;;  %370 = vst.msk [vmem:[#allocation3 + $0x238] sm:$0xff] %vm298_vm4, %v10438_v1  ;;  %v7913_v19 = vpop.f32.mrf.mxu1 }
 0x288   : > { %v2440_v2 = vsel %vm298_vm4, %v2400_v38, 0.0 }
 0x289   : > { %v2273_v58 = vadd.f32 %v7714_v59, %v2237_v48  ;;  %v1840_v17 = vpop.f32.mrf.mxu2  ;;  %5811 = vmatmul.msk.f32.gmra.mxu3 %vm225_vm1, %v6321_v18  ;;  %2441 = vadd.xlane.f32.xlu2 %v2440_v2 }
 0x28a   : > { %v1924_v45 = vadd.f32 %v1840_v17, %v7381_v62  ;;  %5846 = vmatmul.msk.f32.gmra.mxu0 %vm225_vm1, %v7403_v42 }
 0x28b   : > { %vm2305_vm10 = vcmp.ge.f32.partialorder %v2273_v58, 0.0  ;;  %v2337_v43 = vmul.f32 0.2, %v2273_v58 }
 0x28c   : > { %v1994_v10 = vpop.f32.mrf.mxu3 }
 0x28d   : > { %v2078_v53 = vadd.f32 %v1994_v10, %v1924_v45  ;;  %v7891_v14 = vsel %vm2305_vm10, %v2273_v58, %v2337_v43  ;;  %v6323_v58 = vld [vmem:[#allocation2 + $0x1c8] sm:$0xff]  ;;  %v1765_v10 = vadd.f32 %v7779_v52, %v7430_v3 }
 0x28e   : > { %5778 = vmatmul.msk.f32.gmra.mxu2 %vm225_vm1, %v10375_v57  ;;  %v2401_v62 = vmul.f32 %v7891_v14, %v7891_v14  ;;  %v2160_v42 = vpop.f32.mrf.mxu0 }
 0x28f   : > { %v2238_v41 = vadd.f32 %v2154_v36, %v2078_v53 }
 0x290   : > { %v2443_v15 = vsel %vm298_vm4, %v2401_v62, 0.0 }
 0x291   : > { %v2274_v40 = vadd.f32 %v7714_v59, %v2238_v41  ;;  %v1843_v33 = vpop.f32.mrf.mxu2  ;;  %5812 = vmatmul.msk.f32.gmra.mxu3 %vm225_vm1, %v6322_v27  ;;  %2444 = vadd.xlane.f32.xlu2 %v2443_v15  ;;  %v6324_v15 = vld [vmem:[#allocation2 + $0x1d0] sm:$0xff] }
 0x292   : > { %v1925_v25 = vadd.f32 %v1843_v33, %v7396_v37  ;;  %5847 = vmatmul.msk.f32.gmra.mxu0 %vm225_vm1, %v7422_v46  ;;  %v1764_v37 = vadd.f32 %v7739_v55, %v7413_v39 }
 0x293   : > { %vm2306_vm11 = vcmp.ge.f32.partialorder %v2274_v40, 0.0  ;;  %v2338_v57 = vmul.f32 0.2, %v2274_v40 }
 0x294   : > { %v1997_v8 = vpop.f32.mrf.mxu3 }
 0x295   : > { %v2079_v23 = vadd.f32 %v1997_v8, %v1925_v25  ;;  %v7907_v1 = vsel %vm2306_vm11, %v2274_v40, %v2338_v57  ;;  %v1766_v57 = vadd.f32 %v7814_v26, %v7447_v28 }
 0x296   : > { %5779 = vmatmul.msk.f32.gmra.mxu2 %vm225_vm1, %v10376_v7  ;;  %v2402_v36 = vmul.f32 %v7907_v1, %v7907_v1  ;;  %v2163_v29 = vpop.f32.mrf.mxu0 }
 0x297   : > { %v2239_v38 = vadd.f32 %v2157_v21, %v2079_v23 }
 0x298   : > { %v2446_v46 = vsel %vm298_vm4, %v2402_v36, 0.0  ;;  %v6325_v36 = vld [vmem:[#allocation2 + $0x1e8] sm:$0xff] }
 0x299   : > { %v2275_v48 = vadd.f32 %v7714_v59, %v2239_v38  ;;  %v1846_v2 = vpop.f32.mrf.mxu2  ;;  %5813 = vmatmul.msk.f32.gmra.mxu3 %vm225_vm1, %v6323_v58  ;;  %2447 = vadd.xlane.f32.xlu0 %v2446_v46  ;;  %v1767_v58 = vadd.f32 %v7853_v12, %v7462_v51 }
 0x29a   : > { %v1926_v7 = vadd.f32 %v1846_v2, %v1764_v37  ;;  %5848 = vmatmul.msk.f32.gmra.mxu0 %vm225_vm1, %v7439_v35  ;;  %v7931_v35 = vpop.f32.mrf.mxu1 }
 0x29b   : > { %vm2307_vm12 = vcmp.ge.f32.partialorder %v2275_v48, 0.0  ;;  %v2339_v17 = vmul.f32 0.2, %v2275_v48 }
 0x29c   : > { %v2000_v18 = vpop.f32.mrf.mxu3 }
 0x29d   : > { %v2080_v21 = vadd.f32 %v2000_v18, %v1926_v7  ;;  %v7922_v45 = vsel %vm2307_vm12, %v2275_v48, %v2339_v17  ;;  %v6326_v18 = vld [vmem:[#allocation2 + $0x1f0] sm:$0xff] }
 0x29e   : > { %5780 = vmatmul.msk.f32.gmra.mxu2 %vm225_vm1, %v10379_v16  ;;  %v2403_v39 = vmul.f32 %v7922_v45, %v7922_v45  ;;  %v2166_v55 = vpop.f32.mrf.mxu0 }
 0x29f   : > { %v2240_v43 = vadd.f32 %v2160_v42, %v2080_v21 }
 0x2a0   : > { %v2449_v53 = vsel %vm298_vm4, %v2403_v39, 0.0 }
 0x2a1   : > { %v2276_v62 = vadd.f32 %v7714_v59, %v2240_v43  ;;  %v1849_v41 = vpop.f32.mrf.mxu2  ;;  %5814 = vmatmul.msk.f32.gmra.mxu3 %vm225_vm1, %v6324_v15  ;;  %2450 = vadd.xlane.f32.xlu1 %v2449_v53 }
 0x2a2   : > { %v1927_v16 = vadd.f32 %v1849_v41, %v1765_v10  ;;  %5849 = vmatmul.msk.f32.gmra.mxu0 %vm225_vm1, %v7456_v31 }
 0x2a3   : > { %vm2308_vm13 = vcmp.ge.f32.partialorder %v2276_v62, 0.0  ;;  %v2340_v42 = vmul.f32 0.2, %v2276_v62 }
 0x2a4   : > { %v2003_v40 = vpop.f32.mrf.mxu3 }
 0x2a5   : > { %v2081_v33 = vadd.f32 %v2003_v40, %v1927_v16  ;;  %v7937_v3 = vsel %vm2308_vm13, %v2276_v62, %v2340_v42  ;;  %v1768_v62 = vadd.f32 %v7887_v6, %v7483_v22  ;;  %v505_v42 = vld [vmem:[#allocation2 + $0x228] sm:$0xff] }
 0x2a6   : > { %5781 = vmatmul.msk.f32.gmra.mxu2 %vm225_vm1, %v10380_v60  ;;  %v2404_v52 = vmul.f32 %v7937_v3, %v7937_v3  ;;  %v2169_v27 = vpop.f32.mrf.mxu0  ;;  %v7950_v60 = vpop.f32.mrf.mxu1 }
 0x2a7   : > { %v2241_v25 = vadd.f32 %v2163_v29, %v2081_v33  ;;  %v2107_v33 = vrot.slane %v505_v42, 1 }
 0x2a8   : > { %v2452_v8 = vsel %vm298_vm4, %v2404_v52, 0.0  ;;  %v504_v52 = vld [vmem:[#allocation2 + $0x220] sm:$0xff] }
 0x2a9   : > { %v2277_v31 = vadd.f32 %v7714_v59, %v2241_v25  ;;  %v1852_v23 = vpop.f32.mrf.mxu2  ;;  %5815 = vmatmul.msk.f32.gmra.mxu3 %vm225_vm1, %v6325_v36  ;;  %2453 = vadd.xlane.f32.xlu2 %v2452_v8 }
 0x2aa   : > { %v1928_v38 = vadd.f32 %v1852_v23, %v1766_v57  ;;  %5850 = vmatmul.msk.f32.gmra.mxu0 %vm225_vm1, %v7471_v50  ;;  %v1794_v23 = vrot.slane %v505_v42, 7 }
 0x2ab   : > { %vm2309_vm14 = vcmp.ge.f32.partialorder %v2277_v31, 0.0  ;;  %v2341_v29 = vmul.f32 0.2, %v2277_v31 }
 0x2ac   : > { %v2006_v37 = vpop.f32.mrf.mxu3 }
 0x2ad   : > { %v2082_v46 = vadd.f32 %v2006_v37, %v1928_v38  ;;  %v7952_v28 = vsel %vm2309_vm14, %v2277_v31, %v2341_v29  ;;  %v1793_v31 = vrot.slane %v504_v52, 7  ;;  %v1769_v38 = vadd.f32 %v7913_v19, %v7502_v24  ;;  %v507_v37 = vld [vmem:[#allocation2 + $0x238] sm:$0xff]  ;;  %v8001_v19 = vld [vmem:[#allocation3 + $0x8] sm:$0xff] }
 0x2ae   : > { %5782 = vmatmul.msk.f32.gmra.mxu2 %vm225_vm1, %v10382_v32  ;;  %v2405_v26 = vmul.f32 %v7952_v28, %v7952_v28  ;;  %v2172_v48 = vpop.f32.mrf.mxu0  ;;  %v2110_v24 = vrot.slane %v507_v37, 1  ;;  %5856 = vmatmul.msk.f32.vlgmr.msra.gmra.mxu1 %vm298_vm4, %v8001_v19 }
 0x2af   : > { %v2242_v2 = vadd.f32 %v2166_v55, %v2082_v46  ;;  %v7965_v55 = vpop.f32.mrf.mxu1 }
 0x2b0   : > { %v2455_v50 = vsel %vm298_vm4, %v2405_v26, 0.0  ;;  %v10441_v26 = vld [vmem:[#allocation13_spill] sm:$0xff] }
 0x2b1   : > { %v2278_v7 = vadd.f32 %v7714_v59, %v2242_v2  ;;  %v1855_v17 = vpop.f32.mrf.mxu2  ;;  %5816 = vmatmul.msk.f32.gmra.mxu3 %vm225_vm1, %v6326_v18  ;;  %2456 = vadd.xlane.f32.xlu0 %v2455_v50  ;;  %v6360_v2 = vmov 8.0  }
 0x2b2   : > { %v1929_v21 = vadd.f32 %v1855_v17, %v1767_v58  ;;  %5851 = vmatmul.msk.f32.gmra.mxu0 %vm225_vm1, %v7492_v61  ;;  %6169 = vrcp.f32 %v6360_v2  ;;  %v1795_v58 = vsel %vm740_vm2, %v1793_v31, %v1794_v23 }
 0x2b3   : > { %vm2310_vm15 = vcmp.ge.f32.partialorder %v2278_v7, 0.0  ;;  %v2342_v32 = vmul.f32 0.2, %v2278_v7 }
 0x2b4   : > { %v2009_v39 = vpop.f32.mrf.mxu3 }
 0x2b5   : > { %v2083_v43 = vadd.f32 %v2009_v39, %v1929_v21  ;;  %v7967_v51 = vsel %vm2310_vm15, %v2278_v7, %v2342_v32  ;;  %v3052_v21 = vld [vmem:[%s10220_s3] sm:$0xff] }
 0x2b6   : > { %5783 = vmatmul.msk.f32.gmra.mxu2 %vm225_vm1, %v7500_v49  ;;  %v2406_v12 = vmul.f32 %v7967_v51, %v7967_v51  ;;  %v2175_v10 = vpop.f32.mrf.mxu0  ;;  %v7981_v49 = vld [vmem:[#allocation2 + $0x230] sm:$0xff] }
 0x2b7   : > { %v2243_v53 = vadd.f32 %v2169_v27, %v2083_v43  ;;  %v2108_v22 = vrot.slane %v7981_v49, 1  ;;  %3439 = vmatpush.msrb.mxu2 %v3052_v21 }
 0x2b8   : > { %v2458_v61 = vsel %vm298_vm4, %v2406_v12, 0.0  ;;  %v8013_v43 = vpop.eup %6169 }
 0x2b9   : > { %v2279_v41 = vadd.f32 %v7714_v59, %v2243_v53  ;;  %v1858_v15 = vpop.f32.mrf.mxu2  ;;  %5817 = vmatmul.msk.f32.gmra.mxu3 %vm225_vm1, %v7473_v5  ;;  %2459 = vadd.xlane.f32.xlu1 %v2458_v61  ;;  %v2109_v36 = vsel %vm1019_vm3, %v2107_v33, %v2108_v22  ;;  %v1796_v53 = vrot.slane %v7981_v49, 7  ;;  %v5920_v61 = vld [vmem:[%s10220_s3 + $0x10] sm:$0xff] }
 0x2ba   : > { %v1930_v16 = vadd.f32 %v1858_v15, %v1768_v62  ;;  %5852 = vmatmul.msk.f32.gmra.mxu0 %vm225_vm1, %v7511_v56  ;;  %v7990_v56 = vpop.f32.mrf.mxu1  ;;  %v2111_v62 = vsel %vm1019_vm3, %v2108_v22, %v2110_v24  ;;  %3714 = vmatpush.msrb.mxu3 %v5920_v61 }
 0x2bb   : > { %vm2311_vm0 = vcmp.ge.f32.partialorder %v2279_v41, 0.0  ;;  %v2343_v40 = vmul.f32 0.2, %v2279_v41  ;;  %v1797_v52 = vsel %vm740_vm2, %v1794_v23, %v1796_v53 }
 0x2bc   : > { %v2012_v6 = vpop.f32.mrf.mxu3 }
 0x2bd   : > { %v2084_v27 = vadd.f32 %v2012_v6, %v1930_v16  ;;  %v7984_v25 = vsel %vm2311_vm0, %v2279_v41, %v2343_v40  ;;  %v10442_v41 = vld [vmem:[#allocation15_spill] sm:$0xff]  ;;  %v2525_v6 = vmul.f32 8.0, %v8013_v43 }
 0x2be   : > { %5784 = vmatmul.msk.f32.gmra.mxu2 %vm225_vm1, %v7522_v34  ;;  %v2407_v5 = vmul.f32 %v7984_v25, %v7984_v25  ;;  %v2178_v57 = vpop.f32.mrf.mxu0  ;;  %v1770_v15 = vadd.f32 %v7931_v35, %v10442_v41 }
 0x2bf   : > { %v2244_v8 = vadd.f32 %v2172_v48, %v2084_v27  ;;  %v8030_v27 = vld [vmem:[#allocation3 + $0x10] sm:$0xff] }
 0x2c0   : > { %v2461_v29 = vsel %vm298_vm4, %v2407_v5, 0.0  ;;  %5857 = vmatmul.msk.f32.gmra.mxu1 %vm298_vm4, %v8030_v27 }
 0x2c1   : > { %v2280_v46 = vadd.f32 %v7714_v59, %v2244_v8  ;;  %v1861_v34 = vpop.f32.mrf.mxu2  ;;  %5818 = vmatmul.msk.f32.gmra.mxu3 %vm225_vm1, %v10441_v26  ;;  %2462 = vadd.xlane.f32.xlu2 %v2461_v29  ;;  %v2980_v8 = vld [vmem:[#allocation3] sm:$0xff] }
 0x2c2   : > { %v1931_v48 = vadd.f32 %v1861_v34, %v1769_v38  ;;  %5853 = vmatmul.msk.f32.gmra.mxu0 %vm225_vm1, %v2109_v36  ;;  %v8023_v40 = vpop.f32.mrf.mxu1  ;;  %v2526_v38 = vsub.f32 1.0, %v2525_v6  ;;  %v3280_v37 = vrot.slane %v2980_v8, 7  ;;  %v10443_v34 = vld [vmem:[#allocation18_spill] sm:$0xff] }
 0x2c3   : > { %vm2312_vm5 = vcmp.ge.f32.partialorder %v2280_v46, 0.0  ;;  %v2344_v50 = vmul.f32 0.2, %v2280_v46  ;;  %v1771_v26 = vadd.f32 %v7950_v60, %v10443_v34  ;;  %v5953_v34 = vld [vmem:[%s10220_s3 + $0x18] sm:$0xff] }
 0x2c4   : > { %v2015_v7 = vpop.f32.mrf.mxu3  ;;  %v2527_v24 = vmul.f32 %v8013_v43, %v2526_v38  ;;  %3873 = vmatpush.msrb.mxu0 %v5953_v34 }
 0x2c5   : > { %v2085_v17 = vadd.f32 %v2015_v7, %v1931_v48  ;;  %v8005_v18 = vsel %vm2312_vm5, %v2280_v46, %v2344_v50  ;;  %v3281_v46 = vrot.slane %v8001_v19, 7  ;;  %v3556_v7 = vrot.slane %v8030_v27, 1 }
 0x2c6   : > { %5785 = vmatmul.msk.f32.gmra.mxu2 %vm225_vm1, %v1795_v58  ;;  %v2408_v32 = vmul.f32 %v8005_v18, %v8005_v18  ;;  %v2181_v39 = vpop.f32.mrf.mxu0 }
 0x2c7   : > { %v2245_v12 = vadd.f32 %v2175_v10, %v2085_v17  ;;  %v3282_v21 = vsel %vm740_vm2, %v3280_v37, %v3281_v46 }
 0x2c8   : > { %v2464_v16 = vsel %vm298_vm4, %v2408_v32, 0.0 }
 0x2c9   : > { %v2281_v33 = vadd.f32 %v7714_v59, %v2245_v12  ;;  %v1864_v10 = vpop.f32.mrf.mxu2  ;;  %5819 = vmatmul.msk.f32.gmra.mxu3 %vm225_vm1, %v505_v42  ;;  %2465 = vadd.xlane.f32.xlu0 %v2464_v16  ;;  %v2983_v16 = vld [vmem:[#allocation3 + $0x18] sm:$0xff] }
 0x2ca   : > { %v1932_v22 = vadd.f32 %v1864_v10, %v1770_v15  ;;  %5854 = vmatmul.msk.f32.gmra.mxu0 %vm225_vm1, %v2111_v62  ;;  %v8049_v17 = vpop.f32.mrf.mxu1  ;;  %v2528_v62 = vadd.f32 %v8013_v43, %v2527_v24  ;;  %v3283_v15 = vrot.slane %v8030_v27, 7 }
 0x2cb   : > { %vm2313_vm6 = vcmp.ge.f32.partialorder %v2281_v33, 0.0  ;;  %v2345_v35 = vmul.f32 0.2, %v2281_v33 }
 0x2cc   : > { %v2018_v5 = vpop.f32.mrf.mxu3  ;;  %v3284_v27 = vsel %vm740_vm2, %v3281_v46, %v3283_v15 }
 0x2cd   : > { %v2086_v31 = vadd.f32 %v2018_v5, %v1932_v22  ;;  %v8034_v36 = vsel %vm2313_vm6, %v2281_v33, %v2345_v35  ;;  %v10444_v33 = vld [vmem:[#allocation21_spill] sm:$0xff] }
 0x2ce   : > { %5786 = vmatmul.msk.f32.gmra.mxu2 %vm225_vm1, %v1797_v52  ;;  %v2409_v42 = vmul.f32 %v8034_v36, %v8034_v36  ;;  %v2184_v29 = vpop.f32.mrf.mxu0  ;;  %v1772_v10 = vadd.f32 %v7965_v55, %v10444_v33 }
 0x2cf   : > { %v2246_v23 = vadd.f32 %v2178_v57, %v2086_v31  ;;  %v3555_v57 = vrot.slane %v8001_v19, 1 }
 0x2d0   : > { %v2467_v2 = vsel %vm298_vm4, %v2409_v42, 0.0 }
 0x2d1   : > { %v2282_v48 = vadd.f32 %v7714_v59, %v2246_v23  ;;  %v1867_v58 = vpop.f32.mrf.mxu2  ;;  %5820 = vmatmul.msk.f32.gmra.mxu3 %vm225_vm1, %v7981_v49  ;;  %2468 = vadd.xlane.f32.xlu1 %v2467_v2  ;;  %v3557_v19 = vsel %vm1019_vm3, %v3555_v57, %v3556_v7  ;;  %vm2529_vm1 = vweird.f32 %v8013_v43 }
 0x2d2   : > { %v1933_v50 = vadd.f32 %v1867_v58, %v1771_v26  ;;  %v8067_v5 = vsel %vm2529_vm1, %v8013_v43, %v2528_v62  ;;  %v8070_v55 = vpop.f32.mrf.mxu1  ;;  %v10446_v58 = vld [vmem:[#allocation17_spill] sm:$0xff] }
 0x2d3   : > { %vm2314_vm7 = vcmp.ge.f32.partialorder %v2282_v48, 0.0  ;;  %v2346_v60 = vmul.f32 0.2, %v2282_v48  ;;  %10445 = vst [vmem:[#allocation30_spill] sm:$0xff] %v8067_v5 }
 0x2d4   : > { %v2021_v32 = vpop.f32.mrf.mxu3 }
 0x2d5   : > { %v2087_v12 = vadd.f32 %v2021_v32, %v1933_v50  ;;  %v8052_v53 = vsel %vm2314_vm7, %v2282_v48, %v2346_v60  ;;  %v1773_v50 = vadd.f32 %v7990_v56, %v10446_v58  ;;  %v5986_v56 = vld [vmem:[%s10220_s3 + $0x20] sm:$0xff] }
 0x2d6   : > { %v2410_v49 = vmul.f32 %v8052_v53, %v8052_v53  ;;  %v2187_v61 = vpop.f32.mrf.mxu0  ;;  %5888 = vmatmul.msk.f32.vlgmr.msrb.gmra.mxu2 %vm298_vm4, %v3282_v21  ;;  %4024 = vmatpush.msrb.mxu1 %v5986_v56 }
 0x2d7   : > { %v2247_v41 = vadd.f32 %v2181_v39, %v2087_v12  ;;  %v3558_v39 = vrot.slane %v2983_v16, 1 }
 0x2d8   : > { %v2470_v22 = vsel %vm298_vm4, %v2410_v49, 0.0 }
 0x2d9   : > { %v2283_v6 = vadd.f32 %v7714_v59, %v2247_v41  ;;  %v1870_v52 = vpop.f32.mrf.mxu2  ;;  %2471 = vadd.xlane.f32.xlu2 %v2470_v22  ;;  %5921 = vmatmul.msk.f32.vlgmr.msrb.gmra.mxu3 %vm298_vm4, %v3557_v19  ;;  %v3559_v46 = vsel %vm1019_vm3, %v3556_v7, %v3558_v39  ;;  %v10447_v22 = vld [vmem:[#allocation20_spill] sm:$0xff] }
 0x2da   : > { %v1934_v35 = vadd.f32 %v1870_v52, %v1772_v10  ;;  %v8095_v15 = vpop.f32.mrf.mxu1 }
 0x2db   : > { %vm2315_vm8 = vcmp.ge.f32.partialorder %v2283_v6, 0.0  ;;  %v2347_v8 = vmul.f32 0.2, %v2283_v6 }
 0x2dc   : > { %v2024_v31 = vpop.f32.mrf.mxu3  ;;  %v2430_v42 = vpop.xlane.xlu0 %2429 }
 0x2dd   : > { %v2088_v38 = vadd.f32 %v2024_v31, %v1934_v35  ;;  %v2531_v23 = vmul.f32 %v8067_v5, %v2430_v42  ;;  %v8073_v37 = vsel %vm2315_vm8, %v2283_v6, %v2347_v8  ;;  %v1774_v6 = vadd.f32 %v8023_v40, %v10447_v22 }
 0x2de   : > { %v2411_v43 = vmul.f32 %v8073_v37, %v8073_v37  ;;  %v2190_v26 = vpop.f32.mrf.mxu0  ;;  %5889 = vmatmul.msk.f32.gmra.mxu2 %vm298_vm4, %v3284_v27 }
 0x2df   : > { %v2563_v2 = vadd.f32 1e-08, %v2531_v23  ;;  %v2248_v48 = vadd.f32 %v2184_v29, %v2088_v38 }
 0x2e0   : > { %v2473_v24 = vsel %vm298_vm4, %v2411_v43, 0.0 }
 0x2e1   : > { %6171 = vrsqrt.f32 %v2563_v2  ;;  %v2284_v57 = vadd.f32 %v7714_v59, %v2248_v48  ;;  %v1873_v60 = vpop.f32.mrf.mxu2  ;;  %2474 = vadd.xlane.f32.xlu0 %v2473_v24  ;;  %5922 = vmatmul.msk.f32.gmra.mxu3 %vm298_vm4, %v3559_v46  ;;  %vm2601_vm12 = vweird.f32 %v2563_v2 }
 0x2e2   : > { %v1935_v21 = vadd.f32 %v1873_v60, %v1773_v50  ;;  %v10448_v50 = vld [vmem:[#allocation24_spill] sm:$0xff] }
 0x2e3   : > { %vm2316_vm9 = vcmp.ge.f32.partialorder %v2284_v57, 0.0  ;;  %v2348_v32 = vmul.f32 0.2, %v2284_v57  ;;  %v1775_v24 = vadd.f32 %v8049_v17, %v10448_v50 }
 0x2e4   : > { %v2027_v12 = vpop.f32.mrf.mxu3  ;;  %v2433_v49 = vpop.xlane.xlu0 %2432 }
 0x2e5   : > { %v2089_v7 = vadd.f32 %v2027_v12, %v1935_v21  ;;  %v2532_v29 = vmul.f32 %v8067_v5, %v2433_v49  ;;  %v8088_v62 = vsel %vm2316_vm9, %v2284_v57, %v2348_v32 }
 0x2e6   : > { %v2412_v19 = vmul.f32 %v8088_v62, %v8088_v62 }
 0x2e7   : > { %v6172_v41 = vpop.eup %6171  ;;  %v8097_v16 = vadd.f32 1e-08, %v2532_v29  ;;  %v2249_v33 = vadd.f32 %v2187_v61, %v2089_v7  ;;  %v2193_v10 = vpop.f32.mrf.mxu0 }
 0x2e8   : > { %v2596_v52 = vmul.f32 %v6172_v41, %v2563_v2  ;;  %v2476_v35 = vsel %vm298_vm4, %v2412_v19, 0.0  ;;  %vm2602_vm11 = vweird.f32 %v6172_v41  ;;  %v8117_v7 = vpop.f32.mrf.mxu1 }
 0x2e9   : > { %6173 = vrsqrt.f32 %v8097_v16  ;;  %v2285_v39 = vadd.f32 %v7714_v59, %v2249_v33  ;;  %v1876_v8 = vpop.f32.mrf.mxu2  ;;  %2477 = vadd.xlane.f32.xlu1 %v2476_v35  ;;  %vm2603_vm13 = vmor %vm2601_vm12, %vm2602_vm11  ;;  %vm2611_vm0 = vweird.f32 %v8097_v16 }
 0x2ea   : > { %v2597_v27 = vmul.f32 %v6172_v41, %v2596_v52  ;;  %v1936_v31 = vadd.f32 %v1876_v8, %v1774_v6 }
 0x2eb   : > { %vm2317_vm10 = vcmp.ge.f32.partialorder %v2285_v39, 0.0  ;;  %v2349_v42 = vmul.f32 0.2, %v2285_v39 }
 0x2ec   : > { %v2598_v38 = vmul.f32 0.5, %v2597_v27  ;;  %v2030_v23 = vpop.f32.mrf.mxu3  ;;  %v2436_v61 = vpop.xlane.xlu1 %2435 }
 0x2ed   : > { %v2090_v34 = vadd.f32 %v2030_v23, %v1936_v31  ;;  %v2533_v43 = vmul.f32 %v8067_v5, %v2436_v61  ;;  %v8105_v40 = vsel %vm2317_vm10, %v2285_v39, %v2349_v42  ;;  %v10449_v42 = vld [vmem:[#allocation27_spill] sm:$0xff] }
 0x2ee   : > { %v2599_v46 = vsub.f32 1.5, %v2598_v38  ;;  %v2413_v48 = vmul.f32 %v8105_v40, %v8105_v40 }
 0x2ef   : > { %v6174_v58 = vpop.eup %6173  ;;  %v8111_v57 = vadd.f32 1e-08, %v2533_v43  ;;  %v2250_v60 = vadd.f32 %v2190_v26, %v2090_v34  ;;  %v8113_v21 = vpop.f32.mrf.mxu0 }
 0x2f0   : > { %v2600_v32 = vmul.f32 %v6172_v41, %v2599_v46  ;;  %v2606_v12 = vmul.f32 %v6174_v58, %v8097_v16  ;;  %v2479_v49 = vsel %vm298_vm4, %v2413_v48, 0.0  ;;  %vm2612_vm15 = vweird.f32 %v6174_v58  ;;  %v2984_v48 = vld [vmem:[#allocation3 + $0x20] sm:$0xff] }
 0x2f1   : > { %6175 = vrsqrt.f32 %v8111_v57  ;;  %v2286_v29 = vadd.f32 %v7714_v59, %v2250_v60  ;;  %v1879_v56 = vpop.f32.mrf.mxu2  ;;  %2480 = vadd.xlane.f32.xlu2 %v2479_v49  ;;  %vm2613_vm5 = vmor %vm2611_vm0, %vm2612_vm15  ;;  %v3285_v16 = vrot.slane %v2984_v48, 7  ;;  %vm2621_vm1 = vweird.f32 %v8111_v57 }
 0x2f2   : > { %v2604_v17 = vsel %vm2603_vm13, %v6172_v41, %v2600_v32  ;;  %v2607_v19 = vmul.f32 %v6174_v58, %v2606_v12  ;;  %v1937_v26 = vadd.f32 %v1879_v56, %v1775_v24  ;;  %v8139_v32 = vpop.f32.mrf.mxu1 }
 0x2f3   : > { %v2915_v33 = vmul.f32 %v2604_v17, %v7741_v13  ;;  %vm2318_vm14 = vcmp.ge.f32.partialorder %v2286_v29, 0.0  ;;  %v2350_v2 = vmul.f32 0.2, %v2286_v29  ;;  %v1776_v13 = vadd.f32 %v8070_v55, %v10449_v42 }
 0x2f4   : > { %v2608_v22 = vmul.f32 0.5, %v2607_v19  ;;  %v2033_v6 = vpop.f32.mrf.mxu3  ;;  %v2439_v52 = vpop.xlane.xlu1 %2438 }
 0x2f5   : > { %2948 = vst.msk [vmem:[#allocation3 + $0x28] sm:$0xff] %vm298_vm4, %v2915_v33  ;;  %v2091_v35 = vadd.f32 %v2033_v6, %v1937_v26  ;;  %v2534_v39 = vmul.f32 %v8067_v5, %v2439_v52  ;;  %v8124_v8 = vsel %vm2318_vm14, %v2286_v29, %v2350_v2 }
 0x2f6   : > { %v2609_v27 = vsub.f32 1.5, %v2608_v22  ;;  %v2414_v41 = vmul.f32 %v8124_v8, %v8124_v8 }
 0x2f7   : > { %v6176_v31 = vpop.eup %6175  ;;  %v8130_v38 = vadd.f32 1e-08, %v2534_v39  ;;  %v2251_v23 = vadd.f32 %v2193_v10, %v2091_v35  ;;  %v8132_v61 = vpop.f32.mrf.mxu0 }
 0x2f8   : > { %v2610_v34 = vmul.f32 %v6174_v58, %v2609_v27  ;;  %v2616_v43 = vmul.f32 %v6176_v31, %v8111_v57  ;;  %v2482_v46 = vsel %vm298_vm4, %v2414_v41, 0.0  ;;  %vm2622_vm7 = vweird.f32 %v6176_v31  ;;  %v10450_v41 = vld [vmem:[#allocation23_spill] sm:$0xff] }
 0x2f9   : > { %6177 = vrsqrt.f32 %v8130_v38  ;;  %v2287_v50 = vadd.f32 %v7714_v59, %v2251_v23  ;;  %v1882_v24 = vpop.f32.mrf.mxu2  ;;  %2483 = vadd.xlane.f32.xlu0 %v2482_v46  ;;  %v1777_v42 = vadd.f32 %v8095_v15, %v10450_v41  ;;  %vm2623_vm8 = vmor %vm2621_vm1, %vm2622_vm7  ;;  %vm2631_vm11 = vweird.f32 %v8130_v38 }
 0x2fa   : > { %v2614_v55 = vsel %vm2613_vm5, %v6174_v58, %v2610_v34  ;;  %v2617_v60 = vmul.f32 %v6176_v31, %v2616_v43  ;;  %v1938_v10 = vadd.f32 %v1882_v24, %v1776_v13 }
 0x2fb   : > { %v2916_v12 = vmul.f32 %v2614_v55, %v7771_v9  ;;  %vm2319_vm6 = vcmp.ge.f32.partialorder %v2287_v50, 0.0  ;;  %v2351_v49 = vmul.f32 0.2, %v2287_v50 }
 0x2fc   : > { %v2618_v29 = vmul.f32 0.5, %v2617_v60  ;;  %v2036_v56 = vpop.f32.mrf.mxu3  ;;  %v2442_v17 = vpop.xlane.xlu2 %2441  ;;  %v2985_v19 = vld [vmem:[#allocation3 + $0x28] sm:$0xff] }
 0x2fd   : > { %2949 = vst.msk [vmem:[#allocation3 + $0x30] sm:$0xff] %vm298_vm4, %v2916_v12  ;;  %v2092_v26 = vadd.f32 %v2036_v56, %v1938_v10  ;;  %v2535_v33 = vmul.f32 %v8067_v5, %v2442_v17  ;;  %5858 = vmatmul.msk.f32.gmra.mxu1 %vm298_vm4, %v2985_v19  ;;  %v3286_v58 = vrot.slane %v2985_v19, 7  ;;  %v8145_v22 = vsel %vm2319_vm6, %v2287_v50, %v2351_v49 }
 0x2fe   : > { %v2619_v2 = vsub.f32 1.5, %v2618_v29  ;;  %v2415_v39 = vmul.f32 %v8145_v22, %v8145_v22  ;;  %v3560_v55 = vrot.slane %v2985_v19, 1  ;;  %v10451_v29 = vld [vmem:[#allocation26_spill] sm:$0xff] }
 0x2ff   : > { %v8147_v9 = vpop.eup %6177  ;;  %v8149_v6 = vadd.f32 1e-08, %v2535_v33  ;;  %v2252_v52 = vadd.f32 %v8113_v21, %v2092_v26  ;;  %v3287_v35 = vsel %vm740_vm2, %v3285_v16, %v3286_v58  ;;  %v8155_v27 = vpop.f32.mrf.mxu0  ;;  %v1778_v56 = vadd.f32 %v8117_v7, %v10451_v29  ;;  %v2987_v26 = vld [vmem:[#allocation3 + $0x38] sm:$0xff] }
 0x300   : > { %v2620_v13 = vmul.f32 %v6176_v31, %v2619_v2  ;;  %v2626_v23 = vmul.f32 %v8147_v9, %v8130_v38  ;;  %5890 = vmatmul.msk.f32.gmra.mxu2 %vm298_vm4, %v3287_v35  ;;  %5954 = vmatmul.msk.f32.vlgmr.msrb.gmra.mxu0 %vm298_vm4, %v3287_v35  ;;  %v2485_v43 = vsel %vm298_vm4, %v2415_v39, 0.0  ;;  %v8171_v16 = vpop.f32.mrf.mxu1  ;;  %vm2632_vm10 = vweird.f32 %v8147_v9  ;;  %v8211_v38 = vld [vmem:[%s10219_s2] ss:$0 sm:$0xff] }
 0x301   : > { %6179 = vrsqrt.f32 %v8149_v6  ;;  %v2288_v21 = vadd.f32 %v7714_v59, %v2252_v52  ;;  %v1885_v34 = vpop.f32.mrf.mxu2  ;;  %2486 = vadd.xlane.f32.xlu1 %v2485_v43  ;;  %vm2633_vm12 = vmor %vm2631_vm11, %vm2632_vm10  ;;  %vm2641_vm15 = vweird.f32 %v8149_v6 }
 0x302   : > { %v2624_v46 = vsel %vm2623_vm8, %v6176_v31, %v2620_v13  ;;  %v2627_v15 = vmul.f32 %v8147_v9, %v2626_v23  ;;  %v1939_v48 = vadd.f32 %v1885_v34, %v1777_v42 }
 0x303   : > { %v2917_v57 = vmul.f32 %v2624_v46, %v7801_v54  ;;  %vm2320_vm9 = vcmp.ge.f32.partialorder %v2288_v21, 0.0  ;;  %v2352_v50 = vmul.f32 0.2, %v2288_v21 }
 0x304   : > { %v2628_v24 = vmul.f32 0.5, %v2627_v15  ;;  %v2039_v60 = vpop.f32.mrf.mxu3  ;;  %v2445_v10 = vpop.xlane.xlu2 %2444  ;;  %v8169_v12 = vld [vmem:[#allocation3 + $0x30] sm:$0xff] }
 0x305   : > { %2950 = vst.msk [vmem:[#allocation3 + $0x48] sm:$0xff] %vm298_vm4, %v2917_v57  ;;  %v2093_v59 = vadd.f32 %v2039_v60, %v1939_v48  ;;  %v2536_v31 = vmul.f32 %v8067_v5, %v2445_v10  ;;  %5859 = vmatmul.msk.f32.gmra.mxu1 %vm298_vm4, %v8169_v12  ;;  %v3288_v54 = vrot.slane %v8169_v12, 7  ;;  %v3561_v49 = vrot.slane %v8169_v12, 1 }
 0x306   : > { %v2629_v17 = vsub.f32 1.5, %v2628_v24  ;;  %v8183_v19 = vsel %vm2320_vm9, %v2288_v21, %v2352_v50  ;;  %v3563_v21 = vrot.slane %v2987_v26, 1 }
 0x307   : > { %v8185_v33 = vpop.eup %6179  ;;  %v8187_v2 = vadd.f32 1e-08, %v2536_v31  ;;  %v2253_v52 = vadd.f32 %v8132_v61, %v2093_v59  ;;  %v3289_v35 = vsel %vm740_vm2, %v3286_v58, %v3288_v54  ;;  %v8192_v39 = vsel %vm1019_vm3, %v3560_v55, %v3561_v49  ;;  %v8194_v41 = vpop.f32.mrf.mxu0  ;;  %v2988_v58 = vld [vmem:[#allocation3 + $0x40] sm:$0xff]  ;;  %v10452_v54 = vld [vmem:[#allocation29_spill] sm:$0xff] }
 0x308   : > { %v2630_v7 = vmul.f32 %v8147_v9, %v2629_v17  ;;  %v2636_v42 = vmul.f32 %v8185_v33, %v8149_v6  ;;  %5891 = vmatmul.msk.f32.gmra.mxu2 %vm298_vm4, %v3289_v35  ;;  %5923 = vmatmul.msk.f32.gmra.mxu3 %vm298_vm4, %v8192_v39  ;;  %v2416_v61 = vmul.f32 %v8183_v19, %v8183_v19  ;;  %v3290_v57 = vrot.slane %v2988_v58, 7  ;;  %v8231_v26 = vpop.f32.mrf.mxu1 }
 0x309   : > { %6181 = vrsqrt.f32 %v8187_v2  ;;  %v2289_v13 = vadd.f32 %v8211_v38, %v2253_v52  ;;  %5955 = vmatmul.msk.f32.gmra.mxu0 %vm298_vm4, %v3289_v35  ;;  %v1888_v23 = vpop.f32.mrf.mxu2  ;;  %vm2642_vm14 = vweird.f32 %v8185_v33  ;;  %vm2651_vm7 = vweird.f32 %v8187_v2 }
 0x30a   : > { %v2634_v34 = vsel %vm2633_vm12, %v8147_v9, %v2630_v7  ;;  %v2637_v43 = vmul.f32 %v8185_v33, %v2636_v42  ;;  %v1940_v46 = vadd.f32 %v1888_v23, %v1778_v56  ;;  %v2488_v15 = vsel %vm298_vm4, %v2416_v61, 0.0  ;;  %vm2643_vm0 = vmor %vm2641_vm15, %vm2642_vm14 }
 0x30b   : > { %v2918_v48 = vmul.f32 %v2634_v34, %v7831_v63  ;;  %2489 = vadd.xlane.f32.xlu2 %v2488_v15  ;;  %vm2321_vm13 = vcmp.ge.f32.partialorder %v2289_v13, 0.0  ;;  %v2353_v50 = vmul.f32 0.2, %v2289_v13  ;;  %v1779_v63 = vadd.f32 %v8139_v32, %v10452_v54 }
 0x30c   : > { %v2638_v24 = vmul.f32 0.5, %v2637_v43  ;;  %v2042_v55 = vpop.f32.mrf.mxu3  ;;  %v2448_v60 = vpop.xlane.xlu0 %2447  ;;  %v2989_v10 = vld [vmem:[#allocation3 + $0x48] sm:$0xff]  ;;  %v8240_v42 = vsel %vm1019_vm3, %v3561_v49, %v3563_v21 }
 0x30d   : > { %2951 = vst.msk [vmem:[#allocation3 + $0x50] sm:$0xff] %vm298_vm4, %v2918_v48  ;;  %v2094_v12 = vadd.f32 %v2042_v55, %v1940_v46  ;;  %v2537_v9 = vmul.f32 %v8067_v5, %v2448_v60  ;;  %5860 = vmatmul.msk.f32.gmra.mxu1 %vm298_vm4, %v2989_v10  ;;  %v3291_v59 = vrot.slane %v2989_v10, 7  ;;  %v8222_v31 = vsel %vm2321_vm13, %v2289_v13, %v2353_v50 }
 0x30e   : > { %v2639_v29 = vsub.f32 1.5, %v2638_v24  ;;  %v2417_v56 = vmul.f32 %v8222_v31, %v8222_v31  ;;  %v3565_v50 = vrot.slane %v2989_v10, 1 }
 0x30f   : > { %v8229_v17 = vpop.eup %6181  ;;  %v8233_v52 = vadd.f32 1e-08, %v2537_v9  ;;  %v2254_v35 = vadd.f32 %v8155_v27, %v2094_v12  ;;  %v8237_v7 = vsel %vm740_vm2, %v3290_v57, %v3291_v59  ;;  %v8242_v32 = vpop.f32.mrf.mxu0  ;;  %v10453_v12 = vld [vmem:[#allocation32_spill] sm:$0xff] }
 0x310   : > { %v2640_v61 = vmul.f32 %v8185_v33, %v2639_v29  ;;  %v2646_v58 = vmul.f32 %v8229_v17, %v8187_v2  ;;  %5892 = vmatmul.msk.f32.gmra.mxu2 %vm298_vm4, %v8237_v7  ;;  %5924 = vmatmul.msk.f32.gmra.mxu3 %vm298_vm4, %v8240_v42  ;;  %v2491_v27 = vsel %vm298_vm4, %v2417_v56, 0.0  ;;  %v1780_v9 = vadd.f32 %v8171_v16, %v10453_v12 }
 0x311   : > { %6183 = vrsqrt.f32 %v8233_v52  ;;  %v2290_v49 = vadd.f32 %v8211_v38, %v2254_v35  ;;  %5956 = vmatmul.msk.f32.gmra.mxu0 %vm298_vm4, %v8237_v7  ;;  %v1891_v6 = vpop.f32.mrf.mxu2  ;;  %2492 = vadd.xlane.f32.xlu0 %v2491_v27  ;;  %vm2652_vm6 = vweird.f32 %v8229_v17  ;;  %vm2661_vm10 = vweird.f32 %v8233_v52 }
 0x312   : > { %v2644_v13 = vsel %vm2643_vm0, %v8185_v33, %v2640_v61  ;;  %v2647_v23 = vmul.f32 %v8229_v17, %v2646_v58  ;;  %v1941_v21 = vadd.f32 %v1891_v6, %v1779_v63  ;;  %v2991_v63 = vld [vmem:[#allocation3 + $0x58] sm:$0xff]  ;;  %vm2653_vm1 = vmor %vm2651_vm7, %vm2652_vm6 }
 0x313   : > { %v2919_v34 = vmul.f32 %v2644_v13, %v7861_v47  ;;  %vm2322_vm5 = vcmp.ge.f32.partialorder %v2290_v49, 0.0  ;;  %v2354_v43 = vmul.f32 0.2, %v2290_v49  ;;  %v3568_v13 = vrot.slane %v2991_v63, 1 }
 0x314   : > { %v2648_v46 = vmul.f32 0.5, %v2647_v23  ;;  %v2045_v15 = vpop.f32.mrf.mxu3  ;;  %v2451_v48 = vpop.xlane.xlu1 %2450  ;;  %v2990_v57 = vld [vmem:[#allocation3 + $0x50] sm:$0xff] }
 0x315   : > { %2952 = vst.msk [vmem:[#allocation3 + $0x68] sm:$0xff] %vm298_vm4, %v2919_v34  ;;  %v2095_v24 = vadd.f32 %v2045_v15, %v1941_v21  ;;  %v2538_v55 = vmul.f32 %v8067_v5, %v2451_v48  ;;  %5861 = vmatmul.msk.f32.gmra.mxu1 %vm298_vm4, %v2990_v57  ;;  %v3293_v33 = vrot.slane %v2990_v57, 7  ;;  %v3566_v60 = vrot.slane %v2990_v57, 1 }
 0x316   : > { %v2649_v47 = vsub.f32 1.5, %v2648_v46  ;;  %v8269_v54 = vsel %vm2322_vm5, %v2290_v49, %v2354_v43  ;;  %v8294_v49 = vpop.f32.mrf.mxu1 }
 0x317   : > { %v8271_v10 = vpop.eup %6183  ;;  %v8273_v29 = vadd.f32 1e-08, %v2538_v55  ;;  %v2255_v56 = vadd.f32 %v8194_v41, %v2095_v24  ;;  %v8277_v35 = vsel %vm740_vm2, %v3291_v59, %v3293_v33  ;;  %v8280_v61 = vsel %vm1019_vm3, %v3565_v50, %v3566_v60  ;;  %v8282_v16 = vpop.f32.mrf.mxu0  ;;  %v2992_v59 = vld [vmem:[#allocation3 + $0x60] sm:$0xff] }
 0x318   : > { %v2650_v58 = vmul.f32 %v8229_v17, %v2649_v47  ;;  %v2656_v27 = vmul.f32 %v8271_v10, %v8233_v52  ;;  %5893 = vmatmul.msk.f32.gmra.mxu2 %vm298_vm4, %v8277_v35  ;;  %5925 = vmatmul.msk.f32.gmra.mxu3 %vm298_vm4, %v8280_v61  ;;  %v2418_v41 = vmul.f32 %v8269_v54, %v8269_v54  ;;  %v3295_v15 = vrot.slane %v2992_v59, 7 }
 0x319   : > { %6185 = vrsqrt.f32 %v8273_v29  ;;  %v2291_v2 = vadd.f32 %v8211_v38, %v2255_v56  ;;  %5957 = vmatmul.msk.f32.gmra.mxu0 %vm298_vm4, %v8277_v35  ;;  %v1894_v6 = vpop.f32.mrf.mxu2  ;;  %vm2662_vm9 = vweird.f32 %v8271_v10  ;;  %v8325_v59 = vsel %vm1019_vm3, %v3566_v60, %v3568_v13 }
 0x31a   : > { %v2654_v23 = vsel %vm2653_vm1, %v8229_v17, %v2650_v58  ;;  %v2657_v21 = vmul.f32 %v8271_v10, %v2656_v27  ;;  %v1942_v34 = vadd.f32 %v1894_v6, %v1780_v9  ;;  %v2494_v43 = vsel %vm298_vm4, %v2418_v41, 0.0  ;;  %vm2663_vm11 = vmor %vm2661_vm10, %vm2662_vm9 }
 0x31b   : > { %v2920_v46 = vmul.f32 %v2654_v23, %v7891_v14  ;;  %2495 = vadd.xlane.f32.xlu1 %v2494_v43  ;;  %vm2323_vm8 = vcmp.ge.f32.partialorder %v2291_v2, 0.0  ;;  %v2355_v48 = vmul.f32 0.2, %v2291_v2  ;;  %v1781_v14 = vadd.f32 %v8231_v26, %v7615_v30 }
 0x31c   : > { %v2658_v57 = vmul.f32 0.5, %v2657_v21  ;;  %v2048_v50 = vpop.f32.mrf.mxu3  ;;  %v2454_v24 = vpop.xlane.xlu2 %2453  ;;  %v2993_v55 = vld [vmem:[#allocation3 + $0x68] sm:$0xff]  ;;  %vm2671_vm14 = vweird.f32 %v8273_v29 }
 0x31d   : > { %2953 = vst.msk [vmem:[#allocation3 + $0x70] sm:$0xff] %vm298_vm4, %v2920_v46  ;;  %v2096_v33 = vadd.f32 %v2048_v50, %v1942_v34  ;;  %v2539_v17 = vmul.f32 %v8067_v5, %v2454_v24  ;;  %5862 = vmatmul.msk.f32.gmra.mxu1 %vm298_vm4, %v2993_v55  ;;  %v3296_v12 = vrot.slane %v2993_v55, 7  ;;  %v8309_v9 = vsel %vm2323_vm8, %v2291_v2, %v2355_v48 }
 0x31e   : > { %v2659_v47 = vsub.f32 1.5, %v2658_v57  ;;  %v2419_v63 = vmul.f32 %v8309_v9, %v8309_v9  ;;  %v1741_v21 = vpop.f32.mrf.mxu1  ;;  %v3570_v50 = vrot.slane %v2993_v55, 1 }
 0x31f   : > { %v8316_v56 = vpop.eup %6185  ;;  %v8318_v58 = vadd.f32 1e-08, %v2539_v17  ;;  %v2256_v27 = vadd.f32 %v8242_v32, %v2096_v33  ;;  %v8322_v41 = vsel %vm740_vm2, %v3295_v15, %v3296_v12  ;;  %v8340_v2 = vpop.f32.mrf.mxu0 }
 0x320   : > { %v2660_v30 = vmul.f32 %v8271_v10, %v2659_v47  ;;  %v2666_v26 = vmul.f32 %v8316_v56, %v8273_v29  ;;  %5894 = vmatmul.msk.f32.gmra.mxu2 %vm298_vm4, %v8322_v41  ;;  %5926 = vmatmul.msk.f32.gmra.mxu3 %vm298_vm4, %v8325_v59  ;;  %v2497_v32 = vsel %vm298_vm4, %v2419_v63, 0.0  ;;  %vm2672_vm13 = vweird.f32 %v8316_v56 }
 0x321   : > { %6187 = vrsqrt.f32 %v8318_v58  ;;  %v2292_v60 = vadd.f32 %v8211_v38, %v2256_v27  ;;  %5958 = vmatmul.msk.f32.gmra.mxu0 %vm298_vm4, %v8322_v41  ;;  %v1897_v52 = vpop.f32.mrf.mxu2  ;;  %2498 = vadd.xlane.f32.xlu2 %v2497_v32  ;;  %v2995_v27 = vld [vmem:[#allocation3 + $0x78] sm:$0xff]  ;;  %vm2673_vm15 = vmor %vm2671_vm14, %vm2672_vm13  ;;  %vm2681_vm6 = vweird.f32 %v8318_v58 }
 0x322   : > { %v2664_v6 = vsel %vm2663_vm11, %v8271_v10, %v2660_v30  ;;  %v2667_v13 = vmul.f32 %v8316_v56, %v2666_v26  ;;  %v1943_v23 = vadd.f32 %v1897_v52, %v1781_v14  ;;  %v10454_v14 = vld [vmem:[#allocation7_spill] sm:$0xff] }
 0x323   : > { %v2921_v34 = vmul.f32 %v2664_v6, %v7907_v1  ;;  %vm2324_vm12 = vcmp.ge.f32.partialorder %v2292_v60, 0.0  ;;  %v2356_v43 = vmul.f32 0.2, %v2292_v60  ;;  %v1782_v47 = vadd.f32 %v8294_v49, %v10454_v14 }
 0x324   : > { %v2668_v46 = vmul.f32 0.5, %v2667_v13  ;;  %v2051_v15 = vpop.f32.mrf.mxu3  ;;  %v2457_v48 = vpop.xlane.xlu0 %2456  ;;  %v2994_v57 = vld [vmem:[#allocation3 + $0x70] sm:$0xff]  ;;  %v3573_v13 = vrot.slane %v2995_v27, 1 }
 0x325   : > { %2954 = vst.msk [vmem:[#allocation3 + $0x88] sm:$0xff] %vm298_vm4, %v2921_v34  ;;  %v2097_v24 = vadd.f32 %v2051_v15, %v1943_v23  ;;  %v2540_v33 = vmul.f32 %v8067_v5, %v2457_v48  ;;  %5863 = vmatmul.msk.f32.gmra.mxu1 %vm298_vm4, %v2994_v57  ;;  %v3298_v10 = vrot.slane %v2994_v57, 7  ;;  %v3571_v17 = vrot.slane %v2994_v57, 1 }
 0x326   : > { %v2669_v1 = vsub.f32 1.5, %v2668_v46  ;;  %v8352_v63 = vsel %vm2324_vm12, %v2292_v60, %v2356_v43 }
 0x327   : > { %v8354_v55 = vpop.eup %6187  ;;  %v8356_v30 = vadd.f32 1e-08, %v2540_v33  ;;  %v2257_v26 = vadd.f32 %v8282_v16, %v2097_v24  ;;  %v8360_v32 = vsel %vm740_vm2, %v3296_v12, %v3298_v10  ;;  %v8363_v52 = vsel %vm1019_vm3, %v3570_v50, %v3571_v17  ;;  %v2996_v12 = vld [vmem:[#allocation3 + $0x80] sm:$0xff]  ;;  %v2217_v50 = vpop.f32.mrf.mxu0 }
 0x328   : > { %v2670_v49 = vmul.f32 %v8316_v56, %v2669_v1  ;;  %v2676_v60 = vmul.f32 %v8354_v55, %v8318_v58  ;;  %5895 = vmatmul.msk.f32.gmra.mxu2 %vm298_vm4, %v8360_v32  ;;  %5927 = vmatmul.msk.f32.gmra.mxu3 %vm298_vm4, %v8363_v52  ;;  %v2420_v16 = vmul.f32 %v8352_v63, %v8352_v63  ;;  %v3300_v48 = vrot.slane %v2996_v12, 7  ;;  %v1744_v1 = vpop.f32.mrf.mxu1 }
 0x329   : > { %6189 = vrsqrt.f32 %v8356_v30  ;;  %v2293_v29 = vadd.f32 %v8211_v38, %v2257_v26  ;;  %5959 = vmatmul.msk.f32.gmra.mxu0 %vm298_vm4, %v8360_v32  ;;  %v1900_v6 = vpop.f32.mrf.mxu2  ;;  %vm2682_vm5 = vweird.f32 %v8354_v55  ;;  %vm2691_vm9 = vweird.f32 %v8356_v30 }
 0x32a   : > { %v2674_v23 = vsel %vm2673_vm15, %v8316_v56, %v2670_v49  ;;  %v2677_v34 = vmul.f32 %v8354_v55, %v2676_v60  ;;  %v1944_v43 = vadd.f32 %v1900_v6, %v1782_v47  ;;  %v2500_v46 = vsel %vm298_vm4, %v2420_v16, 0.0  ;;  %vm2683_vm7 = vmor %vm2681_vm6, %vm2682_vm5 }
 0x32b   : > { %v2922_v15 = vmul.f32 %v2674_v23, %v7922_v45  ;;  %2501 = vadd.xlane.f32.xlu0 %v2500_v46  ;;  %vm2325_vm0 = vcmp.ge.f32.partialorder %v2293_v29, 0.0  ;;  %v2357_v57 = vmul.f32 0.2, %v2293_v29  ;;  %v1783_v45 = vadd.f32 %v1741_v21, %v7631_v11 }
 0x32c   : > { %v2678_v24 = vmul.f32 0.5, %v2677_v34  ;;  %v2054_v33 = vpop.f32.mrf.mxu3  ;;  %v2460_v10 = vpop.xlane.xlu1 %2459  ;;  %v2997_v14 = vld [vmem:[#allocation3 + $0x88] sm:$0xff] }
 0x32d   : > { %2955 = vst.msk [vmem:[#allocation3 + $0x90] sm:$0xff] %vm298_vm4, %v2922_v15  ;;  %v2098_v56 = vadd.f32 %v2054_v33, %v1944_v43  ;;  %v2541_v27 = vmul.f32 %v8067_v5, %v2460_v10  ;;  %5864 = vmatmul.msk.f32.gmra.mxu1 %vm298_vm4, %v2997_v14  ;;  %v3301_v47 = vrot.slane %v2997_v14, 7  ;;  %v8388_v26 = vsel %vm2325_vm0, %v2293_v29, %v2357_v57 }
 0x32e   : > { %v2679_v49 = vsub.f32 1.5, %v2678_v24  ;;  %v2421_v60 = vmul.f32 %v8388_v26, %v8388_v26  ;;  %v8403_v29 = vsel %vm1019_vm3, %v3571_v17, %v3573_v13  ;;  %v3575_v10 = vrot.slane %v2997_v14, 1 }
 0x32f   : > { %v8394_v16 = vpop.eup %6189  ;;  %v8396_v12 = vadd.f32 1e-08, %v2541_v27  ;;  %v2258_v6 = vadd.f32 %v8340_v2, %v2098_v56  ;;  %v8400_v23 = vsel %vm740_vm2, %v3300_v48, %v3301_v47 }
 0x330   : > { %v2680_v11 = vmul.f32 %v8354_v55, %v2679_v49  ;;  %v2686_v21 = vmul.f32 %v8394_v16, %v8356_v30  ;;  %5896 = vmatmul.msk.f32.gmra.mxu2 %vm298_vm4, %v8400_v23  ;;  %5928 = vmatmul.msk.f32.gmra.mxu3 %vm298_vm4, %v8403_v29  ;;  %v2503_v2 = vsel %vm298_vm4, %v2421_v60, 0.0  ;;  %v2220_v60 = vpop.f32.mrf.mxu0  ;;  %vm2692_vm8 = vweird.f32 %v8394_v16 }
 0x331   : > { %6191 = vrsqrt.f32 %v8396_v12  ;;  %v2294_v17 = vadd.f32 %v8211_v38, %v2258_v6  ;;  %5960 = vmatmul.msk.f32.gmra.mxu0 %vm298_vm4, %v8400_v23  ;;  %v1903_v58 = vpop.f32.mrf.mxu2  ;;  %2504 = vadd.xlane.f32.xlu1 %v2503_v2  ;;  %vm2693_vm10 = vmor %vm2691_vm9, %vm2692_vm8  ;;  %vm2701_vm13 = vweird.f32 %v8396_v12 }
 0x332   : > { %v2684_v13 = vsel %vm2683_vm7, %v8354_v55, %v2680_v11  ;;  %v2687_v34 = vmul.f32 %v8394_v16, %v2686_v21  ;;  %v1945_v43 = vadd.f32 %v1903_v58, %v1783_v45  ;;  %v1784_v45 = vadd.f32 %v1744_v1, %v7639_v20  ;;  %v2999_v11 = vld [vmem:[#allocation3 + $0x98] sm:$0xff]  ;;  %v1747_v21 = vpop.f32.mrf.mxu1 }
 0x333   : > { %v2923_v46 = vmul.f32 %v2684_v13, %v7937_v3  ;;  %vm2326_vm1 = vcmp.ge.f32.partialorder %v2294_v17, 0.0  ;;  %v2358_v15 = vmul.f32 0.2, %v2294_v17 }
 0x334   : > { %v2688_v48 = vmul.f32 0.5, %v2687_v34  ;;  %v2057_v57 = vpop.f32.mrf.mxu3  ;;  %v2463_v24 = vpop.xlane.xlu2 %2462  ;;  %v2998_v33 = vld [vmem:[#allocation3 + $0x90] sm:$0xff] }
 0x335   : > { %2956 = vst.msk [vmem:[#allocation3 + $0xa8] sm:$0xff] %vm298_vm4, %v2923_v46  ;;  %v2099_v56 = vadd.f32 %v2057_v57, %v1945_v43  ;;  %v2542_v27 = vmul.f32 %v8067_v5, %v2463_v24  ;;  %5865 = vmatmul.msk.f32.gmra.mxu1 %vm298_vm4, %v2998_v33  ;;  %v3303_v55 = vrot.slane %v2998_v33, 7  ;;  %v3576_v49 = vrot.slane %v2998_v33, 1 }
 0x336   : > { %v2689_v3 = vsub.f32 1.5, %v2688_v48  ;;  %v8427_v6 = vsel %vm2326_vm1, %v2294_v17, %v2358_v15  ;;  %v3578_v43 = vrot.slane %v2999_v11, 1 }
 0x337   : > { %v8429_v14 = vpop.eup %6191  ;;  %v8431_v2 = vadd.f32 1e-08, %v2542_v27  ;;  %v2259_v58 = vadd.f32 %v2217_v50, %v2099_v56  ;;  %v8434_v13 = vsel %vm740_vm2, %v3301_v47, %v3303_v55  ;;  %v8437_v34 = vsel %vm1019_vm3, %v3575_v10, %v3576_v49  ;;  %v3000_v47 = vld [vmem:[#allocation3 + $0xa0] sm:$0xff] }
 0x338   : > { %v2690_v20 = vmul.f32 %v8394_v16, %v2689_v3  ;;  %v2696_v1 = vmul.f32 %v8429_v14, %v8396_v12  ;;  %5897 = vmatmul.msk.f32.gmra.mxu2 %vm298_vm4, %v8434_v13  ;;  %5929 = vmatmul.msk.f32.gmra.mxu3 %vm298_vm4, %v8437_v34  ;;  %v2422_v50 = vmul.f32 %v8427_v6, %v8427_v6  ;;  %v3305_v33 = vrot.slane %v3000_v47, 7 }
 0x339   : > { %6193 = vrsqrt.f32 %v8431_v2  ;;  %v2295_v30 = vadd.f32 %v8211_v38, %v2259_v58  ;;  %5961 = vmatmul.msk.f32.gmra.mxu0 %vm298_vm4, %v8434_v13  ;;  %v1906_v17 = vpop.f32.mrf.mxu2  ;;  %vm2702_vm12 = vweird.f32 %v8429_v14  ;;  %vm2711_vm5 = vweird.f32 %v8431_v2 }
 0x33a   : > { %v2694_v46 = vsel %vm2693_vm10, %v8394_v16, %v2690_v20  ;;  %v2697_v15 = vmul.f32 %v8429_v14, %v2696_v1  ;;  %v1946_v48 = vadd.f32 %v1906_v17, %v1784_v45  ;;  %v2506_v57 = vsel %vm298_vm4, %v2422_v50, 0.0  ;;  %vm2703_vm14 = vmor %vm2701_vm13, %vm2702_vm12 }
 0x33b   : > { %v2924_v24 = vmul.f32 %v2694_v46, %v7952_v28  ;;  %2507 = vadd.xlane.f32.xlu2 %v2506_v57  ;;  %vm2327_vm11 = vcmp.ge.f32.partialorder %v2295_v30, 0.0  ;;  %v2359_v10 = vmul.f32 0.2, %v2295_v30  ;;  %v1785_v28 = vadd.f32 %v1747_v21, %v7647_v4 }
 0x33c   : > { %v2698_v56 = vmul.f32 0.5, %v2697_v15  ;;  %v2060_v27 = vpop.f32.mrf.mxu3  ;;  %v2466_v55 = vpop.xlane.xlu0 %2465  ;;  %v3001_v3 = vld [vmem:[#allocation3 + $0xa8] sm:$0xff]  ;;  %v8476_v15 = vsel %vm1019_vm3, %v3576_v49, %v3578_v43 }
 0x33d   : > { %2957 = vst.msk [vmem:[#allocation3 + $0xb0] sm:$0xff] %vm298_vm4, %v2924_v24  ;;  %v2100_v11 = vadd.f32 %v2060_v27, %v1946_v48  ;;  %v2543_v16 = vmul.f32 %v8067_v5, %v2466_v55  ;;  %5866 = vmatmul.msk.f32.gmra.mxu1 %vm298_vm4, %v3001_v3  ;;  %v3306_v45 = vrot.slane %v3001_v3, 7  ;;  %v8462_v58 = vsel %vm2327_vm11, %v2295_v30, %v2359_v10  ;;  %v2223_v30 = vpop.f32.mrf.mxu0  ;;  %v1750_v48 = vpop.f32.mrf.mxu1 }
 0x33e   : > { %v2699_v20 = vsub.f32 1.5, %v2698_v56  ;;  %v2423_v1 = vmul.f32 %v8462_v58, %v8462_v58 }
 0x33f   : > { %v8468_v50 = vpop.eup %6193  ;;  %v8470_v47 = vadd.f32 1e-08, %v2543_v16  ;;  %v2260_v17 = vadd.f32 %v2220_v60, %v2100_v11  ;;  %v8473_v46 = vsel %vm740_vm2, %v3305_v33, %v3306_v45  ;;  %v3580_v16 = vrot.slane %v3001_v3, 1 }
 0x340   : > { %v2700_v4 = vmul.f32 %v8429_v14, %v2699_v20  ;;  %v2706_v21 = vmul.f32 %v8468_v50, %v8431_v2  ;;  %5898 = vmatmul.msk.f32.gmra.mxu2 %vm298_vm4, %v8473_v46  ;;  %5930 = vmatmul.msk.f32.gmra.mxu3 %vm298_vm4, %v8476_v15  ;;  %v2509_v60 = vsel %vm298_vm4, %v2423_v1, 0.0  ;;  %vm2712_vm0 = vweird.f32 %v8468_v50 }
 0x341   : > { %6195 = vrsqrt.f32 %v8470_v47  ;;  %v2296_v49 = vadd.f32 %v8211_v38, %v2260_v17  ;;  %5962 = vmatmul.msk.f32.gmra.mxu0 %vm298_vm4, %v8473_v46  ;;  %v1909_v12 = vpop.f32.mrf.mxu2  ;;  %2510 = vadd.xlane.f32.xlu0 %v2509_v60  ;;  %vm2713_vm6 = vmor %vm2711_vm5, %vm2712_vm0  ;;  %vm2721_vm8 = vweird.f32 %v8470_v47 }
 0x342   : > { %v2704_v43 = vsel %vm2703_vm14, %v8429_v14, %v2700_v4  ;;  %v2707_v57 = vmul.f32 %v8468_v50, %v2706_v21  ;;  %v1947_v24 = vadd.f32 %v1909_v12, %v1785_v28  ;;  %v1786_v28 = vadd.f32 %v1750_v48, %v7669_v0  ;;  %v3003_v21 = vld [vmem:[#allocation3 + $0xb8] sm:$0xff] }
 0x343   : > { %v2925_v33 = vmul.f32 %v2704_v43, %v7967_v51  ;;  %vm2328_vm15 = vcmp.ge.f32.partialorder %v2296_v49, 0.0  ;;  %v2360_v10 = vmul.f32 0.2, %v2296_v49 }
 0x344   : > { %v2708_v56 = vmul.f32 0.5, %v2707_v57  ;;  %v2063_v27 = vpop.f32.mrf.mxu3  ;;  %v2469_v55 = vpop.xlane.xlu1 %2468  ;;  %v3002_v11 = vld [vmem:[#allocation3 + $0xb0] sm:$0xff] }
 0x345   : > { %2958 = vst.msk [vmem:[#allocation3 + $0xc8] sm:$0xff] %vm298_vm4, %v2925_v33  ;;  %v2101_v20 = vadd.f32 %v2063_v27, %v1947_v24  ;;  %v2544_v1 = vmul.f32 %v8067_v5, %v2469_v55  ;;  %5867 = vmatmul.msk.f32.gmra.mxu1 %vm298_vm4, %v3002_v11  ;;  %v3308_v14 = vrot.slane %v3002_v11, 7  ;;  %v3581_v17 = vrot.slane %v3002_v11, 1  ;;  %v2226_v24 = vpop.f32.mrf.mxu0  ;;  %v1753_v11 = vpop.f32.mrf.mxu1 }
 0x346   : > { %v2709_v4 = vsub.f32 1.5, %v2708_v56  ;;  %v8502_v51 = vsel %vm2328_vm15, %v2296_v49, %v2360_v10  ;;  %v3583_v33 = vrot.slane %v3003_v21, 1 }
 0x347   : > { %v8504_v60 = vpop.eup %6195  ;;  %v8506_v3 = vadd.f32 1e-08, %v2544_v1  ;;  %v2261_v12 = vadd.f32 %v2223_v30, %v2101_v20  ;;  %v8509_v43 = vsel %vm740_vm2, %v3306_v45, %v3308_v14  ;;  %v8512_v57 = vsel %vm1019_vm3, %v3580_v16, %v3581_v17  ;;  %v3004_v30 = vld [vmem:[#allocation3 + $0xc0] sm:$0xff] }
 0x348   : > { %10455 = vst [vmem:[#allocation31_spill] sm:$0xff] %v8512_v57  ;;  %v2710_v0 = vmul.f32 %v8468_v50, %v2709_v4  ;;  %v2716_v48 = vmul.f32 %v8504_v60, %v8470_v47  ;;  %5899 = vmatmul.msk.f32.gmra.mxu2 %vm298_vm4, %v8509_v43  ;;  %5931 = vmatmul.msk.f32.gmra.mxu3 %vm298_vm4, %v8512_v57  ;;  %v3310_v20 = vrot.slane %v3004_v30, 7  ;;  %vm2722_vm1 = vweird.f32 %v8504_v60 }
 0x349   : > { %v2424_v45 = vmul.f32 %v8502_v51, %v8502_v51  ;;  %6197 = vrsqrt.f32 %v8506_v3  ;;  %v2297_v2 = vadd.f32 %v8211_v38, %v2261_v12  ;;  %5963 = vmatmul.msk.f32.gmra.mxu0 %vm298_vm4, %v8509_v43  ;;  %v1912_v49 = vpop.f32.mrf.mxu2  ;;  %vm2723_vm9 = vmor %vm2721_vm8, %vm2722_vm1  ;;  %vm2731_vm12 = vweird.f32 %v8506_v3 }
 0x34a   : > { %v2714_v10 = vsel %vm2713_vm6, %v8468_v50, %v2710_v0  ;;  %v2717_v56 = vmul.f32 %v8504_v60, %v2716_v48  ;;  %v1948_v27 = vadd.f32 %v1912_v49, %v1786_v28 }
 0x34b   : > { %v2512_v55 = vsel %vm298_vm4, %v2424_v45, 0.0  ;;  %v2926_v16 = vmul.f32 %v2714_v10, %v7984_v25  ;;  %vm2329_vm7 = vcmp.ge.f32.partialorder %v2297_v2, 0.0  ;;  %v2361_v1 = vmul.f32 0.2, %v2297_v2 }
 0x34c   : > { %2513 = vadd.xlane.f32.xlu1 %v2512_v55  ;;  %v2718_v14 = vmul.f32 0.5, %v2717_v56  ;;  %v2066_v4 = vpop.f32.mrf.mxu3  ;;  %v2472_v12 = vpop.xlane.xlu2 %2471  ;;  %v3005_v57 = vld [vmem:[#allocation3 + $0xc8] sm:$0xff]  ;;  %v1787_v25 = vadd.f32 %v1753_v11, %v7693_v44 }
 0x34d   : > { %2959 = vst.msk [vmem:[#allocation3 + $0xd0] sm:$0xff] %vm298_vm4, %v2926_v16  ;;  %v2102_v21 = vadd.f32 %v2066_v4, %v1948_v27  ;;  %v2545_v50 = vmul.f32 %v8067_v5, %v2472_v12  ;;  %5868 = vmatmul.msk.f32.gmra.mxu1 %vm298_vm4, %v3005_v57  ;;  %v3311_v28 = vrot.slane %v3005_v57, 7  ;;  %v8537_v0 = vsel %vm2329_vm7, %v2297_v2, %v2361_v1 }
 0x34e   : > { %v2719_v48 = vsub.f32 1.5, %v2718_v14  ;;  %v2425_v45 = vmul.f32 %v8537_v0, %v8537_v0  ;;  %v8549_v27 = vsel %vm1019_vm3, %v3581_v17, %v3583_v33 }
 0x34f   : > { %v6198_v30 = vpop.eup %6197  ;;  %v8543_v49 = vadd.f32 1e-08, %v2545_v50  ;;  %v2262_v10 = vadd.f32 %v2226_v24, %v2102_v21  ;;  %v8546_v56 = vsel %vm740_vm2, %v3310_v20, %v3311_v28  ;;  %v2229_v20 = vpop.f32.mrf.mxu0  ;;  %v3585_v50 = vrot.slane %v3005_v57, 1 }
 0x350   : > { %v2720_v2 = vmul.f32 %v8504_v60, %v2719_v48  ;;  %v2726_v44 = vmul.f32 %v6198_v30, %v8506_v3  ;;  %5900 = vmatmul.msk.f32.gmra.mxu2 %vm298_vm4, %v8546_v56  ;;  %5932 = vmatmul.msk.f32.gmra.mxu3 %vm298_vm4, %v8549_v27  ;;  %v2515_v24 = vsel %vm298_vm4, %v2425_v45, 0.0  ;;  %vm2732_vm11 = vweird.f32 %v6198_v30 }
 0x351   : > { %6199 = vrsqrt.f32 %v8543_v49  ;;  %v2298_v17 = vadd.f32 %v8211_v38, %v2262_v10  ;;  %5964 = vmatmul.msk.f32.gmra.mxu0 %vm298_vm4, %v8546_v56  ;;  %v1915_v33 = vpop.f32.mrf.mxu2  ;;  %2516 = vadd.xlane.f32.xlu2 %v2515_v24  ;;  %vm2733_vm13 = vmor %vm2731_vm12, %vm2732_vm11  ;;  %vm2741_vm0 = vweird.f32 %v8543_v49 }
 0x352   : > { %v2724_v47 = vsel %vm2723_vm9, %v8504_v60, %v2720_v2  ;;  %v2727_v55 = vmul.f32 %v6198_v30, %v2726_v44  ;;  %v1949_v11 = vadd.f32 %v1915_v33, %v1787_v25 }
 0x353   : > { %v2927_v16 = vmul.f32 %v2724_v47, %v8005_v18  ;;  %vm2330_vm10 = vcmp.ge.f32.partialorder %v2298_v17, 0.0  ;;  %v2362_v1 = vmul.f32 0.2, %v2298_v17  ;;  %v3007_v47 = vld [vmem:[#allocation3 + $0xd8] sm:$0xff] }
 0x354   : > { %v2728_v14 = vmul.f32 0.5, %v2727_v55  ;;  %v2069_v4 = vpop.f32.mrf.mxu3  ;;  %v2475_v12 = vpop.xlane.xlu0 %2474  ;;  %v3006_v21 = vld [vmem:[#allocation3 + $0xd0] sm:$0xff] }
 0x355   : > { %2960 = vst.msk [vmem:[#allocation3 + $0xe8] sm:$0xff] %vm298_vm4, %v2927_v16  ;;  %v2103_v48 = vadd.f32 %v2069_v4, %v1949_v11  ;;  %v2546_v45 = vmul.f32 %v8067_v5, %v2475_v12  ;;  %5869 = vmatmul.msk.f32.gmra.mxu1 %vm298_vm4, %v3006_v21  ;;  %v3313_v60 = vrot.slane %v3006_v21, 7  ;;  %v3586_v10 = vrot.slane %v3006_v21, 1 }
 0x356   : > { %v2729_v25 = vsub.f32 1.5, %v2728_v14  ;;  %v8568_v18 = vsel %vm2330_vm10, %v2298_v17, %v2362_v1  ;;  %v3588_v14 = vrot.slane %v3007_v47, 1 }
 0x357   : > { %v6200_v2 = vpop.eup %6199  ;;  %v8570_v44 = vadd.f32 1e-08, %v2546_v45  ;;  %v2263_v24 = vadd.f32 %v2229_v20, %v2103_v48  ;;  %v8573_v33 = vsel %vm740_vm2, %v3311_v28, %v3313_v60  ;;  %v8576_v57 = vsel %vm1019_vm3, %v3585_v50, %v3586_v10  ;;  %v3008_v28 = vld [vmem:[#allocation3 + $0xe0] sm:$0xff] }
 0x358   : > { %v2730_v55 = vmul.f32 %v6198_v30, %v2729_v25  ;;  %v2736_v11 = vmul.f32 %v6200_v2, %v8543_v49  ;;  %5901 = vmatmul.msk.f32.gmra.mxu2 %vm298_vm4, %v8573_v33  ;;  %5933 = vmatmul.msk.f32.gmra.mxu3 %vm298_vm4, %v8576_v57  ;;  %v2426_v17 = vmul.f32 %v8568_v18, %v8568_v18  ;;  %v3315_v12 = vrot.slane %v3008_v28, 7 }
 0x359   : > { %6201 = vrsqrt.f32 %v8570_v44  ;;  %v2299_v16 = vadd.f32 %v8211_v38, %v2263_v24  ;;  %5965 = vmatmul.msk.f32.gmra.mxu0 %vm298_vm4, %v8573_v33  ;;  %vm2742_vm15 = vweird.f32 %v6200_v2  ;;  %vm2751_vm7 = vweird.f32 %v8570_v44 }
 0x35a   : > { %v2734_v3 = vsel %vm2733_vm13, %v6198_v30, %v2730_v55  ;;  %v2737_v20 = vmul.f32 %v6200_v2, %v2736_v11  ;;  %v2518_v1 = vsel %vm298_vm4, %v2426_v17, 0.0  ;;  %v8606_v11 = vsel %vm1019_vm3, %v3586_v10, %v3588_v14  ;;  %vm2743_vm5 = vmor %vm2741_vm0, %vm2742_vm15 }
 0x35b   : > { %v2928_v4 = vmul.f32 %v2734_v3, %v8034_v36  ;;  %2519 = vadd.xlane.f32.xlu0 %v2518_v1  ;;  %vm2331_vm14 = vcmp.ge.f32.partialorder %v2299_v16, 0.0  ;;  %v2363_v21 = vmul.f32 0.2, %v2299_v16 }
 0x35c   : > { %v2738_v50 = vmul.f32 0.5, %v2737_v20  ;;  %v2478_v48 = vpop.xlane.xlu1 %2477  ;;  %v3009_v45 = vld [vmem:[#allocation3 + $0xe8] sm:$0xff] }
 0x35d   : > { %2961 = vst.msk [vmem:[#allocation3 + $0xf0] sm:$0xff] %vm298_vm4, %v2928_v4  ;;  %v2547_v38 = vmul.f32 %v8067_v5, %v2478_v48  ;;  %5870 = vmatmul.msk.f32.gmra.mxu1 %vm298_vm4, %v3009_v45  ;;  %v3316_v30 = vrot.slane %v3009_v45, 7  ;;  %v8596_v60 = vsel %vm2331_vm14, %v2299_v16, %v2363_v21  ;;  %v3590_v21 = vrot.slane %v3009_v45, 1  ;;  %v3012_v45 = vld [vmem:[#allocation3 + $0x100] sm:$0xff] }
 0x35e   : > { %v2739_v25 = vsub.f32 1.5, %v2738_v50  ;;  %v2427_v36 = vmul.f32 %v8596_v60, %v8596_v60 }
 0x35f   : > { %v6202_v24 = vpop.eup %6201  ;;  %v8600_v47 = vadd.f32 1e-08, %v2547_v38  ;;  %v8603_v55 = vsel %vm740_vm2, %v3315_v12, %v3316_v30  ;;  %v8622_v38 = vpop.f32.mrf.mxu1 }
 0x360   : > { %v2740_v17 = vmul.f32 %v6200_v2, %v2739_v25  ;;  %v2746_v28 = vmul.f32 %v6202_v24, %v8570_v44  ;;  %5902 = vmatmul.msk.f32.gmra.mxu2 %vm298_vm4, %v8603_v55  ;;  %5934 = vmatmul.msk.f32.gmra.mxu3 %vm298_vm4, %v8606_v11  ;;  %v2521_v16 = vsel %vm298_vm4, %v2427_v36, 0.0  ;;  %vm2752_vm6 = vweird.f32 %v6202_v24  ;;  %10456 = vst [vmem:[#allocation34_spill] sm:$0xff] %v8622_v38 }
 0x361   : > { %6203 = vrsqrt.f32 %v8600_v47  ;;  %5966 = vmatmul.msk.f32.gmra.mxu0 %vm298_vm4, %v8603_v55  ;;  %2522 = vadd.xlane.f32.xlu1 %v2521_v16  ;;  %v3011_v16 = vld [vmem:[#allocation3 + $0xf8] sm:$0xff]  ;;  %vm2753_vm1 = vmor %vm2751_vm7, %vm2752_vm6  ;;  %vm2761_vm9 = vweird.f32 %v8600_v47 }
 0x362   : > { %v2744_v10 = vsel %vm2743_vm5, %v6200_v2, %v2740_v17  ;;  %v2747_v3 = vmul.f32 %v6202_v24, %v2746_v28 }
 0x363   : > { %v2929_v49 = vmul.f32 %v2744_v10, %v8052_v53 }
 0x364   : > { %v2748_v20 = vmul.f32 0.5, %v2747_v3  ;;  %v2481_v1 = vpop.xlane.xlu2 %2480  ;;  %v3010_v14 = vld [vmem:[#allocation3 + $0xf0] sm:$0xff]  ;;  %v3320_v3 = vrot.slane %v3012_v45, 7 }
 0x365   : > { %2962 = vst.msk [vmem:[#allocation3 + $0x108] sm:$0xff] %vm298_vm4, %v2929_v49  ;;  %v2548_v4 = vmul.f32 %v8067_v5, %v2481_v1  ;;  %5871 = vmatmul.msk.f32.gmra.mxu1 %vm298_vm4, %v3010_v14  ;;  %v3318_v12 = vrot.slane %v3010_v14, 7  ;;  %v3591_v50 = vrot.slane %v3010_v14, 1  ;;  %v3593_v49 = vrot.slane %v3011_v16, 1  ;;  %v8661_v16 = vpop.f32.mrf.mxu2 }
 0x366   : > { %v2749_v48 = vsub.f32 1.5, %v2748_v20  ;;  %10460 = vst [vmem:[#allocation9_spill] sm:$0xff] %v8661_v16 }
 0x367   : > { %v6204_v2 = vpop.eup %6203  ;;  %v8624_v25 = vadd.f32 1e-08, %v2548_v4  ;;  %v8627_v53 = vsel %vm740_vm2, %v3316_v30, %v3318_v12  ;;  %v8630_v36 = vsel %vm1019_vm3, %v3590_v21, %v3591_v50  ;;  %v8659_v45 = vpop.f32.mrf.mxu1 }
 0x368   : > { %v2750_v17 = vmul.f32 %v6202_v24, %v2749_v48  ;;  %v2756_v28 = vmul.f32 %v6204_v2, %v8600_v47  ;;  %5903 = vmatmul.msk.f32.gmra.mxu2 %vm298_vm4, %v8627_v53  ;;  %5935 = vmatmul.msk.f32.gmra.mxu3 %vm298_vm4, %v8630_v36  ;;  %vm2762_vm8 = vweird.f32 %v6204_v2  ;;  %10459 = vst [vmem:[#allocation33_spill] sm:$0xff] %v8659_v45 }
 0x369   : > { %6205 = vrsqrt.f32 %v8624_v25  ;;  %5967 = vmatmul.msk.f32.gmra.mxu0 %vm298_vm4, %v8627_v53  ;;  %vm2763_vm10 = vmor %vm2761_vm9, %vm2762_vm8  ;;  %vm2771_vm12 = vweird.f32 %v8624_v25 }
 0x36a   : > { %v2754_v30 = vsel %vm2753_vm1, %v6202_v24, %v2750_v17  ;;  %v2757_v10 = vmul.f32 %v6204_v2, %v2756_v28 }
 0x36b   : > { %v2930_v44 = vmul.f32 %v2754_v30, %v8073_v37  ;;  %v8651_v37 = vsel %vm1019_vm3, %v3591_v50, %v3593_v49 }
 0x36c   : > { %v2758_v20 = vmul.f32 0.5, %v2757_v10  ;;  %v2484_v1 = vpop.xlane.xlu0 %2483  ;;  %v3013_v14 = vld [vmem:[#allocation3 + $0x108] sm:$0xff]  ;;  %10458 = vst [vmem:[#allocation36_spill] sm:$0xff] %v8651_v37 }
 0x36d   : > { %2963 = vst.msk [vmem:[#allocation3 + $0x110] sm:$0xff] %vm298_vm4, %v2930_v44  ;;  %v2549_v4 = vmul.f32 %v8067_v5, %v2484_v1  ;;  %5872 = vmatmul.msk.f32.gmra.mxu1 %vm298_vm4, %v3013_v14  ;;  %v3321_v12 = vrot.slane %v3013_v14, 7 }
 0x36e   : > { %v2759_v21 = vsub.f32 1.5, %v2758_v20  ;;  %v3595_v20 = vrot.slane %v3013_v14, 1  ;;  %v3016_v14 = vld [vmem:[#allocation3 + $0x120] sm:$0xff] }
 0x36f   : > { %v6206_v48 = vpop.eup %6205  ;;  %v8645_v38 = vadd.f32 1e-08, %v2549_v4  ;;  %v8648_v24 = vsel %vm740_vm2, %v3320_v3, %v3321_v12 }
 0x370   : > { %10457 = vst [vmem:[#allocation8_spill] sm:$0xff] %v8648_v24  ;;  %v2760_v17 = vmul.f32 %v6204_v2, %v2759_v21  ;;  %v2766_v28 = vmul.f32 %v6206_v48, %v8624_v25  ;;  %5904 = vmatmul.msk.f32.gmra.mxu2 %vm298_vm4, %v8648_v24  ;;  %5936 = vmatmul.msk.f32.gmra.mxu3 %vm298_vm4, %v8651_v37  ;;  %vm2772_vm11 = vweird.f32 %v6206_v48 }
 0x371   : > { %6207 = vrsqrt.f32 %v8645_v38  ;;  %5968 = vmatmul.msk.f32.gmra.mxu0 %vm298_vm4, %v8648_v24  ;;  %vm2773_vm13 = vmor %vm2771_vm12, %vm2772_vm11  ;;  %vm2781_vm15 = vweird.f32 %v8645_v38 }
 0x372   : > { %v2764_v50 = vsel %vm2763_vm10, %v6204_v2, %v2760_v17  ;;  %v2767_v47 = vmul.f32 %v6206_v48, %v2766_v28 }
 0x373   : > { %v2931_v30 = vmul.f32 %v2764_v50, %v8088_v62 }
 0x374   : > { %v2768_v10 = vmul.f32 0.5, %v2767_v47  ;;  %v3014_v44 = vld [vmem:[#allocation3 + $0x110] sm:$0xff]  ;;  %v2487_v3 = vpop.xlane.xlu1 %2486  ;;  %v3015_v47 = vld [vmem:[#allocation3 + $0x118] sm:$0xff] }
 0x375   : > { %2964 = vst.msk [vmem:[#allocation3 + $0x128] sm:$0xff] %vm298_vm4, %v2931_v30  ;;  %5873 = vmatmul.msk.f32.gmra.mxu1 %vm298_vm4, %v3014_v44  ;;  %v3323_v49 = vrot.slane %v3014_v44, 7  ;;  %v3596_v1 = vrot.slane %v3014_v44, 1  ;;  %v2550_v21 = vmul.f32 %v8067_v5, %v2487_v3  ;;  %v8690_v3 = vpop.f32.mrf.mxu2 }
 0x376   : > { %v2769_v4 = vsub.f32 1.5, %v2768_v10  ;;  %10464 = vst [vmem:[#allocation40_spill] sm:$0xff] %v8690_v3 }
 0x377   : > { %v6208_v45 = vpop.eup %6207  ;;  %v8671_v2 = vsel %vm740_vm2, %v3321_v12, %v3323_v49  ;;  %v8674_v62 = vsel %vm1019_vm3, %v3595_v20, %v3596_v1  ;;  %v8678_v50 = vadd.f32 1e-08, %v2550_v21  ;;  %v8684_v12 = vpop.f32.mrf.mxu3  ;;  %v3325_v49 = vrot.slane %v3016_v14, 7 }
 0x378   : > { %10461 = vst [vmem:[#allocation38_spill] sm:$0xff] %v8671_v2  ;;  %v2770_v17 = vmul.f32 %v6206_v48, %v2769_v4  ;;  %v2776_v28 = vmul.f32 %v6208_v45, %v8645_v38  ;;  %5905 = vmatmul.msk.f32.gmra.mxu2 %vm298_vm4, %v8671_v2  ;;  %5937 = vmatmul.msk.f32.gmra.mxu3 %vm298_vm4, %v8674_v62  ;;  %v3598_v20 = vrot.slane %v3015_v47, 1  ;;  %vm2782_vm14 = vweird.f32 %v6208_v45 }
 0x379   : > { %10462 = vst [vmem:[#allocation35_spill] sm:$0xff] %v8674_v62  ;;  %5969 = vmatmul.msk.f32.gmra.mxu0 %vm298_vm4, %v8671_v2  ;;  %6209 = vrsqrt.f32 %v8678_v50  ;;  %vm2783_vm0 = vmor %vm2781_vm15, %vm2782_vm14  ;;  %vm2791_vm6 = vweird.f32 %v8678_v50 }
 0x37a   : > { %10463 = vst [vmem:[#allocation10_spill] sm:$0xff] %v8684_v12  ;;  %v2774_v30 = vsel %vm2773_vm13, %v6206_v48, %v2770_v17  ;;  %v2777_v25 = vmul.f32 %v6208_v45, %v2776_v28  ;;  %v3174_v10 = vpop.f32.mrf.mxu1  ;;  %v8701_v14 = vsel %vm1019_vm3, %v3596_v1, %v3598_v20 }
 0x37b   : > { %v2932_v44 = vmul.f32 %v2774_v30, %v8105_v40  ;;  %10467 = vst [vmem:[#allocation42_spill] sm:$0xff] %v8701_v14 }
 0x37c   : > { %v2778_v4 = vmul.f32 0.5, %v2777_v25  ;;  %v3017_v21 = vld [vmem:[#allocation3 + $0x128] sm:$0xff] }
 0x37d   : > { %2965 = vst.msk [vmem:[#allocation3 + $0x130] sm:$0xff] %vm298_vm4, %v2932_v44  ;;  %5874 = vmatmul.msk.f32.gmra.mxu1 %vm298_vm4, %v3017_v21  ;;  %v8694_v12 = vpop.f32.mrf.mxu0  ;;  %v3326_v16 = vrot.slane %v3017_v21, 7 }
 0x37e   : > { %10465 = vst [vmem:[#allocation37_spill] sm:$0xff] %v8694_v12  ;;  %v2779_v48 = vsub.f32 1.5, %v2778_v4  ;;  %v2490_v17 = vpop.xlane.xlu2 %2489 }
 0x37f   : > { %v2551_v28 = vmul.f32 %v8067_v5, %v2490_v17  ;;  %v8698_v40 = vsel %vm740_vm2, %v3325_v49, %v3326_v16  ;;  %v6210_v47 = vpop.eup %6209  ;;  %v8714_v4 = vpop.f32.mrf.mxu3 }
 0x380   : > { %10466 = vst [vmem:[#allocation11_spill] sm:$0xff] %v8698_v40  ;;  %v2780_v30 = vmul.f32 %v6208_v45, %v2779_v48  ;;  %5906 = vmatmul.msk.f32.gmra.mxu2 %vm298_vm4, %v8698_v40  ;;  %5938 = vmatmul.msk.f32.gmra.mxu3 %vm298_vm4, %v8701_v14  ;;  %v2786_v25 = vmul.f32 %v6210_v47, %v8678_v50  ;;  %vm2792_vm5 = vweird.f32 %v6210_v47 }
 0x381   : > { %v8709_v44 = vadd.f32 1e-08, %v2551_v28  ;;  %5970 = vmatmul.msk.f32.gmra.mxu0 %vm298_vm4, %v8698_v40  ;;  %10468 = vst [vmem:[#allocation39_spill] sm:$0xff] %v8714_v4  ;;  %vm2793_vm7 = vmor %vm2791_vm6, %vm2792_vm5 }
 0x382   : > { %v2784_v1 = vsel %vm2783_vm0, %v6208_v45, %v2780_v30  ;;  %v3177_v49 = vpop.f32.mrf.mxu1  ;;  %v2787_v38 = vmul.f32 %v6210_v47, %v2786_v25 }
 0x383   : > { %v2933_v20 = vmul.f32 %v2784_v1, %v8124_v8  ;;  %6211 = vrsqrt.f32 %v8709_v44  ;;  %v3447_v48 = vpop.f32.mrf.mxu2  ;;  %v3600_v8 = vrot.slane %v3017_v21, 1  ;;  %vm2801_vm8 = vweird.f32 %v8709_v44 }
 0x384   : > { %v3448_v17 = vadd.f32 %v3447_v48, %v3174_v10  ;;  %v2493_v3 = vpop.xlane.xlu0 %2492  ;;  %v3018_v12 = vld [vmem:[#allocation3 + $0x130] sm:$0xff]  ;;  %v2788_v28 = vmul.f32 0.5, %v2787_v38  ;;  %v3019_v38 = vld [vmem:[#allocation3 + $0x138] sm:$0xff] }
 0x385   : > { %2966 = vst.msk [vmem:[#allocation3 + $0x148] sm:$0xff] %vm298_vm4, %v2933_v20  ;;  %v2552_v14 = vmul.f32 %v8067_v5, %v2493_v3  ;;  %5875 = vmatmul.msk.f32.gmra.mxu1 %vm298_vm4, %v3018_v12  ;;  %v3328_v45 = vrot.slane %v3018_v12, 7  ;;  %v3601_v30 = vrot.slane %v3018_v12, 1  ;;  %v3020_v3 = vld [vmem:[#allocation3 + $0x140] sm:$0xff] }
 0x386   : > { %v8720_v40 = vpop.f32.mrf.mxu0  ;;  %v2789_v1 = vsub.f32 1.5, %v2788_v28 }
 0x387   : > { %10469 = vst [vmem:[#allocation12_spill] sm:$0xff] %v8720_v40  ;;  %v8722_v25 = vadd.f32 1e-08, %v2552_v14  ;;  %v8725_v10 = vsel %vm740_vm2, %v3326_v16, %v3328_v45  ;;  %v8730_v20 = vsel %vm1019_vm3, %v3600_v8, %v3601_v30  ;;  %v3330_v8 = vrot.slane %v3020_v3, 7 }
 0x388   : > { %10470 = vst [vmem:[#allocation44_spill] sm:$0xff] %v8725_v10  ;;  %5907 = vmatmul.msk.f32.gmra.mxu2 %vm298_vm4, %v8725_v10  ;;  %v2790_v12 = vmul.f32 %v6210_v47, %v2789_v1  ;;  %5939 = vmatmul.msk.f32.gmra.mxu3 %vm298_vm4, %v8730_v20  ;;  %v3603_v40 = vrot.slane %v3019_v38, 1 }
 0x389   : > { %10471 = vst [vmem:[#allocation41_spill] sm:$0xff] %v8730_v20  ;;  %v6212_v48 = vpop.eup %6211  ;;  %6213 = vrsqrt.f32 %v8722_v25  ;;  %5971 = vmatmul.msk.f32.gmra.mxu0 %vm298_vm4, %v8725_v10  ;;  %vm2811_vm11 = vweird.f32 %v8722_v25 }
 0x38a   : > { %v2796_v16 = vmul.f32 %v6212_v48, %v8709_v44  ;;  %v3180_v21 = vpop.f32.mrf.mxu1  ;;  %v2794_v14 = vsel %vm2793_vm7, %v6210_v47, %v2790_v12  ;;  %vm2802_vm1 = vweird.f32 %v6212_v48 }
 0x38b   : > { %v3450_v28 = vpop.f32.mrf.mxu2  ;;  %v3722_v45 = vpop.f32.mrf.mxu3  ;;  %v2934_v1 = vmul.f32 %v2794_v14, %v8145_v22  ;;  %vm2803_vm9 = vmor %vm2801_vm8, %vm2802_vm1 }
 0x38c   : > { %v2797_v50 = vmul.f32 %v6212_v48, %v2796_v16  ;;  %v3451_v4 = vadd.f32 %v3450_v28, %v3177_v49  ;;  %v8740_v62 = vadd.f32 %v3722_v45, %v3448_v17  ;;  %v3021_v2 = vld [vmem:[#allocation3 + $0x148] sm:$0xff]  ;;  %v8754_v17 = vsel %vm1019_vm3, %v3601_v30, %v3603_v40 }
 0x38d   : > { %5876 = vmatmul.msk.f32.gmra.mxu1 %vm298_vm4, %v3021_v2  ;;  %v3331_v20 = vrot.slane %v3021_v2, 7  ;;  %2967 = vst.msk [vmem:[#allocation3 + $0x150] sm:$0xff] %vm298_vm4, %v2934_v1 }
 0x38e   : > { %10472 = vst [vmem:[#allocation14_spill] sm:$0xff] %v8740_v62  ;;  %v2798_v10 = vmul.f32 0.5, %v2797_v50  ;;  %v2496_v37 = vpop.xlane.xlu1 %2495  ;;  %v8744_v24 = vpop.f32.mrf.mxu0 }
 0x38f   : > { %10473 = vst [vmem:[#allocation46_spill] sm:$0xff] %v8744_v24  ;;  %v6214_v47 = vpop.eup %6213  ;;  %v2553_v3 = vmul.f32 %v8067_v5, %v2496_v37  ;;  %v8748_v38 = vsel %vm740_vm2, %v3330_v8, %v3331_v20  ;;  %v3605_v24 = vrot.slane %v3021_v2, 1 }
 0x390   : > { %v2799_v22 = vsub.f32 1.5, %v2798_v10  ;;  %v2806_v49 = vmul.f32 %v6214_v47, %v8722_v25  ;;  %5908 = vmatmul.msk.f32.gmra.mxu2 %vm298_vm4, %v8748_v38  ;;  %10474 = vst [vmem:[#allocation43_spill] sm:$0xff] %v8754_v17  ;;  %5940 = vmatmul.msk.f32.gmra.mxu3 %vm298_vm4, %v8754_v17  ;;  %vm2812_vm10 = vweird.f32 %v6214_v47 }
 0x391   : > { %v8756_v12 = vadd.f32 1e-08, %v2553_v3  ;;  %5972 = vmatmul.msk.f32.gmra.mxu0 %vm298_vm4, %v8748_v38  ;;  %vm2813_vm12 = vmor %vm2811_vm11, %vm2812_vm10 }
 0x392   : > { %v2800_v37 = vmul.f32 %v6212_v48, %v2799_v22  ;;  %v2807_v10 = vmul.f32 %v6214_v47, %v2806_v49  ;;  %v3183_v16 = vpop.f32.mrf.mxu1 }
 0x393   : > { %6215 = vrsqrt.f32 %v8756_v12  ;;  %v3453_v14 = vpop.f32.mrf.mxu2  ;;  %v3725_v28 = vpop.f32.mrf.mxu3  ;;  %vm2821_vm14 = vweird.f32 %v8756_v12 }
 0x394   : > { %v2804_v40 = vsel %vm2803_vm9, %v6212_v48, %v2800_v37  ;;  %v2808_v30 = vmul.f32 0.5, %v2807_v10  ;;  %v3454_v45 = vadd.f32 %v3453_v14, %v3180_v21  ;;  %v8764_v8 = vadd.f32 %v3725_v28, %v3451_v4  ;;  %v2499_v1 = vpop.xlane.xlu2 %2498  ;;  %v3022_v22 = vld [vmem:[#allocation3 + $0x150] sm:$0xff]  ;;  %v3023_v37 = vld [vmem:[#allocation3 + $0x158] sm:$0xff] }
 0x395   : > { %v2935_v50 = vmul.f32 %v2804_v40, %v8183_v19  ;;  %v2554_v3 = vmul.f32 %v8067_v5, %v2499_v1  ;;  %5877 = vmatmul.msk.f32.gmra.mxu1 %vm298_vm4, %v3022_v22  ;;  %v3333_v62 = vrot.slane %v3022_v22, 7  ;;  %v3606_v17 = vrot.slane %v3022_v22, 1 }
 0x396   : > { %10475 = vst [vmem:[#allocation16_spill] sm:$0xff] %v8764_v8  ;;  %v2809_v44 = vsub.f32 1.5, %v2808_v30  ;;  %v8769_v49 = vpop.f32.mrf.mxu0 }
 0x397   : > { %10476 = vst [vmem:[#allocation48_spill] sm:$0xff] %v8769_v49  ;;  %v8772_v48 = vadd.f32 1e-08, %v2554_v3  ;;  %v8776_v19 = vsel %vm740_vm2, %v3331_v20, %v3333_v62  ;;  %v8779_v2 = vsel %vm1019_vm3, %v3605_v24, %v3606_v17  ;;  %v3024_v24 = vld [vmem:[#allocation3 + $0x160] sm:$0xff] }
 0x398   : > { %2968 = vst.msk [vmem:[#allocation3 + $0x168] sm:$0xff] %vm298_vm4, %v2935_v50  ;;  %v2810_v4 = vmul.f32 %v6214_v47, %v2809_v44  ;;  %5909 = vmatmul.msk.f32.gmra.mxu2 %vm298_vm4, %v8776_v19  ;;  %5941 = vmatmul.msk.f32.gmra.mxu3 %vm298_vm4, %v8779_v2  ;;  %v3608_v50 = vrot.slane %v3023_v37, 1  ;;  %v3335_v3 = vrot.slane %v3024_v24, 7 }
 0x399   : > { %v6216_v21 = vpop.eup %6215  ;;  %6217 = vrsqrt.f32 %v8772_v48  ;;  %5973 = vmatmul.msk.f32.gmra.mxu0 %vm298_vm4, %v8776_v19  ;;  %vm2831_vm5 = vweird.f32 %v8772_v48 }
 0x39a   : > { %v2814_v10 = vsel %vm2813_vm12, %v6214_v47, %v2810_v4  ;;  %v2816_v25 = vmul.f32 %v6216_v21, %v8756_v12  ;;  %v3186_v62 = vpop.f32.mrf.mxu1  ;;  %vm2822_vm13 = vweird.f32 %v6216_v21 }
 0x39b   : > { %v2936_v20 = vmul.f32 %v2814_v10, %v8222_v31  ;;  %v3456_v14 = vpop.f32.mrf.mxu2  ;;  %v3728_v28 = vpop.f32.mrf.mxu3  ;;  %vm2823_vm15 = vmor %vm2821_vm14, %vm2822_vm13 }
 0x39c   : > { %v2817_v40 = vmul.f32 %v6216_v21, %v2816_v25  ;;  %v3457_v30 = vadd.f32 %v3456_v14, %v3183_v16  ;;  %v8790_v1 = vadd.f32 %v3728_v28, %v3454_v45  ;;  %v8799_v45 = vsel %vm1019_vm3, %v3606_v17, %v3608_v50 }
 0x39d   : > { %2969 = vst.msk [vmem:[#allocation3 + $0x170] sm:$0xff] %vm298_vm4, %v2936_v20 }
 0x39e   : > { %10477 = vst [vmem:[#allocation45_spill] sm:$0xff] %v8790_v1  ;;  %v2818_v47 = vmul.f32 0.5, %v2817_v40  ;;  %v2502_v22 = vpop.xlane.xlu0 %2501  ;;  %v8793_v4 = vpop.f32.mrf.mxu0 }
 0x39f   : > { %v3025_v44 = vld [vmem:[#allocation3 + $0x168] sm:$0xff]  ;;  %10478 = vst [vmem:[#allocation19_spill] sm:$0xff] %v8793_v4  ;;  %v6218_v49 = vpop.eup %6217  ;;  %v2555_v8 = vmul.f32 %v8067_v5, %v2502_v22 }
 0x3a0   : > { %5878 = vmatmul.msk.f32.gmra.mxu1 %vm298_vm4, %v3025_v44  ;;  %v3336_v31 = vrot.slane %v3025_v44, 7  ;;  %v2819_v10 = vsub.f32 1.5, %v2818_v47  ;;  %v2826_v16 = vmul.f32 %v6218_v49, %v8772_v48  ;;  %10479 = vst [vmem:[#allocation50_spill] sm:$0xff] %v8799_v45  ;;  %5942 = vmatmul.msk.f32.gmra.mxu3 %vm298_vm4, %v8799_v45  ;;  %v3610_v28 = vrot.slane %v3025_v44, 1 }
 0x3a1   : > { %v8801_v37 = vadd.f32 1e-08, %v2555_v8  ;;  %vm2832_vm0 = vweird.f32 %v6218_v49 }
 0x3a2   : > { %v8804_v25 = vsel %vm740_vm2, %v3335_v3, %v3336_v31  ;;  %v2820_v24 = vmul.f32 %v6216_v21, %v2819_v10  ;;  %v2827_v20 = vmul.f32 %v6218_v49, %v2826_v16  ;;  %v3189_v17 = vpop.f32.mrf.mxu1  ;;  %vm2833_vm6 = vmor %vm2831_vm5, %vm2832_vm0 }
 0x3a3   : > { %10480 = vst [vmem:[#allocation47_spill] sm:$0xff] %v8804_v25  ;;  %5910 = vmatmul.msk.f32.gmra.mxu2 %vm298_vm4, %v8804_v25  ;;  %5974 = vmatmul.msk.f32.gmra.mxu0 %vm298_vm4, %v8804_v25  ;;  %6219 = vrsqrt.f32 %v8801_v37  ;;  %v3459_v8 = vpop.f32.mrf.mxu2  ;;  %v3731_v14 = vpop.f32.mrf.mxu3  ;;  %vm2841_vm1 = vweird.f32 %v8801_v37 }
 0x3a4   : > { %v2824_v40 = vsel %vm2823_vm15, %v6216_v21, %v2820_v24  ;;  %v2828_v50 = vmul.f32 0.5, %v2827_v20  ;;  %v3460_v3 = vadd.f32 %v3459_v8, %v3186_v62  ;;  %v8814_v47 = vadd.f32 %v3731_v14, %v3457_v30  ;;  %v2505_v12 = vpop.xlane.xlu1 %2504  ;;  %v3026_v22 = vld [vmem:[#allocation3 + $0x170] sm:$0xff]  ;;  %v3027_v24 = vld [vmem:[#allocation3 + $0x178] sm:$0xff] }
 0x3a5   : > { %v2937_v10 = vmul.f32 %v2824_v40, %v8269_v54  ;;  %v2556_v16 = vmul.f32 %v8067_v5, %v2505_v12  ;;  %v3338_v4 = vrot.slane %v3026_v22, 7  ;;  %v3611_v1 = vrot.slane %v3026_v22, 1 }
 0x3a6   : > { %10481 = vst [vmem:[#allocation22_spill] sm:$0xff] %v8814_v47  ;;  %v2829_v45 = vsub.f32 1.5, %v2828_v50  ;;  %v8818_v25 = vpop.f32.mrf.mxu0  ;;  %v3613_v12 = vrot.slane %v3027_v24, 1 }
 0x3a7   : > { %10482 = vst [vmem:[#allocation52_spill] sm:$0xff] %v8818_v25  ;;  %v8821_v44 = vadd.f32 1e-08, %v2556_v16  ;;  %v8825_v21 = vsel %vm740_vm2, %v3336_v31, %v3338_v4  ;;  %v8828_v62 = vsel %vm1019_vm3, %v3610_v28, %v3611_v1  ;;  %v3028_v31 = vld [vmem:[#allocation3 + $0x180] sm:$0xff] }
 0x3a8   : > { %2970 = vst.msk [vmem:[#allocation3 + $0x188] sm:$0xff] %vm298_vm4, %v2937_v10  ;;  %5879 = vmatmul.msk.f32.gmra.mxu1 %vm298_vm4, %v3026_v22  ;;  %v2830_v54 = vmul.f32 %v6218_v49, %v2829_v45  ;;  %5943 = vmatmul.msk.f32.gmra.mxu3 %vm298_vm4, %v8828_v62  ;;  %v8853_v24 = vsel %vm1019_vm3, %v3611_v1, %v3613_v12 }
 0x3a9   : > { %v6220_v30 = vpop.eup %6219  ;;  %6221 = vrsqrt.f32 %v8821_v44  ;;  %10485 = vst [vmem:[#allocation54_spill] sm:$0xff] %v8853_v24  ;;  %vm2851_vm10 = vweird.f32 %v8821_v44 }
 0x3aa   : > { %v2834_v20 = vsel %vm2833_vm6, %v6218_v49, %v2830_v54  ;;  %v2836_v8 = vmul.f32 %v6220_v30, %v8801_v37  ;;  %v3192_v4 = vpop.f32.mrf.mxu1  ;;  %v3340_v49 = vrot.slane %v3028_v31, 7  ;;  %vm2842_vm7 = vweird.f32 %v6220_v30 }
 0x3ab   : > { %5911 = vmatmul.msk.f32.gmra.mxu2 %vm298_vm4, %v8825_v21  ;;  %5975 = vmatmul.msk.f32.gmra.mxu0 %vm298_vm4, %v8825_v21  ;;  %v2938_v48 = vmul.f32 %v2834_v20, %v8309_v9  ;;  %v3462_v45 = vpop.f32.mrf.mxu2  ;;  %v3734_v14 = vpop.f32.mrf.mxu3  ;;  %vm2843_vm8 = vmor %vm2841_vm1, %vm2842_vm7 }
 0x3ac   : > { %v2837_v28 = vmul.f32 %v6220_v30, %v2836_v8  ;;  %v3463_v40 = vadd.f32 %v3462_v45, %v3189_v17  ;;  %v8840_v50 = vadd.f32 %v3734_v14, %v3460_v3 }
 0x3ad   : > { %2971 = vst.msk [vmem:[#allocation3 + $0x190] sm:$0xff] %vm298_vm4, %v2938_v48 }
 0x3ae   : > { %10483 = vst [vmem:[#allocation49_spill] sm:$0xff] %v8840_v50  ;;  %v2838_v22 = vmul.f32 0.5, %v2837_v28  ;;  %v2508_v10 = vpop.xlane.xlu2 %2507  ;;  %v8850_v3 = vpop.f32.mrf.mxu0 }
 0x3af   : > { %v8843_v16 = vld [vmem:[#allocation3 + $0x188] sm:$0xff]  ;;  %v6222_v54 = vpop.eup %6221  ;;  %v2557_v25 = vmul.f32 %v8067_v5, %v2508_v10  ;;  %10484 = vst [vmem:[#allocation25_spill] sm:$0xff] %v8850_v3 }
 0x3b0   : > { %5880 = vmatmul.msk.f32.gmra.mxu1 %vm298_vm4, %v8843_v16  ;;  %v3341_v9 = vrot.slane %v8843_v16, 7  ;;  %v2839_v20 = vsub.f32 1.5, %v2838_v22  ;;  %v2846_v17 = vmul.f32 %v6222_v54, %v8821_v44  ;;  %5944 = vmatmul.msk.f32.gmra.mxu3 %vm298_vm4, %v8853_v24  ;;  %v3615_v28 = vrot.slane %v8843_v16, 1  ;;  %v3032_v44 = vld [vmem:[#allocation3 + $0x1a0] sm:$0xff] }
 0x3b1   : > { %v8855_v8 = vadd.f32 1e-08, %v2557_v25  ;;  %vm2852_vm9 = vweird.f32 %v6222_v54 }
 0x3b2   : > { %v8858_v31 = vsel %vm740_vm2, %v3340_v49, %v3341_v9  ;;  %v2840_v48 = vmul.f32 %v6220_v30, %v2839_v20  ;;  %v2847_v45 = vmul.f32 %v6222_v54, %v2846_v17  ;;  %v3195_v1 = vpop.f32.mrf.mxu1  ;;  %vm2853_vm11 = vmor %vm2851_vm10, %vm2852_vm9 }
 0x3b3   : > { %5912 = vmatmul.msk.f32.gmra.mxu2 %vm298_vm4, %v8858_v31  ;;  %5976 = vmatmul.msk.f32.gmra.mxu0 %vm298_vm4, %v8858_v31  ;;  %6223 = vrsqrt.f32 %v8855_v8  ;;  %v3465_v25 = vpop.f32.mrf.mxu2  ;;  %v3737_v14 = vpop.f32.mrf.mxu3  ;;  %vm2861_vm13 = vweird.f32 %v8855_v8 }
 0x3b4   : > { %v2844_v12 = vsel %vm2843_vm8, %v6220_v30, %v2840_v48  ;;  %v2848_v49 = vmul.f32 0.5, %v2847_v45  ;;  %v3466_v22 = vadd.f32 %v3465_v25, %v3192_v4  ;;  %v8869_v10 = vadd.f32 %v3737_v14, %v3463_v40  ;;  %v2511_v37 = vpop.xlane.xlu0 %2510  ;;  %v8871_v20 = vld [vmem:[#allocation3 + $0x190] sm:$0xff] }
 0x3b5   : > { %10487 = vst [vmem:[#allocation28_spill] sm:$0xff] %v8871_v20  ;;  %v2939_v17 = vmul.f32 %v2844_v12, %v8352_v63  ;;  %v2558_v3 = vmul.f32 %v8067_v5, %v2511_v37  ;;  %v3343_v50 = vrot.slane %v8871_v20, 7  ;;  %v3616_v24 = vrot.slane %v8871_v20, 1 }
 0x3b6   : > { %10486 = vst [vmem:[#allocation51_spill] sm:$0xff] %v8869_v10  ;;  %v2849_v47 = vsub.f32 1.5, %v2848_v49  ;;  %v8893_v14 = vpop.f32.mrf.mxu0 }
 0x3b7   : > { %2972 = vst.msk [vmem:[#allocation3 + $0x1a8] sm:$0xff] %vm298_vm4, %v2939_v17  ;;  %v8878_v30 = vadd.f32 1e-08, %v2558_v3  ;;  %v8883_v4 = vsel %vm740_vm2, %v3341_v9, %v3343_v50  ;;  %v8886_v63 = vsel %vm1019_vm3, %v3615_v28, %v3616_v24  ;;  %v3031_v3 = vld [vmem:[#allocation3 + $0x198] sm:$0xff]  ;;  %v3345_v17 = vrot.slane %v3032_v44, 7 }
 0x3b8   : > { %5881 = vmatmul.msk.f32.gmra.mxu1 %vm298_vm4, %v8871_v20  ;;  %10488 = vst [vmem:[#allocation53_spill] sm:$0xff] %v8883_v4  ;;  %v2850_v40 = vmul.f32 %v6222_v54, %v2849_v47  ;;  %5945 = vmatmul.msk.f32.gmra.mxu3 %vm298_vm4, %v8886_v63 }
 0x3b9   : > { %10489 = vst [vmem:[#allocation4_spill] sm:$0xff] %v8886_v63  ;;  %v6224_v48 = vpop.eup %6223  ;;  %6225 = vrsqrt.f32 %v8878_v30  ;;  %vm2871_vm0 = vweird.f32 %v8878_v30 }
 0x3ba   : > { %v2854_v45 = vsel %vm2853_vm11, %v6222_v54, %v2850_v40  ;;  %v2856_v25 = vmul.f32 %v6224_v48, %v8855_v8  ;;  %10490 = vst [vmem:[#allocation57_spill] sm:$0xff] %v8893_v14  ;;  %v3198_v47 = vpop.f32.mrf.mxu1  ;;  %v3618_v54 = vrot.slane %v3031_v3, 1  ;;  %vm2862_vm12 = vweird.f32 %v6224_v48 }
 0x3bb   : > { %5913 = vmatmul.msk.f32.gmra.mxu2 %vm298_vm4, %v8883_v4  ;;  %5977 = vmatmul.msk.f32.gmra.mxu0 %vm298_vm4, %v8883_v4  ;;  %v2940_v50 = vmul.f32 %v2854_v45, %v8388_v26  ;;  %v3468_v9 = vpop.f32.mrf.mxu2  ;;  %v3740_v28 = vpop.f32.mrf.mxu3  ;;  %vm2863_vm14 = vmor %vm2861_vm13, %vm2862_vm12 }
 0x3bc   : > { %v2857_v12 = vmul.f32 %v6224_v48, %v2856_v25  ;;  %v3469_v49 = vadd.f32 %v3468_v9, %v3195_v1  ;;  %v8900_v37 = vadd.f32 %v3740_v28, %v3466_v22  ;;  %v8911_v22 = vsel %vm1019_vm3, %v3616_v24, %v3618_v54 }
 0x3bd   : > { %2973 = vst.msk [vmem:[#allocation3 + $0x1b0] sm:$0xff] %vm298_vm4, %v2940_v50 }
 0x3be   : > { %10491 = vst [vmem:[#allocation55_spill] sm:$0xff] %v8900_v37  ;;  %v2858_v40 = vmul.f32 0.5, %v2857_v12  ;;  %v8903_v10 = vld [vmem:[#allocation3 + $0x1a8] sm:$0xff]  ;;  %v8927_v54 = vpop.f32.mrf.mxu0 }
 0x3bf   : > { %v2514_v14 = vpop.xlane.xlu1 %2513  ;;  %v6226_v20 = vpop.eup %6225  ;;  %v3346_v26 = vrot.slane %v8903_v10, 7  ;;  %10492 = vst [vmem:[#allocation5_spill] sm:$0xff] %v8911_v22  ;;  %v3620_v9 = vrot.slane %v8903_v10, 1 }
 0x3c0   : > { %v2559_v63 = vmul.f32 %v8067_v5, %v2514_v14  ;;  %5882 = vmatmul.msk.f32.gmra.mxu1 %vm298_vm4, %v8903_v10  ;;  %v2859_v45 = vsub.f32 1.5, %v2858_v40  ;;  %v2866_v1 = vmul.f32 %v6226_v20, %v8878_v30  ;;  %5946 = vmatmul.msk.f32.gmra.mxu3 %vm298_vm4, %v8911_v22  ;;  %10494 = vst [vmem:[#allocation6_spill] sm:$0xff] %v8927_v54  ;;  %vm2872_vm15 = vweird.f32 %v6226_v20 }
 0x3c1   : > { %v8916_v25 = vsel %vm740_vm2, %v3345_v17, %v3346_v26  ;;  %vm2873_vm5 = vmor %vm2871_vm0, %vm2872_vm15 }
 0x3c2   : > { %v8913_v3 = vadd.f32 1e-08, %v2559_v63  ;;  %10493 = vst [vmem:[#allocation56_spill] sm:$0xff] %v8916_v25  ;;  %v2860_v14 = vmul.f32 %v6224_v48, %v2859_v45  ;;  %v2867_v44 = vmul.f32 %v6226_v20, %v2866_v1  ;;  %v3201_v24 = vpop.f32.mrf.mxu1 }
 0x3c3   : > { %5914 = vmatmul.msk.f32.gmra.mxu2 %vm298_vm4, %v8916_v25  ;;  %5978 = vmatmul.msk.f32.gmra.mxu0 %vm298_vm4, %v8916_v25  ;;  %v3471_v63 = vpop.f32.mrf.mxu2  ;;  %v3743_v50 = vpop.f32.mrf.mxu3 }
 0x3c4   : > { %6227 = vrsqrt.f32 %v8913_v3  ;;  %v2864_v28 = vsel %vm2863_vm14, %v6224_v48, %v2860_v14  ;;  %v2868_v12 = vmul.f32 0.5, %v2867_v44  ;;  %v3472_v8 = vadd.f32 %v3471_v63, %v3198_v47  ;;  %v2517_v40 = vpop.xlane.xlu2 %2516  ;;  %v8931_v45 = vld [vmem:[#allocation3 + $0x1b0] sm:$0xff] }
 0x3c5   : > { %v8929_v17 = vadd.f32 %v3743_v50, %v3469_v49  ;;  %10496 = vst [vmem:[#allocation59_spill] sm:$0xff] %v8931_v45  ;;  %v2941_v1 = vmul.f32 %v2864_v28, %v8427_v6  ;;  %v2560_v37 = vmul.f32 %v8067_v5, %v2517_v40  ;;  %v3348_v22 = vrot.slane %v8931_v45, 7 }
 0x3c6   : > { %v3621_v25 = vrot.slane %v8931_v45, 1  ;;  %v2869_v4 = vsub.f32 1.5, %v2868_v12  ;;  %vm2881_vm7 = vweird.f32 %v8913_v3 }
 0x3c7   : > { %10495 = vst [vmem:[#allocation58_spill] sm:$0xff] %v8929_v17  ;;  %v8938_v48 = vadd.f32 1e-08, %v2560_v37  ;;  %v8943_v47 = vsel %vm740_vm2, %v3346_v26, %v3348_v22  ;;  %v3035_v37 = vld [vmem:[#allocation3 + $0x1b8] sm:$0xff]  ;;  %v3036_v26 = vld [vmem:[#allocation3 + $0x1c0] sm:$0xff] }
 0x3c8   : > { %2974 = vst.msk [vmem:[#allocation3 + $0x1c8] sm:$0xff] %vm298_vm4, %v2941_v1  ;;  %5883 = vmatmul.msk.f32.gmra.mxu1 %vm298_vm4, %v8931_v45  ;;  %v8946_v6 = vsel %vm1019_vm3, %v3620_v9, %v3621_v25  ;;  %v2870_v49 = vmul.f32 %v6226_v20, %v2869_v4  ;;  %v3623_v40 = vrot.slane %v3035_v37, 1  ;;  %v6019_v1 = vld [vmem:[%s10220_s3 + $0x28] sm:$0xff] }
 0x3c9   : > { %6229 = vrsqrt.f32 %v8938_v48  ;;  %5947 = vmatmul.msk.f32.gmra.mxu3 %vm298_vm4, %v8946_v6  ;;  %4181 = vmatpush.msra.mxu2 %v6019_v1  ;;  %vm2891_vm9 = vweird.f32 %v8938_v48 }
 0x3ca   : > { %v6228_v14 = vpop.eup %6227  ;;  %v2874_v44 = vsel %vm2873_vm5, %v6226_v20, %v2870_v49  ;;  %v3204_v4 = vpop.f32.mrf.mxu1  ;;  %v3350_v20 = vrot.slane %v3036_v26, 7  ;;  %v6052_v49 = vld [vmem:[%s10220_s3 + $0x30] sm:$0xff]  ;;  %v8983_v1 = vsel %vm1019_vm3, %v3621_v25, %v3623_v40 }
 0x3cb   : > { %v2876_v63 = vmul.f32 %v6228_v14, %v8913_v3  ;;  %5915 = vmatmul.msk.f32.gmra.mxu2 %vm298_vm4, %v8943_v47  ;;  %5979 = vmatmul.msk.f32.gmra.mxu0 %vm298_vm4, %v8943_v47  ;;  %v2942_v30 = vmul.f32 %v2874_v44, %v8462_v58  ;;  %v3474_v22 = vpop.f32.mrf.mxu2  ;;  %v3746_v50 = vpop.f32.mrf.mxu3  ;;  %v6085_v58 = vld [vmem:[%s10220_s3 + $0x38] sm:$0xff]  ;;  %vm2882_vm6 = vweird.f32 %v6228_v14  ;;  %10499 = vst [vmem:[#allocation18_spill] sm:$0xff] %v8983_v1 }
 0x3cc   : > { %v3475_v28 = vadd.f32 %v3474_v22, %v3201_v24  ;;  %v8958_v12 = vadd.f32 %v3746_v50, %v3472_v8  ;;  %v8970_v24 = vpop.f32.mrf.mxu0  ;;  %4340 = vmatpush.msra.mxu3 %v6052_v49  ;;  %4491 = vmatpush.msra.mxu0 %v6085_v58  ;;  %v6118_v22 = vld [vmem:[%s10220_s3 + $0x40] sm:$0xff]  ;;  %vm2883_vm1 = vmor %vm2881_vm7, %vm2882_vm6 }
 0x3cd   : > { %v2877_v9 = vmul.f32 %v6228_v14, %v2876_v63  ;;  %2975 = vst.msk [vmem:[#allocation3 + $0x1d0] sm:$0xff] %vm298_vm4, %v2942_v30  ;;  %4648 = vmatpush.msra.mxu1 %v6118_v22 }
 0x3ce   : > { %10497 = vst [vmem:[#allocation13_spill] sm:$0xff] %v8958_v12  ;;  %v2520_v8 = vpop.xlane.xlu0 %2519 }
 0x3cf   : > { %v2878_v44 = vmul.f32 0.5, %v2877_v9  ;;  %10498 = vst [vmem:[#allocation15_spill] sm:$0xff] %v8970_v24  ;;  %v8972_v37 = vld [vmem:[#allocation3 + $0x1c8] sm:$0xff]  ;;  %v6230_v63 = vpop.eup %6229  ;;  %v2561_v26 = vmul.f32 %v8067_v5, %v2520_v8 }
 0x3d0   : > { %5884 = vmatmul.msk.f32.gmra.mxu1 %vm298_vm4, %v8972_v37  ;;  %v3351_v30 = vrot.slane %v8972_v37, 7  ;;  %v2886_v9 = vmul.f32 %v6230_v63, %v8938_v48  ;;  %vm2892_vm8 = vweird.f32 %v6230_v63  ;;  %v3040_v48 = vld [vmem:[#allocation3 + $0x1e0] sm:$0xff] }
 0x3d1   : > { %v2879_v50 = vsub.f32 1.5, %v2878_v44  ;;  %v8985_v49 = vadd.f32 1e-08, %v2561_v26  ;;  %5948 = vmatmul.msk.f32.gmra.mxu3 %vm298_vm4, %v8983_v1  ;;  %v3625_v44 = vrot.slane %v8972_v37, 1  ;;  %vm2893_vm10 = vmor %vm2891_vm9, %vm2892_vm8 }
 0x3d2   : > { %v8988_v8 = vsel %vm740_vm2, %v3350_v20, %v3351_v30  ;;  %v2887_v12 = vmul.f32 %v6230_v63, %v2886_v9  ;;  %v3207_v25 = vpop.f32.mrf.mxu1 }
 0x3d3   : > { %10500 = vst [vmem:[#allocation21_spill] sm:$0xff] %v8988_v8  ;;  %v2880_v58 = vmul.f32 %v6228_v14, %v2879_v50  ;;  %5916 = vmatmul.msk.f32.gmra.mxu2 %vm298_vm4, %v8988_v8  ;;  %5980 = vmatmul.msk.f32.gmra.mxu0 %vm298_vm4, %v8988_v8  ;;  %6231 = vrsqrt.f32 %v8985_v49  ;;  %v3477_v40 = vpop.f32.mrf.mxu2  ;;  %v3749_v20 = vpop.f32.mrf.mxu3  ;;  %vm2901_vm12 = vweird.f32 %v8985_v49 }
 0x3d4   : > { %v2888_v22 = vmul.f32 0.5, %v2887_v12  ;;  %v3478_v50 = vadd.f32 %v3477_v40, %v3204_v4  ;;  %v8999_v24 = vadd.f32 %v3749_v20, %v3475_v28  ;;  %v2523_v3 = vpop.xlane.xlu1 %2522  ;;  %v9001_v9 = vld [vmem:[#allocation3 + $0x1d0] sm:$0xff]  ;;  %v9019_v12 = vpop.f32.mrf.mxu0 }
 0x3d5   : > { %v2884_v26 = vsel %vm2883_vm1, %v6228_v14, %v2880_v58  ;;  %v2562_v54 = vmul.f32 %v8067_v5, %v2523_v3  ;;  %v3353_v1 = vrot.slane %v9001_v9, 7  ;;  %v3626_v8 = vrot.slane %v9001_v9, 1  ;;  %10502 = vst [vmem:[#allocation20_spill] sm:$0xff] %v9019_v12 }
 0x3d6   : > { %10501 = vst [vmem:[#allocation17_spill] sm:$0xff] %v8999_v24  ;;  %v2943_v17 = vmul.f32 %v2884_v26, %v8502_v51  ;;  %v2889_v45 = vsub.f32 1.5, %v2888_v22 }
 0x3d7   : > { %v9008_v14 = vadd.f32 1e-08, %v2562_v54  ;;  %v9013_v4 = vsel %vm740_vm2, %v3351_v30, %v3353_v1  ;;  %v9016_v51 = vsel %vm1019_vm3, %v3625_v44, %v3626_v8  ;;  %v3039_v54 = vld [vmem:[#allocation3 + $0x1d8] sm:$0xff] }
 0x3d8   : > { %2976 = vst.msk [vmem:[#allocation3 + $0x1e8] sm:$0xff] %vm298_vm4, %v2943_v17  ;;  %5885 = vmatmul.msk.f32.gmra.mxu1 %vm298_vm4, %v9001_v9  ;;  %v2890_v28 = vmul.f32 %v6230_v63, %v2889_v45  ;;  %v3628_v3 = vrot.slane %v3039_v54, 1 }
 0x3d9   : > { %v6232_v58 = vpop.eup %6231  ;;  %6233 = vrsqrt.f32 %v9008_v14  ;;  %5949 = vmatmul.msk.f32.gmra.mxu3 %vm298_vm4, %v9016_v51  ;;  %vm2911_vm15 = vweird.f32 %v9008_v14 }
 0x3da   : > { %v2894_v17 = vsel %vm2893_vm10, %v6230_v63, %v2890_v28  ;;  %v2896_v30 = vmul.f32 %v6232_v58, %v8985_v49  ;;  %v3210_v45 = vpop.f32.mrf.mxu1  ;;  %v3355_v63 = vrot.slane %v3040_v48, 7  ;;  %vm2902_vm11 = vweird.f32 %v6232_v58 }
 0x3db   : > { %5917 = vmatmul.msk.f32.gmra.mxu2 %vm298_vm4, %v9013_v4  ;;  %5981 = vmatmul.msk.f32.gmra.mxu0 %vm298_vm4, %v9013_v4  ;;  %v2944_v1 = vmul.f32 %v2894_v17, %v8537_v0  ;;  %v3480_v40 = vpop.f32.mrf.mxu2  ;;  %v3752_v20 = vpop.f32.mrf.mxu3  ;;  %vm2903_vm13 = vmor %vm2901_vm12, %vm2902_vm11 }
 0x3dc   : > { %v2897_v44 = vmul.f32 %v6232_v58, %v2896_v30  ;;  %v3481_v26 = vadd.f32 %v3480_v40, %v3207_v25  ;;  %v9030_v22 = vadd.f32 %v3752_v20, %v3478_v50  ;;  %v9040_v25 = vsel %vm1019_vm3, %v3626_v8, %v3628_v3  ;;  %v9048_v48 = vpop.f32.mrf.mxu0 }
 0x3dd   : > { %2977 = vst.msk [vmem:[#allocation3 + $0x1f0] sm:$0xff] %vm298_vm4, %v2944_v1 }
 0x3de   : > { %10503 = vst [vmem:[#allocation24_spill] sm:$0xff] %v9030_v22  ;;  %v2898_v28 = vmul.f32 0.5, %v2897_v44 }
 0x3df   : > { %v9033_v5 = vld [vmem:[#allocation3 + $0x1e8] sm:$0xff]  ;;  %v6234_v24 = vpop.eup %6233  ;;  %10504 = vst [vmem:[#allocation27_spill] sm:$0xff] %v9048_v48 }
 0x3e0   : > { %5886 = vmatmul.msk.f32.gmra.mxu1 %vm298_vm4, %v9033_v5  ;;  %v3356_v12 = vrot.slane %v9033_v5, 7  ;;  %v2899_v0 = vsub.f32 1.5, %v2898_v28  ;;  %v2906_v17 = vmul.f32 %v6234_v24, %v9008_v14  ;;  %vm2912_vm14 = vweird.f32 %v6234_v24 }
 0x3e1   : > { %5950 = vmatmul.msk.f32.gmra.mxu3 %vm298_vm4, %v9040_v25  ;;  %vm2913_vm0 = vmor %vm2911_vm15, %vm2912_vm14 }
 0x3e2   : > { %v9043_v50 = vsel %vm740_vm2, %v3355_v63, %v3356_v12  ;;  %v2900_v54 = vmul.f32 %v6232_v58, %v2899_v0  ;;  %v2907_v30 = vmul.f32 %v6234_v24, %v2906_v17  ;;  %v3213_v8 = vpop.f32.mrf.mxu1  ;;  %v3630_v17 = vrot.slane %v9033_v5, 1 }
 0x3e3   : > { %5918 = vmatmul.msk.f32.gmra.mxu2 %vm298_vm4, %v9043_v50  ;;  %5982 = vmatmul.msk.f32.gmra.mxu0 %vm298_vm4, %v9043_v50  ;;  %v3483_v1 = vpop.f32.mrf.mxu2  ;;  %v3755_v40 = vpop.f32.mrf.mxu3 }
 0x3e4   : > { %v2904_v20 = vsel %vm2903_vm13, %v6232_v58, %v2900_v54  ;;  %v2908_v44 = vmul.f32 0.5, %v2907_v30  ;;  %v3484_v3 = vadd.f32 %v3483_v1, %v3210_v45  ;;  %v9054_v63 = vadd.f32 %v3755_v40, %v3481_v26  ;;  %v9056_v28 = vld [vmem:[#allocation3 + $0x1f0] sm:$0xff]  ;;  %v3043_v26 = vld [vmem:[#allocation3 + $0x1f8] sm:$0xff]  ;;  %v3044_v30 = vld [vmem:[#allocation3 + $0x200] sm:$0xff] }
 0x3e5   : > { %v2945_v49 = vmul.f32 %v2904_v20, %v8568_v18  ;;  %v3358_v0 = vrot.slane %v9056_v28, 7  ;;  %v3631_v22 = vrot.slane %v9056_v28, 1  ;;  %v9079_v20 = vpop.f32.mrf.mxu0 }
 0x3e6   : > { %v2909_v48 = vsub.f32 1.5, %v2908_v44 }
 0x3e7   : > { %2978 = vst.msk [vmem:[#allocation3 + $0x208] sm:$0xff] %vm298_vm4, %v2945_v49  ;;  %v9066_v58 = vsel %vm740_vm2, %v3356_v12, %v3358_v0  ;;  %v9069_v45 = vsel %vm1019_vm3, %v3630_v17, %v3631_v22  ;;  %v3633_v49 = vrot.slane %v3043_v26, 1  ;;  %v6328_v17 = vld [vmem:[#allocation3 + $0x28] sm:$0xff] }
 0x3e8   : > { %5887 = vmatmul.msk.f32.gmra.mxu1 %vm298_vm4, %v9056_v28  ;;  %v2910_v18 = vmul.f32 %v6234_v24, %v2909_v48 }
 0x3e9   : > { %5951 = vmatmul.msk.f32.gmra.mxu3 %vm298_vm4, %v9069_v45 }
 0x3ea   : > { %v2914_v54 = vsel %vm2913_vm0, %v6234_v24, %v2910_v18  ;;  %v3216_v12 = vpop.f32.mrf.mxu1  ;;  %v3849_v24 = vrot.slane %v3044_v30, 7 }
 0x3eb   : > { %5919 = vmatmul.msk.f32.gmra.mxu2 %vm298_vm4, %v9066_v58  ;;  %5983 = vmatmul.msk.f32.gmra.mxu0 %vm298_vm4, %v9066_v58  ;;  %v2946_v1 = vmul.f32 %v2914_v54, %v8596_v60  ;;  %v3486_v40 = vpop.f32.mrf.mxu2  ;;  %v3758_v48 = vpop.f32.mrf.mxu3  ;;  %v9089_v60 = vsel %vm1019_vm3, %v3631_v22, %v3633_v49  ;;  %v6329_v49 = vld [vmem:[#allocation3 + $0x30] sm:$0xff] }
 0x3ec   : > { %v3487_v14 = vadd.f32 %v3486_v40, %v3213_v8  ;;  %v9081_v44 = vadd.f32 %v3758_v48, %v3484_v3 }
 0x3ed   : > { %2979 = vst.msk [vmem:[#allocation3 + $0x210] sm:$0xff] %vm298_vm4, %v2946_v1  ;;  %v9105_v48 = vpop.f32.mrf.mxu0 }
 0x3ee   : > { %10505 = vst [vmem:[#allocation23_spill] sm:$0xff] %v9081_v44  ;;  %v9084_v0 = vld [vmem:[#allocation3 + $0x208] sm:$0xff] }
 0x3ef   : > { %v3850_v18 = vrot.slane %v9084_v0, 7  ;;  %v10578_v44 = vld [vmem:[#allocation5_spill] sm:$0xff] }
 0x3f0   : > { %5987 = vmatmul.msk.f32.vlgmr.msrb.gmra.mxu1 %vm298_vm4, %v6328_v17 }
 0x3f1   : > { %5952 = vmatmul.msk.f32.gmra.mxu3 %vm298_vm4, %v9089_v60  ;;  %v9094_v8 = vsel %vm740_vm2, %v3849_v24, %v3850_v18 }
 0x3f2   : > { %v3219_v3 = vpop.f32.mrf.mxu1 }
 0x3f3   : > { %5984 = vmatmul.msk.f32.gmra.mxu0 %vm298_vm4, %v9094_v8  ;;  %6020 = vmatmul.msk.f32.vlgmr.msra.gmra.mxu2 %vm298_vm4, %v8192_v39  ;;  %v3489_v26 = vpop.f32.mrf.mxu2  ;;  %v3761_v54 = vpop.f32.mrf.mxu3 }
 0x3f4   : > { %v3490_v30 = vadd.f32 %v3489_v26, %v3216_v12  ;;  %v9100_v1 = vadd.f32 %v3761_v54, %v3487_v14  ;;  %v9102_v22 = vld [vmem:[#allocation3 + $0x210] sm:$0xff]  ;;  %v6330_v54 = vld [vmem:[#allocation3 + $0x48] sm:$0xff] }
 0x3f5   : > { %v3852_v40 = vrot.slane %v9102_v22, 7 }
 0x3f6   : > { %10506 = vst [vmem:[#allocation26_spill] sm:$0xff] %v9100_v1 }
 0x3f7   : > { %v9109_v24 = vsel %vm740_vm2, %v3850_v18, %v3852_v40  ;;  %v9120_v18 = vpop.f32.mrf.mxu0 }
 0x3f8   : > { %5988 = vmatmul.msk.f32.gmra.mxu1 %vm298_vm4, %v6329_v49  ;;  %10508 = vst [vmem:[#allocation32_spill] sm:$0xff] %v9120_v18 }
 0x3f9   : > { %6053 = vmatmul.msk.f32.vlgmr.msra.gmra.mxu3 %vm298_vm4, %v8237_v7 }
 0x3fa   : > { %v3222_v39 = vpop.f32.mrf.mxu1 }
 0x3fb   : > { %5985 = vmatmul.msk.f32.gmra.mxu0 %vm298_vm4, %v9109_v24  ;;  %6021 = vmatmul.msk.f32.gmra.mxu2 %vm298_vm4, %v8240_v42  ;;  %v3492_v12 = vpop.f32.mrf.mxu2  ;;  %v3764_v14 = vpop.f32.mrf.mxu3 }
 0x3fc   : > { %v3493_v17 = vadd.f32 %v3492_v12, %v3219_v3  ;;  %v9117_v26 = vadd.f32 %v3764_v14, %v3490_v30  ;;  %v6331_v30 = vld [vmem:[#allocation3 + $0x50] sm:$0xff] }
 0x3fe   : > { %10507 = vst [vmem:[#allocation29_spill] sm:$0xff] %v9117_v26 }
 0x3ff   : > { %v9132_v12 = vpop.f32.mrf.mxu0 }
 0x400   : > { %5989 = vmatmul.msk.f32.gmra.mxu1 %vm298_vm4, %v6330_v54  ;;  %10510 = vst [vmem:[#allocation60_spill] sm:$0xff] %v9132_v12  ;;  %v10551_v12 = vld [vmem:[#allocation43_spill] sm:$0xff] }
 0x401   : > { %6054 = vmatmul.msk.f32.gmra.mxu3 %vm298_vm4, %v8277_v35 }
 0x402   : > { %v3225_v7 = vpop.f32.mrf.mxu1 }
 0x403   : > { %6022 = vmatmul.msk.f32.gmra.mxu2 %vm298_vm4, %v8280_v61  ;;  %6086 = vmatmul.msk.f32.vlgmr.msra.gmra.mxu0 %vm298_vm4, %v6330_v54  ;;  %v3495_v42 = vpop.f32.mrf.mxu2  ;;  %v3767_v40 = vpop.f32.mrf.mxu3 }
 0x404   : > { %v3496_v49 = vadd.f32 %v3495_v42, %v3222_v39  ;;  %v9127_v3 = vadd.f32 %v3767_v40, %v3493_v17  ;;  %v6332_v17 = vld [vmem:[#allocation3 + $0x68] sm:$0xff] }
 0x406   : > { %10509 = vst [vmem:[#allocation7_spill] sm:$0xff] %v9127_v3 }
 0x407   : > { %v9145_v40 = vpop.f32.mrf.mxu0 }
 0x408   : > { %5990 = vmatmul.msk.f32.gmra.mxu1 %vm298_vm4, %v6331_v30  ;;  %10512 = vst [vmem:[#allocation62_spill] sm:$0xff] %v9145_v40 }
 0x409   : > { %6055 = vmatmul.msk.f32.gmra.mxu3 %vm298_vm4, %v8322_v41 }
 0x40a   : > { %v3228_v35 = vpop.f32.mrf.mxu1 }
 0x40b   : > { %6023 = vmatmul.msk.f32.gmra.mxu2 %vm298_vm4, %v8325_v59  ;;  %6087 = vmatmul.msk.f32.gmra.mxu0 %vm298_vm4, %v6331_v30  ;;  %v3498_v14 = vpop.f32.mrf.mxu2  ;;  %v3770_v26 = vpop.f32.mrf.mxu3 }
 0x40c   : > { %v3499_v54 = vadd.f32 %v3498_v14, %v3225_v7  ;;  %v9137_v39 = vadd.f32 %v3770_v26, %v3496_v49  ;;  %v6333_v26 = vld [vmem:[#allocation3 + $0x70] sm:$0xff] }
 0x40e   : > { %10511 = vst [vmem:[#allocation61_spill] sm:$0xff] %v9137_v39 }
 0x40f   : > { %v9155_v3 = vpop.f32.mrf.mxu0 }
 0x410   : > { %5991 = vmatmul.msk.f32.gmra.mxu1 %vm298_vm4, %v6332_v17  ;;  %10514 = vst [vmem:[#allocation64_spill] sm:$0xff] %v9155_v3 }
 0x411   : > { %6056 = vmatmul.msk.f32.gmra.mxu3 %vm298_vm4, %v8360_v32 }
 0x412   : > { %v3231_v41 = vpop.f32.mrf.mxu1 }
 0x413   : > { %6024 = vmatmul.msk.f32.gmra.mxu2 %vm298_vm4, %v8363_v52  ;;  %6088 = vmatmul.msk.f32.gmra.mxu0 %vm298_vm4, %v6332_v17  ;;  %v3501_v42 = vpop.f32.mrf.mxu2  ;;  %v3773_v7 = vpop.f32.mrf.mxu3 }
 0x414   : > { %v3502_v30 = vadd.f32 %v3501_v42, %v3228_v35  ;;  %v9147_v14 = vadd.f32 %v3773_v7, %v3499_v54  ;;  %v6334_v54 = vld [vmem:[#allocation3 + $0x88] sm:$0xff] }
 0x416   : > { %10513 = vst [vmem:[#allocation63_spill] sm:$0xff] %v9147_v14 }
 0x418   : > { %5992 = vmatmul.msk.f32.gmra.mxu1 %vm298_vm4, %v6333_v26 }
 0x419   : > { %6057 = vmatmul.msk.f32.gmra.mxu3 %vm298_vm4, %v8400_v23 }
 0x41b   : > { %6025 = vmatmul.msk.f32.gmra.mxu2 %vm298_vm4, %v8403_v29  ;;  %6089 = vmatmul.msk.f32.gmra.mxu0 %vm298_vm4, %v6333_v26  ;;  %v3504_v49 = vpop.f32.mrf.mxu2  ;;  %v3776_v39 = vpop.f32.mrf.mxu3 }
 0x41c   : > { %v3505_v17 = vadd.f32 %v3504_v49, %v3231_v41  ;;  %v9157_v35 = vadd.f32 %v3776_v39, %v3502_v30  ;;  %v6335_v49 = vld [vmem:[#allocation3 + $0x90] sm:$0xff]  ;;  %v9168_v39 = vpop.f32.mrf.mxu0 }
 0x41d   : > { %v3234_v32 = vpop.f32.mrf.mxu1  ;;  %10517 = vst [vmem:[#allocation67_spill] sm:$0xff] %v9168_v39 }
 0x41e   : > { %10515 = vst [vmem:[#allocation65_spill] sm:$0xff] %v9157_v35 }
 0x420   : > { %5993 = vmatmul.msk.f32.gmra.mxu1 %vm298_vm4, %v6334_v54 }
 0x421   : > { %6058 = vmatmul.msk.f32.gmra.mxu3 %vm298_vm4, %v8434_v13 }
 0x423   : > { %6026 = vmatmul.msk.f32.gmra.mxu2 %vm298_vm4, %v8437_v34  ;;  %6090 = vmatmul.msk.f32.gmra.mxu0 %vm298_vm4, %v6334_v54  ;;  %v3779_v7 = vpop.f32.mrf.mxu3 }
 0x424   : > { %v9165_v26 = vadd.f32 %v3779_v7, %v3505_v17  ;;  %v6336_v17 = vld [vmem:[#allocation3 + $0xa8] sm:$0xff] }
 0x425   : > { %v3237_v23 = vpop.f32.mrf.mxu1 }
 0x426   : > { %v3507_v42 = vpop.f32.mrf.mxu2  ;;  %10516 = vst [vmem:[#allocation66_spill] sm:$0xff] %v9165_v26 }
 0x427   : > { %v3508_v41 = vadd.f32 %v3507_v42, %v3234_v32  ;;  %v9180_v42 = vpop.f32.mrf.mxu0 }
 0x428   : > { %5994 = vmatmul.msk.f32.gmra.mxu1 %vm298_vm4, %v6335_v49  ;;  %10519 = vst [vmem:[#allocation69_spill] sm:$0xff] %v9180_v42  ;;  %v10544_v42 = vld [vmem:[#allocation41_spill] sm:$0xff] }
 0x429   : > { %6059 = vmatmul.msk.f32.gmra.mxu3 %vm298_vm4, %v8473_v46  ;;  %v10520_v46 = vld [vmem:[#allocation31_spill] sm:$0xff] }
 0x42b   : > { %6027 = vmatmul.msk.f32.gmra.mxu2 %vm298_vm4, %v8476_v15  ;;  %6091 = vmatmul.msk.f32.gmra.mxu0 %vm298_vm4, %v6335_v49  ;;  %v3782_v54 = vpop.f32.mrf.mxu3 }
 0x42c   : > { %v9175_v32 = vadd.f32 %v3782_v54, %v3508_v41  ;;  %v6337_v41 = vld [vmem:[#allocation3 + $0xb0] sm:$0xff] }
 0x42d   : > { %v3240_v13 = vpop.f32.mrf.mxu1 }
 0x42e   : > { %v3510_v30 = vpop.f32.mrf.mxu2  ;;  %10518 = vst [vmem:[#allocation68_spill] sm:$0xff] %v9175_v32 }
 0x42f   : > { %v3511_v35 = vadd.f32 %v3510_v30, %v3237_v23 }
 0x430   : > { %5995 = vmatmul.msk.f32.gmra.mxu1 %vm298_vm4, %v6336_v17 }
 0x431   : > { %6060 = vmatmul.msk.f32.gmra.mxu3 %vm298_vm4, %v8509_v43  ;;  %v9193_v43 = vpop.f32.mrf.mxu0 }
 0x432   : > { %10522 = vst [vmem:[#allocation70_spill] sm:$0xff] %v9193_v43 }
 0x433   : > { %6028 = vmatmul.msk.f32.gmra.mxu2 %vm298_vm4, %v10520_v46  ;;  %6092 = vmatmul.msk.f32.gmra.mxu0 %vm298_vm4, %v6336_v17  ;;  %v3785_v26 = vpop.f32.mrf.mxu3 }
 0x434   : > { %v9185_v23 = vadd.f32 %v3785_v26, %v3511_v35  ;;  %v6338_v35 = vld [vmem:[#allocation3 + $0xc8] sm:$0xff] }
 0x435   : > { %v3243_v7 = vpop.f32.mrf.mxu1 }
 0x436   : > { %v3513_v49 = vpop.f32.mrf.mxu2  ;;  %10521 = vst [vmem:[#allocation31_spill] sm:$0xff] %v9185_v23 }
 0x437   : > { %v3514_v14 = vadd.f32 %v3513_v49, %v3240_v13 }
 0x438   : > { %5996 = vmatmul.msk.f32.gmra.mxu1 %vm298_vm4, %v6337_v41 }
 0x439   : > { %6061 = vmatmul.msk.f32.gmra.mxu3 %vm298_vm4, %v8546_v56 }
 0x43b   : > { %6029 = vmatmul.msk.f32.gmra.mxu2 %vm298_vm4, %v8549_v27  ;;  %6093 = vmatmul.msk.f32.gmra.mxu0 %vm298_vm4, %v6337_v41  ;;  %v3788_v17 = vpop.f32.mrf.mxu3  ;;  %v9203_v41 = vpop.f32.mrf.mxu0 }
 0x43c   : > { %v9195_v13 = vadd.f32 %v3788_v17, %v3514_v14  ;;  %10524 = vst [vmem:[#allocation72_spill] sm:$0xff] %v9203_v41  ;;  %v6339_v14 = vld [vmem:[#allocation3 + $0xd0] sm:$0xff] }
 0x43d   : > { %v3246_v30 = vpop.f32.mrf.mxu1 }
 0x43e   : > { %v3516_v54 = vpop.f32.mrf.mxu2  ;;  %10523 = vst [vmem:[#allocation71_spill] sm:$0xff] %v9195_v13 }
 0x43f   : > { %v3517_v32 = vadd.f32 %v3516_v54, %v3243_v7 }
 0x440   : > { %5997 = vmatmul.msk.f32.gmra.mxu1 %vm298_vm4, %v6338_v35 }
 0x441   : > { %6062 = vmatmul.msk.f32.gmra.mxu3 %vm298_vm4, %v8573_v33 }
 0x443   : > { %6030 = vmatmul.msk.f32.gmra.mxu2 %vm298_vm4, %v8576_v57  ;;  %6094 = vmatmul.msk.f32.gmra.mxu0 %vm298_vm4, %v6338_v35  ;;  %v3791_v49 = vpop.f32.mrf.mxu3 }
 0x444   : > { %v9205_v7 = vadd.f32 %v3791_v49, %v3517_v32  ;;  %v9216_v32 = vpop.f32.mrf.mxu0 }
 0x445   : > { %v3249_v56 = vpop.f32.mrf.mxu1  ;;  %10527 = vst [vmem:[#allocation75_spill] sm:$0xff] %v9216_v32 }
 0x446   : > { %v3519_v26 = vpop.f32.mrf.mxu2  ;;  %10525 = vst [vmem:[#allocation73_spill] sm:$0xff] %v9205_v7 }
 0x447   : > { %v3520_v23 = vadd.f32 %v3519_v26, %v3246_v30  ;;  %v6340_v30 = vld [vmem:[#allocation3 + $0xe8] sm:$0xff] }
 0x448   : > { %5998 = vmatmul.msk.f32.gmra.mxu1 %vm298_vm4, %v6339_v14 }
 0x449   : > { %6063 = vmatmul.msk.f32.gmra.mxu3 %vm298_vm4, %v8603_v55 }
 0x44b   : > { %6031 = vmatmul.msk.f32.gmra.mxu2 %vm298_vm4, %v8606_v11  ;;  %6095 = vmatmul.msk.f32.gmra.mxu0 %vm298_vm4, %v6339_v14 }
 0x44c   : > { %v3794_v17 = vpop.f32.mrf.mxu3 }
 0x44d   : > { %v3252_v33 = vpop.f32.mrf.mxu1  ;;  %v9213_v13 = vadd.f32 %v3794_v17, %v3520_v23  ;;  %v6341_v23 = vld [vmem:[#allocation3 + $0xf0] sm:$0xff]  ;;  %v9228_v17 = vpop.f32.mrf.mxu0 }
 0x44e   : > { %v3522_v54 = vpop.f32.mrf.mxu2 }
 0x44f   : > { %v3523_v35 = vadd.f32 %v3522_v54, %v3249_v56  ;;  %10526 = vst [vmem:[#allocation74_spill] sm:$0xff] %v9213_v13  ;;  %v10529_v54 = vld [vmem:[#allocation8_spill] sm:$0xff] }
 0x450   : > { %5999 = vmatmul.msk.f32.gmra.mxu1 %vm298_vm4, %v6340_v30  ;;  %10530 = vst [vmem:[#allocation8_spill] sm:$0xff] %v9228_v17 }
 0x451   : > { %6064 = vmatmul.msk.f32.gmra.mxu3 %vm298_vm4, %v8627_v53  ;;  %v10531_v53 = vld [vmem:[#allocation36_spill] sm:$0xff] }
 0x453   : > { %6032 = vmatmul.msk.f32.gmra.mxu2 %vm298_vm4, %v8630_v36  ;;  %6096 = vmatmul.msk.f32.gmra.mxu0 %vm298_vm4, %v6340_v30 }
 0x454   : > { %v3797_v49 = vpop.f32.mrf.mxu3 }
 0x455   : > { %v3255_v55 = vpop.f32.mrf.mxu1  ;;  %v9223_v56 = vadd.f32 %v3797_v49, %v3523_v35  ;;  %v6342_v35 = vld [vmem:[#allocation3 + $0x108] sm:$0xff]  ;;  %v10534_v49 = vld [vmem:[#allocation35_spill] sm:$0xff] }
 0x456   : > { %v3525_v26 = vpop.f32.mrf.mxu2 }
 0x457   : > { %v3526_v14 = vadd.f32 %v3525_v26, %v3252_v33  ;;  %10528 = vst [vmem:[#allocation76_spill] sm:$0xff] %v9223_v56  ;;  %v10533_v26 = vld [vmem:[#allocation38_spill] sm:$0xff] }
 0x458   : > { %6000 = vmatmul.msk.f32.gmra.mxu1 %vm298_vm4, %v6341_v23 }
 0x459   : > { %6065 = vmatmul.msk.f32.gmra.mxu3 %vm298_vm4, %v10529_v54  ;;  %v9241_v54 = vpop.f32.mrf.mxu0 }
 0x45a   : > { %10535 = vst [vmem:[#allocation38_spill] sm:$0xff] %v9241_v54 }
 0x45b   : > { %6033 = vmatmul.msk.f32.gmra.mxu2 %vm298_vm4, %v10531_v53  ;;  %6097 = vmatmul.msk.f32.gmra.mxu0 %vm298_vm4, %v6341_v23 }
 0x45c   : > { %v3800_v7 = vpop.f32.mrf.mxu3 }
 0x45d   : > { %v3258_v30 = vpop.f32.mrf.mxu1  ;;  %v9233_v33 = vadd.f32 %v3800_v7, %v3526_v14  ;;  %v6343_v7 = vld [vmem:[#allocation3 + $0x110] sm:$0xff] }
 0x45e   : > { %v3528_v13 = vpop.f32.mrf.mxu2  ;;  %v10538_v14 = vld [vmem:[#allocation42_spill] sm:$0xff] }
 0x45f   : > { %v3529_v32 = vadd.f32 %v3528_v13, %v3255_v55  ;;  %10532 = vst [vmem:[#allocation36_spill] sm:$0xff] %v9233_v33  ;;  %v10537_v55 = vld [vmem:[#allocation11_spill] sm:$0xff] }
 0x460   : > { %6001 = vmatmul.msk.f32.gmra.mxu1 %vm298_vm4, %v6342_v35 }
 0x461   : > { %6066 = vmatmul.msk.f32.gmra.mxu3 %vm298_vm4, %v10533_v26  ;;  %v9251_v54 = vpop.f32.mrf.mxu0 }
 0x462   : > { %10539 = vst [vmem:[#allocation11_spill] sm:$0xff] %v9251_v54 }
 0x463   : > { %6034 = vmatmul.msk.f32.gmra.mxu2 %vm298_vm4, %v10534_v49  ;;  %6098 = vmatmul.msk.f32.gmra.mxu0 %vm298_vm4, %v6342_v35 }
 0x464   : > { %v3803_v17 = vpop.f32.mrf.mxu3 }
 0x465   : > { %v3261_v23 = vpop.f32.mrf.mxu1  ;;  %v9243_v13 = vadd.f32 %v3803_v17, %v3529_v32  ;;  %v6344_v32 = vld [vmem:[#allocation3 + $0x128] sm:$0xff]  ;;  %v10541_v17 = vld [vmem:[#allocation44_spill] sm:$0xff] }
 0x466   : > { %v3531_v56 = vpop.f32.mrf.mxu2 }
 0x467   : > { %v3532_v41 = vadd.f32 %v3531_v56, %v3258_v30  ;;  %10536 = vst [vmem:[#allocation35_spill] sm:$0xff] %v9243_v13  ;;  %v10542_v30 = vld [vmem:[#allocation34_spill] sm:$0xff] }
 0x468   : > { %6002 = vmatmul.msk.f32.gmra.mxu1 %vm298_vm4, %v6343_v7 }
 0x469   : > { %6067 = vmatmul.msk.f32.gmra.mxu3 %vm298_vm4, %v10537_v55  ;;  %v10543_v55 = vld [vmem:[#allocation9_spill] sm:$0xff]  ;;  %v9268_v3 = vpop.f32.mrf.mxu0 }
 0x46a   : > { %v3442_v13 = vadd.f32 %v10543_v55, %v10542_v30  ;;  %10548 = vst [vmem:[#allocation34_spill] sm:$0xff] %v9268_v3  ;;  %v10549_v30 = vld [vmem:[#allocation33_spill] sm:$0xff]  ;;  %v10550_v55 = vld [vmem:[#allocation40_spill] sm:$0xff] }
 0x46b   : > { %6035 = vmatmul.msk.f32.gmra.mxu2 %vm298_vm4, %v10538_v14  ;;  %6099 = vmatmul.msk.f32.gmra.mxu0 %vm298_vm4, %v6343_v7  ;;  %v6346_v3 = vld [vmem:[#allocation3 + $0x148] sm:$0xff] }
 0x46c   : > { %v3806_v33 = vpop.f32.mrf.mxu3 }
 0x46d   : > { %v4026_v35 = vpop.f32.mrf.mxu1  ;;  %v9253_v56 = vadd.f32 %v3806_v33, %v3532_v41 }
 0x46e   : > { %v3534_v26 = vpop.f32.mrf.mxu2 }
 0x46f   : > { %v3535_v43 = vadd.f32 %v3534_v26, %v3261_v23  ;;  %10540 = vst [vmem:[#allocation42_spill] sm:$0xff] %v9253_v56  ;;  %v10545_v23 = vld [vmem:[#allocation10_spill] sm:$0xff]  ;;  %v10547_v56 = vld [vmem:[#allocation37_spill] sm:$0xff] }
 0x470   : > { %6003 = vmatmul.msk.f32.gmra.mxu1 %vm298_vm4, %v6344_v32  ;;  %v3812_v41 = vadd.f32 %v10545_v23, %v3442_v13  ;;  %v6345_v26 = vld [vmem:[#allocation3 + $0x130] sm:$0xff] }
 0x471   : > { %6068 = vmatmul.msk.f32.gmra.mxu3 %vm298_vm4, %v10541_v17 }
 0x472   : > { %v3971_v17 = vadd.f32 %v10547_v56, %v3812_v41 }
 0x473   : > { %6036 = vmatmul.msk.f32.gmra.mxu2 %vm298_vm4, %v10544_v42  ;;  %6100 = vmatmul.msk.f32.gmra.mxu0 %vm298_vm4, %v6344_v32  ;;  %v3445_v32 = vadd.f32 %v10550_v55, %v10549_v30 }
 0x474   : > { %v3809_v39 = vpop.f32.mrf.mxu3  ;;  %v4122_v40 = vadd.f32 %v4026_v35, %v3971_v17  ;;  %v10554_v35 = vld [vmem:[#allocation14_spill] sm:$0xff] }
 0x475   : > { %v4029_v7 = vpop.f32.mrf.mxu1  ;;  %v9264_v33 = vadd.f32 %v3809_v39, %v3535_v43  ;;  %v10555_v17 = vld [vmem:[#allocation46_spill] sm:$0xff] }
 0x476   : > { %v4183_v54 = vpop.f32.mrf.mxu2  ;;  %v3973_v30 = vadd.f32 %v10555_v17, %v10554_v35  ;;  %v10560_v17 = vld [vmem:[#allocation50_spill] sm:$0xff] }
 0x477   : > { %10546 = vst [vmem:[#allocation44_spill] sm:$0xff] %v9264_v33  ;;  %v4279_v39 = vadd.f32 %v4183_v54, %v4122_v40  ;;  %v10552_v33 = vld [vmem:[#allocation39_spill] sm:$0xff] }
 0x478   : > { %6004 = vmatmul.msk.f32.gmra.mxu1 %vm298_vm4, %v6345_v26  ;;  %v3813_v56 = vadd.f32 %v10552_v33, %v3445_v32 }
 0x479   : > { %6069 = vmatmul.msk.f32.gmra.mxu3 %vm298_vm4, %v8748_v38  ;;  %v10553_v38 = vld [vmem:[#allocation12_spill] sm:$0xff] }
 0x47a   : > { %v3972_v1 = vadd.f32 %v10553_v38, %v3813_v56  ;;  %v10557_v38 = vld [vmem:[#allocation47_spill] sm:$0xff] }
 0x47b   : > { %6037 = vmatmul.msk.f32.gmra.mxu2 %vm298_vm4, %v10551_v12  ;;  %6101 = vmatmul.msk.f32.gmra.mxu0 %vm298_vm4, %v6345_v26  ;;  %v9286_v26 = vpop.f32.mrf.mxu0 }
 0x47c   : > { %v4342_v23 = vpop.f32.mrf.mxu3  ;;  %10556 = vst [vmem:[#allocation9_spill] sm:$0xff] %v9286_v26  ;;  %v4123_v40 = vadd.f32 %v4029_v7, %v3972_v1  ;;  %v10558_v1 = vld [vmem:[#allocation16_spill] sm:$0xff] }
 0x47d   : > { %v4032_v43 = vpop.f32.mrf.mxu1  ;;  %v9278_v41 = vadd.f32 %v4342_v23, %v4279_v39  ;;  %v10559_v7 = vld [vmem:[#allocation48_spill] sm:$0xff] }
 0x47e   : > { %v4186_v13 = vpop.f32.mrf.mxu2  ;;  %v4124_v54 = vadd.f32 %v4032_v43, %v3973_v30  ;;  %v3974_v35 = vadd.f32 %v10559_v7, %v10558_v1  ;;  %v10572_v26 = vld [vmem:[#allocation4_spill] sm:$0xff] }
 0x47f   : > { %v4280_v33 = vadd.f32 %v4186_v13, %v4123_v40 }
 0x480   : > { %6005 = vmatmul.msk.f32.gmra.mxu1 %vm298_vm4, %v6346_v3 }
 0x481   : > { %6070 = vmatmul.msk.f32.gmra.mxu3 %vm298_vm4, %v8776_v19  ;;  %v6347_v19 = vld [vmem:[#allocation3 + $0x150] sm:$0xff] }
 0x483   : > { %6038 = vmatmul.msk.f32.gmra.mxu2 %vm298_vm4, %v8779_v2  ;;  %6102 = vmatmul.msk.f32.gmra.mxu0 %vm298_vm4, %v6346_v3  ;;  %v9301_v3 = vpop.f32.mrf.mxu0 }
 0x484   : > { %v4345_v39 = vpop.f32.mrf.mxu3  ;;  %10561 = vst [vmem:[#allocation41_spill] sm:$0xff] %v9301_v3  ;;  %v10567_v3 = vld [vmem:[#allocation54_spill] sm:$0xff] }
 0x485   : > { %v4035_v55 = vpop.f32.mrf.mxu1  ;;  %v9291_v56 = vadd.f32 %v4345_v39, %v4280_v33  ;;  %v10562_v39 = vld [vmem:[#allocation45_spill] sm:$0xff] }
 0x486   : > { %v4189_v32 = vpop.f32.mrf.mxu2  ;;  %v4125_v43 = vadd.f32 %v4035_v55, %v3974_v35 }
 0x487   : > { %v4281_v23 = vadd.f32 %v4189_v32, %v4124_v54  ;;  %v6348_v32 = vld [vmem:[#allocation3 + $0x168] sm:$0xff] }
 0x488   : > { %6006 = vmatmul.msk.f32.gmra.mxu1 %vm298_vm4, %v6347_v19 }
 0x489   : > { %6071 = vmatmul.msk.f32.gmra.mxu3 %vm298_vm4, %v10557_v38  ;;  %v10563_v38 = vld [vmem:[#allocation19_spill] sm:$0xff] }
 0x48a   : > { %v3975_v1 = vadd.f32 %v10563_v38, %v10562_v39  ;;  %v10566_v39 = vld [vmem:[#allocation52_spill] sm:$0xff] }
 0x48b   : > { %6039 = vmatmul.msk.f32.gmra.mxu2 %vm298_vm4, %v10560_v17  ;;  %6103 = vmatmul.msk.f32.gmra.mxu0 %vm298_vm4, %v6347_v19 }
 0x48c   : > { %v4348_v40 = vpop.f32.mrf.mxu3 }
 0x48d   : > { %v4038_v13 = vpop.f32.mrf.mxu1  ;;  %v9303_v33 = vadd.f32 %v4348_v40, %v4281_v23  ;;  %v9313_v23 = vpop.f32.mrf.mxu0  ;;  %v6349_v40 = vld [vmem:[#allocation3 + $0x170] sm:$0xff] }
 0x48e   : > { %v4192_v30 = vpop.f32.mrf.mxu2  ;;  %v4126_v55 = vadd.f32 %v4038_v13, %v3975_v1  ;;  %10564 = vst [vmem:[#allocation10_spill] sm:$0xff] %v9313_v23 }
 0x48f   : > { %v4282_v54 = vadd.f32 %v4192_v30, %v4125_v43 }
 0x490   : > { %6007 = vmatmul.msk.f32.gmra.mxu1 %vm298_vm4, %v6348_v32 }
 0x491   : > { %6072 = vmatmul.msk.f32.gmra.mxu3 %vm298_vm4, %v8825_v21  ;;  %v10565_v21 = vld [vmem:[#allocation22_spill] sm:$0xff] }
 0x492   : > { %v3976_v38 = vadd.f32 %v10566_v39, %v10565_v21  ;;  %v10570_v21 = vld [vmem:[#allocation49_spill] sm:$0xff] }
 0x493   : > { %6040 = vmatmul.msk.f32.gmra.mxu2 %vm298_vm4, %v8828_v62  ;;  %6104 = vmatmul.msk.f32.gmra.mxu0 %vm298_vm4, %v6348_v32  ;;  %v10571_v39 = vld [vmem:[#allocation25_spill] sm:$0xff] }
 0x494   : > { %v4351_v35 = vpop.f32.mrf.mxu3  ;;  %v3977_v23 = vadd.f32 %v10571_v39, %v10570_v21  ;;  %v10575_v21 = vld [vmem:[#allocation51_spill] sm:$0xff]  ;;  %v10576_v39 = vld [vmem:[#allocation57_spill] sm:$0xff] }
 0x495   : > { %v4041_v19 = vpop.f32.mrf.mxu1  ;;  %v9315_v30 = vadd.f32 %v4351_v35, %v4282_v54  ;;  %v9329_v35 = vpop.f32.mrf.mxu0 }
 0x496   : > { %v4195_v7 = vpop.f32.mrf.mxu2  ;;  %v4127_v13 = vadd.f32 %v4041_v19, %v3976_v38  ;;  %10568 = vst [vmem:[#allocation37_spill] sm:$0xff] %v9329_v35  ;;  %v3978_v35 = vadd.f32 %v10576_v39, %v10575_v21 }
 0x497   : > { %v4283_v43 = vadd.f32 %v4195_v7, %v4126_v55 }
 0x498   : > { %6008 = vmatmul.msk.f32.gmra.mxu1 %vm298_vm4, %v6349_v40 }
 0x499   : > { %6073 = vmatmul.msk.f32.gmra.mxu3 %vm298_vm4, %v8858_v31  ;;  %v10569_v31 = vld [vmem:[#allocation53_spill] sm:$0xff] }
 0x49b   : > { %6041 = vmatmul.msk.f32.gmra.mxu2 %vm298_vm4, %v10567_v3  ;;  %6105 = vmatmul.msk.f32.gmra.mxu0 %vm298_vm4, %v6349_v40 }
 0x49c   : > { %v4354_v55 = vpop.f32.mrf.mxu3 }
 0x49d   : > { %v4044_v32 = vpop.f32.mrf.mxu1  ;;  %v9325_v7 = vadd.f32 %v4354_v55, %v4283_v43  ;;  %v10573_v55 = vld [vmem:[#allocation28_spill] sm:$0xff]  ;;  %v9347_v18 = vpop.f32.mrf.mxu0 }
 0x49e   : > { %v4198_v1 = vpop.f32.mrf.mxu2  ;;  %v4128_v19 = vadd.f32 %v4044_v32, %v3977_v23  ;;  %10577 = vst [vmem:[#allocation33_spill] sm:$0xff] %v9347_v18 }
 0x49f   : > { %v4284_v54 = vadd.f32 %v4198_v1, %v4127_v13 }
 0x4a0   : > { %6009 = vmatmul.msk.f32.gmra.mxu1 %vm298_vm4, %v8843_v16 }
 0x4a1   : > { %6074 = vmatmul.msk.f32.gmra.mxu3 %vm298_vm4, %v10569_v31  ;;  %v10574_v31 = vld [vmem:[#allocation56_spill] sm:$0xff] }
 0x4a3   : > { %6042 = vmatmul.msk.f32.gmra.mxu2 %vm298_vm4, %v10572_v26  ;;  %6106 = vmatmul.msk.f32.gmra.mxu0 %vm298_vm4, %v8843_v16 }
 0x4a4   : > { %v4357_v38 = vpop.f32.mrf.mxu3 }
 0x4a5   : > { %v4047_v43 = vpop.f32.mrf.mxu1  ;;  %v9339_v1 = vadd.f32 %v4357_v38, %v4284_v54 }
 0x4a6   : > { %v4201_v40 = vpop.f32.mrf.mxu2  ;;  %v4129_v16 = vadd.f32 %v4047_v43, %v3978_v35  ;;  %v9365_v35 = vpop.f32.mrf.mxu0 }
 0x4a7   : > { %v4285_v13 = vadd.f32 %v4201_v40, %v4128_v19 }
 0x4a8   : > { %6010 = vmatmul.msk.f32.gmra.mxu1 %vm298_vm4, %v10573_v55 }
 0x4a9   : > { %6075 = vmatmul.msk.f32.gmra.mxu3 %vm298_vm4, %v10574_v31  ;;  %v10580_v31 = vld [vmem:[#allocation21_spill] sm:$0xff] }
 0x4ab   : > { %6043 = vmatmul.msk.f32.gmra.mxu2 %vm298_vm4, %v10578_v44  ;;  %6107 = vmatmul.msk.f32.gmra.mxu0 %vm298_vm4, %v10573_v55 }
 0x4ac   : > { %v4360_v54 = vpop.f32.mrf.mxu3 }
 0x4ad   : > { %v9353_v23 = vpop.f32.mrf.mxu1  ;;  %v9355_v40 = vadd.f32 %v4360_v54, %v4285_v13  ;;  %v10579_v13 = vld [vmem:[#allocation59_spill] sm:$0xff]  ;;  %v3048_v54 = vld [vmem:[#allocation3 + $0x220] sm:$0xff] }
 0x4ae   : > { %v4204_v32 = vpop.f32.mrf.mxu2  ;;  %v9381_v21 = vpop.f32.mrf.mxu0 }
 0x4af   : > { %v4286_v19 = vadd.f32 %v4204_v32, %v4129_v16  ;;  %v4157_v32 = vrot.slane %v9084_v0, 1 }
 0x4b0   : > { %6011 = vmatmul.msk.f32.gmra.mxu1 %vm298_vm4, %v8903_v10 }
 0x4b1   : > { %6076 = vmatmul.msk.f32.gmra.mxu3 %vm298_vm4, %v8943_v47  ;;  %v10581_v47 = vld [vmem:[#allocation18_spill] sm:$0xff] }
 0x4b3   : > { %6044 = vmatmul.msk.f32.gmra.mxu2 %vm298_vm4, %v8946_v6  ;;  %6108 = vmatmul.msk.f32.gmra.mxu0 %vm298_vm4, %v8903_v10 }
 0x4b4   : > { %v4363_v38 = vpop.f32.mrf.mxu3 }
 0x4b5   : > { %v9367_v43 = vpop.f32.mrf.mxu1  ;;  %v9369_v55 = vadd.f32 %v4363_v38, %v4286_v19  ;;  %v9433_v19 = vld [vmem:[#allocation3 + $0x228] sm:$0xff]  ;;  %v4316_v38 = vrot.slane %v3048_v54, 7 }
 0x4b6   : > { %v9395_v16 = vpop.f32.mrf.mxu0 }
 0x4b8   : > { %6012 = vmatmul.msk.f32.gmra.mxu1 %vm298_vm4, %v10579_v13 }
 0x4b9   : > { %6077 = vmatmul.msk.f32.gmra.mxu3 %vm298_vm4, %v10580_v31 }
 0x4bb   : > { %6045 = vmatmul.msk.f32.gmra.mxu2 %vm298_vm4, %v10581_v47  ;;  %6109 = vmatmul.msk.f32.gmra.mxu0 %vm298_vm4, %v10579_v13  ;;  %v4317_v13 = vrot.slane %v9433_v19, 7 }
 0x4bd   : > { %v9379_v10 = vpop.f32.mrf.mxu1 }
 0x4c0   : > { %6013 = vmatmul.msk.f32.gmra.mxu1 %vm298_vm4, %v8972_v37 }
 0x4c1   : > { %6078 = vmatmul.msk.f32.gmra.mxu3 %vm298_vm4, %v9013_v4 }
 0x4c3   : > { %6046 = vmatmul.msk.f32.gmra.mxu2 %vm298_vm4, %v9016_v51  ;;  %6110 = vmatmul.msk.f32.gmra.mxu0 %vm298_vm4, %v8972_v37  ;;  %v9409_v37 = vpop.f32.mrf.mxu0 }
 0x4c5   : > { %v9391_v39 = vpop.f32.mrf.mxu1 }
 0x4c8   : > { %6014 = vmatmul.msk.f32.gmra.mxu1 %vm298_vm4, %v9001_v9 }
 0x4c9   : > { %6079 = vmatmul.msk.f32.gmra.mxu3 %vm298_vm4, %v9043_v50 }
 0x4cb   : > { %6047 = vmatmul.msk.f32.gmra.mxu2 %vm298_vm4, %v9040_v25  ;;  %6111 = vmatmul.msk.f32.gmra.mxu0 %vm298_vm4, %v9001_v9  ;;  %v9425_v9 = vpop.f32.mrf.mxu0 }
 0x4cd   : > { %v9403_v4 = vpop.f32.mrf.mxu1 }
 0x4d0   : > { %6015 = vmatmul.msk.f32.gmra.mxu1 %vm298_vm4, %v9033_v5 }
 0x4d1   : > { %6080 = vmatmul.msk.f32.gmra.mxu3 %vm298_vm4, %v9066_v58 }
 0x4d3   : > { %6048 = vmatmul.msk.f32.gmra.mxu2 %vm298_vm4, %v9069_v45  ;;  %6112 = vmatmul.msk.f32.gmra.mxu0 %vm298_vm4, %v9033_v5  ;;  %v4158_v5 = vrot.slane %v9102_v22, 1 }
 0x4d5   : > { %v9415_v50 = vpop.f32.mrf.mxu1 }
 0x4d8   : > { %6016 = vmatmul.msk.f32.gmra.mxu1 %vm298_vm4, %v9056_v28 }
 0x4d9   : > { %6081 = vmatmul.msk.f32.gmra.mxu3 %vm298_vm4, %v9094_v8  ;;  %v9436_v8 = vsel %vm1019_vm3, %v4157_v32, %v4158_v5  ;;  %v4318_v32 = vsel %vm740_vm2, %v4316_v38, %v4317_v13 }
 0x4da   : > { %10583 = vst [vmem:[#allocation43_spill] sm:$0xff] %v9436_v8 }
 0x4db   : > { %6049 = vmatmul.msk.f32.gmra.mxu2 %vm298_vm4, %v9089_v60  ;;  %6113 = vmatmul.msk.f32.gmra.mxu0 %vm298_vm4, %v9056_v28  ;;  %v3047_v28 = vld [vmem:[#allocation3 + $0x218] sm:$0xff] }
 0x4dc   : > { %v4160_v18 = vrot.slane %v3047_v28, 1 }
 0x4dd   : > { %v9427_v58 = vpop.f32.mrf.mxu1 }
 0x4de   : > { %10582 = vst [vmem:[#allocation40_spill] sm:$0xff] %v9427_v58  ;;  %v9447_v58 = vpop.f32.mrf.mxu0 }
 0x4e0   : > { %6017 = vmatmul.msk.f32.gmra.mxu1 %vm298_vm4, %v9084_v0 }
 0x4e1   : > { %6082 = vmatmul.msk.f32.gmra.mxu3 %vm298_vm4, %v9109_v24  ;;  %v9452_v24 = vld [vmem:[#allocation3 + $0x230] sm:$0xff] }
 0x4e3   : > { %6050 = vmatmul.msk.f32.gmra.mxu2 %vm298_vm4, %v9436_v8  ;;  %6114 = vmatmul.msk.f32.gmra.mxu0 %vm298_vm4, %v9084_v0  ;;  %v9455_v8 = vsel %vm1019_vm3, %v4158_v5, %v4160_v18  ;;  %v4319_v0 = vrot.slane %v9452_v24, 7 }
 0x4e5   : > { %v9445_v31 = vpop.f32.mrf.mxu1  ;;  %v4320_v28 = vsel %vm740_vm2, %v4317_v13, %v4319_v0 }
 0x4e6   : > { %v9468_v38 = vpop.f32.mrf.mxu0 }
 0x4e8   : > { %6018 = vmatmul.msk.f32.gmra.mxu1 %vm298_vm4, %v9102_v22 }
 0x4e9   : > { %6083 = vmatmul.msk.f32.gmra.mxu3 %vm298_vm4, %v4318_v32 }
 0x4eb   : > { %6051 = vmatmul.msk.f32.gmra.mxu2 %vm298_vm4, %v9455_v8  ;;  %6115 = vmatmul.msk.f32.gmra.mxu0 %vm298_vm4, %v9102_v22 }
 0x4ed   : > { %v9463_v54 = vpop.f32.mrf.mxu1 }
 0x4ee   : > { %v9477_v22 = vpop.f32.mrf.mxu0 }
 0x4f0   : > { %6119 = vmatmul.msk.f32.vlgmr.msra.gmra.mxu1 %vm298_vm4, %v8280_v61 }
 0x4f1   : > { %6084 = vmatmul.msk.f32.gmra.mxu3 %vm298_vm4, %v4320_v28 }
 0x4f3   : > { %6116 = vmatmul.msk.f32.gmra.mxu0 %vm298_vm4, %v9433_v19 }
 0x4f5   : > { %v9473_v18 = vpop.f32.mrf.mxu1 }
 0x4f8   : > { %6120 = vmatmul.msk.f32.gmra.mxu1 %vm298_vm4, %v8325_v59 }
 0x4fb   : > { %6117 = vmatmul.msk.f32.gmra.mxu0 %vm298_vm4, %v9452_v24 }
 0x4fd   : > { %v9481_v5 = vpop.f32.mrf.mxu1 }
 0x500   : > { %6121 = vmatmul.msk.f32.gmra.mxu1 %vm298_vm4, %v8363_v52 }
 0x505   : > { %v9485_v61 = vpop.f32.mrf.mxu1 }
 0x508   : > { %6122 = vmatmul.msk.f32.gmra.mxu1 %vm298_vm4, %v8403_v29 }
 0x50d   : > { %v9489_v13 = vpop.f32.mrf.mxu1 }
 0x510   : > { %6123 = vmatmul.msk.f32.gmra.mxu1 %vm298_vm4, %v8437_v34 }
 0x515   : > { %v9493_v59 = vpop.f32.mrf.mxu1 }
 0x518   : > { %6124 = vmatmul.msk.f32.gmra.mxu1 %vm298_vm4, %v8476_v15 }
 0x51d   : > { %v9497_v32 = vpop.f32.mrf.mxu1 }
 0x520   : > { %6125 = vmatmul.msk.f32.gmra.mxu1 %vm298_vm4, %v10520_v46 }
 0x525   : > { %v9501_v52 = vpop.f32.mrf.mxu1 }
 0x528   : > { %6126 = vmatmul.msk.f32.gmra.mxu1 %vm298_vm4, %v8549_v27 }
 0x52d   : > { %v9505_v29 = vpop.f32.mrf.mxu1 }
 0x530   : > { %6127 = vmatmul.msk.f32.gmra.mxu1 %vm298_vm4, %v8576_v57 }
 0x535   : > { %v9509_v34 = vpop.f32.mrf.mxu1 }
 0x536   : > { %10584 = vst [vmem:[#allocation39_spill] sm:$0xff] %v9509_v34 }
 0x538   : > { %6128 = vmatmul.msk.f32.gmra.mxu1 %vm298_vm4, %v8606_v11 }
 0x53d   : > { %v9513_v15 = vpop.f32.mrf.mxu1 }
 0x53e   : > { %10585 = vst [vmem:[#allocation12_spill] sm:$0xff] %v9513_v15 }
 0x540   : > { %6129 = vmatmul.msk.f32.gmra.mxu1 %vm298_vm4, %v8630_v36 }
 0x545   : > { %v9517_v46 = vpop.f32.mrf.mxu1 }
 0x546   : > { %10586 = vst [vmem:[#allocation14_spill] sm:$0xff] %v9517_v46 }
 0x548   : > { %6130 = vmatmul.msk.f32.gmra.mxu1 %vm298_vm4, %v10531_v53  ;;  %v4589_v53 = vadd.f32 %v9365_v35, %v9278_v41  ;;  %v9551_v41 = vpop.f32.mrf.mxu2 }
 0x54d   : > { %v9521_v27 = vpop.f32.mrf.mxu1 }
 0x54e   : > { %10587 = vst [vmem:[#allocation46_spill] sm:$0xff] %v9521_v27 }
 0x550   : > { %6131 = vmatmul.msk.f32.gmra.mxu1 %vm298_vm4, %v10534_v49  ;;  %v9542_v49 = vld [vmem:[%s10221_s4] ss:$0 sm:$0xff] }
 0x555   : > { %v9525_v57 = vpop.f32.mrf.mxu1 }
 0x556   : > { %10588 = vst [vmem:[#allocation47_spill] sm:$0xff] %v9525_v57 }
 0x558   : > { %6132 = vmatmul.msk.f32.gmra.mxu1 %vm298_vm4, %v10538_v14 }
 0x55d   : > { %v9529_v11 = vpop.f32.mrf.mxu1 }
 0x55e   : > { %10589 = vst [vmem:[#allocation16_spill] sm:$0xff] %v9529_v11 }
 0x560   : > { %6133 = vmatmul.msk.f32.gmra.mxu1 %vm298_vm4, %v10544_v42 }
 0x565   : > { %v9533_v36 = vpop.f32.mrf.mxu1 }
 0x566   : > { %10590 = vst [vmem:[#allocation48_spill] sm:$0xff] %v9533_v36 }
 0x568   : > { %6134 = vmatmul.msk.f32.gmra.mxu1 %vm298_vm4, %v10551_v12  ;;  %v4590_v12 = vadd.f32 %v9381_v21, %v9291_v56  ;;  %v9561_v21 = vpop.f32.mrf.mxu0 }
 0x56d   : > { %v4650_v0 = vpop.f32.mrf.mxu1 }
 0x56e   : > { %v4746_v14 = vadd.f32 %v4650_v0, %v4589_v53  ;;  %v9555_v53 = vpop.f32.mrf.mxu3 }
 0x570   : > { %v4782_v28 = vadd.f32 %v9542_v49, %v4746_v14  ;;  %6135 = vmatmul.msk.f32.gmra.mxu1 %vm298_vm4, %v8779_v2  ;;  %v4591_v14 = vadd.f32 %v9395_v16, %v9303_v33  ;;  %v4592_v16 = vadd.f32 %v9409_v37, %v9315_v30 }
 0x572   : > { %vm4814_vm2 = vcmp.ge.f32.partialorder %v4782_v28, 0.0  ;;  %v4846_v42 = vmul.f32 0.2, %v4782_v28 }
 0x574   : > { %v9549_v36 = vsel %vm4814_vm2, %v4782_v28, %v4846_v42 }
 0x575   : > { %v4653_v35 = vpop.f32.mrf.mxu1  ;;  %v4910_v11 = vmul.f32 %v9549_v36, %v9549_v36 }
 0x576   : > { %v4747_v57 = vadd.f32 %v4653_v35, %v4590_v12  ;;  %v9569_v35 = vpop.f32.mrf.mxu2 }
 0x577   : > { %v4942_v0 = vsel %vm298_vm4, %v4910_v11, 0.0 }
 0x578   : > { %v4783_v2 = vadd.f32 %v9542_v49, %v4747_v57  ;;  %6136 = vmatmul.msk.f32.gmra.mxu1 %vm298_vm4, %v10560_v17  ;;  %4943 = vadd.xlane.f32.xlu2 %v4942_v0  ;;  %v9575_v0 = vpop.f32.mrf.mxu3 }
 0x57a   : > { %vm4815_vm5 = vcmp.ge.f32.partialorder %v4783_v2, 0.0  ;;  %v4847_v56 = vmul.f32 0.2, %v4783_v2 }
 0x57c   : > { %v9565_v28 = vsel %vm4815_vm5, %v4783_v2, %v4847_v56  ;;  %v9581_v56 = vpop.f32.mrf.mxu0 }
 0x57d   : > { %v4656_v42 = vpop.f32.mrf.mxu1  ;;  %v4911_v12 = vmul.f32 %v9565_v28, %v9565_v28 }
 0x57e   : > { %v4748_v11 = vadd.f32 %v4656_v42, %v4591_v14 }
 0x57f   : > { %v4945_v57 = vsel %vm298_vm4, %v4911_v12, 0.0 }
 0x580   : > { %v4784_v17 = vadd.f32 %v9542_v49, %v4748_v11  ;;  %6137 = vmatmul.msk.f32.gmra.mxu1 %vm298_vm4, %v8828_v62  ;;  %4946 = vadd.xlane.f32.xlu0 %v4945_v57  ;;  %v9589_v57 = vpop.f32.mrf.mxu2  ;;  %v9591_v37 = vpop.f32.mrf.mxu3 }
 0x582   : > { %vm4816_vm6 = vcmp.ge.f32.partialorder %v4784_v17, 0.0  ;;  %v4848_v33 = vmul.f32 0.2, %v4784_v17 }
 0x584   : > { %v9579_v2 = vsel %vm4816_vm6, %v4784_v17, %v4848_v33  ;;  %v4593_v17 = vadd.f32 %v9425_v9, %v9325_v7  ;;  %v4594_v9 = vadd.f32 %v9447_v58, %v9339_v1  ;;  %v4595_v58 = vadd.f32 %v9468_v38, %v9355_v40  ;;  %v10591_v40 = vld [vmem:[#allocation55_spill] sm:$0xff]  ;;  %v10592_v38 = vld [vmem:[#allocation6_spill] sm:$0xff] }
 0x585   : > { %v4659_v14 = vpop.f32.mrf.mxu1  ;;  %v4912_v42 = vmul.f32 %v9579_v2, %v9579_v2 }
 0x586   : > { %v4749_v12 = vadd.f32 %v4659_v14, %v4592_v16 }
 0x587   : > { %v4948_v11 = vsel %vm298_vm4, %v4912_v42, 0.0 }
 0x588   : > { %v4785_v62 = vadd.f32 %v9542_v49, %v4749_v12  ;;  %6138 = vmatmul.msk.f32.gmra.mxu1 %vm298_vm4, %v10567_v3  ;;  %4949 = vadd.xlane.f32.xlu1 %v4948_v11  ;;  %v9599_v12 = vpop.f32.mrf.mxu0  ;;  %v9605_v7 = vpop.f32.mrf.mxu2 }
 0x58a   : > { %vm4817_vm7 = vcmp.ge.f32.partialorder %v4785_v62, 0.0  ;;  %v4849_v30 = vmul.f32 0.2, %v4785_v62 }
 0x58c   : > { %v9595_v33 = vsel %vm4817_vm7, %v4785_v62, %v4849_v30  ;;  %v9611_v30 = vpop.f32.mrf.mxu3 }
 0x58d   : > { %v4662_v16 = vpop.f32.mrf.mxu1  ;;  %v4913_v14 = vmul.f32 %v9595_v33, %v9595_v33 }
 0x58e   : > { %v4750_v42 = vadd.f32 %v4662_v16, %v4593_v17 }
 0x58f   : > { %v4951_v3 = vsel %vm298_vm4, %v4913_v14, 0.0 }
 0x590   : > { %v4786_v11 = vadd.f32 %v9542_v49, %v4750_v42  ;;  %6139 = vmatmul.msk.f32.gmra.mxu1 %vm298_vm4, %v10572_v26  ;;  %4952 = vadd.xlane.f32.xlu2 %v4951_v3  ;;  %v9619_v3 = vpop.f32.mrf.mxu0 }
 0x592   : > { %vm4818_vm1 = vcmp.ge.f32.partialorder %v4786_v11, 0.0  ;;  %v4850_v27 = vmul.f32 0.2, %v4786_v11 }
 0x594   : > { %v9609_v62 = vsel %vm4818_vm1, %v4786_v11, %v4850_v27  ;;  %v9625_v11 = vpop.f32.mrf.mxu2 }
 0x595   : > { %v4665_v17 = vpop.f32.mrf.mxu1  ;;  %v4914_v16 = vmul.f32 %v9609_v62, %v9609_v62 }
 0x596   : > { %v4751_v14 = vadd.f32 %v4665_v17, %v4594_v9 }
 0x597   : > { %v4954_v42 = vsel %vm298_vm4, %v4914_v16, 0.0 }
 0x598   : > { %v4787_v26 = vadd.f32 %v9542_v49, %v4751_v14  ;;  %6140 = vmatmul.msk.f32.gmra.mxu1 %vm298_vm4, %v10578_v44  ;;  %4955 = vadd.xlane.f32.xlu0 %v4954_v42  ;;  %v9629_v14 = vpop.f32.mrf.mxu3  ;;  %v9637_v46 = vpop.f32.mrf.mxu0 }
 0x59a   : > { %vm4819_vm8 = vcmp.ge.f32.partialorder %v4787_v26, 0.0  ;;  %v4851_v1 = vmul.f32 0.2, %v4787_v26 }
 0x59c   : > { %v9623_v27 = vsel %vm4819_vm8, %v4787_v26, %v4851_v1  ;;  %v3979_v26 = vadd.f32 %v10592_v38, %v10591_v40  ;;  %v9647_v34 = vpop.f32.mrf.mxu2 }
 0x59d   : > { %v4668_v9 = vpop.f32.mrf.mxu1  ;;  %v4915_v17 = vmul.f32 %v9623_v27, %v9623_v27 }
 0x59e   : > { %v4752_v16 = vadd.f32 %v4668_v9, %v4595_v58  ;;  %v4130_v15 = vadd.f32 %v9353_v23, %v3979_v26  ;;  %v4596_v58 = vadd.f32 %v9477_v22, %v9369_v55  ;;  %v10593_v22 = vld [vmem:[#allocation58_spill] sm:$0xff] }
 0x59f   : > { %v4957_v44 = vsel %vm298_vm4, %v4915_v17, 0.0 }
 0x5a0   : > { %v4788_v42 = vadd.f32 %v9542_v49, %v4752_v16  ;;  %6141 = vmatmul.msk.f32.gmra.mxu1 %vm298_vm4, %v8946_v6  ;;  %4958 = vadd.xlane.f32.xlu1 %v4957_v44  ;;  %v4287_v6 = vadd.f32 %v9551_v41, %v4130_v15  ;;  %v9654_v55 = vpop.f32.mrf.mxu3 }
 0x5a2   : > { %vm4820_vm9 = vcmp.ge.f32.partialorder %v4788_v42, 0.0  ;;  %v4852_v1 = vmul.f32 0.2, %v4788_v42  ;;  %v4446_v38 = vadd.f32 %v9555_v53, %v4287_v6  ;;  %v9662_v53 = vpop.f32.mrf.mxu0 }
 0x5a4   : > { %v9642_v9 = vsel %vm4820_vm9, %v4788_v42, %v4852_v1  ;;  %v10594_v42 = vld [vmem:[#allocation15_spill] sm:$0xff]  ;;  %v4597_v1 = vadd.f32 %v9561_v21, %v4446_v38  ;;  %v10595_v21 = vld [vmem:[#allocation13_spill] sm:$0xff]  ;;  %v10596_v38 = vld [vmem:[#allocation20_spill] sm:$0xff] }
 0x5a5   : > { %v4671_v17 = vpop.f32.mrf.mxu1  ;;  %v4916_v16 = vmul.f32 %v9642_v9, %v9642_v9  ;;  %v3980_v26 = vadd.f32 %v10594_v42, %v10593_v22 }
 0x5a6   : > { %v4753_v44 = vadd.f32 %v4671_v17, %v4596_v58 }
 0x5a7   : > { %v4960_v40 = vsel %vm298_vm4, %v4916_v16, 0.0  ;;  %v4131_v41 = vadd.f32 %v9367_v43, %v3980_v26  ;;  %v9672_v43 = vpop.f32.mrf.mxu2 }
 0x5a8   : > { %v4789_v23 = vadd.f32 %v9542_v49, %v4753_v44  ;;  %6142 = vmatmul.msk.f32.gmra.mxu1 %vm298_vm4, %v10581_v47  ;;  %4961 = vadd.xlane.f32.xlu2 %v4960_v40  ;;  %v9676_v26 = vpop.f32.mrf.mxu3 }
 0x5a9   : > { %v4288_v16 = vadd.f32 %v9569_v35, %v4131_v41 }
 0x5aa   : > { %vm4821_vm10 = vcmp.ge.f32.partialorder %v4789_v23, 0.0  ;;  %v4853_v15 = vmul.f32 0.2, %v4789_v23 }
 0x5ab   : > { %v4447_v40 = vadd.f32 %v9575_v0, %v4288_v16 }
 0x5ac   : > { %v9660_v58 = vsel %vm4821_vm10, %v4789_v23, %v4853_v15  ;;  %v3981_v23 = vadd.f32 %v10596_v38, %v10595_v21 }
 0x5ad   : > { %v4674_v17 = vpop.f32.mrf.mxu1  ;;  %v4917_v47 = vmul.f32 %v9660_v58, %v9660_v58  ;;  %v4598_v15 = vadd.f32 %v9581_v56, %v4447_v40  ;;  %v10598_v56 = vld [vmem:[#allocation27_spill] sm:$0xff] }
 0x5ae   : > { %v4754_v6 = vadd.f32 %v4674_v17, %v4597_v1  ;;  %v4132_v35 = vadd.f32 %v9379_v10, %v3981_v23  ;;  %v10597_v10 = vld [vmem:[#allocation17_spill] sm:$0xff] }
 0x5af   : > { %v4963_v44 = vsel %vm298_vm4, %v4917_v47, 0.0  ;;  %v9685_v47 = vpop.f32.mrf.mxu0  ;;  %v3982_v40 = vadd.f32 %v10598_v56, %v10597_v10  ;;  %v9694_v21 = vpop.f32.mrf.mxu2 }
 0x5b0   : > { %v4790_v22 = vadd.f32 %v9542_v49, %v4754_v6  ;;  %6143 = vmatmul.msk.f32.gmra.mxu1 %vm298_vm4, %v9016_v51  ;;  %4964 = vadd.xlane.f32.xlu0 %v4963_v44  ;;  %v4289_v1 = vadd.f32 %v9589_v57, %v4132_v35 }
 0x5b1   : > { %v4133_v57 = vadd.f32 %v9391_v39, %v3982_v40 }
 0x5b2   : > { %v4854_v42 = vmul.f32 0.2, %v4790_v22  ;;  %vm4822_vm11 = vcmp.ge.f32.partialorder %v4790_v22, 0.0  ;;  %v4448_v6 = vadd.f32 %v9591_v37, %v4289_v1  ;;  %v9700_v37 = vpop.f32.mrf.mxu3 }
 0x5b3   : > { %v4290_v35 = vadd.f32 %v9605_v7, %v4133_v57 }
 0x5b4   : > { %v9680_v0 = vsel %vm4822_vm11, %v4790_v22, %v4854_v42  ;;  %v4599_v38 = vadd.f32 %v9599_v12, %v4448_v6  ;;  %v10599_v12 = vld [vmem:[#allocation24_spill] sm:$0xff] }
 0x5b5   : > { %v4677_v41 = vpop.f32.mrf.mxu1  ;;  %v4918_v51 = vmul.f32 %v9680_v0, %v9680_v0 }
 0x5b6   : > { %v4755_v17 = vadd.f32 %v4677_v41, %v4598_v15 }
 0x5b7   : > { %v4966_v16 = vsel %vm298_vm4, %v4918_v51, 0.0  ;;  %v4449_v51 = vadd.f32 %v9611_v30, %v4290_v35  ;;  %v9710_v39 = vpop.f32.mrf.mxu0  ;;  %v9718_v30 = vpop.f32.mrf.mxu2 }
 0x5b8   : > { %v4791_v44 = vadd.f32 %v9542_v49, %v4755_v17  ;;  %6144 = vmatmul.msk.f32.gmra.mxu1 %vm298_vm4, %v9040_v25  ;;  %4967 = vadd.xlane.f32.xlu1 %v4966_v16  ;;  %v3983_v17 = vadd.f32 %v9079_v20, %v10599_v12  ;;  %v10601_v12 = vld [vmem:[#allocation23_spill] sm:$0xff] }
 0x5b9   : > { %v4600_v6 = vadd.f32 %v9619_v3, %v4449_v51  ;;  %v3984_v3 = vadd.f32 %v9105_v48, %v9054_v63 }
 0x5ba   : > { %v4855_v22 = vmul.f32 0.2, %v4791_v44  ;;  %vm4823_vm12 = vcmp.ge.f32.partialorder %v4791_v44, 0.0  ;;  %v4134_v7 = vadd.f32 %v9403_v4, %v3983_v17  ;;  %v10602_v17 = vld [vmem:[#allocation32_spill] sm:$0xff] }
 0x5bc   : > { %v9698_v23 = vsel %vm4823_vm12, %v4791_v44, %v4855_v22  ;;  %v4291_v56 = vadd.f32 %v9625_v11, %v4134_v7  ;;  %v9723_v22 = vpop.f32.mrf.mxu3  ;;  %v4135_v11 = vadd.f32 %v9415_v50, %v3984_v3  ;;  %v10600_v50 = vld [vmem:[#allocation43_spill] sm:$0xff] }
 0x5bd   : > { %v4680_v42 = vpop.f32.mrf.mxu1  ;;  %v4919_v25 = vmul.f32 %v9698_v23, %v9698_v23 }
 0x5be   : > { %v4756_v15 = vadd.f32 %v4680_v42, %v4599_v38  ;;  %v4450_v57 = vadd.f32 %v9629_v14, %v4291_v56 }
 0x5bf   : > { %v4969_v41 = vsel %vm298_vm4, %v4919_v25, 0.0  ;;  %v9732_v42 = vpop.f32.mrf.mxu0  ;;  %v9741_v51 = vpop.f32.mrf.mxu2 }
 0x5c0   : > { %v4792_v1 = vadd.f32 %v9542_v49, %v4756_v15  ;;  %6145 = vmatmul.msk.f32.gmra.mxu1 %vm298_vm4, %v9069_v45  ;;  %4970 = vadd.xlane.f32.xlu2 %v4969_v41  ;;  %v4601_v25 = vadd.f32 %v9637_v46, %v4450_v57 }
 0x5c2   : > { %v4856_v16 = vmul.f32 0.2, %v4792_v1  ;;  %vm4824_vm13 = vcmp.ge.f32.partialorder %v4792_v1, 0.0 }
 0x5c4   : > { %v9716_v44 = vsel %vm4824_vm13, %v4792_v1, %v4856_v16  ;;  %v9748_v46 = vpop.f32.mrf.mxu3  ;;  %v3985_v16 = vadd.f32 %v10602_v17, %v10601_v12  ;;  %v3051_v12 = vld [vmem:[#allocation3 + $0x238] sm:$0xff] }
 0x5c5   : > { %v4683_v10 = vpop.f32.mrf.mxu1  ;;  %v4920_v45 = vmul.f32 %v9716_v44, %v9716_v44 }
 0x5c6   : > { %v4757_v40 = vadd.f32 %v4683_v10, %v4600_v6 }
 0x5c7   : > { %v4972_v20 = vsel %vm298_vm4, %v4920_v45, 0.0 }
 0x5c8   : > { %v4793_v4 = vadd.f32 %v9542_v49, %v4757_v40  ;;  %6146 = vmatmul.msk.f32.gmra.mxu1 %vm298_vm4, %v9089_v60  ;;  %4973 = vadd.xlane.f32.xlu0 %v4972_v20  ;;  %v4292_v60 = vadd.f32 %v9647_v34, %v4135_v11  ;;  %v10603_v34 = vld [vmem:[#allocation40_spill] sm:$0xff]  ;;  %v4624_v11 = vrot.slane %v9433_v19, 1 }
 0x5c9   : > { %v4136_v6 = vadd.f32 %v10603_v34, %v3985_v16  ;;  %v10606_v34 = vld [vmem:[#allocation29_spill] sm:$0xff] }
 0x5ca   : > { %v4857_v38 = vmul.f32 0.2, %v4793_v4  ;;  %vm4825_vm14 = vcmp.ge.f32.partialorder %v4793_v4, 0.0  ;;  %v4451_v48 = vadd.f32 %v9654_v55, %v4292_v60  ;;  %v9756_v55 = vpop.f32.mrf.mxu0 }
 0x5cb   : > { %v4293_v20 = vadd.f32 %v9672_v43, %v4136_v6  ;;  %v10607_v6 = vld [vmem:[#allocation62_spill] sm:$0xff] }
 0x5cc   : > { %v9736_v35 = vsel %vm4825_vm14, %v4793_v4, %v4857_v38  ;;  %v4602_v10 = vadd.f32 %v9662_v53, %v4451_v48  ;;  %v9766_v53 = vpop.f32.mrf.mxu2 }
 0x5cd   : > { %v4686_v14 = vpop.f32.mrf.mxu1  ;;  %v4921_v15 = vmul.f32 %v9736_v35, %v9736_v35  ;;  %v4452_v3 = vadd.f32 %v9676_v26, %v4293_v20 }
 0x5ce   : > { %v4758_v41 = vadd.f32 %v4686_v14, %v4601_v25  ;;  %v4625_v25 = vrot.slane %v9452_v24, 1  ;;  %v10604_v14 = vld [vmem:[#allocation26_spill] sm:$0xff] }
 0x5cf   : > { %v4975_v63 = vsel %vm298_vm4, %v4921_v15, 0.0  ;;  %v10605_v15 = vld [vmem:[#allocation60_spill] sm:$0xff] }
 0x5d0   : > { %v4794_v1 = vadd.f32 %v9542_v49, %v4758_v41  ;;  %6147 = vmatmul.msk.f32.gmra.mxu1 %vm298_vm4, %v10600_v50  ;;  %4976 = vadd.xlane.f32.xlu1 %v4975_v63  ;;  %v3986_v43 = vadd.f32 %v10605_v15, %v10604_v14  ;;  %v9772_v41 = vpop.f32.mrf.mxu3  ;;  %v4603_v63 = vadd.f32 %v9685_v47, %v4452_v3 }
 0x5d2   : > { %v4858_v7 = vmul.f32 0.2, %v4794_v1  ;;  %vm4826_vm15 = vcmp.ge.f32.partialorder %v4794_v1, 0.0  ;;  %v4137_v26 = vadd.f32 %v9445_v31, %v3986_v43  ;;  %v9782_v17 = vpop.f32.mrf.mxu0 }
 0x5d4   : > { %v9754_v45 = vsel %vm4826_vm15, %v4794_v1, %v4858_v7  ;;  %v4626_v1 = vsel %vm1019_vm3, %v4624_v11, %v4625_v25  ;;  %v4294_v24 = vadd.f32 %v9694_v21, %v4137_v26  ;;  %v4627_v7 = vrot.slane %v3051_v12, 1  ;;  %v9790_v21 = vpop.f32.mrf.mxu2  ;;  %v10609_v26 = vld [vmem:[#allocation64_spill] sm:$0xff] }
 0x5d5   : > { %v4689_v56 = vpop.f32.mrf.mxu1  ;;  %v4922_v40 = vmul.f32 %v9754_v45, %v9754_v45 }
 0x5d6   : > { %v4759_v57 = vadd.f32 %v4689_v56, %v4602_v10  ;;  %v4453_v31 = vadd.f32 %v9700_v37, %v4294_v24  ;;  %v3987_v10 = vadd.f32 %v10607_v6, %v10606_v34  ;;  %v4628_v3 = vsel %vm1019_vm3, %v4625_v25, %v4627_v7 }
 0x5d7   : > { %v4978_v4 = vsel %vm298_vm4, %v4922_v40, 0.0 }
 0x5d8   : > { %v4795_v38 = vadd.f32 %v9542_v49, %v4759_v57  ;;  %6148 = vmatmul.msk.f32.gmra.mxu1 %vm298_vm4, %v9455_v8  ;;  %4979 = vadd.xlane.f32.xlu2 %v4978_v4  ;;  %v4138_v40 = vadd.f32 %v9463_v54, %v3987_v10  ;;  %v4604_v20 = vadd.f32 %v9710_v39, %v4453_v31  ;;  %v9796_v37 = vpop.f32.mrf.mxu3  ;;  %v10611_v10 = vld [vmem:[#allocation61_spill] sm:$0xff] }
 0x5da   : > { %v4859_v60 = vmul.f32 0.2, %v4795_v38  ;;  %vm4827_vm0 = vcmp.ge.f32.partialorder %v4795_v38, 0.0  ;;  %v4295_v11 = vadd.f32 %v9718_v30, %v4138_v40  ;;  %v9806_v39 = vpop.f32.mrf.mxu0 }
 0x5dc   : > { %v9776_v48 = vsel %vm4827_vm0, %v4795_v38, %v4859_v60  ;;  %v4454_v43 = vadd.f32 %v9723_v22, %v4295_v11  ;;  %v10608_v60 = vld [vmem:[#allocation7_spill] sm:$0xff] }
 0x5dd   : > { %v4692_v8 = vpop.f32.mrf.mxu1  ;;  %v4923_v19 = vmul.f32 %v9776_v48, %v9776_v48  ;;  %v3988_v25 = vadd.f32 %v10609_v26, %v10608_v60 }
 0x5de   : > { %v4760_v50 = vadd.f32 %v4692_v8, %v4603_v63 }
 0x5df   : > { %v4981_v16 = vsel %vm298_vm4, %v4923_v19, 0.0  ;;  %v4139_v30 = vadd.f32 %v9473_v18, %v3988_v25  ;;  %v10610_v19 = vld [vmem:[#allocation30_spill] sm:$0xff] }
 0x5e0   : > { %v4796_v47 = vadd.f32 %v9542_v49, %v4760_v50  ;;  %6149 = vmatmul.msk.f32.gmra.mxu1 %vm298_vm4, %v4626_v1  ;;  %4982 = vadd.xlane.f32.xlu0 %v4981_v16  ;;  %v4605_v1 = vadd.f32 %v9732_v42, %v4454_v43  ;;  %v9815_v50 = vpop.f32.mrf.mxu2  ;;  %v9820_v34 = vpop.f32.mrf.mxu3 }
 0x5e1   : > { %v4296_v31 = vadd.f32 %v9741_v51, %v4139_v30 }
 0x5e2   : > { %v4860_v56 = vmul.f32 0.2, %v4796_v47  ;;  %vm4828_vm2 = vcmp.ge.f32.partialorder %v4796_v47, 0.0 }
 0x5e3   : > { %v4455_v42 = vadd.f32 %v9748_v46, %v4296_v31 }
 0x5e4   : > { %v9794_v57 = vsel %vm4828_vm2, %v4796_v47, %v4860_v56  ;;  %v10612_v56 = vld [vmem:[#allocation67_spill] sm:$0xff] }
 0x5e5   : > { %v4695_v4 = vpop.f32.mrf.mxu1  ;;  %v4924_v38 = vmul.f32 %v9794_v57, %v9794_v57  ;;  %v3989_v40 = vadd.f32 %v10612_v56, %v10611_v10 }
 0x5e6   : > { %v4761_v14 = vadd.f32 %v4695_v4, %v4604_v20  ;;  %v9827_v4 = vpop.f32.mrf.mxu0 }
 0x5e7   : > { %v4984_v15 = vsel %vm298_vm4, %v4924_v38, 0.0  ;;  %v4606_v38 = vadd.f32 %v9756_v55, %v4455_v42 }
 0x5e8   : > { %v4797_v54 = vadd.f32 %v9542_v49, %v4761_v14  ;;  %6150 = vmatmul.msk.f32.gmra.mxu1 %vm298_vm4, %v4628_v3  ;;  %4985 = vadd.xlane.f32.xlu1 %v4984_v15  ;;  %v4140_v3 = vadd.f32 %v9481_v5, %v3989_v40  ;;  %v9839_v25 = vpop.f32.mrf.mxu2  ;;  %v9845_v30 = vpop.f32.mrf.mxu3 }
 0x5ea   : > { %v4861_v63 = vmul.f32 0.2, %v4797_v54  ;;  %vm4829_vm3 = vcmp.ge.f32.partialorder %v4797_v54, 0.0 }
 0x5eb   : > { %v4944_v8 = vpop.xlane.xlu2 %4943 }
 0x5ec   : > { %v5038_v24 = vmul.f32 %v4944_v8, %v10610_v19  ;;  %v9813_v22 = vsel %vm4829_vm3, %v4797_v54, %v4861_v63  ;;  %v4297_v54 = vadd.f32 %v9766_v53, %v4140_v3  ;;  %v10614_v53 = vld [vmem:[#allocation69_spill] sm:$0xff] }
 0x5ed   : > { %v4698_v12 = vpop.f32.mrf.mxu1  ;;  %v4925_v16 = vmul.f32 %v9813_v22, %v9813_v22 }
 0x5ee   : > { %v5070_v47 = vadd.f32 1e-08, %v5038_v24  ;;  %v4762_v7 = vadd.f32 %v4698_v12, %v4605_v1  ;;  %v4456_v55 = vadd.f32 %v9772_v41, %v4297_v54  ;;  %v10613_v24 = vld [vmem:[#allocation63_spill] sm:$0xff]  ;;  %v9854_v10 = vpop.f32.mrf.mxu0 }
 0x5ef   : > { %v4987_v18 = vsel %vm298_vm4, %v4925_v16, 0.0  ;;  %v3990_v12 = vadd.f32 %v10614_v53, %v10613_v24 }
 0x5f0   : > { %6235 = vrsqrt.f32 %v5070_v47  ;;  %v4798_v6 = vadd.f32 %v9542_v49, %v4762_v7  ;;  %4988 = vadd.xlane.f32.xlu2 %v4987_v18  ;;  %v4607_v42 = vadd.f32 %v9782_v17, %v4456_v55  ;;  %vm5108_vm1 = vweird.f32 %v5070_v47 }
 0x5f1   : > { %v4141_v18 = vadd.f32 %v9485_v61, %v3990_v12 }
 0x5f2   : > { %v4862_v20 = vmul.f32 0.2, %v4798_v6  ;;  %vm4830_vm5 = vcmp.ge.f32.partialorder %v4798_v6, 0.0 }
 0x5f3   : > { %v4947_v51 = vpop.xlane.xlu0 %4946  ;;  %v4298_v3 = vadd.f32 %v9790_v21, %v4141_v18 }
 0x5f4   : > { %v5039_v11 = vmul.f32 %v4947_v51, %v10610_v19  ;;  %v9832_v14 = vsel %vm4830_vm5, %v4798_v6, %v4862_v20 }
 0x5f5   : > { %v4701_v46 = vpop.f32.mrf.mxu1  ;;  %v4926_v15 = vmul.f32 %v9832_v14, %v9832_v14 }
 0x5f6   : > { %v6236_v43 = vpop.eup %6235  ;;  %v9837_v60 = vadd.f32 1e-08, %v5039_v11  ;;  %v4763_v26 = vadd.f32 %v4701_v46, %v4606_v38 }
 0x5f7   : > { %v5103_v63 = vmul.f32 %v6236_v43, %v5070_v47  ;;  %v4990_v5 = vsel %vm298_vm4, %v4926_v15, 0.0  ;;  %vm5109_vm7 = vweird.f32 %v6236_v43  ;;  %v4457_v15 = vadd.f32 %v9796_v37, %v4298_v3 }
 0x5f8   : > { %6237 = vrsqrt.f32 %v9837_v60  ;;  %v4799_v8 = vadd.f32 %v9542_v49, %v4763_v26  ;;  %4991 = vadd.xlane.f32.xlu0 %v4990_v5  ;;  %vm5110_vm8 = vmor %vm5108_vm1, %vm5109_vm7  ;;  %v9866_v26 = vpop.f32.mrf.mxu2  ;;  %v10616_v5 = vld [vmem:[#allocation70_spill] sm:$0xff]  ;;  %vm5118_vm11 = vweird.f32 %v9837_v60 }
 0x5f9   : > { %v5104_v1 = vmul.f32 %v6236_v43, %v5103_v63  ;;  %v10615_v63 = vld [vmem:[#allocation65_spill] sm:$0xff] }
 0x5fa   : > { %v4863_v16 = vmul.f32 0.2, %v4799_v8  ;;  %vm4831_vm6 = vcmp.ge.f32.partialorder %v4799_v8, 0.0  ;;  %v3991_v37 = vadd.f32 %v10616_v5, %v10615_v63 }
 0x5fb   : > { %v5105_v31 = vmul.f32 0.5, %v5104_v1  ;;  %v4950_v7 = vpop.xlane.xlu1 %4949  ;;  %v9878_v1 = vpop.f32.mrf.mxu3 }
 0x5fc   : > { %v5040_v41 = vmul.f32 %v4950_v7, %v10610_v19  ;;  %v9852_v6 = vsel %vm4831_vm6, %v4799_v8, %v4863_v16  ;;  %v4142_v12 = vadd.f32 %v9489_v13, %v3991_v37  ;;  %v4608_v16 = vadd.f32 %v9806_v39, %v4457_v15  ;;  %v10618_v15 = vld [vmem:[#allocation72_spill] sm:$0xff] }
 0x5fd   : > { %v5106_v56 = vsub.f32 1.5, %v5105_v31  ;;  %v4704_v40 = vpop.f32.mrf.mxu1  ;;  %v4927_v20 = vmul.f32 %v9852_v6, %v9852_v6 }
 0x5fe   : > { %v6238_v51 = vpop.eup %6237  ;;  %v9859_v38 = vadd.f32 1e-08, %v5040_v41  ;;  %v4764_v61 = vadd.f32 %v4704_v40, %v4607_v42  ;;  %v4299_v41 = vadd.f32 %v9815_v50, %v4142_v12  ;;  %v9892_v40 = vpop.f32.mrf.mxu0 }
 0x5ff   : > { %v5107_v17 = vmul.f32 %v6236_v43, %v5106_v56  ;;  %v5113_v11 = vmul.f32 %v6238_v51, %v9837_v60  ;;  %v4993_v46 = vsel %vm298_vm4, %v4927_v20, 0.0  ;;  %vm5119_vm10 = vweird.f32 %v6238_v51 }
 0x600   : > { %6239 = vrsqrt.f32 %v9859_v38  ;;  %v4800_v54 = vadd.f32 %v9542_v49, %v4764_v61  ;;  %4994 = vadd.xlane.f32.xlu1 %v4993_v46  ;;  %v4458_v61 = vadd.f32 %v9820_v34, %v4299_v41  ;;  %vm5120_vm12 = vmor %vm5118_vm11, %vm5119_vm10  ;;  %v10617_v46 = vld [vmem:[#allocation66_spill] sm:$0xff]  ;;  %vm5128_vm15 = vweird.f32 %v9859_v38 }
 0x601   : > { %v5111_v21 = vsel %vm5110_vm8, %v6236_v43, %v5107_v17  ;;  %v5114_v47 = vmul.f32 %v6238_v51, %v5113_v11 }
 0x602   : > { %v5422_v55 = vmul.f32 %v5111_v21, %v9549_v36  ;;  %v4864_v8 = vmul.f32 0.2, %v4800_v54  ;;  %vm4832_vm9 = vcmp.ge.f32.partialorder %v4800_v54, 0.0  ;;  %v4609_v37 = vadd.f32 %v9827_v4, %v4458_v61 }
 0x603   : > { %v5115_v24 = vmul.f32 0.5, %v5114_v47  ;;  %v4953_v53 = vpop.xlane.xlu2 %4952  ;;  %v9903_v47 = vpop.f32.mrf.mxu2 }
 0x604   : > { %5454 = vst.msk [vmem:[%s9873_s24] sm:$0xff] %vm298_vm4, %v5422_v55  ;;  %v5041_v43 = vmul.f32 %v4953_v53, %v10610_v19  ;;  %v9885_v31 = vsel %vm4832_vm9, %v4800_v54, %v4864_v8  ;;  %v3992_v54 = vadd.f32 %v10618_v15, %v10617_v46  ;;  %v9912_v8 = vpop.f32.mrf.mxu3 }
 0x605   : > { %v5116_v7 = vsub.f32 1.5, %v5115_v24  ;;  %v4707_v18 = vpop.f32.mrf.mxu1  ;;  %v4928_v36 = vmul.f32 %v9885_v31, %v9885_v31 }
 0x606   : > { %v6240_v42 = vpop.eup %6239  ;;  %v9890_v56 = vadd.f32 1e-08, %v5041_v43  ;;  %v4765_v13 = vadd.f32 %v4707_v18, %v4608_v16  ;;  %v4143_v5 = vadd.f32 %v9493_v59, %v3992_v54 }
 0x607   : > { %v5117_v39 = vmul.f32 %v6238_v51, %v5116_v7  ;;  %v5123_v20 = vmul.f32 %v6240_v42, %v9859_v38  ;;  %v4996_v3 = vsel %vm298_vm4, %v4928_v36, 0.0  ;;  %vm5129_vm14 = vweird.f32 %v6240_v42 }
 0x608   : > { %6241 = vrsqrt.f32 %v9890_v56  ;;  %v4801_v50 = vadd.f32 %v9542_v49, %v4765_v13  ;;  %4997 = vadd.xlane.f32.xlu2 %v4996_v3  ;;  %v4300_v16 = vadd.f32 %v9839_v25, %v4143_v5  ;;  %vm5130_vm0 = vmor %vm5128_vm15, %vm5129_vm14  ;;  %v9925_v25 = vpop.f32.mrf.mxu0  ;;  %v10620_v3 = vld [vmem:[#allocation75_spill] sm:$0xff]  ;;  %vm5138_vm5 = vweird.f32 %v9890_v56 }
 0x609   : > { %v5121_v17 = vsel %vm5120_vm12, %v6238_v51, %v5117_v39  ;;  %v5124_v11 = vmul.f32 %v6240_v42, %v5123_v20  ;;  %v10619_v20 = vld [vmem:[#allocation68_spill] sm:$0xff] }
 0x60a   : > { %v5423_v60 = vmul.f32 %v5121_v17, %v9565_v28  ;;  %v4865_v21 = vmul.f32 0.2, %v4801_v50  ;;  %vm4833_vm13 = vcmp.ge.f32.partialorder %v4801_v50, 0.0  ;;  %v4459_v36 = vadd.f32 %v9845_v30, %v4300_v16 }
 0x60b   : > { %v5125_v63 = vmul.f32 0.5, %v5124_v11  ;;  %v4956_v34 = vpop.xlane.xlu0 %4955  ;;  %v3993_v38 = vadd.f32 %v10620_v3, %v10619_v20 }
 0x60c   : > { %5455 = vst.msk [vmem:[%s9873_s24 + $0x8] sm:$0xff] %vm298_vm4, %v5423_v60  ;;  %v5042_v51 = vmul.f32 %v4956_v34, %v10610_v19  ;;  %v9910_v55 = vsel %vm4833_vm13, %v4801_v50, %v4865_v21  ;;  %v4610_v46 = vadd.f32 %v9854_v10, %v4459_v36  ;;  %v9944_v5 = vpop.f32.mrf.mxu3 }
 0x60d   : > { %v5126_v24 = vsub.f32 1.5, %v5125_v63  ;;  %v4710_v28 = vpop.f32.mrf.mxu1  ;;  %v4929_v53 = vmul.f32 %v9910_v55, %v9910_v55  ;;  %v4144_v11 = vadd.f32 %v9497_v32, %v3993_v38 }
 0x60e   : > { %v6242_v12 = vpop.eup %6241  ;;  %v9917_v59 = vadd.f32 1e-08, %v5042_v51  ;;  %v4766_v4 = vadd.f32 %v4710_v28, %v4609_v37 }
 0x60f   : > { %v5127_v43 = vmul.f32 %v6240_v42, %v5126_v24  ;;  %v5133_v7 = vmul.f32 %v6242_v12, %v9890_v56  ;;  %v4999_v18 = vsel %vm298_vm4, %v4929_v53, 0.0  ;;  %vm5139_vm3 = vweird.f32 %v6242_v12 }
 0x610   : > { %6243 = vrsqrt.f32 %v9917_v59  ;;  %v4802_v41 = vadd.f32 %v9542_v49, %v4766_v4  ;;  %5000 = vadd.xlane.f32.xlu0 %v4999_v18  ;;  %v4301_v34 = vadd.f32 %v9866_v26, %v4144_v11  ;;  %vm5140_vm6 = vmor %vm5138_vm5, %vm5139_vm3  ;;  %v10621_v4 = vld [vmem:[#allocation31_spill] sm:$0xff]  ;;  %v9955_v36 = vpop.f32.mrf.mxu0  ;;  %vm5148_vm8 = vweird.f32 %v9917_v59 }
 0x611   : > { %v5131_v13 = vsel %vm5130_vm0, %v6240_v42, %v5127_v43  ;;  %v5134_v39 = vmul.f32 %v6242_v12, %v5133_v7  ;;  %v9937_v42 = vpop.f32.mrf.mxu2  ;;  %v10622_v43 = vld [vmem:[#allocation8_spill] sm:$0xff] }
 0x612   : > { %v5424_v61 = vmul.f32 %v5131_v13, %v9579_v2  ;;  %v4866_v50 = vmul.f32 0.2, %v4802_v41  ;;  %vm4834_vm2 = vcmp.ge.f32.partialorder %v4802_v41, 0.0  ;;  %v4460_v28 = vadd.f32 %v9878_v1, %v4301_v34  ;;  %v10623_v34 = vld [vmem:[#allocation71_spill] sm:$0xff] }
 0x613   : > { %v5135_v17 = vmul.f32 0.5, %v5134_v39  ;;  %v4959_v30 = vpop.xlane.xlu1 %4958  ;;  %v3994_v7 = vadd.f32 %v10622_v43, %v10621_v4 }
 0x614   : > { %5456 = vst.msk [vmem:[%s9873_s24 + $0x10] sm:$0xff] %vm298_vm4, %v5424_v61  ;;  %v5043_v15 = vmul.f32 %v4959_v30, %v10610_v19  ;;  %v9935_v54 = vsel %vm4834_vm2, %v4802_v41, %v4866_v50  ;;  %v4611_v39 = vadd.f32 %v9892_v40, %v4460_v28 }
 0x615   : > { %v5136_v60 = vsub.f32 1.5, %v5135_v17  ;;  %v4713_v21 = vpop.f32.mrf.mxu1  ;;  %v4930_v2 = vmul.f32 %v9935_v54, %v9935_v54  ;;  %v4145_v13 = vadd.f32 %v9501_v52, %v3994_v7 }
 0x616   : > { %v6244_v63 = vpop.eup %6243  ;;  %v9942_v32 = vadd.f32 1e-08, %v5043_v15  ;;  %v4767_v10 = vadd.f32 %v4713_v21, %v4610_v46 }
 0x617   : > { %v5137_v37 = vmul.f32 %v6242_v12, %v5136_v60  ;;  %v5143_v51 = vmul.f32 %v6244_v63, %v9917_v59  ;;  %v5002_v24 = vsel %vm298_vm4, %v4930_v2, 0.0  ;;  %vm5149_vm1 = vweird.f32 %v6244_v63 }
 0x618   : > { %6245 = vrsqrt.f32 %v9942_v32  ;;  %v4803_v26 = vadd.f32 %v9542_v49, %v4767_v10  ;;  %5003 = vadd.xlane.f32.xlu1 %v5002_v24  ;;  %v4302_v50 = vadd.f32 %v9903_v47, %v4145_v13  ;;  %vm5150_vm9 = vmor %vm5148_vm8, %vm5149_vm1  ;;  %v4417_v47 = vpop.f32.mrf.mxu3  ;;  %v10624_v10 = vld [vmem:[#allocation38_spill] sm:$0xff]  ;;  %vm5158_vm12 = vweird.f32 %v9942_v32 }
 0x619   : > { %v5141_v53 = vsel %vm5140_vm6, %v6242_v12, %v5137_v37  ;;  %v5144_v16 = vmul.f32 %v6244_v63, %v5143_v51  ;;  %v4258_v30 = vpop.f32.mrf.mxu2  ;;  %v3995_v37 = vadd.f32 %v10624_v10, %v10623_v34 }
 0x61a   : > { %v5425_v56 = vmul.f32 %v5141_v53, %v9595_v33  ;;  %v4867_v18 = vmul.f32 0.2, %v4803_v26  ;;  %vm4835_vm7 = vcmp.ge.f32.partialorder %v4803_v26, 0.0  ;;  %v4461_v15 = vadd.f32 %v9912_v8, %v4302_v50 }
 0x61b   : > { %v5145_v41 = vmul.f32 0.5, %v5144_v16  ;;  %v4962_v1 = vpop.xlane.xlu2 %4961  ;;  %v4146_v8 = vadd.f32 %v9505_v29, %v3995_v37 }
 0x61c   : > { %5457 = vst.msk [vmem:[%s9873_s24 + $0x18] sm:$0xff] %vm298_vm4, %v5425_v56  ;;  %v5044_v12 = vmul.f32 %v4962_v1, %v10610_v19  ;;  %v9962_v20 = vsel %vm4835_vm7, %v4803_v26, %v4867_v18  ;;  %v4612_v26 = vadd.f32 %v9925_v25, %v4461_v15 }
 0x61d   : > { %v5146_v3 = vsub.f32 1.5, %v5145_v41  ;;  %v4716_v38 = vpop.f32.mrf.mxu1  ;;  %v4931_v33 = vmul.f32 %v9962_v20, %v9962_v20  ;;  %v4303_v56 = vadd.f32 %v9937_v42, %v4146_v8 }
 0x61e   : > { %v6246_v61 = vpop.eup %6245  ;;  %v9967_v17 = vadd.f32 1e-08, %v5044_v12  ;;  %v4768_v52 = vadd.f32 %v4716_v38, %v4611_v39  ;;  %v10625_v38 = vld [vmem:[#allocation73_spill] sm:$0xff] }
 0x61f   : > { %v5147_v40 = vmul.f32 %v6244_v63, %v5146_v3  ;;  %v5153_v11 = vmul.f32 %v6246_v61, %v9942_v32  ;;  %v5005_v46 = vsel %vm298_vm4, %v4931_v33, 0.0  ;;  %vm5159_vm11 = vweird.f32 %v6246_v61  ;;  %v10626_v33 = vld [vmem:[#allocation11_spill] sm:$0xff] }
 0x620   : > { %6247 = vrsqrt.f32 %v9967_v17  ;;  %v4804_v60 = vadd.f32 %v9542_v49, %v4768_v52  ;;  %5006 = vadd.xlane.f32.xlu2 %v5005_v46  ;;  %v4462_v13 = vadd.f32 %v9944_v5, %v4303_v56  ;;  %vm5160_vm13 = vmor %vm5158_vm12, %vm5159_vm11  ;;  %v3996_v50 = vadd.f32 %v10626_v33, %v10625_v38  ;;  %v10627_v46 = vld [vmem:[#allocation39_spill] sm:$0xff] }
 0x621   : > { %v5151_v21 = vsel %vm5150_vm9, %v6244_v63, %v5147_v40  ;;  %v5154_v2 = vmul.f32 %v6246_v61, %v5153_v11  ;;  %v4568_v63 = vpop.f32.mrf.mxu0  ;;  %v4261_v42 = vpop.f32.mrf.mxu2  ;;  %vm5168_vm0 = vweird.f32 %v9967_v17 }
 0x622   : > { %v5426_v59 = vmul.f32 %v5151_v21, %v9609_v62  ;;  %v4868_v51 = vmul.f32 0.2, %v4804_v60  ;;  %vm4836_vm10 = vcmp.ge.f32.partialorder %v4804_v60, 0.0  ;;  %v4420_v40 = vpop.f32.mrf.mxu3  ;;  %v4147_v15 = vadd.f32 %v10627_v46, %v3996_v50 }
 0x623   : > { %v5155_v24 = vmul.f32 0.5, %v5154_v2  ;;  %v4965_v28 = vpop.xlane.xlu0 %4964 }
 0x624   : > { %5458 = vst.msk [vmem:[%s9873_s24 + $0x20] sm:$0xff] %vm298_vm4, %v5426_v59  ;;  %v5045_v53 = vmul.f32 %v4965_v28, %v10610_v19  ;;  %v9983_v16 = vsel %vm4836_vm10, %v4804_v60, %v4868_v51  ;;  %v4613_v60 = vadd.f32 %v9955_v36, %v4462_v13  ;;  %v4304_v10 = vadd.f32 %v4258_v30, %v4147_v15  ;;  %v10017_v30 = vld [vmem:[%s10221_s4] ss:$0 sm:$0xff] }
 0x625   : > { %v5156_v4 = vsub.f32 1.5, %v5155_v24  ;;  %v4719_v43 = vpop.f32.mrf.mxu1  ;;  %v4932_v62 = vmul.f32 %v9983_v16, %v9983_v16 }
 0x626   : > { %v6248_v7 = vpop.eup %6247  ;;  %v9988_v18 = vadd.f32 1e-08, %v5045_v53  ;;  %v4769_v29 = vadd.f32 %v4719_v43, %v4612_v26  ;;  %v4463_v8 = vadd.f32 %v4417_v47, %v4304_v10  ;;  %v10629_v43 = vld [vmem:[#allocation34_spill] sm:$0xff] }
 0x627   : > { %v5157_v25 = vmul.f32 %v6246_v61, %v5156_v4  ;;  %v5163_v41 = vmul.f32 %v6248_v7, %v9967_v17  ;;  %v5008_v1 = vsel %vm298_vm4, %v4932_v62, 0.0  ;;  %vm5169_vm15 = vweird.f32 %v6248_v7  ;;  %v10628_v17 = vld [vmem:[#allocation74_spill] sm:$0xff] }
 0x628   : > { %6249 = vrsqrt.f32 %v9988_v18  ;;  %v4805_v39 = vadd.f32 %v9542_v49, %v4769_v29  ;;  %5009 = vadd.xlane.f32.xlu0 %v5008_v1  ;;  %vm5170_vm2 = vmor %vm5168_vm0, %vm5169_vm15  ;;  %v3997_v62 = vadd.f32 %v10629_v43, %v10628_v17  ;;  %v10630_v1 = vld [vmem:[#allocation12_spill] sm:$0xff]  ;;  %vm5178_vm6 = vweird.f32 %v9988_v18 }
 0x629   : > { %v5161_v12 = vsel %vm5160_vm13, %v6246_v61, %v5157_v25  ;;  %v5164_v3 = vmul.f32 %v6248_v7, %v5163_v41  ;;  %v4571_v51 = vpop.f32.mrf.mxu0  ;;  %v4264_v29 = vpop.f32.mrf.mxu2 }
 0x62a   : > { %v5427_v32 = vmul.f32 %v5161_v12, %v9623_v27  ;;  %v4869_v52 = vmul.f32 0.2, %v4805_v39  ;;  %vm4837_vm14 = vcmp.ge.f32.partialorder %v4805_v39, 0.0  ;;  %v4148_v13 = vadd.f32 %v10630_v1, %v3997_v62 }
 0x62b   : > { %v5165_v11 = vmul.f32 0.5, %v5164_v3  ;;  %v4968_v5 = vpop.xlane.xlu1 %4967 }
 0x62c   : > { %5459 = vst.msk [vmem:[%s9873_s24 + $0x28] sm:$0xff] %vm298_vm4, %v5427_v32  ;;  %v5046_v49 = vmul.f32 %v4968_v5, %v10610_v19  ;;  %v10004_v61 = vsel %vm4837_vm14, %v4805_v39, %v4869_v52  ;;  %v4614_v39 = vadd.f32 %v4568_v63, %v4463_v8  ;;  %v4305_v32 = vadd.f32 %v4261_v42, %v4148_v13 }
 0x62d   : > { %v5166_v21 = vsub.f32 1.5, %v5165_v11  ;;  %v4722_v2 = vpop.f32.mrf.mxu1  ;;  %v4933_v27 = vmul.f32 %v10004_v61, %v10004_v61 }
 0x62e   : > { %v6250_v34 = vpop.eup %6249  ;;  %v10008_v37 = vadd.f32 1e-08, %v5046_v49  ;;  %v4770_v59 = vadd.f32 %v4722_v2, %v4613_v60  ;;  %v4464_v15 = vadd.f32 %v4420_v40, %v4305_v32  ;;  %v10631_v2 = vld [vmem:[#allocation76_spill] sm:$0xff]  ;;  %v10633_v40 = vld [vmem:[#allocation14_spill] sm:$0xff] }
 0x62f   : > { %v5167_v24 = vmul.f32 %v6248_v7, %v5166_v21  ;;  %v5173_v36 = vmul.f32 %v6250_v34, %v9988_v18  ;;  %v5011_v28 = vsel %vm298_vm4, %v4933_v27, 0.0  ;;  %vm5179_vm5 = vweird.f32 %v6250_v34  ;;  %v10632_v27 = vld [vmem:[#allocation9_spill] sm:$0xff] }
 0x630   : > { %6251 = vrsqrt.f32 %v10008_v37  ;;  %v4806_v26 = vadd.f32 %v10017_v30, %v4770_v59  ;;  %5012 = vadd.xlane.f32.xlu1 %v5011_v28  ;;  %vm5180_vm7 = vmor %vm5178_vm6, %vm5179_vm5  ;;  %v3998_v10 = vadd.f32 %v10632_v27, %v10631_v2  ;;  %v4615_v8 = vadd.f32 %v4571_v51, %v4464_v15 }
 0x631   : > { %v5171_v53 = vsel %vm5170_vm2, %v6248_v7, %v5167_v24  ;;  %v5174_v4 = vmul.f32 %v6250_v34, %v5173_v36  ;;  %v4423_v7 = vpop.f32.mrf.mxu3  ;;  %v4574_v49 = vpop.f32.mrf.mxu0  ;;  %vm5188_vm9 = vweird.f32 %v10008_v37 }
 0x632   : > { %v5428_v56 = vmul.f32 %v5171_v53, %v9642_v9  ;;  %v4870_v47 = vmul.f32 0.2, %v4806_v26  ;;  %vm4838_vm3 = vcmp.ge.f32.partialorder %v4806_v26, 0.0  ;;  %v4149_v28 = vadd.f32 %v10633_v40, %v3998_v10 }
 0x633   : > { %v5175_v25 = vmul.f32 0.5, %v5174_v4  ;;  %v4971_v41 = vpop.xlane.xlu2 %4970 }
 0x634   : > { %5460 = vst.msk [vmem:[%s9873_s24 + $0x30] sm:$0xff] %vm298_vm4, %v5428_v56  ;;  %v5047_v12 = vmul.f32 %v4971_v41, %v10610_v19  ;;  %v10027_v3 = vsel %vm4838_vm3, %v4806_v26, %v4870_v47  ;;  %v4306_v62 = vadd.f32 %v4264_v29, %v4149_v28 }
 0x635   : > { %v5176_v38 = vsub.f32 1.5, %v5175_v25  ;;  %v4725_v33 = vpop.f32.mrf.mxu1  ;;  %v4934_v9 = vmul.f32 %v10027_v3, %v10027_v3 }
 0x636   : > { %v6252_v50 = vpop.eup %6251  ;;  %v10031_v52 = vadd.f32 1e-08, %v5047_v12  ;;  %v4771_v11 = vadd.f32 %v4725_v33, %v4614_v39  ;;  %v4465_v13 = vadd.f32 %v4423_v7, %v4306_v62  ;;  %v10635_v33 = vld [vmem:[#allocation41_spill] sm:$0xff]  ;;  %v10636_v7 = vld [vmem:[#allocation46_spill] sm:$0xff] }
 0x637   : > { %v5177_v5 = vmul.f32 %v6250_v34, %v5176_v38  ;;  %v5183_v63 = vmul.f32 %v6252_v50, %v10008_v37  ;;  %v5014_v46 = vsel %vm298_vm4, %v4934_v9, 0.0  ;;  %vm5189_vm8 = vweird.f32 %v6252_v50  ;;  %v10634_v38 = vld [vmem:[#allocation36_spill] sm:$0xff] }
 0x638   : > { %6253 = vrsqrt.f32 %v10031_v52  ;;  %v4807_v60 = vadd.f32 %v10017_v30, %v4771_v11  ;;  %5015 = vadd.xlane.f32.xlu2 %v5014_v46  ;;  %vm5190_vm10 = vmor %vm5188_vm9, %vm5189_vm8  ;;  %v3999_v9 = vadd.f32 %v10635_v33, %v10634_v38  ;;  %v4616_v15 = vadd.f32 %v4574_v49, %v4465_v13 }
 0x639   : > { %v5181_v42 = vsel %vm5180_vm7, %v6250_v34, %v5177_v5  ;;  %v5184_v21 = vmul.f32 %v6252_v50, %v5183_v63  ;;  %v4267_v34 = vpop.f32.mrf.mxu2  ;;  %v4426_v25 = vpop.f32.mrf.mxu3  ;;  %vm5198_vm13 = vweird.f32 %v10031_v52 }
 0x63a   : > { %v5429_v18 = vmul.f32 %v5181_v42, %v9660_v58  ;;  %v4871_v59 = vmul.f32 0.2, %v4807_v60  ;;  %vm4839_vm1 = vcmp.ge.f32.partialorder %v4807_v60, 0.0  ;;  %v4577_v11 = vpop.f32.mrf.mxu0  ;;  %v4150_v46 = vadd.f32 %v10636_v7, %v3999_v9 }
 0x63b   : > { %v5185_v24 = vmul.f32 0.5, %v5184_v21  ;;  %v4974_v36 = vpop.xlane.xlu0 %4973 }
 0x63c   : > { %5461 = vst.msk [vmem:[%s9873_s24 + $0x38] sm:$0xff] %vm298_vm4, %v5429_v18  ;;  %v5048_v26 = vmul.f32 %v4974_v36, %v10610_v19  ;;  %v10045_v53 = vsel %vm4839_vm1, %v4807_v60, %v4871_v59  ;;  %v4307_v27 = vadd.f32 %v4267_v34, %v4150_v46 }
 0x63d   : > { %v5186_v4 = vsub.f32 1.5, %v5185_v24  ;;  %v4728_v17 = vpop.f32.mrf.mxu1  ;;  %v4935_v58 = vmul.f32 %v10045_v53, %v10045_v53 }
 0x63e   : > { %v6254_v43 = vpop.eup %6253  ;;  %v10049_v56 = vadd.f32 1e-08, %v5048_v26  ;;  %v4772_v47 = vadd.f32 %v4728_v17, %v4615_v8  ;;  %v4466_v40 = vadd.f32 %v4426_v25, %v4307_v27  ;;  %v10638_v17 = vld [vmem:[#allocation10_spill] sm:$0xff]  ;;  %v10639_v25 = vld [vmem:[#allocation47_spill] sm:$0xff] }
 0x63f   : > { %v5187_v51 = vmul.f32 %v6252_v50, %v5186_v4  ;;  %v5193_v41 = vmul.f32 %v6254_v43, %v10031_v52  ;;  %v5017_v1 = vsel %vm298_vm4, %v4935_v58, 0.0  ;;  %vm5199_vm12 = vweird.f32 %v6254_v43  ;;  %v10637_v4 = vld [vmem:[#allocation35_spill] sm:$0xff] }
 0x640   : > { %6255 = vrsqrt.f32 %v10049_v56  ;;  %v4808_v39 = vadd.f32 %v10017_v30, %v4772_v47  ;;  %5018 = vadd.xlane.f32.xlu0 %v5017_v1  ;;  %vm5200_vm14 = vmor %vm5198_vm13, %vm5199_vm12  ;;  %v4000_v58 = vadd.f32 %v10638_v17, %v10637_v4  ;;  %v4617_v1 = vadd.f32 %v4577_v11, %v4466_v40 }
 0x641   : > { %v5191_v29 = vsel %vm5190_vm10, %v6252_v50, %v5187_v51  ;;  %v5194_v12 = vmul.f32 %v6254_v43, %v5193_v41  ;;  %v4270_v59 = vpop.f32.mrf.mxu2  ;;  %v4429_v8 = vpop.f32.mrf.mxu3  ;;  %vm5208_vm2 = vweird.f32 %v10049_v56 }
 0x642   : > { %v5430_v32 = vmul.f32 %v5191_v29, %v9680_v0  ;;  %v4872_v37 = vmul.f32 0.2, %v4808_v39  ;;  %vm4840_vm11 = vcmp.ge.f32.partialorder %v4808_v39, 0.0  ;;  %v4151_v41 = vadd.f32 %v10639_v25, %v4000_v58 }
 0x643   : > { %v5195_v5 = vmul.f32 0.5, %v5194_v12  ;;  %v4977_v63 = vpop.xlane.xlu1 %4976 }
 0x644   : > { %5462 = vst.msk [vmem:[%s9873_s24 + $0x40] sm:$0xff] %vm298_vm4, %v5430_v32  ;;  %v5049_v60 = vmul.f32 %v4977_v63, %v10610_v19  ;;  %v10063_v42 = vsel %vm4840_vm11, %v4808_v39, %v4872_v37  ;;  %v4308_v33 = vadd.f32 %v4270_v59, %v4151_v41 }
 0x645   : > { %v5196_v50 = vsub.f32 1.5, %v5195_v5  ;;  %v4731_v21 = vpop.f32.mrf.mxu1  ;;  %v4936_v0 = vmul.f32 %v10063_v42, %v10063_v42 }
 0x646   : > { %v6256_v2 = vpop.eup %6255  ;;  %v10067_v10 = vadd.f32 1e-08, %v5049_v60  ;;  %v4773_v18 = vadd.f32 %v4731_v21, %v4616_v15  ;;  %v4467_v63 = vadd.f32 %v4429_v8, %v4308_v33  ;;  %v10641_v21 = vld [vmem:[#allocation37_spill] sm:$0xff] }
 0x647   : > { %v5197_v24 = vmul.f32 %v6254_v43, %v5196_v50  ;;  %v5203_v49 = vmul.f32 %v6256_v2, %v10049_v56  ;;  %v5020_v36 = vsel %vm298_vm4, %v4936_v0, 0.0  ;;  %vm5209_vm0 = vweird.f32 %v6256_v2  ;;  %v10640_v50 = vld [vmem:[#allocation42_spill] sm:$0xff] }
 0x648   : > { %6257 = vrsqrt.f32 %v10067_v10  ;;  %v4809_v28 = vadd.f32 %v10017_v30, %v4773_v18  ;;  %5021 = vadd.xlane.f32.xlu1 %v5020_v36  ;;  %vm5210_vm3 = vmor %vm5208_vm2, %vm5209_vm0  ;;  %v4001_v0 = vadd.f32 %v10641_v21, %v10640_v50  ;;  %vm5218_vm7 = vweird.f32 %v10067_v10 }
 0x649   : > { %v5201_v26 = vsel %vm5200_vm14, %v6254_v43, %v5197_v24  ;;  %v5204_v34 = vmul.f32 %v6256_v2, %v5203_v49  ;;  %v4580_v43 = vpop.f32.mrf.mxu0  ;;  %v4273_v46 = vpop.f32.mrf.mxu2  ;;  %v10642_v49 = vld [vmem:[#allocation16_spill] sm:$0xff] }
 0x64a   : > { %v5431_v52 = vmul.f32 %v5201_v26, %v9698_v23  ;;  %v4873_v62 = vmul.f32 0.2, %v4809_v28  ;;  %vm4841_vm15 = vcmp.ge.f32.partialorder %v4809_v28, 0.0  ;;  %v4432_v18 = vpop.f32.mrf.mxu3  ;;  %v4152_v36 = vadd.f32 %v10642_v49, %v4001_v0 }
 0x64b   : > { %v5205_v47 = vmul.f32 0.5, %v5204_v34  ;;  %v4980_v51 = vpop.xlane.xlu2 %4979  ;;  %v4618_v40 = vadd.f32 %v4580_v43, %v4467_v63  ;;  %v10643_v43 = vld [vmem:[#allocation44_spill] sm:$0xff] }
 0x64c   : > { %5463 = vst.msk [vmem:[%s9873_s24 + $0x48] sm:$0xff] %vm298_vm4, %v5431_v52  ;;  %v5050_v13 = vmul.f32 %v4980_v51, %v10610_v19  ;;  %v10081_v39 = vsel %vm4841_vm15, %v4809_v28, %v4873_v62  ;;  %v4309_v4 = vadd.f32 %v4273_v46, %v4152_v36 }
 0x64d   : > { %v5206_v29 = vsub.f32 1.5, %v5205_v47  ;;  %v4734_v12 = vpop.f32.mrf.mxu1  ;;  %v4937_v23 = vmul.f32 %v10081_v39, %v10081_v39 }
 0x64e   : > { %v6258_v38 = vpop.eup %6257  ;;  %v10085_v9 = vadd.f32 1e-08, %v5050_v13  ;;  %v4774_v32 = vadd.f32 %v4734_v12, %v4617_v1  ;;  %v4468_v25 = vadd.f32 %v4432_v18, %v4309_v4 }
 0x64f   : > { %v5207_v37 = vmul.f32 %v6256_v2, %v5206_v29  ;;  %v5213_v11 = vmul.f32 %v6258_v38, %v10067_v10  ;;  %v5023_v5 = vsel %vm298_vm4, %v4937_v23, 0.0  ;;  %vm5219_vm6 = vweird.f32 %v6258_v38  ;;  %v10644_v29 = vld [vmem:[#allocation33_spill] sm:$0xff] }
 0x650   : > { %6259 = vrsqrt.f32 %v10085_v9  ;;  %v4810_v7 = vadd.f32 %v10017_v30, %v4774_v32  ;;  %5024 = vadd.xlane.f32.xlu2 %v5023_v5  ;;  %vm5220_vm1 = vmor %vm5218_vm7, %vm5219_vm6  ;;  %v4002_v12 = vadd.f32 %v10644_v29, %v10643_v43  ;;  %vm5228_vm10 = vweird.f32 %v10085_v9 }
 0x651   : > { %v5211_v15 = vsel %vm5210_vm3, %v6256_v2, %v5207_v37  ;;  %v5214_v60 = vmul.f32 %v6258_v38, %v5213_v11  ;;  %v4583_v52 = vpop.f32.mrf.mxu0  ;;  %v4276_v33 = vpop.f32.mrf.mxu2  ;;  %v10645_v11 = vld [vmem:[#allocation48_spill] sm:$0xff] }
 0x652   : > { %v5432_v56 = vmul.f32 %v5211_v15, %v9716_v44  ;;  %v4874_v27 = vmul.f32 0.2, %v4810_v7  ;;  %vm4842_vm5 = vcmp.ge.f32.partialorder %v4810_v7, 0.0  ;;  %v4153_v5 = vadd.f32 %v10645_v11, %v4002_v12 }
 0x653   : > { %v5215_v59 = vmul.f32 0.5, %v5214_v60  ;;  %v4983_v24 = vpop.xlane.xlu0 %4982  ;;  %v4619_v63 = vadd.f32 %v4583_v52, %v4468_v25 }
 0x654   : > { %5464 = vst.msk [vmem:[%s9873_s24 + $0x50] sm:$0xff] %vm298_vm4, %v5432_v56  ;;  %v5051_v28 = vmul.f32 %v4983_v24, %v10610_v19  ;;  %v10099_v8 = vsel %vm4842_vm5, %v4810_v7, %v4874_v27  ;;  %v4310_v21 = vadd.f32 %v4276_v33, %v4153_v5 }
 0x655   : > { %v5216_v2 = vsub.f32 1.5, %v5215_v59  ;;  %v4737_v26 = vpop.f32.mrf.mxu1  ;;  %v4938_v44 = vmul.f32 %v10099_v8, %v10099_v8 }
 0x656   : > { %v6260_v34 = vpop.eup %6259  ;;  %v10103_v17 = vadd.f32 1e-08, %v5051_v28  ;;  %v4775_v58 = vadd.f32 %v4737_v26, %v4618_v40 }
 0x657   : > { %v5217_v62 = vmul.f32 %v6258_v38, %v5216_v2  ;;  %v5223_v47 = vmul.f32 %v6260_v34, %v10085_v9  ;;  %v5026_v51 = vsel %vm298_vm4, %v4938_v44, 0.0  ;;  %vm5229_vm9 = vweird.f32 %v6260_v34 }
 0x658   : > { %6261 = vrsqrt.f32 %v10103_v17  ;;  %v4811_v41 = vadd.f32 %v10017_v30, %v4775_v58  ;;  %5027 = vadd.xlane.f32.xlu0 %v5026_v51  ;;  %vm5230_vm11 = vmor %vm5228_vm10, %vm5229_vm9  ;;  %vm5238_vm14 = vweird.f32 %v10103_v17 }
 0x659   : > { %v5221_v1 = vsel %vm5220_vm1, %v6258_v38, %v5217_v62  ;;  %v5224_v13 = vmul.f32 %v6260_v34, %v5223_v47  ;;  %v4435_v38 = vpop.f32.mrf.mxu3  ;;  %v4586_v36 = vpop.f32.mrf.mxu0 }
 0x65a   : > { %v5433_v23 = vmul.f32 %v5221_v1, %v9736_v35  ;;  %v4875_v10 = vmul.f32 0.2, %v4811_v41  ;;  %vm4843_vm8 = vcmp.ge.f32.partialorder %v4811_v41, 0.0  ;;  %v4469_v24 = vadd.f32 %v4435_v38, %v4310_v21 }
 0x65b   : > { %v5225_v32 = vmul.f32 0.5, %v5224_v13  ;;  %v4986_v37 = vpop.xlane.xlu1 %4985 }
 0x65c   : > { %5465 = vst.msk [vmem:[%s9873_s24 + $0x58] sm:$0xff] %vm298_vm4, %v5433_v23  ;;  %v5052_v7 = vmul.f32 %v4986_v37, %v10610_v19  ;;  %v10117_v46 = vsel %vm4843_vm8, %v4811_v41, %v4875_v10  ;;  %v4620_v4 = vadd.f32 %v4586_v36, %v4469_v24 }
 0x65d   : > { %v5226_v15 = vsub.f32 1.5, %v5225_v32  ;;  %v4740_v60 = vpop.f32.mrf.mxu1  ;;  %v4939_v35 = vmul.f32 %v10117_v46, %v10117_v46 }
 0x65e   : > { %v6262_v50 = vpop.eup %6261  ;;  %v5084_v0 = vadd.f32 1e-08, %v5052_v7  ;;  %v4776_v56 = vadd.f32 %v4740_v60, %v4619_v63 }
 0x65f   : > { %v5227_v27 = vmul.f32 %v6260_v34, %v5226_v15  ;;  %v5233_v18 = vmul.f32 %v6262_v50, %v10103_v17  ;;  %v5029_v59 = vsel %vm298_vm4, %v4939_v35, 0.0  ;;  %vm5239_vm13 = vweird.f32 %v6262_v50 }
 0x660   : > { %6263 = vrsqrt.f32 %v5084_v0  ;;  %v4812_v49 = vadd.f32 %v10017_v30, %v4776_v56  ;;  %5030 = vadd.xlane.f32.xlu1 %v5029_v59  ;;  %vm5240_vm15 = vmor %vm5238_vm14, %vm5239_vm13  ;;  %vm5248_vm3 = vweird.f32 %v5084_v0 }
 0x661   : > { %v5231_v40 = vsel %vm5230_vm11, %v6260_v34, %v5227_v27  ;;  %v5234_v28 = vmul.f32 %v6262_v50, %v5233_v18 }
 0x662   : > { %v5434_v2 = vmul.f32 %v5231_v40, %v9754_v45  ;;  %v4876_v26 = vmul.f32 0.2, %v4812_v49  ;;  %vm4844_vm12 = vcmp.ge.f32.partialorder %v4812_v49, 0.0 }
 0x663   : > { %v5235_v44 = vmul.f32 0.5, %v5234_v28  ;;  %v4989_v9 = vpop.xlane.xlu2 %4988 }
 0x664   : > { %5466 = vst.msk [vmem:[%s9873_s24 + $0x60] sm:$0xff] %vm298_vm4, %v5434_v2  ;;  %v5053_v58 = vmul.f32 %v4989_v9, %v10610_v19  ;;  %v10129_v52 = vsel %vm4844_vm12, %v4812_v49, %v4876_v26 }
 0x665   : > { %v5236_v62 = vsub.f32 1.5, %v5235_v44  ;;  %v4743_v47 = vpop.f32.mrf.mxu1  ;;  %v4940_v34 = vmul.f32 %v10129_v52, %v10129_v52 }
 0x666   : > { %v6264_v51 = vpop.eup %6263  ;;  %v5085_v25 = vadd.f32 1e-08, %v5053_v58  ;;  %v4777_v45 = vadd.f32 %v4743_v47, %v4620_v4 }
 0x667   : > { %v5237_v41 = vmul.f32 %v6262_v50, %v5236_v62  ;;  %v5243_v1 = vmul.f32 %v6264_v51, %v5084_v0  ;;  %v5032_v13 = vsel %vm298_vm4, %v4940_v34, 0.0  ;;  %vm5249_vm2 = vweird.f32 %v6264_v51 }
 0x668   : > { %6265 = vrsqrt.f32 %v5085_v25  ;;  %v4813_v43 = vadd.f32 %v10017_v30, %v4777_v45  ;;  %5033 = vadd.xlane.f32.xlu2 %v5032_v13  ;;  %vm5250_vm5 = vmor %vm5248_vm3, %vm5249_vm2  ;;  %vm5258_vm7 = vweird.f32 %v5085_v25 }
 0x669   : > { %v5241_v29 = vsel %vm5240_vm15, %v6262_v50, %v5237_v41  ;;  %v5244_v12 = vmul.f32 %v6264_v51, %v5243_v1 }
 0x66a   : > { %v5435_v23 = vmul.f32 %v5241_v29, %v9776_v48  ;;  %v4877_v10 = vmul.f32 0.2, %v4813_v43  ;;  %vm4845_vm0 = vcmp.ge.f32.partialorder %v4813_v43, 0.0 }
 0x66b   : > { %v5245_v33 = vmul.f32 0.5, %v5244_v12  ;;  %v4992_v32 = vpop.xlane.xlu0 %4991 }
 0x66c   : > { %5467 = vst.msk [vmem:[%s9873_s24 + $0x68] sm:$0xff] %vm298_vm4, %v5435_v23  ;;  %v5054_v17 = vmul.f32 %v4992_v32, %v10610_v19  ;;  %v10140_v37 = vsel %vm4845_vm0, %v4813_v43, %v4877_v10 }
 0x66d   : > { %v5246_v11 = vsub.f32 1.5, %v5245_v33  ;;  %v4941_v30 = vmul.f32 %v10140_v37, %v10140_v37 }
 0x66e   : > { %v6266_v5 = vpop.eup %6265  ;;  %v5086_v63 = vadd.f32 1e-08, %v5054_v17 }
 0x66f   : > { %v5247_v7 = vmul.f32 %v6264_v51, %v5246_v11  ;;  %v5253_v48 = vmul.f32 %v6266_v5, %v5085_v25  ;;  %v5035_v38 = vsel %vm298_vm4, %v4941_v30, 0.0  ;;  %vm5259_vm6 = vweird.f32 %v6266_v5 }
 0x670   : > { %6267 = vrsqrt.f32 %v5086_v63  ;;  %5036 = vadd.xlane.f32.xlu0 %v5035_v38  ;;  %vm5260_vm1 = vmor %vm5258_vm7, %vm5259_vm6  ;;  %vm5268_vm9 = vweird.f32 %v5086_v63 }
 0x671   : > { %v5251_v15 = vsel %vm5250_vm5, %v6264_v51, %v5247_v7  ;;  %v5254_v60 = vmul.f32 %v6266_v5, %v5253_v48 }
 0x672   : > { %v5436_v35 = vmul.f32 %v5251_v15, %v9794_v57 }
 0x673   : > { %v5255_v50 = vmul.f32 0.5, %v5254_v60  ;;  %v4995_v21 = vpop.xlane.xlu1 %4994 }
 0x674   : > { %5468 = vst.msk [vmem:[%s9873_s24 + $0x70] sm:$0xff] %vm298_vm4, %v5436_v35  ;;  %v5055_v56 = vmul.f32 %v4995_v21, %v10610_v19 }
 0x675   : > { %v5256_v27 = vsub.f32 1.5, %v5255_v50 }
 0x676   : > { %v6268_v0 = vpop.eup %6267  ;;  %v5087_v18 = vadd.f32 1e-08, %v5055_v56 }
 0x677   : > { %v5257_v59 = vmul.f32 %v6266_v5, %v5256_v27  ;;  %v5263_v24 = vmul.f32 %v6268_v0, %v5086_v63  ;;  %vm5269_vm8 = vweird.f32 %v6268_v0 }
 0x678   : > { %6269 = vrsqrt.f32 %v5087_v18  ;;  %vm5270_vm10 = vmor %vm5268_vm9, %vm5269_vm8  ;;  %vm5278_vm12 = vweird.f32 %v5087_v18 }
 0x679   : > { %v5261_v49 = vsel %vm5260_vm1, %v6266_v5, %v5257_v59  ;;  %v5264_v36 = vmul.f32 %v6268_v0, %v5263_v24 }
 0x67a   : > { %v5437_v57 = vmul.f32 %v5261_v49, %v9813_v22 }
 0x67b   : > { %v5265_v40 = vmul.f32 0.5, %v5264_v36  ;;  %v4998_v28 = vpop.xlane.xlu2 %4997 }
 0x67c   : > { %5469 = vst.msk [vmem:[%s9873_s24 + $0x78] sm:$0xff] %vm298_vm4, %v5437_v57  ;;  %v5056_v2 = vmul.f32 %v4998_v28, %v10610_v19 }
 0x67d   : > { %v5266_v26 = vsub.f32 1.5, %v5265_v40 }
 0x67e   : > { %v6270_v44 = vpop.eup %6269  ;;  %v5088_v9 = vadd.f32 1e-08, %v5056_v2 }
 0x67f   : > { %v5267_v4 = vmul.f32 %v6268_v0, %v5266_v26  ;;  %v5273_v58 = vmul.f32 %v6270_v44, %v5087_v18  ;;  %vm5279_vm11 = vweird.f32 %v6270_v44 }
 0x680   : > { %6271 = vrsqrt.f32 %v5088_v9  ;;  %vm5280_vm13 = vmor %vm5278_vm12, %vm5279_vm11  ;;  %vm5288_vm15 = vweird.f32 %v5088_v9 }
 0x681   : > { %v5271_v62 = vsel %vm5270_vm10, %v6268_v0, %v5267_v4  ;;  %v5274_v47 = vmul.f32 %v6270_v44, %v5273_v58 }
 0x682   : > { %v5438_v22 = vmul.f32 %v5271_v62, %v9832_v14 }
 0x683   : > { %v5275_v34 = vmul.f32 0.5, %v5274_v47  ;;  %v5001_v51 = vpop.xlane.xlu0 %5000 }
 0x684   : > { %5470 = vst.msk [vmem:[%s9873_s24 + $0x80] sm:$0xff] %vm298_vm4, %v5438_v22  ;;  %v5057_v25 = vmul.f32 %v5001_v51, %v10610_v19 }
 0x685   : > { %v5276_v45 = vsub.f32 1.5, %v5275_v34 }
 0x686   : > { %v6272_v41 = vpop.eup %6271  ;;  %v5089_v1 = vadd.f32 1e-08, %v5057_v25 }
 0x687   : > { %v5277_v13 = vmul.f32 %v6270_v44, %v5276_v45  ;;  %v5283_v43 = vmul.f32 %v6272_v41, %v5088_v9  ;;  %vm5289_vm14 = vweird.f32 %v6272_v41 }
 0x688   : > { %6273 = vrsqrt.f32 %v5089_v1  ;;  %vm5290_vm0 = vmor %vm5288_vm15, %vm5289_vm14  ;;  %vm5298_vm3 = vweird.f32 %v5089_v1 }
 0x689   : > { %v5281_v29 = vsel %vm5280_vm13, %v6270_v44, %v5277_v13  ;;  %v5284_v12 = vmul.f32 %v6272_v41, %v5283_v43 }
 0x68a   : > { %v5439_v14 = vmul.f32 %v5281_v29, %v9852_v6 }
 0x68b   : > { %v5285_v23 = vmul.f32 0.5, %v5284_v12  ;;  %v5004_v10 = vpop.xlane.xlu1 %5003 }
 0x68c   : > { %5471 = vst.msk [vmem:[%s9873_s24 + $0x88] sm:$0xff] %vm298_vm4, %v5439_v14  ;;  %v5058_v33 = vmul.f32 %v5004_v10, %v10610_v19 }
 0x68d   : > { %v5286_v32 = vsub.f32 1.5, %v5285_v23 }
 0x68e   : > { %v6274_v17 = vpop.eup %6273  ;;  %v5090_v11 = vadd.f32 1e-08, %v5058_v33 }
 0x68f   : > { %v5287_v30 = vmul.f32 %v6272_v41, %v5286_v32  ;;  %v5293_v5 = vmul.f32 %v6274_v17, %v5089_v1  ;;  %vm5299_vm2 = vweird.f32 %v6274_v17 }
 0x690   : > { %6275 = vrsqrt.f32 %v5090_v11  ;;  %vm5300_vm5 = vmor %vm5298_vm3, %vm5299_vm2  ;;  %vm5308_vm7 = vweird.f32 %v5090_v11 }
 0x691   : > { %v5291_v63 = vsel %vm5290_vm0, %v6272_v41, %v5287_v30  ;;  %v5294_v7 = vmul.f32 %v6274_v17, %v5293_v5 }
 0x692   : > { %v5440_v6 = vmul.f32 %v5291_v63, %v9885_v31 }
 0x693   : > { %v5295_v48 = vmul.f32 0.5, %v5294_v7  ;;  %v5007_v38 = vpop.xlane.xlu2 %5006 }
 0x694   : > { %5472 = vst.msk [vmem:[%s9873_s24 + $0x90] sm:$0xff] %vm298_vm4, %v5440_v6  ;;  %v5059_v15 = vmul.f32 %v5007_v38, %v10610_v19 }
 0x695   : > { %v5296_v60 = vsub.f32 1.5, %v5295_v48 }
 0x696   : > { %v6276_v35 = vpop.eup %6275  ;;  %v5091_v50 = vadd.f32 1e-08, %v5059_v15 }
 0x697   : > { %v5297_v21 = vmul.f32 %v6274_v17, %v5296_v60  ;;  %v5303_v56 = vmul.f32 %v6276_v35, %v5090_v11  ;;  %vm5309_vm6 = vweird.f32 %v6276_v35 }
 0x698   : > { %6277 = vrsqrt.f32 %v5091_v50  ;;  %vm5310_vm1 = vmor %vm5308_vm7, %vm5309_vm6  ;;  %vm5318_vm9 = vweird.f32 %v5091_v50 }
 0x699   : > { %v5301_v27 = vsel %vm5300_vm5, %v6274_v17, %v5297_v21  ;;  %v5304_v0 = vmul.f32 %v6276_v35, %v5303_v56 }
 0x69a   : > { %v5441_v31 = vmul.f32 %v5301_v27, %v9910_v55 }
 0x69b   : > { %v5305_v18 = vmul.f32 0.5, %v5304_v0  ;;  %v5010_v59 = vpop.xlane.xlu0 %5009 }
 0x69c   : > { %5473 = vst.msk [vmem:[%s9873_s24 + $0x98] sm:$0xff] %vm298_vm4, %v5441_v31  ;;  %v5060_v24 = vmul.f32 %v5010_v59, %v10610_v19 }
 0x69d   : > { %v5306_v49 = vsub.f32 1.5, %v5305_v18 }
 0x69e   : > { %v6278_v36 = vpop.eup %6277  ;;  %v5092_v57 = vadd.f32 1e-08, %v5060_v24 }
 0x69f   : > { %v5307_v40 = vmul.f32 %v6276_v35, %v5306_v49  ;;  %v5313_v28 = vmul.f32 %v6278_v36, %v5091_v50  ;;  %vm5319_vm8 = vweird.f32 %v6278_v36 }
 0x6a0   : > { %6279 = vrsqrt.f32 %v5092_v57  ;;  %vm5320_vm10 = vmor %vm5318_vm9, %vm5319_vm8  ;;  %vm5328_vm12 = vweird.f32 %v5092_v57 }
 0x6a1   : > { %v5311_v2 = vsel %vm5310_vm1, %v6276_v35, %v5307_v40  ;;  %v5314_v26 = vmul.f32 %v6278_v36, %v5313_v28 }
 0x6a2   : > { %v5442_v55 = vmul.f32 %v5311_v2, %v9935_v54 }
 0x6a3   : > { %v5315_v44 = vmul.f32 0.5, %v5314_v26  ;;  %v5013_v9 = vpop.xlane.xlu1 %5012 }
 0x6a4   : > { %5474 = vst.msk [vmem:[%s9873_s24 + $0xa0] sm:$0xff] %vm298_vm4, %v5442_v55  ;;  %v5061_v4 = vmul.f32 %v5013_v9, %v10610_v19 }
 0x6a5   : > { %v5316_v58 = vsub.f32 1.5, %v5315_v44 }
 0x6a6   : > { %v6280_v62 = vpop.eup %6279  ;;  %v5093_v47 = vadd.f32 1e-08, %v5061_v4 }
 0x6a7   : > { %v5317_v22 = vmul.f32 %v6278_v36, %v5316_v58  ;;  %v5323_v34 = vmul.f32 %v6280_v62, %v5092_v57  ;;  %vm5329_vm11 = vweird.f32 %v6280_v62 }
 0x6a8   : > { %6281 = vrsqrt.f32 %v5093_v47  ;;  %vm5330_vm13 = vmor %vm5328_vm12, %vm5329_vm11  ;;  %vm5338_vm15 = vweird.f32 %v5093_v47 }
 0x6a9   : > { %v5321_v51 = vsel %vm5320_vm10, %v6278_v36, %v5317_v22  ;;  %v5324_v25 = vmul.f32 %v6280_v62, %v5323_v34 }
 0x6aa   : > { %v5443_v54 = vmul.f32 %v5321_v51, %v9962_v20 }
 0x6ab   : > { %v5325_v45 = vmul.f32 0.5, %v5324_v25  ;;  %v5016_v41 = vpop.xlane.xlu2 %5015 }
 0x6ac   : > { %5475 = vst.msk [vmem:[%s9873_s24 + $0xa8] sm:$0xff] %vm298_vm4, %v5443_v54  ;;  %v5062_v1 = vmul.f32 %v5016_v41, %v10610_v19 }
 0x6ad   : > { %v5326_v13 = vsub.f32 1.5, %v5325_v45 }
 0x6ae   : > { %v6282_v43 = vpop.eup %6281  ;;  %v5094_v29 = vadd.f32 1e-08, %v5062_v1 }
 0x6af   : > { %v5327_v12 = vmul.f32 %v6280_v62, %v5326_v13  ;;  %v5333_v14 = vmul.f32 %v6282_v43, %v5093_v47  ;;  %vm5339_vm14 = vweird.f32 %v6282_v43 }
 0x6b0   : > { %6283 = vrsqrt.f32 %v5094_v29  ;;  %vm5340_vm0 = vmor %vm5338_vm15, %vm5339_vm14  ;;  %vm5348_vm3 = vweird.f32 %v5094_v29 }
 0x6b1   : > { %v5331_v23 = vsel %vm5330_vm13, %v6280_v62, %v5327_v12  ;;  %v5334_v10 = vmul.f32 %v6282_v43, %v5333_v14 }
 0x6b2   : > { %v5444_v20 = vmul.f32 %v5331_v23, %v9983_v16 }
 0x6b3   : > { %v5335_v33 = vmul.f32 0.5, %v5334_v10  ;;  %v5019_v32 = vpop.xlane.xlu0 %5018 }
 0x6b4   : > { %5476 = vst.msk [vmem:[%s9873_s24 + $0xb0] sm:$0xff] %vm298_vm4, %v5444_v20  ;;  %v5063_v17 = vmul.f32 %v5019_v32, %v10610_v19 }
 0x6b5   : > { %v5336_v11 = vsub.f32 1.5, %v5335_v33 }
 0x6b6   : > { %v6284_v30 = vpop.eup %6283  ;;  %v5095_v5 = vadd.f32 1e-08, %v5063_v17 }
 0x6b7   : > { %v5337_v63 = vmul.f32 %v6282_v43, %v5336_v11  ;;  %v5343_v7 = vmul.f32 %v6284_v30, %v5094_v29  ;;  %vm5349_vm2 = vweird.f32 %v6284_v30 }
 0x6b8   : > { %6285 = vrsqrt.f32 %v5095_v5  ;;  %vm5350_vm5 = vmor %vm5348_vm3, %vm5349_vm2  ;;  %vm5358_vm7 = vweird.f32 %v5095_v5 }
 0x6b9   : > { %v5341_v6 = vsel %vm5340_vm0, %v6282_v43, %v5337_v63  ;;  %v5344_v48 = vmul.f32 %v6284_v30, %v5343_v7 }
 0x6ba   : > { %v5445_v16 = vmul.f32 %v5341_v6, %v10004_v61 }
 0x6bb   : > { %v5345_v38 = vmul.f32 0.5, %v5344_v48  ;;  %v5022_v15 = vpop.xlane.xlu1 %5021 }
 0x6bc   : > { %5477 = vst.msk [vmem:[%s9873_s24 + $0xb8] sm:$0xff] %vm298_vm4, %v5445_v16  ;;  %v5064_v60 = vmul.f32 %v5022_v15, %v10610_v19 }
 0x6bd   : > { %v5346_v35 = vsub.f32 1.5, %v5345_v38 }
 0x6be   : > { %v6286_v50 = vpop.eup %6285  ;;  %v5096_v21 = vadd.f32 1e-08, %v5064_v60 }
 0x6bf   : > { %v5347_v56 = vmul.f32 %v6284_v30, %v5346_v35  ;;  %v5353_v27 = vmul.f32 %v6286_v50, %v5095_v5  ;;  %vm5359_vm6 = vweird.f32 %v6286_v50 }
 0x6c0   : > { %6287 = vrsqrt.f32 %v5096_v21  ;;  %vm5360_vm1 = vmor %vm5358_vm7, %vm5359_vm6  ;;  %vm5368_vm9 = vweird.f32 %v5096_v21 }
 0x6c1   : > { %v5351_v0 = vsel %vm5350_vm5, %v6284_v30, %v5347_v56  ;;  %v5354_v31 = vmul.f32 %v6286_v50, %v5353_v27 }
 0x6c2   : > { %v5446_v61 = vmul.f32 %v5351_v0, %v10027_v3 }
 0x6c3   : > { %v5355_v18 = vmul.f32 0.5, %v5354_v31  ;;  %v5025_v59 = vpop.xlane.xlu2 %5024 }
 0x6c4   : > { %5478 = vst.msk [vmem:[%s9873_s24 + $0xc0] sm:$0xff] %vm298_vm4, %v5446_v61  ;;  %v5065_v24 = vmul.f32 %v5025_v59, %v10610_v19 }
 0x6c5   : > { %v5356_v49 = vsub.f32 1.5, %v5355_v18 }
 0x6c6   : > { %v6288_v36 = vpop.eup %6287  ;;  %v5097_v57 = vadd.f32 1e-08, %v5065_v24 }
 0x6c7   : > { %v5357_v40 = vmul.f32 %v6286_v50, %v5356_v49  ;;  %v5363_v28 = vmul.f32 %v6288_v36, %v5096_v21  ;;  %vm5369_vm8 = vweird.f32 %v6288_v36 }
 0x6c8   : > { %6289 = vrsqrt.f32 %v5097_v57  ;;  %vm5370_vm10 = vmor %vm5368_vm9, %vm5369_vm8  ;;  %vm5378_vm12 = vweird.f32 %v5097_v57 }
 0x6c9   : > { %v5361_v2 = vsel %vm5360_vm1, %v6286_v50, %v5357_v40  ;;  %v5364_v26 = vmul.f32 %v6288_v36, %v5363_v28 }
 0x6ca   : > { %v5447_v3 = vmul.f32 %v5361_v2, %v10045_v53 }
 0x6cb   : > { %v5365_v55 = vmul.f32 0.5, %v5364_v26  ;;  %v5028_v44 = vpop.xlane.xlu0 %5027 }
 0x6cc   : > { %5479 = vst.msk [vmem:[%s9873_s24 + $0xc8] sm:$0xff] %vm298_vm4, %v5447_v3  ;;  %v5066_v9 = vmul.f32 %v5028_v44, %v10610_v19 }
 0x6cd   : > { %v5366_v4 = vsub.f32 1.5, %v5365_v55 }
 0x6ce   : > { %v6290_v58 = vpop.eup %6289  ;;  %v5098_v62 = vadd.f32 1e-08, %v5066_v9 }
 0x6cf   : > { %v5367_v47 = vmul.f32 %v6288_v36, %v5366_v4  ;;  %v5373_v22 = vmul.f32 %v6290_v58, %v5097_v57  ;;  %vm5379_vm11 = vweird.f32 %v6290_v58 }
 0x6d0   : > { %6291 = vrsqrt.f32 %v5098_v62  ;;  %vm5380_vm13 = vmor %vm5378_vm12, %vm5379_vm11  ;;  %vm5388_vm15 = vweird.f32 %v5098_v62 }
 0x6d1   : > { %v5371_v34 = vsel %vm5370_vm10, %v6288_v36, %v5367_v47  ;;  %v5374_v51 = vmul.f32 %v6290_v58, %v5373_v22 }
 0x6d2   : > { %v5448_v53 = vmul.f32 %v5371_v34, %v10063_v42 }
 0x6d3   : > { %v5375_v25 = vmul.f32 0.5, %v5374_v51  ;;  %v5031_v54 = vpop.xlane.xlu1 %5030 }
 0x6d4   : > { %5480 = vst.msk [vmem:[%s9873_s24 + $0xd0] sm:$0xff] %vm298_vm4, %v5448_v53  ;;  %v5067_v45 = vmul.f32 %v5031_v54, %v10610_v19 }
 0x6d5   : > { %v5376_v41 = vsub.f32 1.5, %v5375_v25 }
 0x6d6   : > { %v6292_v1 = vpop.eup %6291  ;;  %v5099_v13 = vadd.f32 1e-08, %v5067_v45 }
 0x6d7   : > { %v5377_v43 = vmul.f32 %v6290_v58, %v5376_v41  ;;  %v5383_v29 = vmul.f32 %v6292_v1, %v5098_v62  ;;  %vm5389_vm14 = vweird.f32 %v6292_v1 }
 0x6d8   : > { %6293 = vrsqrt.f32 %v5099_v13  ;;  %vm5390_vm0 = vmor %vm5388_vm15, %vm5389_vm14  ;;  %vm5398_vm3 = vweird.f32 %v5099_v13 }
 0x6d9   : > { %v5381_v12 = vsel %vm5380_vm13, %v6290_v58, %v5377_v43  ;;  %v5384_v14 = vmul.f32 %v6292_v1, %v5383_v29 }
 0x6da   : > { %v5449_v42 = vmul.f32 %v5381_v12, %v10081_v39 }
 0x6db   : > { %v5385_v23 = vmul.f32 0.5, %v5384_v14  ;;  %v5034_v10 = vpop.xlane.xlu2 %5033 }
 0x6dc   : > { %5481 = vst.msk [vmem:[%s9873_s24 + $0xd8] sm:$0xff] %vm298_vm4, %v5449_v42  ;;  %v5068_v20 = vmul.f32 %v5034_v10, %v10610_v19 }
 0x6dd   : > { %v5386_v33 = vsub.f32 1.5, %v5385_v23 }
 0x6de   : > { %v6294_v32 = vpop.eup %6293  ;;  %v5100_v17 = vadd.f32 1e-08, %v5068_v20 }
 0x6df   : > { %v5387_v11 = vmul.f32 %v6292_v1, %v5386_v33  ;;  %v5393_v30 = vmul.f32 %v6294_v32, %v5099_v13  ;;  %vm5399_vm2 = vweird.f32 %v6294_v32 }
 0x6e0   : > { %6295 = vrsqrt.f32 %v5100_v17  ;;  %vm5400_vm5 = vmor %vm5398_vm3, %vm5399_vm2  ;;  %vm5408_vm7 = vweird.f32 %v5100_v17 }
 0x6e1   : > { %v5391_v5 = vsel %vm5390_vm0, %v6292_v1, %v5387_v11  ;;  %v5394_v63 = vmul.f32 %v6294_v32, %v5393_v30 }
 0x6e2   : > { %v5450_v39 = vmul.f32 %v5391_v5, %v10099_v8 }
 0x6e3   : > { %v5395_v7 = vmul.f32 0.5, %v5394_v63  ;;  %v5037_v6 = vpop.xlane.xlu0 %5036 }
 0x6e4   : > { %5482 = vst.msk [vmem:[%s9873_s24 + $0xe0] sm:$0xff] %vm298_vm4, %v5450_v39  ;;  %v5069_v48 = vmul.f32 %v5037_v6, %v10610_v19 }
 0x6e5   : > { %v5396_v16 = vsub.f32 1.5, %v5395_v7 }
 0x6e6   : > { %v6296_v38 = vpop.eup %6295  ;;  %v5101_v15 = vadd.f32 1e-08, %v5069_v48 }
 0x6e7   : > { %v5397_v60 = vmul.f32 %v6294_v32, %v5396_v16  ;;  %v5403_v35 = vmul.f32 %v6296_v38, %v5100_v17  ;;  %vm5409_vm6 = vweird.f32 %v6296_v38 }
 0x6e8   : > { %6297 = vrsqrt.f32 %v5101_v15  ;;  %vm5410_vm1 = vmor %vm5408_vm7, %vm5409_vm6  ;;  %vm5418_vm9 = vweird.f32 %v5101_v15 }
 0x6e9   : > { %v5401_v50 = vsel %vm5400_vm5, %v6294_v32, %v5397_v60  ;;  %v5404_v21 = vmul.f32 %v6296_v38, %v5403_v35 }
 0x6ea   : > { %v5451_v8 = vmul.f32 %v5401_v50, %v10117_v46 }
 0x6eb   : > { %v5405_v56 = vmul.f32 0.5, %v5404_v21 }
 0x6ec   : > { %5483 = vst.msk [vmem:[%s9873_s24 + $0xe8] sm:$0xff] %vm298_vm4, %v5451_v8 }
 0x6ed   : > { %v5406_v27 = vsub.f32 1.5, %v5405_v56 }
 0x6ee   : > { %v6298_v19 = vpop.eup %6297 }
 0x6ef   : > { %v5407_v0 = vmul.f32 %v6296_v38, %v5406_v27  ;;  %v5413_v31 = vmul.f32 %v6298_v19, %v5101_v15  ;;  %vm5419_vm8 = vweird.f32 %v6298_v19 }
 0x6f0   : > { %vm5420_vm10 = vmor %vm5418_vm9, %vm5419_vm8 }
 0x6f1   : > { %v5411_v61 = vsel %vm5410_vm1, %v6296_v38, %v5407_v0  ;;  %v5414_v18 = vmul.f32 %v6298_v19, %v5413_v31 }
 0x6f2   : > { %v5452_v59 = vmul.f32 %v5411_v61, %v10129_v52 }
 0x6f3   : > { %v5415_v24 = vmul.f32 0.5, %v5414_v18 }
 0x6f4   : > { %5484 = vst.msk [vmem:[%s9873_s24 + $0xf0] sm:$0xff] %vm298_vm4, %v5452_v59 }
 0x6f5   : > { %v5416_v49 = vsub.f32 1.5, %v5415_v24 }
 0x6f7   : > { %v5417_v46 = vmul.f32 %v6298_v19, %v5416_v49 }
 0x6f9   : > { %v5421_v36 = vsel %vm5420_vm10, %v6298_v19, %v5417_v46 }
 0x6fa   : > { %v5453_v57 = vmul.f32 %v5421_v36, %v10140_v37 }
 0x6fc   : > { %5485 = vst.msk [vmem:[%s9873_s24 + $0xf8] sm:$0xff] %vm298_vm4, %v5453_v57 }
 0x6fd PF: > { %s15_s18 = sadd.s32 1, %s6357_s18  }
 0x6fe   : > { %p12_p4 = scmp.ge.s32.totalorder %s15_s18, 4  }
 0x700   :  { %14 = sbr.rel (!%p12_p4) target bundleno = 1 (0x1), region = 88 }

</bundles_post_ra>
